<compile_context>
chip_gen: v5e
topology: v5e:2x2
jax: 0.10.0
libtpu: 0.0.40
codegen_flags: <defaults>
</compile_context>

<pallas_src>
import functools
import math

import jax
import jax.numpy as jnp
from jax.experimental import pallas as pl
from jax.experimental.pallas import tpu as pltpu


# ----------------------------------------------------------------------------
# Activations (f32 on the VPU).
# ----------------------------------------------------------------------------
def _hardswish(v):
    # torch.nn.Hardswish: x * relu6(x + 3) / 6
    return v * jnp.clip(v + 3.0, 0.0, 6.0) * (1.0 / 6.0)


def _relu(v):
    return jnp.maximum(v, 0.0)


def _identity(v):
    return v


_H1_RAW = 2056      # first hidden width of the AE encoder
_H1_PAD = 2176      # next multiple of 128 >= 2056 (lane-dense)
_TAIL_PAD = 128     # padded width for the 64 / code_size / 15 / num_classes tail


# ----------------------------------------------------------------------------
# Pallas kernel: whole AE_NET forward for one batch block, fully in VMEM.
#   layers: L1+HS, L2(BN)+HS, L3(BN)+HS, L4(BN)+HS, (L5 o L6)+ReLU, L7
# ----------------------------------------------------------------------------
def _ae_net_kernel(x_ref, w1_ref, w2_ref, w3_ref, wt_ref, sh_ref, out_ref):
    def layer(h, w, shift, act):
        # bf16 x bf16 -> f32 on the MXU; shift add + activation in f32.
        y = jnp.dot(h.astype(jnp.bfloat16), w,
                    preferred_element_type=jnp.float32)
        return act(y + shift)

    h = x_ref[...]
    h = layer(h, w1_ref[...], sh_ref[0:1, :_H1_PAD], _hardswish)          # L1
    h = layer(h, w2_ref[...], sh_ref[1:2, :1024], _hardswish)             # L2
    h = layer(h, w3_ref[...], sh_ref[2:3, :256], _hardswish)              # L3
    # Tail weights live in one packed (512, 128) bf16 slab; static slices.
    h = layer(h, wt_ref[0:256, :], sh_ref[3:4, :_TAIL_PAD], _hardswish)   # L4
    h = layer(h, wt_ref[256:384, :], sh_ref[4:5, :_TAIL_PAD], _relu)      # L5∘L6
    out_ref[...] = layer(h, wt_ref[384:512, :],
                         sh_ref[5:6, :_TAIL_PAD], _identity)              # L7


def ae_net_forward(x, params, num_classes):
    """x: (B, input_size**2) f32.  params: (W1, W2, W3, W_tail, shifts) with
    weights bf16 (scale folded in) and shifts (6, 2176) f32.
    Returns logits (B, num_classes) f32."""
    w1, w2, w3, w_tail, shifts = params
    B, F = x.shape

    TB = min(B, 256)                       # batch block per grid step
    n_blocks = pl.cdiv(B, TB)
    B_pad = n_blocks * TB
    if B_pad != B:                         # ragged tail block -> pad batch
        x = jnp.pad(x, ((0, B_pad - B), (0, 0)))

    const = lambda i: (0, 0)               # weights: fetched once, stay resident
    in_specs = [
        pl.BlockSpec((TB, F), lambda i: (i, 0)),
        pl.BlockSpec(w1.shape, const),
        pl.BlockSpec(w2.shape, const),
        pl.BlockSpec(w3.shape, const),
        pl.BlockSpec(w_tail.shape, const),
        pl.BlockSpec(shifts.shape, const),
    ]
    out_spec = pl.BlockSpec((TB, _TAIL_PAD), lambda i: (i, 0))

    # Advisory cost hint for the XLA scheduler.
    per_row_macs = (F * _H1_PAD + _H1_PAD * 1024 + 1024 * 256
                    + 256 * _TAIL_PAD + 2 * _TAIL_PAD * _TAIL_PAD)
    flops = 2 * B_pad * per_row_macs
    bytes_accessed = (sum(int(p.size) * p.dtype.itemsize
                          for p in (w1, w2, w3, w_tail, shifts))
                      + int(x.size) * 4 + B_pad * _TAIL_PAD * 4)

    # "parallel" on a 2-TC chip (v7x) duplicates the full resident-weight DMA
    # per core; only worth it when there are >= 2 batch blocks of 256 rows.
    semantics = ("arbitrary",) if n_blocks == 1 else ("parallel",)

    out = pl.pallas_call(
        _ae_net_kernel,
        out_shape=jax.ShapeDtypeStruct((B_pad, _TAIL_PAD), jnp.float32),
        grid=(n_blocks,),
        in_specs=in_specs,
        out_specs=out_spec,
        compiler_params=pltpu.CompilerParams(
            dimension_semantics=semantics,
            vmem_limit_bytes=32 << 20),
        cost_estimate=pl.CostEstimate(
            flops=flops, transcendentals=0, bytes_accessed=bytes_accessed),
    )(x, w1, w2, w3, w_tail, shifts)

    # Drop batch padding and the lane padding of the logits.
    return out[:B, :num_classes]


# ----------------------------------------------------------------------------
# Deterministic parameter construction (synthetic — no checkpoint loading).
# TODO(synk): AE_NET loads 'model.h5' with torch.load; weights are synthesized
# in-script instead (same shapes / eval-mode semantics).
# ----------------------------------------------------------------------------
def build_params(key, input_size, code_size, num_classes):
    in_feat = input_size * input_size

    def linear(k, fin, fout):
        kw, kb = jax.random.split(k)
        bound = 1.0 / math.sqrt(fin)
        w = jax.random.uniform(kw, (fin, fout), jnp.float32, -bound, bound)
        b = jax.random.uniform(kb, (fout,), jnp.float32, -bound, bound)
        return w, b

    def bn_params(k, n):
        k1, k2, k3, k4 = jax.random.split(k, 4)
        gamma = 1.0 + 0.1 * jax.random.normal(k1, (n,), jnp.float32)
        beta = 0.1 * jax.random.normal(k2, (n,), jnp.float32)
        mean = 0.1 * jax.random.normal(k3, (n,), jnp.float32)
        var = 1.0 + 0.1 * jnp.abs(jax.random.normal(k4, (n,), jnp.float32))
        return gamma, beta, mean, var

    ks = jax.random.split(key, 10)
    w1, b1 = linear(ks[0], in_feat, _H1_RAW)
    w2, b2 = linear(ks[1], _H1_RAW, 1024); bn2 = bn_params(ks[2], 1024)
    w3, b3 = linear(ks[3], 1024, 256);     bn3 = bn_params(ks[4], 256)
    w4, b4 = linear(ks[5], 256, 64);       bn4 = bn_params(ks[6], 64)
    w5, b5 = linear(ks[7], 64, code_size)
    w6, b6 = linear(ks[8], code_size, 15)
    w7, b7 = linear(ks[9], 15, num_classes)
    raw = (w1, b1, w2, b2, bn2, w3, b3, bn3, w4, b4, bn4,
           w5, b5, w6, b6, w7, b7)

    eps = 1e-5

    def fold(w, b, bnp):
        # Fold eval-mode BN into the weight columns (scale) + a shift row.
        if bnp is None:
            return w, b
        gamma, beta, mean, var = bnp
        scale = gamma * jax.lax.rsqrt(var + eps)
        return w * scale[None, :], (b - mean) * scale + beta

    w2f, s2 = fold(w2, b2, bn2)
    w3f, s3 = fold(w3, b3, bn3)
    w4f, s4 = fold(w4, b4, bn4)
    # Compose L5 (identity-activated code layer) with the classifier's L6.
    w56 = w5 @ w6                      # (64, 15)
    s56 = b5 @ w6 + b6                 # (15,)

    def padw(w, rows, cols):
        return jnp.zeros((rows, cols), jnp.float32).at[
            :w.shape[0], :w.shape[1]].set(w)

    def pads(s):
        return jnp.zeros((_H1_PAD,), jnp.float32).at[:s.shape[0]].set(s)

    w1_p = padw(w1, in_feat, _H1_PAD)          # (in_feat, 2176)
    w2_p = padw(w2f, _H1_PAD, 1024)            # (2176, 1024)
    w3_p = w3f                                 # (1024, 256)
    w4_p = padw(w4f, 256, _TAIL_PAD)           # (256, 128)
    w56_p = padw(w56, _TAIL_PAD, _TAIL_PAD)    # (128, 128)
    w7_p = padw(w7, _TAIL_PAD, _TAIL_PAD)      # (128, 128)
    w_tail = jnp.concatenate([w4_p, w56_p, w7_p], axis=0)   # (512, 128)

    shifts = jnp.stack([pads(b1), pads(s2), pads(s3),
                        pads(s4), pads(s56), pads(b7)], axis=0)  # (6,2176) f32

    kernel_params = (w1_p.astype(jnp.bfloat16),
                     w2_p.astype(jnp.bfloat16),
                     w3_p.astype(jnp.bfloat16),
                     w_tail.astype(jnp.bfloat16),
                     shifts)
    return kernel_params, raw


# ----------------------------------------------------------------------------
# References.
# ----------------------------------------------------------------------------
def reference_forward_folded(x, params, num_classes):
    """Pure-JAX reference using the exact same folded/padded bf16 params."""
    w1, w2, w3, wt, sh = params
    layers = ((w1, _H1_PAD, _hardswish),
              (w2, 1024, _hardswish),
              (w3, 256, _hardswish),
              (wt[0:256], _TAIL_PAD, _hardswish),
              (wt[256:384], _TAIL_PAD, _relu),
              (wt[384:512], _TAIL_PAD, _identity))
    h = x
    for i, (w, width, act) in enumerate(layers):
        y = jnp.dot(h.astype(jnp.bfloat16), w,
                    preferred_element_type=jnp.float32)
        h = act(y + sh[i:i + 1, :width])
    return h[:, :num_classes]


def reference_forward_f32(x, raw, eps=1e-5):
    """Unfolded f32 emulation of the original PyTorch AE_NET.forward (eval)."""
    (w1, b1, w2, b2, bn2, w3, b3, bn3, w4, b4, bn4,
     w5, b5, w6, b6, w7, b7) = raw

    def bn_eval(y, p):
        gamma, beta, mean, var = p
        return (y - mean) * gamma * jax.lax.rsqrt(var + eps) + beta

    h = _hardswish(x @ w1 + b1)
    h = _hardswish(bn_eval(h @ w2 + b2, bn2))
    h = _hardswish(bn_eval(h @ w3 + b3, bn3))
    h = _hardswish(bn_eval(h @ w4 + b4, bn4))
    code = h @ w5 + b5                       # feature_extractor.get_coding
    h = _relu(code @ w6 + b6)                # classifier
    return h @ w7 + b7


if __name__ == "__main__":
    # Small shapes consistent with the module: AE_NET feeds flat
    # (B, input_size**2) vectors; hidden widths are fixed by the module.
    INPUT_SIZE = 16      # -> 256 input features
    CODE_SIZE = 30
    NUM_CLASSES = 5
    BATCH = 8

    key = jax.random.PRNGKey(0)
    key, kx, kp = jax.random.split(key, 3)
    x = jax.random.normal(kx, (BATCH, INPUT_SIZE * INPUT_SIZE), jnp.float32)
    params, raw = build_params(kp, INPUT_SIZE, CODE_SIZE, NUM_CLASSES)

    fwd = jax.jit(functools.partial(ae_net_forward, num_classes=NUM_CLASSES))
    out = jax.block_until_ready(fwd(x, params))

    assert out.shape == (BATCH, NUM_CLASSES), out.shape
    assert out.dtype == jnp.float32

    # (1) tight check against a reference that uses the same folded bf16 math
    ref_folded = reference_forward_folded(x, params, NUM_CLASSES)
    err_folded = float(jnp.max(jnp.abs(out - ref_folded)))
    assert jnp.allclose(out, ref_folded, rtol=1e-2, atol=1e-2), (
        f"mismatch vs folded-param reference; max abs err = {err_folded}")

    # (2) semantics check against the unfolded f32 original-module math
    ref_f32 = reference_forward_f32(x, raw)
    err_f32 = float(jnp.max(jnp.abs(out - ref_f32)))
    assert jnp.allclose(out, ref_f32, rtol=1e-1, atol=1e-1), (
        f"mismatch vs f32 module reference; max abs err = {err_f32}")

    print("KERNEL_OK")
</pallas_src>

<mosaic_0001>
module attributes {stable_mosaic.version = 11 : i64} {
  func.func @_ae_net_kernel(%arg0: i32, %arg1: memref<8x256xf32, #tpu.memory_space<vmem>>, %arg2: memref<256x2176xbf16, #tpu.memory_space<vmem>>, %arg3: memref<2176x1024xbf16, #tpu.memory_space<vmem>>, %arg4: memref<1024x256xbf16, #tpu.memory_space<vmem>>, %arg5: memref<512x128xbf16, #tpu.memory_space<vmem>>, %arg6: memref<6x2176xf32, #tpu.memory_space<vmem>>, %arg7: memref<8x128xf32, #tpu.memory_space<vmem>>) attributes {dimension_semantics = [#tpu.dimension_semantics<arbitrary>], iteration_bounds = array<i64: 1>, scalar_prefetch = 0 : i64, scratch_operands = 0 : i64, tpu.core_type = #tpu.core_type<tc>, window_params = [{transform_indices = @transform_0, window_bounds = array<i64: 8, 256>}, {pipeline_mode = #tpu.pipeline_mode<synchronous>, transform_indices = @transform_1, window_bounds = array<i64: 256, 2176>}, {pipeline_mode = #tpu.pipeline_mode<synchronous>, transform_indices = @transform_2, window_bounds = array<i64: 2176, 1024>}, {pipeline_mode = #tpu.pipeline_mode<synchronous>, transform_indices = @transform_3, window_bounds = array<i64: 1024, 256>}, {pipeline_mode = #tpu.pipeline_mode<synchronous>, transform_indices = @transform_4, window_bounds = array<i64: 512, 128>}, {pipeline_mode = #tpu.pipeline_mode<synchronous>, transform_indices = @transform_5, window_bounds = array<i64: 6, 2176>}, {transform_indices = @transform_6, window_bounds = array<i64: 8, 128>}]} {
    %c0 = arith.constant 0 : index
    %c0_0 = arith.constant 0 : index
    %0 = vector.load %arg1[%c0, %c0_0] : memref<8x256xf32, #tpu.memory_space<vmem>>, vector<8x256xf32>
    %c0_1 = arith.constant 0 : index
    %c0_2 = arith.constant 0 : index
    %1 = vector.load %arg2[%c0_1, %c0_2] : memref<256x2176xbf16, #tpu.memory_space<vmem>>, vector<256x2176xbf16>
    %c0_3 = arith.constant 0 : index
    %c0_4 = arith.constant 0 : index
    %2 = vector.load %arg6[%c0_3, %c0_4] : memref<6x2176xf32, #tpu.memory_space<vmem>>, vector<1x2176xf32>
    %3 = arith.truncf %0 : vector<8x256xf32> to vector<8x256xbf16>
    %cst = arith.constant dense<0.000000e+00> : vector<8x2176xf32>
    %4 = tpu.matmul %3, %1, %cst {dimension_numbers = #tpu.dot_dimension_numbers<[1], [0], [0], [1], [0, 0, 1, 1], [], []>} : vector<8x256xbf16>, vector<256x2176xbf16>, vector<8x2176xf32> -> vector<8x2176xf32>
    %5 = vector.broadcast %2 : vector<1x2176xf32> to vector<8x2176xf32>
    %6 = arith.addf %4, %5 : vector<8x2176xf32>
    %cst_5 = arith.constant 3.000000e+00 : f32
    %7 = vector.broadcast %cst_5 : f32 to vector<8x2176xf32>
    %8 = arith.addf %6, %7 : vector<8x2176xf32>
    %cst_6 = arith.constant 0.000000e+00 : f32
    %cst_7 = arith.constant 6.000000e+00 : f32
    %9 = vector.broadcast %cst_6 : f32 to vector<8x2176xf32>
    %10 = arith.maximumf %9, %8 : vector<8x2176xf32>
    %11 = vector.broadcast %cst_7 : f32 to vector<8x2176xf32>
    %12 = arith.minimumf %11, %10 : vector<8x2176xf32>
    %13 = arith.mulf %6, %12 : vector<8x2176xf32>
    %cst_8 = arith.constant 0.166666672 : f32
    %14 = vector.broadcast %cst_8 : f32 to vector<8x2176xf32>
    %15 = arith.mulf %13, %14 : vector<8x2176xf32>
    %c0_9 = arith.constant 0 : index
    %c0_10 = arith.constant 0 : index
    %16 = vector.load %arg3[%c0_9, %c0_10] : memref<2176x1024xbf16, #tpu.memory_space<vmem>>, vector<2176x1024xbf16>
    %c1 = arith.constant 1 : index
    %c0_11 = arith.constant 0 : index
    %17 = vector.load %arg6[%c1, %c0_11] : memref<6x2176xf32, #tpu.memory_space<vmem>>, vector<1x1024xf32>
    %18 = arith.truncf %15 : vector<8x2176xf32> to vector<8x2176xbf16>
    %cst_12 = arith.constant dense<0.000000e+00> : vector<8x1024xf32>
    %19 = tpu.matmul %18, %16, %cst_12 {dimension_numbers = #tpu.dot_dimension_numbers<[1], [0], [0], [1], [0, 0, 1, 1], [], []>} : vector<8x2176xbf16>, vector<2176x1024xbf16>, vector<8x1024xf32> -> vector<8x1024xf32>
    %20 = vector.broadcast %17 : vector<1x1024xf32> to vector<8x1024xf32>
    %21 = arith.addf %19, %20 : vector<8x1024xf32>
    %cst_13 = arith.constant 3.000000e+00 : f32
    %22 = vector.broadcast %cst_13 : f32 to vector<8x1024xf32>
    %23 = arith.addf %21, %22 : vector<8x1024xf32>
    %cst_14 = arith.constant 0.000000e+00 : f32
    %cst_15 = arith.constant 6.000000e+00 : f32
    %24 = vector.broadcast %cst_14 : f32 to vector<8x1024xf32>
    %25 = arith.maximumf %24, %23 : vector<8x1024xf32>
    %26 = vector.broadcast %cst_15 : f32 to vector<8x1024xf32>
    %27 = arith.minimumf %26, %25 : vector<8x1024xf32>
    %28 = arith.mulf %21, %27 : vector<8x1024xf32>
    %cst_16 = arith.constant 0.166666672 : f32
    %29 = vector.broadcast %cst_16 : f32 to vector<8x1024xf32>
    %30 = arith.mulf %28, %29 : vector<8x1024xf32>
    %c0_17 = arith.constant 0 : index
    %c0_18 = arith.constant 0 : index
    %31 = vector.load %arg4[%c0_17, %c0_18] : memref<1024x256xbf16, #tpu.memory_space<vmem>>, vector<1024x256xbf16>
    %c2 = arith.constant 2 : index
    %c0_19 = arith.constant 0 : index
    %32 = vector.load %arg6[%c2, %c0_19] : memref<6x2176xf32, #tpu.memory_space<vmem>>, vector<1x256xf32>
    %33 = arith.truncf %30 : vector<8x1024xf32> to vector<8x1024xbf16>
    %cst_20 = arith.constant dense<0.000000e+00> : vector<8x256xf32>
    %34 = tpu.matmul %33, %31, %cst_20 {dimension_numbers = #tpu.dot_dimension_numbers<[1], [0], [0], [1], [0, 0, 1, 1], [], []>} : vector<8x1024xbf16>, vector<1024x256xbf16>, vector<8x256xf32> -> vector<8x256xf32>
    %35 = vector.broadcast %32 : vector<1x256xf32> to vector<8x256xf32>
    %36 = arith.addf %34, %35 : vector<8x256xf32>
    %cst_21 = arith.constant 3.000000e+00 : f32
    %37 = vector.broadcast %cst_21 : f32 to vector<8x256xf32>
    %38 = arith.addf %36, %37 : vector<8x256xf32>
    %cst_22 = arith.constant 0.000000e+00 : f32
    %cst_23 = arith.constant 6.000000e+00 : f32
    %39 = vector.broadcast %cst_22 : f32 to vector<8x256xf32>
    %40 = arith.maximumf %39, %38 : vector<8x256xf32>
    %41 = vector.broadcast %cst_23 : f32 to vector<8x256xf32>
    %42 = arith.minimumf %41, %40 : vector<8x256xf32>
    %43 = arith.mulf %36, %42 : vector<8x256xf32>
    %cst_24 = arith.constant 0.166666672 : f32
    %44 = vector.broadcast %cst_24 : f32 to vector<8x256xf32>
    %45 = arith.mulf %43, %44 : vector<8x256xf32>
    %c0_25 = arith.constant 0 : index
    %c0_26 = arith.constant 0 : index
    %46 = vector.load %arg5[%c0_25, %c0_26] : memref<512x128xbf16, #tpu.memory_space<vmem>>, vector<256x128xbf16>
    %c3 = arith.constant 3 : index
    %c0_27 = arith.constant 0 : index
    %47 = vector.load %arg6[%c3, %c0_27] : memref<6x2176xf32, #tpu.memory_space<vmem>>, vector<1x128xf32>
    %48 = arith.truncf %45 : vector<8x256xf32> to vector<8x256xbf16>
    %cst_28 = arith.constant dense<0.000000e+00> : vector<8x128xf32>
    %49 = tpu.matmul %48, %46, %cst_28 {dimension_numbers = #tpu.dot_dimension_numbers<[1], [0], [0], [1], [0, 0, 1, 1], [], []>} : vector<8x256xbf16>, vector<256x128xbf16>, vector<8x128xf32> -> vector<8x128xf32>
    %50 = vector.broadcast %47 : vector<1x128xf32> to vector<8x128xf32>
    %51 = arith.addf %49, %50 : vector<8x128xf32>
    %cst_29 = arith.constant 3.000000e+00 : f32
    %52 = vector.broadcast %cst_29 : f32 to vector<8x128xf32>
    %53 = arith.addf %51, %52 : vector<8x128xf32>
    %cst_30 = arith.constant 0.000000e+00 : f32
    %cst_31 = arith.constant 6.000000e+00 : f32
    %54 = vector.broadcast %cst_30 : f32 to vector<8x128xf32>
    %55 = arith.maximumf %54, %53 : vector<8x128xf32>
    %56 = vector.broadcast %cst_31 : f32 to vector<8x128xf32>
    %57 = arith.minimumf %56, %55 : vector<8x128xf32>
    %58 = arith.mulf %51, %57 : vector<8x128xf32>
    %cst_32 = arith.constant 0.166666672 : f32
    %59 = vector.broadcast %cst_32 : f32 to vector<8x128xf32>
    %60 = arith.mulf %58, %59 : vector<8x128xf32>
    %c256 = arith.constant 256 : index
    %c0_33 = arith.constant 0 : index
    %61 = vector.load %arg5[%c256, %c0_33] : memref<512x128xbf16, #tpu.memory_space<vmem>>, vector<128x128xbf16>
    %c4 = arith.constant 4 : index
    %c0_34 = arith.constant 0 : index
    %62 = vector.load %arg6[%c4, %c0_34] : memref<6x2176xf32, #tpu.memory_space<vmem>>, vector<1x128xf32>
    %63 = arith.truncf %60 : vector<8x128xf32> to vector<8x128xbf16>
    %cst_35 = arith.constant dense<0.000000e+00> : vector<8x128xf32>
    %64 = tpu.matmul %63, %61, %cst_35 {dimension_numbers = #tpu.dot_dimension_numbers<[1], [0], [0], [1], [0, 0, 1, 1], [], []>} : vector<8x128xbf16>, vector<128x128xbf16>, vector<8x128xf32> -> vector<8x128xf32>
    %65 = vector.broadcast %62 : vector<1x128xf32> to vector<8x128xf32>
    %66 = arith.addf %64, %65 : vector<8x128xf32>
    %cst_36 = arith.constant 0.000000e+00 : f32
    %67 = vector.broadcast %cst_36 : f32 to vector<8x128xf32>
    %68 = arith.maximumf %66, %67 : vector<8x128xf32>
    %c384 = arith.constant 384 : index
    %c0_37 = arith.constant 0 : index
    %69 = vector.load %arg5[%c384, %c0_37] : memref<512x128xbf16, #tpu.memory_space<vmem>>, vector<128x128xbf16>
    %c5 = arith.constant 5 : index
    %c0_38 = arith.constant 0 : index
    %70 = vector.load %arg6[%c5, %c0_38] : memref<6x2176xf32, #tpu.memory_space<vmem>>, vector<1x128xf32>
    %71 = arith.truncf %68 : vector<8x128xf32> to vector<8x128xbf16>
    %cst_39 = arith.constant dense<0.000000e+00> : vector<8x128xf32>
    %72 = tpu.matmul %71, %69, %cst_39 {dimension_numbers = #tpu.dot_dimension_numbers<[1], [0], [0], [1], [0, 0, 1, 1], [], []>} : vector<8x128xbf16>, vector<128x128xbf16>, vector<8x128xf32> -> vector<8x128xf32>
    %73 = vector.broadcast %70 : vector<1x128xf32> to vector<8x128xf32>
    %74 = arith.addf %72, %73 : vector<8x128xf32>
    %c0_40 = arith.constant 0 : index
    %c0_41 = arith.constant 0 : index
    %75 = vector.load %arg7[%c0_40, %c0_41] : memref<8x128xf32, #tpu.memory_space<vmem>>, vector<8x128xf32>
    tpu.vector_store %arg7[%c0_40, %c0_41], %74 {strides = array<i32>} : memref<8x128xf32, #tpu.memory_space<vmem>>, vector<8x128xf32>,
    return
  }
  func.func @transform_0(%arg0: i32) -> (i32, i32) {
    %c0_i32 = arith.constant 0 : i32
    %c0_i32_0 = arith.constant 0 : i32
    return %arg0, %c0_i32 : i32, i32
  }
  func.func @transform_1(%arg0: i32) -> (i32, i32) {
    %c0_i32 = arith.constant 0 : i32
    %c0_i32_0 = arith.constant 0 : i32
    %c0_i32_1 = arith.constant 0 : i32
    return %c0_i32, %c0_i32_0 : i32, i32
  }
  func.func @transform_2(%arg0: i32) -> (i32, i32) {
    %c0_i32 = arith.constant 0 : i32
    %c0_i32_0 = arith.constant 0 : i32
    %c0_i32_1 = arith.constant 0 : i32
    return %c0_i32, %c0_i32_0 : i32, i32
  }
  func.func @transform_3(%arg0: i32) -> (i32, i32) {
    %c0_i32 = arith.constant 0 : i32
    %c0_i32_0 = arith.constant 0 : i32
    %c0_i32_1 = arith.constant 0 : i32
    return %c0_i32, %c0_i32_0 : i32, i32
  }
  func.func @transform_4(%arg0: i32) -> (i32, i32) {
    %c0_i32 = arith.constant 0 : i32
    %c0_i32_0 = arith.constant 0 : i32
    %c0_i32_1 = arith.constant 0 : i32
    return %c0_i32, %c0_i32_0 : i32, i32
  }
  func.func @transform_5(%arg0: i32) -> (i32, i32) {
    %c0_i32 = arith.constant 0 : i32
    %c0_i32_0 = arith.constant 0 : i32
    %c0_i32_1 = arith.constant 0 : i32
    return %c0_i32, %c0_i32_0 : i32, i32
  }
  func.func @transform_6(%arg0: i32) -> (i32, i32) {
    %c0_i32 = arith.constant 0 : i32
    %c0_i32_0 = arith.constant 0 : i32
    return %arg0, %c0_i32 : i32, i32
  }
}

</mosaic_0001>

<bundles_post_ra>
// kernel: ae_net_forward.1
= control target key start
LH: loop header
LB: loop body
LE: loop exit
PB: predicated region body
PF: predicated region fallthrough
CT: control target
= control target key end

     0   :  { %11 = vsyncpa [#allocation3], 0  ;;  %s20452_s0 = inlined_call_operand.hbm [shape: f32[8,256], index: 0, kind: input, shape index: {}]   ;;  %s20453_s1 = inlined_call_operand.hbm [shape: bf16[256,2176], index: 1, kind: input, shape index: {}]   ;;  %s20454_s2 = inlined_call_operand.hbm [shape: bf16[2176,1024], index: 2, kind: input, shape index: {}]   ;;  %s20455_s3 = inlined_call_operand.hbm [shape: bf16[1024,256], index: 3, kind: input, shape index: {}]   ;;  %s20456_s4 = inlined_call_operand.hbm [shape: bf16[512,128], index: 4, kind: input, shape index: {}]   ;;  %s20457_s5 = inlined_call_operand.hbm [shape: f32[6,2176], index: 5, kind: input, shape index: {}]   ;;  %s20458_s6 = inlined_call_operand.hbm [shape: f32[8,128], index: 6, kind: output, shape index: {}]  }
   0x1   :  { %12 = vsyncpa [#allocation6], 0 }
   0x2   :  { %13 = vsyncpa [#allocation9], 0 }
   0x3   :  { %14 = vsyncpa [#allocation12], 0  ;;  %s31_s23 = sshll.u32 %s20453_s1, 4  ;;  %s32_s23 = int_to_ptr.hbm [resolvable:$true] %s31_s23 }
   0x4   :  { %15 = vsyncpa [#allocation4], 0  ;;  %s19866_s24 = smov [#allocation5]   ;;  %s57_s28 = sshll.u32 %s20455_s3, 4  ;;  %s58_s28 = int_to_ptr.hbm [resolvable:$true] %s57_s28 }
   0x5   :  { %s33_s25 = sshll.u32 %s19866_s24, 4  ;;  %s19867_s29 = smov 1088   ;;  %s34_s25 = int_to_ptr.vmem [resolvable:$true] %s33_s25 }
   0x6   :  { %s19868_s30 = smov 68   ;;  %s19869_s7 = smov [#allocation8]  }
   0x7   :  { %39 = dma.hbm_to_vmem [thread:$0]  %s32_s23, 34816, %s34_s25, [#allocation6], %s19867_s29, %s19867_s29, %s19868_s30  }
   0x8   :  { %s59_s8 = sshll.u32 %s19869_s7, 4  ;;  %s19870_s9 = smov 128   ;;  %s60_s8 = int_to_ptr.vmem [resolvable:$true] %s59_s8 }
   0x9   :  { %s19871_s10 = smov 8   ;;  %s21_s12 = sshll.u32 %s20452_s0, 4  ;;  %s22_s12 = int_to_ptr.hbm [resolvable:$true] %s21_s12 }
   0xa   :  { %65 = dma.hbm_to_vmem [thread:$0]  %s58_s28, 16384, %s60_s8, [#allocation9], %s19870_s9, %s19870_s9, %s19871_s10  }
   0xb   :  { %s19872_s13 = smov [#allocation2]   ;;  %s44_s16 = sshll.u32 %s20454_s2, 4  ;;  %s45_s16 = int_to_ptr.hbm [resolvable:$true] %s44_s16 }
   0xc   :  { %s23_s14 = sshll.u32 %s19872_s13, 4  ;;  %s19873_s17 = smov [#allocation7]   ;;  %s24_s14 = int_to_ptr.vmem [resolvable:$true] %s23_s14 }
   0xd   :  { %26 = dma.hbm_to_vmem [thread:$0]  %s22_s12, 256, %s24_s14, [#allocation3]  }
   0xe   :  { %s46_s18 = sshll.u32 %s19873_s17, 4  ;;  %s19874_s19 = smov 512   ;;  %s47_s18 = int_to_ptr.vmem [resolvable:$true] %s46_s18 }
   0xf   :  { %s19875_s20 = smov 32   ;;  %s70_s0 = sshll.u32 %s20456_s4, 4  ;;  %s71_s0 = int_to_ptr.hbm [resolvable:$true] %s70_s0 }
  0x10   :  { %52 = dma.hbm_to_vmem [thread:$0]  %s45_s16, 139264, %s47_s18, [#allocation6], %s19874_s19, %s19874_s19, %s19875_s20  }
  0x11   :  { %s19876_s23 = smov [#allocation10]   ;;  %s84_s2 = sshll.u32 %s20457_s5, 4  ;;  %s85_s2 = int_to_ptr.hbm [resolvable:$true] %s84_s2 }
  0x12   :  { %s72_s24 = sshll.u32 %s19876_s23, 4  ;;  %s19877_s27 = smov 64   ;;  %s73_s24 = int_to_ptr.vmem [resolvable:$true] %s72_s24 }
  0x13   :  { %s19878_s28 = smov 4   ;;  %s19879_s29 = smov [#allocation11]  }
  0x14   :  { %78 = dma.hbm_to_vmem [thread:$0]  %s71_s0, 4096, %s73_s24, [#allocation9], %s19877_s27, %s19877_s27, %s19878_s28  }
  0x15   :  { %s86_s30 = sshll.u32 %s19879_s29, 4  ;;  %s87_s30 = int_to_ptr.vmem [resolvable:$true] %s86_s30 }
  0x16   :  { %89 = dma.hbm_to_vmem [thread:$0]  %s85_s2, 2176, %s87_s30, [#allocation12]  }
  0x17   :  { %19856 = dma.done.wait [#allocation3], 256  }
  0x18   :  { %19857 = vsyncadd [#allocation3], 4294967040 }
  0x19   :  { %19858 = dma.done.wait [#allocation6], 174080  }
  0x1a   :  { %19859 = vsyncadd [#allocation6], 4294793216 }
  0x1b   :  { %19860 = dma.done.wait [#allocation9], 20480  }
  0x1c   :  { %19861 = vsyncadd [#allocation9], 4294946816 }
  0x1d   :  { %19862 = dma.done.wait [#allocation12], 2176  }
  0x1e   :  { %19863 = vsyncadd [#allocation12], 4294965120  ;;  %v12550_v0 = vld [vmem:[#allocation5 + $0x3b8] sm:$0xf]  ;;  %v18279_v1 = vld [vmem:[#allocation5 + $0x3f8] sm:$0xf0] }
  0x1f   :  { %v13094_v2 = vld [vmem:[#allocation5 + $0x7f8] sm:$0xf]  ;;  %v12551_v3 = vor.u32 %v18279_v1, %v12550_v0  ;;  %v18415_v4 = vld [vmem:[#allocation5 + $0x838] sm:$0xf0]  ;;  %v12552_v6 = vld [vmem:[#allocation5 + $0x3fc] sm:$0xf0] }
  0x20   :  { %v18271_v5 = vld [vmem:[#allocation5 + $0x3bc] sm:$0xf]  ;;  %v13095_v7 = vor.u32 %v18415_v4, %v13094_v2  ;;  %v13096_v10 = vld [vmem:[#allocation5 + $0x83c] sm:$0xf0]  ;;  %v12482_v11 = vld [vmem:[#allocation5 + $0x330] sm:$0xf] }
  0x21   :  { %v12555_v8 = vor.u32 %v18271_v5, %v12552_v6  ;;  %v18407_v9 = vld [vmem:[#allocation5 + $0x7fc] sm:$0xf]  ;;  %1828 = vmatpush.bf16.msra.mxu0 %v12551_v3  ;;  %v18262_v13 = vld [vmem:[#allocation5 + $0x370] sm:$0xf0]  ;;  %v13026_v14 = vld [vmem:[#allocation5 + $0x770] sm:$0xf] }
  0x22   :  { %v13099_v12 = vor.u32 %v18407_v9, %v13096_v10  ;;  %v18398_v15 = vld [vmem:[#allocation5 + $0x7b0] sm:$0xf0]  ;;  %1841 = vmatpush.bf16.msra.mxu1 %v13095_v7  ;;  %v12483_v16 = vor.u32 %v18262_v13, %v12482_v11  ;;  %v12484_v19 = vld [vmem:[#allocation5 + $0x374] sm:$0xf0]  ;;  %v12414_v23 = vld [vmem:[#allocation5 + $0x2a8] sm:$0xf] }
  0x23   :  { %1854 = vmatpush.bf16.msra.mxu2 %v12555_v8  ;;  %v13027_v17 = vor.u32 %v18398_v15, %v13026_v14  ;;  %v18254_v18 = vld [vmem:[#allocation5 + $0x334] sm:$0xf]  ;;  %v13028_v22 = vld [vmem:[#allocation5 + $0x7b4] sm:$0xf0]  ;;  %v18245_v24 = vld [vmem:[#allocation5 + $0x2e8] sm:$0xf0] }
  0x24   :  { %v18390_v20 = vld [vmem:[#allocation5 + $0x774] sm:$0xf]  ;;  %1867 = vmatpush.bf16.msra.mxu3 %v13099_v12  ;;  %v12487_v21 = vor.u32 %v18254_v18, %v12484_v19  ;;  %v12958_v26 = vld [vmem:[#allocation5 + $0x6e8] sm:$0xf]  ;;  %v18381_v27 = vld [vmem:[#allocation5 + $0x728] sm:$0xf0]  ;;  %v12415_v29 = vor.u32 %v18245_v24, %v12414_v23 }
  0x25   :  { %v13031_v25 = vor.u32 %v18390_v20, %v13028_v22  ;;  %v18237_v28 = vld [vmem:[#allocation5 + $0x2ac] sm:$0xf]  ;;  %1829 = vmatpush.bf16.msra.mxu0 %v12483_v16  ;;  %v12416_v30 = vld [vmem:[#allocation5 + $0x2ec] sm:$0xf0]  ;;  %v12959_v33 = vor.u32 %v18381_v27, %v12958_v26  ;;  %v12346_v35 = vld [vmem:[#allocation5 + $0x220] sm:$0xf] }
  0x26   :  { %v18373_v31 = vld [vmem:[#allocation5 + $0x6ec] sm:$0xf]  ;;  %v12960_v32 = vld [vmem:[#allocation5 + $0x72c] sm:$0xf0]  ;;  %1842 = vmatpush.bf16.msra.mxu1 %v13027_v17  ;;  %v12419_v34 = vor.u32 %v18237_v28, %v12416_v30  ;;  %v18228_v36 = vld [vmem:[#allocation5 + $0x260] sm:$0xf0] }
  0x27   :  { %1855 = vmatpush.bf16.msra.mxu2 %v12487_v21  ;;  %v12890_v37 = vld [vmem:[#allocation5 + $0x660] sm:$0xf]  ;;  %v12963_v38 = vor.u32 %v18373_v31, %v12960_v32  ;;  %v18364_v39 = vld [vmem:[#allocation5 + $0x6a0] sm:$0xf0]  ;;  %v12348_v41 = vld [vmem:[#allocation5 + $0x264] sm:$0xf0]  ;;  %v12347_v44 = vor.u32 %v18228_v36, %v12346_v35 }
  0x28   :  { %1868 = vmatpush.bf16.msra.mxu3 %v13031_v25  ;;  %v18220_v40 = vld [vmem:[#allocation5 + $0x224] sm:$0xf]  ;;  %v12892_v43 = vld [vmem:[#allocation5 + $0x6a4] sm:$0xf0]  ;;  %v12891_v45 = vor.u32 %v18364_v39, %v12890_v37  ;;  %v12278_v47 = vld [vmem:[#allocation5 + $0x198] sm:$0xf] }
  0x29   :  { %v18356_v42 = vld [vmem:[#allocation5 + $0x664] sm:$0xf]  ;;  %1830 = vmatpush.bf16.msra.mxu0 %v12415_v29  ;;  %v12351_v46 = vor.u32 %v18220_v40, %v12348_v41  ;;  %v18211_v48 = vld [vmem:[#allocation5 + $0x1d8] sm:$0xf0]  ;;  %v12822_v49 = vld [vmem:[#allocation5 + $0x5d8] sm:$0xf] }
  0x2a   :  { %1843 = vmatpush.bf16.msra.mxu1 %v12959_v33  ;;  %v12895_v50 = vor.u32 %v18356_v42, %v12892_v43  ;;  %v18347_v51 = vld [vmem:[#allocation5 + $0x618] sm:$0xf0]  ;;  %v12280_v53 = vld [vmem:[#allocation5 + $0x1dc] sm:$0xf0]  ;;  %v12279_v56 = vor.u32 %v18211_v48, %v12278_v47  ;;  %v12210_v59 = vld [vmem:[#allocation5 + $0x110] sm:$0xf] }
  0x2b   :  { %1856 = vmatpush.bf16.msra.mxu2 %v12419_v34  ;;  %v18203_v52 = vld [vmem:[#allocation5 + $0x19c] sm:$0xf]  ;;  %v12824_v55 = vld [vmem:[#allocation5 + $0x61c] sm:$0xf0]  ;;  %v12823_v57 = vor.u32 %v18347_v51, %v12822_v49  ;;  %v18194_v60 = vld [vmem:[#allocation5 + $0x150] sm:$0xf0] }
  0x2c   :  { %1869 = vmatpush.bf16.msra.mxu3 %v12963_v38  ;;  %v18339_v54 = vld [vmem:[#allocation5 + $0x5dc] sm:$0xf]  ;;  %v12283_v58 = vor.u32 %v18203_v52, %v12280_v53  ;;  %v12754_v61 = vld [vmem:[#allocation5 + $0x550] sm:$0xf]  ;;  %v18330_v63 = vld [vmem:[#allocation5 + $0x590] sm:$0xf0]  ;;  %v12211_v4 = vor.u32 %v18194_v60, %v12210_v59 }
  0x2d   :  { %1831 = vmatpush.bf16.msra.mxu0 %v12347_v44  ;;  %v12827_v62 = vor.u32 %v18339_v54, %v12824_v55  ;;  %v18186_v0 = vld [vmem:[#allocation5 + $0x114] sm:$0xf]  ;;  %v12212_v1 = vld [vmem:[#allocation5 + $0x154] sm:$0xf0]  ;;  %v12755_v5 = vor.u32 %v18330_v63, %v12754_v61  ;;  %v12142_v7 = vld [vmem:[#allocation5 + $0x88] sm:$0xf] }
  0x2e   :  { %1844 = vmatpush.bf16.msra.mxu1 %v12891_v45  ;;  %v18322_v2 = vld [vmem:[#allocation5 + $0x554] sm:$0xf]  ;;  %v12756_v3 = vld [vmem:[#allocation5 + $0x594] sm:$0xf0]  ;;  %v12215_v6 = vor.u32 %v18186_v0, %v12212_v1  ;;  %v18177_v8 = vld [vmem:[#allocation5 + $0xc8] sm:$0xf0] }
  0x2f   :  { %1857 = vmatpush.bf16.msra.mxu2 %v12351_v46  ;;  %v12686_v9 = vld [vmem:[#allocation5 + $0x4c8] sm:$0xf]  ;;  %v12759_v10 = vor.u32 %v18322_v2, %v12756_v3  ;;  %v18313_v11 = vld [vmem:[#allocation5 + $0x508] sm:$0xf0]  ;;  %v12144_v13 = vld [vmem:[#allocation5 + $0xcc] sm:$0xf0]  ;;  %v12143_v16 = vor.u32 %v18177_v8, %v12142_v7 }
  0x30   :  { %1870 = vmatpush.bf16.msra.mxu3 %v12895_v50  ;;  %v18169_v12 = vld [vmem:[#allocation5 + $0x8c] sm:$0xf]  ;;  %v12688_v15 = vld [vmem:[#allocation5 + $0x50c] sm:$0xf0]  ;;  %v12074_v17 = vld [vmem:[#allocation5] sm:$0xf]  ;;  %v12687_v19 = vor.u32 %v18313_v11, %v12686_v9 }
  0x31   :  { %1832 = vmatpush.bf16.msra.mxu0 %v12279_v56  ;;  %v18305_v14 = vld [vmem:[#allocation5 + $0x4cc] sm:$0xf]  ;;  %v18160_v18 = vld [vmem:[#allocation5 + $0x40] sm:$0xf0]  ;;  %v12147_v20 = vor.u32 %v18169_v12, %v12144_v13  ;;  %v12618_v21 = vld [vmem:[#allocation5 + $0x440] sm:$0xf] }
  0x32   :  { %1845 = vmatpush.bf16.msra.mxu1 %v12823_v57  ;;  %v18296_v22 = vld [vmem:[#allocation5 + $0x480] sm:$0xf0]  ;;  %v12691_v24 = vor.u32 %v18305_v14, %v12688_v15  ;;  %v12076_v25 = vld [vmem:[#allocation5 + $0x44] sm:$0xf0]  ;;  %v12558_v28 = vld [vmem:[#allocation5 + $0x3c0] sm:$0xf]  ;;  %v12075_v31 = vor.u32 %v18160_v18, %v12074_v17 }
  0x33   :  { %1858 = vmatpush.bf16.msra.mxu2 %v12283_v58  ;;  %v18152_v23 = vld [vmem:[#allocation5 + $0x4] sm:$0xf]  ;;  %v12620_v27 = vld [vmem:[#allocation5 + $0x484] sm:$0xf0]  ;;  %v13102_v30 = vld [vmem:[#allocation5 + $0x800] sm:$0xf]  ;;  %v12619_v35 = vor.u32 %v18296_v22, %v12618_v21 }
  0x34   :  { %1871 = vmatpush.bf16.msra.mxu3 %v12827_v62  ;;  %v18288_v26 = vld [vmem:[#allocation5 + $0x444] sm:$0xf]  ;;  %v12560_v34 = vld [vmem:[#allocation5 + $0x404] sm:$0xf0]  ;;  %v12079_v36 = vor.u32 %v18152_v23, %v12076_v25  ;;  %v12490_v43 = vld [vmem:[#allocation5 + $0x338] sm:$0xf] }
  0x35   :  { %1833 = vmatpush.bf16.msra.mxu0 %v12211_v4  ;;  %v18280_v29 = vld [vmem:[#allocation5 + $0x400] sm:$0xf0]  ;;  %v13104_v38 = vld [vmem:[#allocation5 + $0x844] sm:$0xf0]  ;;  %v12623_v39 = vor.u32 %v18288_v26, %v12620_v27  ;;  %v18263_v44 = vld [vmem:[#allocation5 + $0x378] sm:$0xf0] }
  0x36   :  { %1846 = vmatpush.bf16.msra.mxu1 %v12755_v5  ;;  %v18416_v32 = vld [vmem:[#allocation5 + $0x840] sm:$0xf0]  ;;  %v12559_v40 = vor.u32 %v18280_v29, %v12558_v28  ;;  %v13034_v45 = vld [vmem:[#allocation5 + $0x778] sm:$0xf]  ;;  %v18399_v47 = vld [vmem:[#allocation5 + $0x7b8] sm:$0xf0]  ;;  %v12491_v52 = vor.u32 %v18263_v44, %v12490_v43 }
  0x37   :  { %1859 = vmatpush.bf16.msra.mxu2 %v12215_v6  ;;  %v18272_v33 = vld [vmem:[#allocation5 + $0x3c4] sm:$0xf]  ;;  %v13103_v41 = vor.u32 %v18416_v32, %v13102_v30  ;;  %v18255_v48 = vld [vmem:[#allocation5 + $0x33c] sm:$0xf]  ;;  %v12492_v49 = vld [vmem:[#allocation5 + $0x37c] sm:$0xf0]  ;;  %v13035_v54 = vor.u32 %v18399_v47, %v13034_v45 }
  0x38   :  { %1872 = vmatpush.bf16.msra.mxu3 %v12759_v10  ;;  %v18408_v37 = vld [vmem:[#allocation5 + $0x804] sm:$0xf]  ;;  %v12563_v42 = vor.u32 %v18272_v33, %v12560_v34  ;;  %v18391_v50 = vld [vmem:[#allocation5 + $0x77c] sm:$0xf]  ;;  %v13036_v51 = vld [vmem:[#allocation5 + $0x7bc] sm:$0xf0]  ;;  %v12495_v55 = vor.u32 %v18255_v48, %v12492_v49 }
  0x39   :  { %1834 = vmatpush.bf16.msra.mxu0 %v12143_v16  ;;  %v13107_v46 = vor.u32 %v18408_v37, %v13104_v38  ;;  %v12422_v53 = vld [vmem:[#allocation5 + $0x2b0] sm:$0xf]  ;;  %v18246_v56 = vld [vmem:[#allocation5 + $0x2f0] sm:$0xf0]  ;;  %v13039_v59 = vor.u32 %v18391_v50, %v13036_v51  ;;  %v12424_v61 = vld [vmem:[#allocation5 + $0x2f4] sm:$0xf0] }
  0x3a   :  { %1847 = vmatpush.bf16.msra.mxu1 %v12687_v19  ;;  %v12966_v57 = vld [vmem:[#allocation5 + $0x6f0] sm:$0xf]  ;;  %v18382_v58 = vld [vmem:[#allocation5 + $0x730] sm:$0xf0]  ;;  %v12968_v63 = vld [vmem:[#allocation5 + $0x734] sm:$0xf0]  ;;  %v12423_v0 = vor.u32 %v18246_v56, %v12422_v53 }
  0x3b   :  { %1860 = vmatpush.bf16.msra.mxu2 %v12147_v20  ;;  %v18238_v60 = vld [vmem:[#allocation5 + $0x2b4] sm:$0xf]  ;;  %v12967_v1 = vor.u32 %v18382_v58, %v12966_v57  ;;  %v115_v3 = vld [vmem:[#allocation2 + $0x8] sm:$0xff]  ;;  %v12354_v5 = vld [vmem:[#allocation5 + $0x228] sm:$0xf]  ;;  %s19880_s4 = smov [#allocation13]  }
  0x3c   :  { %1873 = vmatpush.bf16.msra.mxu3 %v12691_v24  ;;  %v18374_v62 = vld [vmem:[#allocation5 + $0x6f4] sm:$0xf]  ;;  %v12427_v4 = vor.u32 %v18238_v60, %v12424_v61  ;;  %v18229_v6 = vld [vmem:[#allocation5 + $0x268] sm:$0xf0]  ;;  %v12898_v7 = vld [vmem:[#allocation5 + $0x668] sm:$0xf]  ;;  %v19936_v9 = vpack.c.bf16 %v115_v3, %v115_v3 }
  0x3d   :  { %1835 = vmatpush.bf16.msra.mxu0 %v12075_v31  ;;  %v114_v2 = vld [vmem:[#allocation2] sm:$0xff]  ;;  %v12971_v10 = vor.u32 %v18374_v62, %v12968_v63  ;;  %v18365_v11 = vld [vmem:[#allocation5 + $0x6a8] sm:$0xf0]  ;;  %v12355_v16 = vor.u32 %v18229_v6, %v12354_v5  ;;  %v12286_v19 = vld [vmem:[#allocation5 + $0x1a0] sm:$0xf]  ;;  %s12057_s5 = sshll.u32 %s19880_s4, 4  ;;  %s12058_s5 = int_to_ptr.vmem [resolvable:$true] %s12057_s5 }
  0x3e   :  { %1848 = vmatpush.bf16.msra.mxu1 %v12619_v35  ;;  %v19934_v8 = vpack.c.bf16 %v114_v2, %v114_v2  ;;  %v18221_v12 = vld [vmem:[#allocation5 + $0x22c] sm:$0xf]  ;;  %v12356_v13 = vld [vmem:[#allocation5 + $0x26c] sm:$0xf0]  ;;  %v12899_v17 = vor.u32 %v18365_v11, %v12898_v7  ;;  %v18212_v20 = vld [vmem:[#allocation5 + $0x1e0] sm:$0xf0] }
  0x3f   :  { %1861 = vmatpush.bf16.msra.mxu2 %v12079_v36  ;;  %v18357_v14 = vld [vmem:[#allocation5 + $0x66c] sm:$0xf]  ;;  %v12900_v15 = vld [vmem:[#allocation5 + $0x6ac] sm:$0xf0]  ;;  %v12359_v18 = vor.u32 %v18221_v12, %v12356_v13  ;;  %v12830_v21 = vld [vmem:[#allocation5 + $0x5e0] sm:$0xf]  ;;  %v12287_v28 = vor.u32 %v18212_v20, %v12286_v19 }
  0x40   :  { %1874 = vmatpush.bf16.msra.mxu3 %v12623_v39  ;;  %1836 = vmatmul.bf16.vlgmr.msra.gmra.mxu0 %v19934_v8  ;;  %v12903_v22 = vor.u32 %v18357_v14, %v12900_v15  ;;  %v18348_v23 = vld [vmem:[#allocation5 + $0x620] sm:$0xf0]  ;;  %v12288_v25 = vld [vmem:[#allocation5 + $0x1e4] sm:$0xf0]  ;;  %v12218_v31 = vld [vmem:[#allocation5 + $0x118] sm:$0xf] }
  0x41   :  { %1880 = vmatpush.bf16.msrb.mxu0 %v12559_v40  ;;  %1849 = vmatmul.bf16.vlgmr.msra.gmra.mxu1 %v19936_v9  ;;  %v18204_v24 = vld [vmem:[#allocation5 + $0x1a4] sm:$0xf]  ;;  %v12832_v27 = vld [vmem:[#allocation5 + $0x624] sm:$0xf0]  ;;  %v12831_v29 = vor.u32 %v18348_v23, %v12830_v21  ;;  %v18195_v32 = vld [vmem:[#allocation5 + $0x158] sm:$0xf0] }
  0x42   :  { %1893 = vmatpush.bf16.msrb.mxu1 %v13103_v41  ;;  %1862 = vmatmul.bf16.vlgmr.msra.gmra.mxu2 %v19934_v8  ;;  %v18340_v26 = vld [vmem:[#allocation5 + $0x5e4] sm:$0xf]  ;;  %v12291_v30 = vor.u32 %v18204_v24, %v12288_v25  ;;  %v12762_v33 = vld [vmem:[#allocation5 + $0x558] sm:$0xf]  ;;  %v18331_v35 = vld [vmem:[#allocation5 + $0x598] sm:$0xf0]  ;;  %v12219_v40 = vor.u32 %v18195_v32, %v12218_v31 }
  0x43   :  { %1906 = vmatpush.bf16.msrb.mxu2 %v12563_v42  ;;  %1875 = vmatmul.bf16.vlgmr.msra.gmra.mxu3 %v19936_v9  ;;  %v12835_v34 = vor.u32 %v18340_v26, %v12832_v27  ;;  %v18187_v36 = vld [vmem:[#allocation5 + $0x11c] sm:$0xf]  ;;  %v12220_v37 = vld [vmem:[#allocation5 + $0x15c] sm:$0xf0]  ;;  %v12763_v41 = vor.u32 %v18331_v35, %v12762_v33  ;;  %v12150_v43 = vld [vmem:[#allocation5 + $0x90] sm:$0xf] }
  0x44   :  { %1919 = vmatpush.bf16.msrb.mxu3 %v13107_v46  ;;  %v18323_v38 = vld [vmem:[#allocation5 + $0x55c] sm:$0xf]  ;;  %v12764_v39 = vld [vmem:[#allocation5 + $0x59c] sm:$0xf0]  ;;  %v12223_v42 = vor.u32 %v18187_v36, %v12220_v37  ;;  %v18178_v44 = vld [vmem:[#allocation5 + $0xd0] sm:$0xf0] }
  0x45   :  { %1881 = vmatpush.bf16.msrb.mxu0 %v12491_v52  ;;  %v12694_v45 = vld [vmem:[#allocation5 + $0x4d0] sm:$0xf]  ;;  %v12767_v46 = vor.u32 %v18323_v38, %v12764_v39  ;;  %v18314_v47 = vld [vmem:[#allocation5 + $0x510] sm:$0xf0]  ;;  %v12152_v49 = vld [vmem:[#allocation5 + $0xd4] sm:$0xf0]  ;;  %v12151_v52 = vor.u32 %v18178_v44, %v12150_v43 }
  0x46   :  { %1894 = vmatpush.bf16.msrb.mxu1 %v13035_v54  ;;  %v18170_v48 = vld [vmem:[#allocation5 + $0x94] sm:$0xf]  ;;  %v12696_v51 = vld [vmem:[#allocation5 + $0x514] sm:$0xf0]  ;;  %v12082_v53 = vld [vmem:[#allocation5 + $0x8] sm:$0xf] }
  0x47   :  { %1907 = vmatpush.bf16.msrb.mxu2 %v12495_v55  ;;  %v18306_v50 = vld [vmem:[#allocation5 + $0x4d4] sm:$0xf]  ;;  %v18161_v54 = vld [vmem:[#allocation5 + $0x48] sm:$0xf0]  ;;  %v12695_v55 = vor.u32 %v18314_v47, %v12694_v45  ;;  %v12155_v56 = vor.u32 %v18170_v48, %v12152_v49  ;;  %v12626_v57 = vld [vmem:[#allocation5 + $0x448] sm:$0xf] }
  0x48   :  { %1920 = vmatpush.bf16.msrb.mxu3 %v13039_v59  ;;  %v18297_v58 = vld [vmem:[#allocation5 + $0x488] sm:$0xf0]  ;;  %v12699_v60 = vor.u32 %v18306_v50, %v12696_v51  ;;  %v12084_v61 = vld [vmem:[#allocation5 + $0x4c] sm:$0xf0]  ;;  %v13110_v2 = vld [vmem:[#allocation5 + $0x808] sm:$0xf]  ;;  %v12083_v3 = vor.u32 %v18161_v54, %v12082_v53 }
  0x49   :  { %1882 = vmatpush.bf16.msrb.mxu0 %v12423_v0  ;;  %v18153_v59 = vld [vmem:[#allocation5 + $0xc] sm:$0xf]  ;;  %v12628_v63 = vld [vmem:[#allocation5 + $0x48c] sm:$0xf0]  ;;  %v12566_v0 = vld [vmem:[#allocation5 + $0x3c8] sm:$0xf]  ;;  %v12627_v7 = vor.u32 %v18297_v58, %v12626_v57 }
  0x4a   :  { %1895 = vmatpush.bf16.msrb.mxu1 %v12967_v1  ;;  %v18289_v62 = vld [vmem:[#allocation5 + $0x44c] sm:$0xf]  ;;  %v12568_v6 = vld [vmem:[#allocation5 + $0x40c] sm:$0xf0]  ;;  %v13042_v19 = vld [vmem:[#allocation5 + $0x780] sm:$0xf] }
  0x4b   :  { %1908 = vmatpush.bf16.msrb.mxu2 %v12427_v4  ;;  %v18281_v1 = vld [vmem:[#allocation5 + $0x408] sm:$0xf0]  ;;  %v13112_v12 = vld [vmem:[#allocation5 + $0x84c] sm:$0xf0]  ;;  %v12631_v13 = vor.u32 %v18289_v62, %v12628_v63  ;;  %v18400_v21 = vld [vmem:[#allocation5 + $0x7c0] sm:$0xf0] }
  0x4c   :  { %1921 = vmatpush.bf16.msrb.mxu3 %v12971_v10  ;;  %v18417_v4 = vld [vmem:[#allocation5 + $0x848] sm:$0xf0]  ;;  %v12087_v10 = vor.u32 %v18153_v59, %v12084_v61  ;;  %v12567_v14 = vor.u32 %v18281_v1, %v12566_v0  ;;  %v12500_v23 = vld [vmem:[#allocation5 + $0x384] sm:$0xf0]  ;;  %v18392_v24 = vld [vmem:[#allocation5 + $0x784] sm:$0xf]  ;;  %v13043_v27 = vor.u32 %v18400_v21, %v13042_v19 }
  0x4d   :  { %1883 = vmatpush.bf16.msrb.mxu0 %v12355_v16  ;;  %v18273_v5 = vld [vmem:[#allocation5 + $0x3cc] sm:$0xf]  ;;  %v13111_v15 = vor.u32 %v18417_v4, %v13110_v2  ;;  %v13044_v25 = vld [vmem:[#allocation5 + $0x7c4] sm:$0xf0]  ;;  %v12974_v31 = vld [vmem:[#allocation5 + $0x6f8] sm:$0xf] }
  0x4e   :  { %1896 = vmatpush.bf16.msrb.mxu1 %v12899_v17  ;;  %v18409_v11 = vld [vmem:[#allocation5 + $0x80c] sm:$0xf]  ;;  %v12571_v16 = vor.u32 %v18273_v5, %v12568_v6  ;;  %v12498_v17 = vld [vmem:[#allocation5 + $0x340] sm:$0xf]  ;;  %v13047_v32 = vor.u32 %v18392_v24, %v13044_v25  ;;  %v18383_v33 = vld [vmem:[#allocation5 + $0x738] sm:$0xf0] }
  0x4f   :  { %1909 = vmatpush.bf16.msrb.mxu2 %v12359_v18  ;;  %v18264_v18 = vld [vmem:[#allocation5 + $0x380] sm:$0xf0]  ;;  %v13115_v20 = vor.u32 %v18409_v11, %v13112_v12  ;;  %v12432_v35 = vld [vmem:[#allocation5 + $0x2fc] sm:$0xf0]  ;;  %v18375_v36 = vld [vmem:[#allocation5 + $0x6fc] sm:$0xf]  ;;  %v12975_v39 = vor.u32 %v18383_v33, %v12974_v31 }
  0x50   :  { %1922 = vmatpush.bf16.msrb.mxu3 %v12903_v22  ;;  %v18256_v22 = vld [vmem:[#allocation5 + $0x344] sm:$0xf]  ;;  %v12499_v26 = vor.u32 %v18264_v18, %v12498_v17  ;;  %v12976_v37 = vld [vmem:[#allocation5 + $0x73c] sm:$0xf0]  ;;  %v12906_v43 = vld [vmem:[#allocation5 + $0x670] sm:$0xf] }
  0x51   :  { %1884 = vmatpush.bf16.msrb.mxu0 %v12287_v28  ;;  %v12503_v28 = vor.u32 %v18256_v22, %v12500_v23  ;;  %v12979_v44 = vor.u32 %v18375_v36, %v12976_v37  ;;  %v18366_v45 = vld [vmem:[#allocation5 + $0x6b0] sm:$0xf0]  ;;  %v12364_v47 = vld [vmem:[#allocation5 + $0x274] sm:$0xf0]  ;;  %v12294_v53 = vld [vmem:[#allocation5 + $0x1a8] sm:$0xf] }
  0x52   :  { %1897 = vmatpush.bf16.msrb.mxu1 %v12831_v29  ;;  %v12430_v29 = vld [vmem:[#allocation5 + $0x2b8] sm:$0xf]  ;;  %v18358_v48 = vld [vmem:[#allocation5 + $0x674] sm:$0xf]  ;;  %v12907_v51 = vor.u32 %v18366_v45, %v12906_v43  ;;  %v18213_v54 = vld [vmem:[#allocation5 + $0x1e8] sm:$0xf0] }
  0x53   :  { %1910 = vmatpush.bf16.msrb.mxu2 %v12291_v30  ;;  %v18247_v30 = vld [vmem:[#allocation5 + $0x2f8] sm:$0xf0]  ;;  %v12908_v49 = vld [vmem:[#allocation5 + $0x6b4] sm:$0xf0]  ;;  %v18349_v57 = vld [vmem:[#allocation5 + $0x628] sm:$0xf0]  ;;  %v12295_v62 = vor.u32 %v18213_v54, %v12294_v53 }
  0x54   :  { %1923 = vmatpush.bf16.msrb.mxu3 %v12835_v34  ;;  %v18239_v34 = vld [vmem:[#allocation5 + $0x2bc] sm:$0xf]  ;;  %v12431_v38 = vor.u32 %v18247_v30, %v12430_v29  ;;  %v18205_v58 = vld [vmem:[#allocation5 + $0x1ac] sm:$0xf]  ;;  %v12296_v59 = vld [vmem:[#allocation5 + $0x1ec] sm:$0xf0] }
  0x55   :  { %1885 = vmatpush.bf16.msrb.mxu0 %v12219_v40  ;;  %v12435_v40 = vor.u32 %v18239_v34, %v12432_v35  ;;  %v12840_v61 = vld [vmem:[#allocation5 + $0x62c] sm:$0xf0]  ;;  %v12226_v63 = vld [vmem:[#allocation5 + $0x120] sm:$0xf]  ;;  %v12299_v1 = vor.u32 %v18205_v58, %v12296_v59  ;;  %v18196_v2 = vld [vmem:[#allocation5 + $0x160] sm:$0xf0] }
  0x56   :  { %1898 = vmatpush.bf16.msrb.mxu1 %v12763_v41  ;;  %v12362_v41 = vld [vmem:[#allocation5 + $0x230] sm:$0xf]  ;;  %v18332_v4 = vld [vmem:[#allocation5 + $0x5a0] sm:$0xf0]  ;;  %v12772_v11 = vld [vmem:[#allocation5 + $0x5a4] sm:$0xf0]  ;;  %v12227_v12 = vor.u32 %v18196_v2, %v12226_v63 }
  0x57   :  { %1911 = vmatpush.bf16.msrb.mxu2 %v12223_v42  ;;  %v18230_v42 = vld [vmem:[#allocation5 + $0x270] sm:$0xf0]  ;;  %v18188_v6 = vld [vmem:[#allocation5 + $0x124] sm:$0xf]  ;;  %v12702_v17 = vld [vmem:[#allocation5 + $0x4d8] sm:$0xf] }
  0x58   :  { %1924 = vmatpush.bf16.msrb.mxu3 %v12767_v46  ;;  %v18222_v46 = vld [vmem:[#allocation5 + $0x234] sm:$0xf]  ;;  %v12363_v50 = vor.u32 %v18230_v42, %v12362_v41  ;;  %v18315_v19 = vld [vmem:[#allocation5 + $0x518] sm:$0xf0]  ;;  %v12160_v21 = vld [vmem:[#allocation5 + $0xdc] sm:$0xf0] }
  0x59   :  { %1886 = vmatpush.bf16.msrb.mxu0 %v12151_v52  ;;  %v12367_v52 = vor.u32 %v18222_v46, %v12364_v47  ;;  %v18307_v22 = vld [vmem:[#allocation5 + $0x4dc] sm:$0xf]  ;;  %v12704_v23 = vld [vmem:[#allocation5 + $0x51c] sm:$0xf0]  ;;  %v12090_v25 = vld [vmem:[#allocation5 + $0x10] sm:$0xf] }
  0x5a   :  { %1899 = vmatpush.bf16.msrb.mxu1 %v12695_v55  ;;  %v12838_v55 = vld [vmem:[#allocation5 + $0x5e8] sm:$0xf]  ;;  %v12634_v29 = vld [vmem:[#allocation5 + $0x450] sm:$0xf]  ;;  %v18298_v30 = vld [vmem:[#allocation5 + $0x490] sm:$0xf0] }
  0x5b   :  { %1912 = vmatpush.bf16.msrb.mxu2 %v12155_v56  ;;  %v12911_v56 = vor.u32 %v18358_v48, %v12908_v49  ;;  %v12839_v0 = vor.u32 %v18349_v57, %v12838_v55  ;;  %v18154_v31 = vld [vmem:[#allocation5 + $0x14] sm:$0xf]  ;;  %v12092_v33 = vld [vmem:[#allocation5 + $0x54] sm:$0xf0]  ;;  %v12574_v36 = vld [vmem:[#allocation5 + $0x3d0] sm:$0xf]  ;;  %v12635_v43 = vor.u32 %v18298_v30, %v12634_v29 }
  0x5c   :  { %1925 = vmatpush.bf16.msrb.mxu3 %v12699_v60  ;;  %v18341_v60 = vld [vmem:[#allocation5 + $0x5ec] sm:$0xf]  ;;  %v18290_v34 = vld [vmem:[#allocation5 + $0x454] sm:$0xf]  ;;  %v12636_v35 = vld [vmem:[#allocation5 + $0x494] sm:$0xf0] }
  0x5d   :  { %1887 = vmatpush.bf16.msrb.mxu0 %v12083_v3  ;;  %v12770_v3 = vld [vmem:[#allocation5 + $0x560] sm:$0xf]  ;;  %v12843_v5 = vor.u32 %v18341_v60, %v12840_v61  ;;  %v18282_v37 = vld [vmem:[#allocation5 + $0x410] sm:$0xf0]  ;;  %v12576_v42 = vld [vmem:[#allocation5 + $0x414] sm:$0xf0]  ;;  %v12639_v47 = vor.u32 %v18290_v34, %v12636_v35 }
  0x5e   :  { %1900 = vmatpush.bf16.msrb.mxu1 %v12627_v7  ;;  %v12228_v7 = vld [vmem:[#allocation5 + $0x164] sm:$0xf0]  ;;  %v18274_v41 = vld [vmem:[#allocation5 + $0x3d4] sm:$0xf]  ;;  %v13120_v46 = vld [vmem:[#allocation5 + $0x854] sm:$0xf0]  ;;  %v12575_v48 = vor.u32 %v18282_v37, %v12574_v36 }
  0x5f   :  { %1913 = vmatpush.bf16.msrb.mxu2 %v12087_v10  ;;  %v18324_v10 = vld [vmem:[#allocation5 + $0x564] sm:$0xf]  ;;  %v18410_v45 = vld [vmem:[#allocation5 + $0x814] sm:$0xf]  ;;  %v13050_v53 = vld [vmem:[#allocation5 + $0x788] sm:$0xf] }
  0x60   :  { %1926 = vmatpush.bf16.msrb.mxu3 %v12631_v13  ;;  %1888 = vmatmul.bf16.vlgmr.msrb.gmra.mxu0 %v19934_v8  ;;  %v12771_v13 = vor.u32 %v18332_v4, %v12770_v3  ;;  %v12775_v18 = vor.u32 %v18324_v10, %v12772_v11  ;;  %v13123_v54 = vor.u32 %v18410_v45, %v13120_v46  ;;  %v18401_v55 = vld [vmem:[#allocation5 + $0x7c8] sm:$0xf0]  ;;  %v12508_v57 = vld [vmem:[#allocation5 + $0x38c] sm:$0xf0]  ;;  %v12438_v63 = vld [vmem:[#allocation5 + $0x2c0] sm:$0xf] }
  0x61   :  { %1932 = vmatpush.bf16.msra.mxu0 %v12567_v14  ;;  %1901 = vmatmul.bf16.vlgmr.msrb.gmra.mxu1 %v19936_v9  ;;  %v12231_v14 = vor.u32 %v18188_v6, %v12228_v7  ;;  %v18393_v58 = vld [vmem:[#allocation5 + $0x78c] sm:$0xf]  ;;  %v13052_v59 = vld [vmem:[#allocation5 + $0x7cc] sm:$0xf0]  ;;  %v13051_v61 = vor.u32 %v18401_v55, %v13050_v53  ;;  %v18384_v3 = vld [vmem:[#allocation5 + $0x740] sm:$0xf0] }
  0x62   :  { %1945 = vmatpush.bf16.msra.mxu1 %v13111_v15  ;;  %1914 = vmatmul.bf16.vlgmr.msrb.gmra.mxu2 %v19934_v8  ;;  %v12158_v15 = vld [vmem:[#allocation5 + $0x98] sm:$0xf]  ;;  %v13055_v2 = vor.u32 %v18393_v58, %v13052_v59  ;;  %v18240_v4 = vld [vmem:[#allocation5 + $0x2c4] sm:$0xf]  ;;  %v12984_v7 = vld [vmem:[#allocation5 + $0x744] sm:$0xf0] }
  0x63   :  { %1958 = vmatpush.bf16.msra.mxu2 %v12571_v16  ;;  %1927 = vmatmul.bf16.vlgmr.msrb.gmra.mxu3 %v19936_v9  ;;  %v18179_v16 = vld [vmem:[#allocation5 + $0xd8] sm:$0xf0]  ;;  %v18376_v6 = vld [vmem:[#allocation5 + $0x704] sm:$0xf]  ;;  %v18350_v29 = vld [vmem:[#allocation5 + $0x630] sm:$0xf0] }
  0x64   :  { %1971 = vmatpush.bf16.msra.mxu3 %v13115_v20  ;;  %v18171_v20 = vld [vmem:[#allocation5 + $0x9c] sm:$0xf]  ;;  %v12159_v24 = vor.u32 %v18179_v16, %v12158_v15  ;;  %v12914_v15 = vld [vmem:[#allocation5 + $0x678] sm:$0xf]  ;;  %v12987_v16 = vor.u32 %v18376_v6, %v12984_v7  ;;  %v18206_v30 = vld [vmem:[#allocation5 + $0x1b4] sm:$0xf] }
  0x65   :  { %1933 = vmatpush.bf16.msra.mxu0 %v12499_v26  ;;  %v18162_v26 = vld [vmem:[#allocation5 + $0x50] sm:$0xf0]  ;;  %v12234_v37 = vld [vmem:[#allocation5 + $0x128] sm:$0xf]  ;;  %v12780_v45 = vld [vmem:[#allocation5 + $0x5ac] sm:$0xf0] }
  0x66   :  { %1946 = vmatpush.bf16.msra.mxu1 %v13043_v27  ;;  %v12703_v27 = vor.u32 %v18315_v19, %v12702_v17  ;;  %v18367_v17 = vld [vmem:[#allocation5 + $0x6b8] sm:$0xf0]  ;;  %v12372_v19 = vld [vmem:[#allocation5 + $0x27c] sm:$0xf0]  ;;  %v18316_v53 = vld [vmem:[#allocation5 + $0x520] sm:$0xf0] }
  0x67   :  { %1959 = vmatpush.bf16.msra.mxu2 %v12503_v28  ;;  %v12163_v28 = vor.u32 %v18171_v20, %v12160_v21  ;;  %v18359_v20 = vld [vmem:[#allocation5 + $0x67c] sm:$0xf]  ;;  %v12916_v21 = vld [vmem:[#allocation5 + $0x6bc] sm:$0xf0]  ;;  %v12168_v55 = vld [vmem:[#allocation5 + $0xe4] sm:$0xf0] }
  0x68   :  { %1972 = vmatpush.bf16.msra.mxu3 %v13047_v32  ;;  %v12707_v32 = vor.u32 %v18307_v22, %v12704_v23  ;;  %v12915_v23 = vor.u32 %v18367_v17, %v12914_v15  ;;  %v12098_v59 = vld [vmem:[#allocation5 + $0x18] sm:$0xf]  ;;  %v18283_v7 = vld [vmem:[#allocation5 + $0x418] sm:$0xf0]  ;;  %s12059_s9 = sshll.u32 %s20458_s6, 4  ;;  %s12060_s9 = int_to_ptr.hbm [resolvable:$true] %s12059_s9 }
  0x69   :  { %1934 = vmatpush.bf16.msra.mxu0 %v12431_v38  ;;  %v13118_v38 = vld [vmem:[#allocation5 + $0x810] sm:$0xf]  ;;  %v12582_v6 = vld [vmem:[#allocation5 + $0x3d8] sm:$0xf]  ;;  %v18411_v17 = vld [vmem:[#allocation5 + $0x81c] sm:$0xf] }
  0x6a   :  { %1947 = vmatpush.bf16.msra.mxu1 %v12975_v39  ;;  %v12091_v39 = vor.u32 %v18162_v26, %v12090_v25  ;;  %v12302_v25 = vld [vmem:[#allocation5 + $0x1b0] sm:$0xf]  ;;  %v18214_v26 = vld [vmem:[#allocation5 + $0x1f0] sm:$0xf0] }
  0x6b   :  { %1960 = vmatpush.bf16.msra.mxu2 %v12435_v40  ;;  %v18418_v40 = vld [vmem:[#allocation5 + $0x850] sm:$0xf0]  ;;  %v12303_v34 = vor.u32 %v18214_v26, %v12302_v25  ;;  %v13058_v25 = vld [vmem:[#allocation5 + $0x790] sm:$0xf] }
  0x6c   :  { %1973 = vmatpush.bf16.msra.mxu3 %v12979_v44  ;;  %v12095_v44 = vor.u32 %v18154_v31, %v12092_v33  ;;  %v13119_v49 = vor.u32 %v18418_v40, %v13118_v38  ;;  %v12304_v31 = vld [vmem:[#allocation5 + $0x1f4] sm:$0xf0]  ;;  %v18197_v38 = vld [vmem:[#allocation5 + $0x168] sm:$0xf0] }
  0x6d   :  { %1935 = vmatpush.bf16.msra.mxu0 %v12363_v50  ;;  %v12579_v50 = vor.u32 %v18274_v41, %v12576_v42  ;;  %v12848_v33 = vld [vmem:[#allocation5 + $0x634] sm:$0xf0]  ;;  %v12307_v36 = vor.u32 %v18206_v30, %v12304_v31  ;;  %v18333_v41 = vld [vmem:[#allocation5 + $0x5a8] sm:$0xf0]  ;;  %v12235_v46 = vor.u32 %v18197_v38, %v12234_v37  ;;  %v18394_v30 = vld [vmem:[#allocation5 + $0x794] sm:$0xf] }
  0x6e   :  { %1948 = vmatpush.bf16.msra.mxu1 %v12907_v51  ;;  %v12506_v51 = vld [vmem:[#allocation5 + $0x348] sm:$0xf]  ;;  %v18189_v42 = vld [vmem:[#allocation5 + $0x12c] sm:$0xf]  ;;  %v13060_v31 = vld [vmem:[#allocation5 + $0x7d4] sm:$0xf0] }
  0x6f   :  { %1961 = vmatpush.bf16.msra.mxu2 %v12367_v52  ;;  %v18265_v52 = vld [vmem:[#allocation5 + $0x388] sm:$0xf0]  ;;  %v12990_v37 = vld [vmem:[#allocation5 + $0x708] sm:$0xf]  ;;  %v13063_v38 = vor.u32 %v18394_v30, %v13060_v31  ;;  %v12106_v31 = vld [vmem:[#allocation5 + $0x20] sm:$0xf] }
  0x70   :  { %1974 = vmatpush.bf16.msra.mxu3 %v12911_v56  ;;  %v18257_v56 = vld [vmem:[#allocation5 + $0x34c] sm:$0xf]  ;;  %v12507_v60 = vor.u32 %v18265_v52, %v12506_v51  ;;  %v12710_v51 = vld [vmem:[#allocation5 + $0x4e0] sm:$0xf] }
  0x71   :  { %1936 = vmatpush.bf16.msra.mxu0 %v12295_v62  ;;  %v12511_v62 = vor.u32 %v18257_v56, %v12508_v57  ;;  %v18308_v56 = vld [vmem:[#allocation5 + $0x4e4] sm:$0xf]  ;;  %v12712_v57 = vld [vmem:[#allocation5 + $0x524] sm:$0xf0] }
  0x72   :  { %1949 = vmatpush.bf16.msra.mxu1 %v12839_v0  ;;  %v18248_v0 = vld [vmem:[#allocation5 + $0x300] sm:$0xf0] }
  0x73   :  { %1962 = vmatpush.bf16.msra.mxu2 %v12299_v1  ;;  %v12982_v1 = vld [vmem:[#allocation5 + $0x700] sm:$0xf]  ;;  %v12439_v10 = vor.u32 %v18248_v0, %v12438_v63  ;;  %v12642_v63 = vld [vmem:[#allocation5 + $0x458] sm:$0xf]  ;;  %v18299_v0 = vld [vmem:[#allocation5 + $0x498] sm:$0xf0] }
  0x74   :  { %1975 = vmatpush.bf16.msra.mxu3 %v12843_v5  ;;  %v12440_v5 = vld [vmem:[#allocation5 + $0x304] sm:$0xf0]  ;;  %v12983_v11 = vor.u32 %v18384_v3, %v12982_v1  ;;  %v18155_v1 = vld [vmem:[#allocation5 + $0x1c] sm:$0xf]  ;;  %v12100_v3 = vld [vmem:[#allocation5 + $0x5c] sm:$0xf0]  ;;  %v12643_v15 = vor.u32 %v18299_v0, %v12642_v63 }
  0x75   :  { %1937 = vmatpush.bf16.msra.mxu0 %v12227_v12  ;;  %v12443_v12 = vor.u32 %v18240_v4, %v12440_v5  ;;  %v18291_v4 = vld [vmem:[#allocation5 + $0x45c] sm:$0xf]  ;;  %v12644_v5 = vld [vmem:[#allocation5 + $0x49c] sm:$0xf0] }
  0x76   :  { %1950 = vmatpush.bf16.msra.mxu1 %v12771_v13  ;;  %v12370_v13 = vld [vmem:[#allocation5 + $0x238] sm:$0xf]  ;;  %v18351_v63 = vld [vmem:[#allocation5 + $0x638] sm:$0xf0] }
  0x77   :  { %1963 = vmatpush.bf16.msra.mxu2 %v12231_v14  ;;  %v18231_v14 = vld [vmem:[#allocation5 + $0x278] sm:$0xf0] }
  0x78   :  { %1976 = vmatpush.bf16.msra.mxu3 %v12775_v18  ;;  %v18223_v18 = vld [vmem:[#allocation5 + $0x23c] sm:$0xf]  ;;  %v12371_v22 = vor.u32 %v18231_v14, %v12370_v13  ;;  %v12584_v14 = vld [vmem:[#allocation5 + $0x41c] sm:$0xf0] }
  0x79   :  { %1938 = vmatpush.bf16.msra.mxu0 %v12159_v24  ;;  %v12375_v24 = vor.u32 %v18223_v18, %v12372_v19  ;;  %v18275_v13 = vld [vmem:[#allocation5 + $0x3dc] sm:$0xf]  ;;  %v13128_v18 = vld [vmem:[#allocation5 + $0x85c] sm:$0xf0]  ;;  %v12647_v19 = vor.u32 %v18291_v4, %v12644_v5 }
  0x7a   :  { %1951 = vmatpush.bf16.msra.mxu1 %v12703_v27  ;;  %v12846_v27 = vld [vmem:[#allocation5 + $0x5f0] sm:$0xf]  ;;  %v13131_v26 = vor.u32 %v18411_v17, %v13128_v18  ;;  %v18207_v0 = vld [vmem:[#allocation5 + $0x1bc] sm:$0xf]  ;;  %v12788_v17 = vld [vmem:[#allocation5 + $0x5b4] sm:$0xf0] }
  0x7b   :  { %1964 = vmatpush.bf16.msra.mxu2 %v12163_v28  ;;  %v12919_v28 = vor.u32 %v18359_v20, %v12916_v21  ;;  %v12847_v35 = vor.u32 %v18350_v29, %v12846_v27  ;;  %v12583_v20 = vor.u32 %v18283_v7, %v12582_v6  ;;  %v18402_v27 = vld [vmem:[#allocation5 + $0x7d0] sm:$0xf0]  ;;  %v12516_v29 = vld [vmem:[#allocation5 + $0x394] sm:$0xf0]  ;;  %v12242_v7 = vld [vmem:[#allocation5 + $0x130] sm:$0xf] }
  0x7c   :  { %1977 = vmatpush.bf16.msra.mxu3 %v12707_v32  ;;  %v18342_v32 = vld [vmem:[#allocation5 + $0x5f4] sm:$0xf] }
  0x7d   :  { %1939 = vmatpush.bf16.msra.mxu0 %v12091_v39  ;;  %v12778_v39 = vld [vmem:[#allocation5 + $0x568] sm:$0xf]  ;;  %v12851_v40 = vor.u32 %v18342_v32, %v12848_v33  ;;  %v13059_v33 = vor.u32 %v18402_v27, %v13058_v25  ;;  %v18317_v25 = vld [vmem:[#allocation5 + $0x528] sm:$0xf0]  ;;  %v12176_v27 = vld [vmem:[#allocation5 + $0xec] sm:$0xf0] }
  0x7e   :  { %1952 = vmatpush.bf16.msra.mxu1 %v12635_v43  ;;  %v12236_v43 = vld [vmem:[#allocation5 + $0x16c] sm:$0xf0] }
  0x7f   :  { %1965 = vmatpush.bf16.msra.mxu2 %v12095_v44  ;;  %v18325_v44 = vld [vmem:[#allocation5 + $0x56c] sm:$0xf] }
  0x80   :  { %1978 = vmatpush.bf16.msra.mxu3 %v12639_v47  ;;  %1940 = vmatmul.bf16.vlgmr.msra.gmra.mxu0 %v19934_v8  ;;  %v12779_v47 = vor.u32 %v18333_v41, %v12778_v39  ;;  %v12783_v52 = vor.u32 %v18325_v44, %v12780_v45  ;;  %v18385_v39 = vld [vmem:[#allocation5 + $0x748] sm:$0xf0]  ;;  %v12448_v41 = vld [vmem:[#allocation5 + $0x30c] sm:$0xf0] }
  0x81   :  { %1984 = vmatpush.bf16.msrb.mxu0 %v12575_v48  ;;  %1953 = vmatmul.bf16.vlgmr.msra.gmra.mxu1 %v19936_v9  ;;  %v12239_v48 = vor.u32 %v18189_v42, %v12236_v43  ;;  %v18377_v42 = vld [vmem:[#allocation5 + $0x70c] sm:$0xf]  ;;  %v12992_v43 = vld [vmem:[#allocation5 + $0x74c] sm:$0xf0]  ;;  %v12991_v45 = vor.u32 %v18385_v39, %v12990_v37  ;;  %v18156_v37 = vld [vmem:[#allocation5 + $0x24] sm:$0xf] }
  0x82   :  { %1997 = vmatpush.bf16.msrb.mxu1 %v13119_v49  ;;  %1966 = vmatmul.bf16.vlgmr.msra.gmra.mxu2 %v19934_v8  ;;  %v12166_v49 = vld [vmem:[#allocation5 + $0xa0] sm:$0xf]  ;;  %v12108_v39 = vld [vmem:[#allocation5 + $0x64] sm:$0xf0] }
  0x83   :  { %2010 = vmatpush.bf16.msrb.mxu2 %v12579_v50  ;;  %1979 = vmatmul.bf16.vlgmr.msra.gmra.mxu3 %v19936_v9  ;;  %v18180_v50 = vld [vmem:[#allocation5 + $0xe0] sm:$0xf0] }
  0x84   :  { %2023 = vmatpush.bf16.msrb.mxu3 %v13123_v54  ;;  %v18172_v54 = vld [vmem:[#allocation5 + $0xa4] sm:$0xf]  ;;  %v12167_v58 = vor.u32 %v18180_v50, %v12166_v49  ;;  %v12922_v49 = vld [vmem:[#allocation5 + $0x680] sm:$0xf]  ;;  %v12995_v50 = vor.u32 %v18377_v42, %v12992_v43 }
  0x85   :  { %1985 = vmatpush.bf16.msrb.mxu0 %v12507_v60  ;;  %v18163_v60 = vld [vmem:[#allocation5 + $0x58] sm:$0xf0]  ;;  %v12590_v42 = vld [vmem:[#allocation5 + $0x3e0] sm:$0xf]  ;;  %v18284_v43 = vld [vmem:[#allocation5 + $0x420] sm:$0xf0] }
  0x86   :  { %1998 = vmatpush.bf16.msrb.mxu1 %v13051_v61  ;;  %v12711_v61 = vor.u32 %v18316_v53, %v12710_v51  ;;  %v18368_v51 = vld [vmem:[#allocation5 + $0x6c0] sm:$0xf0]  ;;  %v12380_v53 = vld [vmem:[#allocation5 + $0x284] sm:$0xf0] }
  0x87   :  { %2011 = vmatpush.bf16.msrb.mxu2 %v12511_v62  ;;  %v12171_v62 = vor.u32 %v18172_v54, %v12168_v55  ;;  %v18360_v54 = vld [vmem:[#allocation5 + $0x684] sm:$0xf]  ;;  %v12924_v55 = vld [vmem:[#allocation5 + $0x6c4] sm:$0xf0] }
  0x88   :  { %2024 = vmatpush.bf16.msrb.mxu3 %v13055_v2  ;;  %v12715_v2 = vor.u32 %v18308_v56, %v12712_v57  ;;  %v12923_v57 = vor.u32 %v18368_v51, %v12922_v49  ;;  %v18412_v51 = vld [vmem:[#allocation5 + $0x824] sm:$0xf] }
  0x89   :  { %1986 = vmatpush.bf16.msrb.mxu0 %v12439_v10  ;;  %v13126_v10 = vld [vmem:[#allocation5 + $0x818] sm:$0xf] }
  0x8a   :  { %1999 = vmatpush.bf16.msrb.mxu1 %v12983_v11  ;;  %v12099_v11 = vor.u32 %v18163_v60, %v12098_v59  ;;  %v12310_v59 = vld [vmem:[#allocation5 + $0x1b8] sm:$0xf]  ;;  %v18215_v60 = vld [vmem:[#allocation5 + $0x1f8] sm:$0xf0] }
  0x8b   :  { %2012 = vmatpush.bf16.msrb.mxu2 %v12443_v12  ;;  %v18419_v12 = vld [vmem:[#allocation5 + $0x858] sm:$0xf0]  ;;  %v12311_v4 = vor.u32 %v18215_v60, %v12310_v59  ;;  %v13066_v59 = vld [vmem:[#allocation5 + $0x798] sm:$0xf] }
  0x8c   :  { %2025 = vmatpush.bf16.msrb.mxu3 %v12987_v16  ;;  %v12103_v16 = vor.u32 %v18155_v1, %v12100_v3  ;;  %v13127_v21 = vor.u32 %v18419_v12, %v13126_v10  ;;  %v12312_v1 = vld [vmem:[#allocation5 + $0x1fc] sm:$0xf0]  ;;  %v18198_v10 = vld [vmem:[#allocation5 + $0x170] sm:$0xf0] }
  0x8d   :  { %1987 = vmatpush.bf16.msrb.mxu0 %v12371_v22  ;;  %v12587_v22 = vor.u32 %v18275_v13, %v12584_v14  ;;  %v12856_v3 = vld [vmem:[#allocation5 + $0x63c] sm:$0xf0]  ;;  %v12315_v6 = vor.u32 %v18207_v0, %v12312_v1  ;;  %v18334_v13 = vld [vmem:[#allocation5 + $0x5b0] sm:$0xf0]  ;;  %v12243_v18 = vor.u32 %v18198_v10, %v12242_v7  ;;  %v18395_v0 = vld [vmem:[#allocation5 + $0x79c] sm:$0xf] }
  0x8e   :  { %2000 = vmatpush.bf16.msrb.mxu1 %v12915_v23  ;;  %v12514_v23 = vld [vmem:[#allocation5 + $0x350] sm:$0xf]  ;;  %v18190_v14 = vld [vmem:[#allocation5 + $0x134] sm:$0xf]  ;;  %v13068_v1 = vld [vmem:[#allocation5 + $0x7dc] sm:$0xf0] }
  0x8f   :  { %2013 = vmatpush.bf16.msrb.mxu2 %v12375_v24  ;;  %v18266_v24 = vld [vmem:[#allocation5 + $0x390] sm:$0xf0] }
  0x90   :  { %2026 = vmatpush.bf16.msrb.mxu3 %v12919_v28  ;;  %v18258_v28 = vld [vmem:[#allocation5 + $0x354] sm:$0xf]  ;;  %v12515_v32 = vor.u32 %v18266_v24, %v12514_v23  ;;  %v12718_v23 = vld [vmem:[#allocation5 + $0x4e8] sm:$0xf] }
  0x91   :  { %1988 = vmatpush.bf16.msrb.mxu0 %v12303_v34  ;;  %v12519_v34 = vor.u32 %v18258_v28, %v12516_v29  ;;  %v18309_v28 = vld [vmem:[#allocation5 + $0x4ec] sm:$0xf]  ;;  %v12720_v29 = vld [vmem:[#allocation5 + $0x52c] sm:$0xf0]  ;;  %v18386_v10 = vld [vmem:[#allocation5 + $0x750] sm:$0xf0] }
  0x92   :  { %2001 = vmatpush.bf16.msrb.mxu1 %v12847_v35  ;;  %v12446_v35 = vld [vmem:[#allocation5 + $0x2c8] sm:$0xf] }
  0x93   :  { %2014 = vmatpush.bf16.msrb.mxu2 %v12307_v36  ;;  %v18249_v36 = vld [vmem:[#allocation5 + $0x308] sm:$0xf0] }
  0x94   :  { %2027 = vmatpush.bf16.msrb.mxu3 %v12851_v40  ;;  %v18241_v40 = vld [vmem:[#allocation5 + $0x2cc] sm:$0xf]  ;;  %v12447_v44 = vor.u32 %v18249_v36, %v12446_v35  ;;  %v12650_v35 = vld [vmem:[#allocation5 + $0x460] sm:$0xf]  ;;  %v18300_v36 = vld [vmem:[#allocation5 + $0x4a0] sm:$0xf0] }
  0x95   :  { %1989 = vmatpush.bf16.msrb.mxu0 %v12235_v46  ;;  %v12451_v46 = vor.u32 %v18241_v40, %v12448_v41  ;;  %v18292_v40 = vld [vmem:[#allocation5 + $0x464] sm:$0xf]  ;;  %v12652_v41 = vld [vmem:[#allocation5 + $0x4a4] sm:$0xf0]  ;;  %v12651_v49 = vor.u32 %v18300_v36, %v12650_v35  ;;  %v12862_v36 = vld [vmem:[#allocation5 + $0x600] sm:$0xf] }
  0x96   :  { %2002 = vmatpush.bf16.msrb.mxu1 %v12779_v47  ;;  %v12378_v47 = vld [vmem:[#allocation5 + $0x240] sm:$0xf]  ;;  %v18216_v35 = vld [vmem:[#allocation5 + $0x200] sm:$0xf0] }
  0x97   :  { %2015 = vmatpush.bf16.msrb.mxu2 %v12239_v48  ;;  %v18232_v48 = vld [vmem:[#allocation5 + $0x280] sm:$0xf0] }
  0x98   :  { %2028 = vmatpush.bf16.msrb.mxu3 %v12783_v52  ;;  %v18224_v52 = vld [vmem:[#allocation5 + $0x244] sm:$0xf]  ;;  %v12379_v56 = vor.u32 %v18232_v48, %v12378_v47  ;;  %v12592_v48 = vld [vmem:[#allocation5 + $0x424] sm:$0xf0] }
  0x99   :  { %1990 = vmatpush.bf16.msrb.mxu0 %v12167_v58  ;;  %v12383_v58 = vor.u32 %v18224_v52, %v12380_v53  ;;  %v18276_v47 = vld [vmem:[#allocation5 + $0x3e4] sm:$0xf]  ;;  %v13136_v52 = vld [vmem:[#allocation5 + $0x864] sm:$0xf0]  ;;  %v12655_v53 = vor.u32 %v18292_v40, %v12652_v41 }
  0x9a   :  { %2003 = vmatpush.bf16.msrb.mxu1 %v12711_v61  ;;  %v12854_v61 = vld [vmem:[#allocation5 + $0x5f8] sm:$0xf]  ;;  %v13139_v60 = vor.u32 %v18412_v51, %v13136_v52  ;;  %v18208_v40 = vld [vmem:[#allocation5 + $0x1c4] sm:$0xf]  ;;  %v12320_v41 = vld [vmem:[#allocation5 + $0x204] sm:$0xf0] }
  0x9b   :  { %2016 = vmatpush.bf16.msrb.mxu2 %v12171_v62  ;;  %v12927_v62 = vor.u32 %v18360_v54, %v12924_v55  ;;  %v12855_v5 = vor.u32 %v18351_v63, %v12854_v61  ;;  %v12591_v54 = vor.u32 %v18284_v43, %v12590_v42  ;;  %v18403_v61 = vld [vmem:[#allocation5 + $0x7d8] sm:$0xf0]  ;;  %v12524_v63 = vld [vmem:[#allocation5 + $0x39c] sm:$0xf0]  ;;  %v18344_v42 = vld [vmem:[#allocation5 + $0x604] sm:$0xf] }
  0x9c   :  { %2029 = vmatpush.bf16.msrb.mxu3 %v12715_v2  ;;  %v18343_v2 = vld [vmem:[#allocation5 + $0x5fc] sm:$0xf]  ;;  %v12864_v43 = vld [vmem:[#allocation5 + $0x644] sm:$0xf0]  ;;  %v12794_v51 = vld [vmem:[#allocation5 + $0x578] sm:$0xf] }
  0x9d   :  { %1991 = vmatpush.bf16.msrb.mxu0 %v12099_v11  ;;  %v12786_v11 = vld [vmem:[#allocation5 + $0x570] sm:$0xf]  ;;  %v12859_v12 = vor.u32 %v18343_v2, %v12856_v3 }
  0x9e   :  { %2004 = vmatpush.bf16.msrb.mxu1 %v12643_v15  ;;  %v12244_v15 = vld [vmem:[#allocation5 + $0x174] sm:$0xf0]  ;;  %v12454_v3 = vld [vmem:[#allocation5 + $0x2d0] sm:$0xf] }
  0x9f   :  { %2017 = vmatpush.bf16.msrb.mxu2 %v12103_v16  ;;  %v18326_v16 = vld [vmem:[#allocation5 + $0x574] sm:$0xf] }
  0xa0   :  { %2030 = vmatpush.bf16.msrb.mxu3 %v12647_v19  ;;  %1992 = vmatmul.bf16.vlgmr.msrb.gmra.mxu0 %v19934_v8  ;;  %v12787_v19 = vor.u32 %v18334_v13, %v12786_v11  ;;  %v12791_v24 = vor.u32 %v18326_v16, %v12788_v17  ;;  %v18242_v11 = vld [vmem:[#allocation5 + $0x2d4] sm:$0xf]  ;;  %v13071_v13 = vor.u32 %v18395_v0, %v13068_v1  ;;  %v13000_v17 = vld [vmem:[#allocation5 + $0x754] sm:$0xf0]  ;;  %v12726_v1 = vld [vmem:[#allocation5 + $0x4f0] sm:$0xf] }
  0xa1   :  { %2036 = vmatpush.bf16.msra.mxu0 %v12583_v20  ;;  %2005 = vmatmul.bf16.vlgmr.msrb.gmra.mxu1 %v19936_v9  ;;  %v12247_v20 = vor.u32 %v18190_v14, %v12244_v15  ;;  %v404_v14 = vld [vmem:[#allocation11] ss:$8 sm:$0xf]  ;;  %v18378_v16 = vld [vmem:[#allocation5 + $0x714] sm:$0xf] }
  0xa2   :  { %2049 = vmatpush.bf16.msra.mxu1 %v13127_v21  ;;  %2018 = vmatmul.bf16.vlgmr.msrb.gmra.mxu2 %v19934_v8  ;;  %v12174_v21 = vld [vmem:[#allocation5 + $0xa8] sm:$0xf]  ;;  %v18182_v0 = vld [vmem:[#allocation5 + $0xf0] sm:$0xf0] }
  0xa3   :  { %2062 = vmatpush.bf16.msra.mxu2 %v12587_v22  ;;  %2031 = vmatmul.bf16.vlgmr.msrb.gmra.mxu3 %v19936_v9  ;;  %v18181_v22 = vld [vmem:[#allocation5 + $0xe8] sm:$0xf0]  ;;  %v405_v15 = vld [vmem:[#allocation11] ss:$8 sm:$0xf0] }
  0xa4   :  { %2075 = vmatpush.bf16.msra.mxu3 %v13131_v26  ;;  %v18173_v26 = vld [vmem:[#allocation5 + $0xac] sm:$0xf]  ;;  %v12175_v30 = vor.u32 %v18181_v22, %v12174_v21  ;;  %v12386_v21 = vld [vmem:[#allocation5 + $0x248] sm:$0xf] }
  0xa5   :  { %2037 = vmatpush.bf16.msra.mxu0 %v12515_v32  ;;  %v18164_v32 = vld [vmem:[#allocation5 + $0x60] sm:$0xf0]  ;;  %v18233_v22 = vld [vmem:[#allocation5 + $0x288] sm:$0xf0] }
  0xa6   :  { %2050 = vmatpush.bf16.msra.mxu1 %v13059_v33  ;;  %v12719_v33 = vor.u32 %v18317_v25, %v12718_v23  ;;  %v12930_v23 = vld [vmem:[#allocation5 + $0x688] sm:$0xf]  ;;  %v13003_v25 = vor.u32 %v18378_v16, %v13000_v17 }
  0xa7   :  { %2063 = vmatpush.bf16.msra.mxu2 %v12519_v34  ;;  %v12179_v34 = vor.u32 %v18173_v26, %v12176_v27  ;;  %v18369_v26 = vld [vmem:[#allocation5 + $0x6c8] sm:$0xf0] }
  0xa8   :  { %2076 = vmatpush.bf16.msra.mxu3 %v13063_v38  ;;  %v12723_v38 = vor.u32 %v18309_v28, %v12720_v29  ;;  %v18225_v27 = vld [vmem:[#allocation5 + $0x24c] sm:$0xf]  ;;  %v12388_v28 = vld [vmem:[#allocation5 + $0x28c] sm:$0xf0] }
  0xa9   :  { %2038 = vmatpush.bf16.msra.mxu0 %v12447_v44  ;;  %v13134_v44 = vld [vmem:[#allocation5 + $0x820] sm:$0xf]  ;;  %v18361_v29 = vld [vmem:[#allocation5 + $0x68c] sm:$0xf] }
  0xaa   :  { %2051 = vmatpush.bf16.msra.mxu1 %v12991_v45  ;;  %v12107_v45 = vor.u32 %v18164_v32, %v12106_v31  ;;  %v12387_v31 = vor.u32 %v18233_v22, %v12386_v21  ;;  %v12318_v32 = vld [vmem:[#allocation5 + $0x1c0] sm:$0xf]  ;;  %v18293_v22 = vld [vmem:[#allocation5 + $0x46c] sm:$0xf] }
  0xab   :  { %2064 = vmatpush.bf16.msra.mxu2 %v12451_v46  ;;  %v18420_v46 = vld [vmem:[#allocation5 + $0x860] sm:$0xf0] }
  0xac   :  { %2077 = vmatpush.bf16.msra.mxu3 %v12995_v50  ;;  %v12111_v50 = vor.u32 %v18156_v37, %v12108_v39  ;;  %v13135_v55 = vor.u32 %v18420_v46, %v13134_v44  ;;  %v18352_v39 = vld [vmem:[#allocation5 + $0x640] sm:$0xf0]  ;;  %v12319_v44 = vor.u32 %v18216_v35, %v12318_v32 }
  0xad   :  { %2039 = vmatpush.bf16.msra.mxu0 %v12379_v56  ;;  %v12595_v56 = vor.u32 %v18276_v47, %v12592_v48  ;;  %v12863_v47 = vor.u32 %v18352_v39, %v12862_v36  ;;  %v12323_v48 = vor.u32 %v18208_v40, %v12320_v41 }
  0xae   :  { %2052 = vmatpush.bf16.msra.mxu1 %v12923_v57  ;;  %v12522_v57 = vld [vmem:[#allocation5 + $0x358] sm:$0xf] }
  0xaf   :  { %2065 = vmatpush.bf16.msra.mxu2 %v12383_v58  ;;  %v18267_v58 = vld [vmem:[#allocation5 + $0x398] sm:$0xf0] }
  0xb0   :  { %2078 = vmatpush.bf16.msra.mxu3 %v12927_v62  ;;  %v18259_v62 = vld [vmem:[#allocation5 + $0x35c] sm:$0xf]  ;;  %v12523_v2 = vor.u32 %v18267_v58, %v12522_v57  ;;  %v12796_v58 = vld [vmem:[#allocation5 + $0x5bc] sm:$0xf0] }
  0xb1   :  { %2040 = vmatpush.bf16.msra.mxu0 %v12311_v4  ;;  %v18250_v4 = vld [vmem:[#allocation5 + $0x310] sm:$0xf0]  ;;  %v12527_v7 = vor.u32 %v18259_v62, %v12524_v63  ;;  %v18327_v57 = vld [vmem:[#allocation5 + $0x57c] sm:$0xf]  ;;  %v12182_v63 = vld [vmem:[#allocation5 + $0xb0] sm:$0xf] }
  0xb2   :  { %2053 = vmatpush.bf16.msra.mxu1 %v12855_v5  ;;  %v12998_v5 = vld [vmem:[#allocation5 + $0x710] sm:$0xf] }
  0xb3   :  { %2066 = vmatpush.bf16.msra.mxu2 %v12315_v6  ;;  %v13067_v6 = vor.u32 %v18403_v61, %v13066_v59 }
  0xb4   :  { %2079 = vmatpush.bf16.msra.mxu3 %v12859_v12  ;;  %v12456_v12 = vld [vmem:[#allocation5 + $0x314] sm:$0xf0] }
  0xb5   :  { %2041 = vmatpush.bf16.msra.mxu0 %v12243_v18  ;;  %v12455_v18 = vor.u32 %v18250_v4, %v12454_v3  ;;  %v18318_v3 = vld [vmem:[#allocation5 + $0x530] sm:$0xf0] }
  0xb6   :  { %2054 = vmatpush.bf16.msra.mxu1 %v12787_v19  ;;  %v12999_v19 = vor.u32 %v18386_v10, %v12998_v5  ;;  %v18174_v4 = vld [vmem:[#allocation5 + $0xb4] sm:$0xf]  ;;  %v12184_v5 = vld [vmem:[#allocation5 + $0xf4] sm:$0xf0]  ;;  %v12183_v10 = vor.u32 %v18182_v0, %v12182_v63  ;;  %v12727_v16 = vor.u32 %v18318_v3, %v12726_v1  ;;  %v18243_v63 = vld [vmem:[#allocation5 + $0x2dc] sm:$0xf] }
  0xb7   :  { %2067 = vmatpush.bf16.msra.mxu2 %v12247_v20  ;;  %v12459_v20 = vor.u32 %v18242_v11, %v12456_v12  ;;  %v12114_v11 = vld [vmem:[#allocation5 + $0x28] sm:$0xf]  ;;  %v18165_v12 = vld [vmem:[#allocation5 + $0x68] sm:$0xf0]  ;;  %v12187_v17 = vor.u32 %v18174_v4, %v12184_v5  ;;  %v12464_v0 = vld [vmem:[#allocation5 + $0x31c] sm:$0xf0] }
  0xb8   :  { %2080 = vmatpush.bf16.msra.mxu3 %v12791_v24  ;;  %v19958_v24 = vor.u32 %v405_v15, %v404_v14  ;;  %v18379_v3 = vld [vmem:[#allocation5 + $0x71c] sm:$0xf]  ;;  %v13008_v4 = vld [vmem:[#allocation5 + $0x75c] sm:$0xf0] }
  0xb9   :  { %2042 = vmatpush.bf16.msra.mxu0 %v12175_v30  ;;  %v12932_v30 = vld [vmem:[#allocation5 + $0x6cc] sm:$0xf0] }
  0xba   :  { %2055 = vmatpush.bf16.msra.mxu1 %v12719_v33  ;;  %v12931_v33 = vor.u32 %v18369_v26, %v12930_v23  ;;  %v418_v37 = vperm.slane %v19958_v24, 0  ;;  %v12660_v23 = vld [vmem:[#allocation5 + $0x4ac] sm:$0xf0]  ;;  %v18285_v26 = vld [vmem:[#allocation5 + $0x428] sm:$0xf0]  ;;  %v419_v32 = vperm.slane %v19958_v24, 1 }
  0xbb   :  { %2068 = vmatpush.bf16.msra.mxu2 %v12179_v34  ;;  %v12391_v34 = vor.u32 %v18225_v27, %v12388_v28  ;;  %v13142_v27 = vld [vmem:[#allocation5 + $0x828] sm:$0xf]  ;;  %v18421_v28 = vld [vmem:[#allocation5 + $0x868] sm:$0xf0]  ;;  %v12663_v39 = vor.u32 %v18293_v22, %v12660_v23 }
  0xbc   :  { %2081 = vmatpush.bf16.msra.mxu3 %v12723_v38  ;;  %v12935_v38 = vor.u32 %v18361_v29, %v12932_v30  ;;  %v12115_v29 = vor.u32 %v18165_v12, %v12114_v11  ;;  %v18277_v30 = vld [vmem:[#allocation5 + $0x3ec] sm:$0xf]  ;;  %v12394_v11 = vld [vmem:[#allocation5 + $0x250] sm:$0xf]  ;;  %v18234_v12 = vld [vmem:[#allocation5 + $0x290] sm:$0xf0] }
  0xbd   :  { %2043 = vmatpush.bf16.msra.mxu0 %v12107_v45  ;;  %v1837_v45 = vpop.f32.mrf.mxu0 }
  0xbe   :  { %2056 = vmatpush.bf16.msra.mxu1 %v12651_v49  ;;  %v1850_v46 = vpop.f32.mrf.mxu1  ;;  %v12250_v49 = vld [vmem:[#allocation5 + $0x138] sm:$0xf]  ;;  %v1838_v52 = vadd.f32 %v1837_v45, %v418_v37  ;;  %v18413_v37 = vld [vmem:[#allocation5 + $0x82c] sm:$0xf]  ;;  %v18268_v45 = vld [vmem:[#allocation5 + $0x3a0] sm:$0xf0] }
  0xbf   :  { %2069 = vmatpush.bf16.msra.mxu2 %v12111_v50  ;;  %v18199_v50 = vld [vmem:[#allocation5 + $0x178] sm:$0xf0] }
  0xc0   :  { %2082 = vmatpush.bf16.msra.mxu3 %v12655_v53  ;;  %2044 = vmatmul.bf16.vlgmr.msra.gmra.mxu0 %v19934_v8  ;;  %v12867_v53 = vor.u32 %v18344_v42, %v12864_v43  ;;  %v19961_v59 = vadd.f32 %v1850_v46, %v1838_v52  ;;  %v13143_v42 = vor.u32 %v18421_v28, %v13142_v27  ;;  %v13074_v46 = vld [vmem:[#allocation5 + $0x7a0] sm:$0xf]  ;;  %v18396_v52 = vld [vmem:[#allocation5 + $0x7a4] sm:$0xf]  ;;  %v12326_v27 = vld [vmem:[#allocation5 + $0x1c8] sm:$0xf] }
  0xc1   :  { %2088 = vmatpush.bf16.msrb.mxu0 %v12591_v54  ;;  %2057 = vmatmul.bf16.vlgmr.msra.gmra.mxu1 %v19936_v9  ;;  %v18335_v54 = vld [vmem:[#allocation5 + $0x5b8] sm:$0xf0]  ;;  %v18217_v28 = vld [vmem:[#allocation5 + $0x208] sm:$0xf0] }
  0xc2   :  { %2101 = vmatpush.bf16.msrb.mxu1 %v13135_v55  ;;  %2070 = vmatmul.bf16.vlgmr.msra.gmra.mxu2 %v19934_v8  ;;  %v18191_v55 = vld [vmem:[#allocation5 + $0x13c] sm:$0xf]  ;;  %v12795_v61 = vor.u32 %v18335_v54, %v12794_v51 }
  0xc3   :  { %2114 = vmatpush.bf16.msrb.mxu2 %v12595_v56  ;;  %2083 = vmatmul.bf16.vlgmr.msra.gmra.mxu3 %v19936_v9  ;;  %v12252_v56 = vld [vmem:[#allocation5 + $0x17c] sm:$0xf0] }
  0xc4   :  { %2127 = vmatpush.bf16.msrb.mxu3 %v13139_v60  ;;  %v12251_v60 = vor.u32 %v18199_v50, %v12250_v49  ;;  %v12255_v62 = vor.u32 %v18191_v55, %v12252_v56  ;;  %v18260_v49 = vld [vmem:[#allocation5 + $0x364] sm:$0xf]  ;;  %v12532_v50 = vld [vmem:[#allocation5 + $0x3a4] sm:$0xf0] }
  0xc5   :  { %2089 = vmatpush.bf16.msrb.mxu0 %v12523_v2  ;;  %v12799_v2 = vor.u32 %v18327_v57, %v12796_v58  ;;  %v1839_v14 = vpop.f32.mrf.mxu0  ;;  %v12535_v56 = vor.u32 %v18260_v49, %v12532_v50  ;;  %v12462_v57 = vld [vmem:[#allocation5 + $0x2d8] sm:$0xf]  ;;  %v18251_v58 = vld [vmem:[#allocation5 + $0x318] sm:$0xf0] }
  0xc6   :  { %2102 = vmatpush.bf16.msrb.mxu1 %v13067_v6  ;;  %v18310_v6 = vld [vmem:[#allocation5 + $0x4f4] sm:$0xf]  ;;  %v1852_v15 = vpop.f32.mrf.mxu1  ;;  %v12463_v5 = vor.u32 %v18251_v58, %v12462_v57  ;;  %v13011_v14 = vor.u32 %v18379_v3, %v13008_v4  ;;  %v12734_v57 = vld [vmem:[#allocation5 + $0x4f8] sm:$0xf]  ;;  %v12666_v4 = vld [vmem:[#allocation5 + $0x470] sm:$0xf] }
  0xc7   :  { %2115 = vmatpush.bf16.msrb.mxu2 %v12527_v7  ;;  %v12728_v7 = vld [vmem:[#allocation5 + $0x534] sm:$0xf0]  ;;  %v18370_v15 = vld [vmem:[#allocation5 + $0x6d0] sm:$0xf0] }
  0xc8   :  { %2128 = vmatpush.bf16.msrb.mxu3 %v13071_v13  ;;  %v12658_v13 = vld [vmem:[#allocation5 + $0x468] sm:$0xf]  ;;  %v12731_v21 = vor.u32 %v18310_v6, %v12728_v7  ;;  %v420_v6 = vperm.slane %v19958_v24, 2  ;;  %v18166_v3 = vld [vmem:[#allocation5 + $0x70] sm:$0xf0] }
  0xc9   :  { %2090 = vmatpush.bf16.msrb.mxu0 %v12455_v18  ;;  %v18301_v18 = vld [vmem:[#allocation5 + $0x4a8] sm:$0xf0] }
  0xca   :  { %2103 = vmatpush.bf16.msrb.mxu1 %v12999_v19  ;;  %v18157_v19 = vld [vmem:[#allocation5 + $0x2c] sm:$0xf]  ;;  %v12659_v35 = vor.u32 %v18301_v18, %v12658_v13  ;;  %v12938_v13 = vld [vmem:[#allocation5 + $0x690] sm:$0xf]  ;;  %v18362_v18 = vld [vmem:[#allocation5 + $0x694] sm:$0xf] }
  0xcb   :  { %2116 = vmatpush.bf16.msrb.mxu2 %v12459_v20  ;;  %v12116_v20 = vld [vmem:[#allocation5 + $0x6c] sm:$0xf0] }
  0xcc   :  { %2129 = vmatpush.bf16.msrb.mxu3 %v13003_v25  ;;  %v12598_v25 = vld [vmem:[#allocation5 + $0x3e8] sm:$0xf]  ;;  %v12119_v36 = vor.u32 %v18157_v19, %v12116_v20  ;;  %v12940_v19 = vld [vmem:[#allocation5 + $0x6d4] sm:$0xf0] }
  0xcd   :  { %2091 = vmatpush.bf16.msrb.mxu0 %v12387_v31  ;;  %v12600_v31 = vld [vmem:[#allocation5 + $0x42c] sm:$0xf0]  ;;  %v12599_v40 = vor.u32 %v18285_v26, %v12598_v25  ;;  %v12939_v25 = vor.u32 %v18370_v15, %v12938_v13  ;;  %v18294_v13 = vld [vmem:[#allocation5 + $0x474] sm:$0xf] }
  0xce   :  { %2104 = vmatpush.bf16.msrb.mxu1 %v12931_v33  ;;  %v1863_v33 = vpop.f32.mrf.mxu2  ;;  %v12603_v43 = vor.u32 %v18277_v30, %v12600_v31  ;;  %v12943_v30 = vor.u32 %v18362_v18, %v12940_v19  ;;  %v18353_v31 = vld [vmem:[#allocation5 + $0x648] sm:$0xf0]  ;;  %v12606_v15 = vld [vmem:[#allocation5 + $0x3f0] sm:$0xf]  ;;  %v18422_v18 = vld [vmem:[#allocation5 + $0x870] sm:$0xf0] }
  0xcf   :  { %2117 = vmatpush.bf16.msrb.mxu2 %v12391_v34  ;;  %v1876_v34 = vpop.f32.mrf.mxu3  ;;  %v1864_v41 = vadd.f32 %v1863_v33, %v419_v32  ;;  %v18209_v32 = vld [vmem:[#allocation5 + $0x1cc] sm:$0xf]  ;;  %v12328_v33 = vld [vmem:[#allocation5 + $0x20c] sm:$0xf0] }
  0xd0   :  { %2130 = vmatpush.bf16.msrb.mxu3 %v12935_v38  ;;  %v13144_v38 = vld [vmem:[#allocation5 + $0x86c] sm:$0xf0] }
  0xd1   :  { %2092 = vmatpush.bf16.msrb.mxu0 %v12319_v44  ;;  %v12530_v44 = vld [vmem:[#allocation5 + $0x360] sm:$0xf]  ;;  %v19964_v51 = vadd.f32 %v1876_v34, %v1864_v41  ;;  %v18200_v41 = vld [vmem:[#allocation5 + $0x180] sm:$0xf0] }
  0xd2   :  { %2105 = vmatpush.bf16.msrb.mxu1 %v12863_v47  ;;  %v13147_v47 = vor.u32 %v18413_v37, %v13144_v38  ;;  %v12531_v54 = vor.u32 %v18268_v45, %v12530_v44  ;;  %v12327_v37 = vor.u32 %v18217_v28, %v12326_v27  ;;  %v18336_v44 = vld [vmem:[#allocation5 + $0x5c0] sm:$0xf0]  ;;  %v18414_v28 = vld [vmem:[#allocation5 + $0x834] sm:$0xf] }
  0xd3   :  { %2118 = vmatpush.bf16.msrb.mxu2 %v12323_v48  ;;  %v18404_v48 = vld [vmem:[#allocation5 + $0x7e0] sm:$0xf0] }
  0xd4   :  { %2131 = vmatpush.bf16.msrb.mxu3 %v12867_v53  ;;  %v13076_v53 = vld [vmem:[#allocation5 + $0x7e4] sm:$0xf0]  ;;  %v13075_v55 = vor.u32 %v18404_v48, %v13074_v46  ;;  %v18192_v45 = vld [vmem:[#allocation5 + $0x144] sm:$0xf] }
  0xd5   :  { %2093 = vmatpush.bf16.msrb.mxu0 %v12251_v60  ;;  %v13006_v60 = vld [vmem:[#allocation5 + $0x718] sm:$0xf]  ;;  %v12260_v46 = vld [vmem:[#allocation5 + $0x184] sm:$0xf0] }
  0xd6   :  { %2106 = vmatpush.bf16.msrb.mxu1 %v12795_v61  ;;  %v13079_v61 = vor.u32 %v18396_v52, %v13076_v53  ;;  %v1865_v1 = vpop.f32.mrf.mxu2  ;;  %v12804_v48 = vld [vmem:[#allocation5 + $0x5c4] sm:$0xf0] }
  0xd7   :  { %2119 = vmatpush.bf16.msrb.mxu2 %v12255_v62  ;;  %v18387_v62 = vld [vmem:[#allocation5 + $0x758] sm:$0xf0] }
  0xd8   :  { %2132 = vmatpush.bf16.msrb.mxu3 %v12799_v2  ;;  %v1878_v2 = vpop.f32.mrf.mxu3  ;;  %v13007_v7 = vor.u32 %v18387_v62, %v13006_v60  ;;  %v18319_v60 = vld [vmem:[#allocation5 + $0x538] sm:$0xf0]  ;;  %v12192_v62 = vld [vmem:[#allocation5 + $0xfc] sm:$0xf0] }
  0xd9   :  { %2094 = vmatpush.bf16.msrb.mxu0 %v12183_v10  ;;  %v12467_v10 = vor.u32 %v18243_v63, %v12464_v0  ;;  %v18311_v63 = vld [vmem:[#allocation5 + $0x4fc] sm:$0xf]  ;;  %v12736_v0 = vld [vmem:[#allocation5 + $0x53c] sm:$0xf0]  ;;  %v12122_v2 = vld [vmem:[#allocation5 + $0x30] sm:$0xf] }
  0xda   :  { %2107 = vmatpush.bf16.msrb.mxu1 %v12727_v16  ;;  %v18226_v16 = vld [vmem:[#allocation5 + $0x254] sm:$0xf]  ;;  %v12123_v19 = vor.u32 %v18166_v3, %v12122_v2  ;;  %v12402_v2 = vld [vmem:[#allocation5 + $0x258] sm:$0xf]  ;;  %v18235_v3 = vld [vmem:[#allocation5 + $0x298] sm:$0xf0] }
  0xdb   :  { %2120 = vmatpush.bf16.msrb.mxu2 %v12187_v17  ;;  %v12396_v17 = vld [vmem:[#allocation5 + $0x294] sm:$0xf0] }
  0xdc   :  { %2133 = vmatpush.bf16.msrb.mxu3 %v12731_v21  ;;  %v12395_v21 = vor.u32 %v18234_v12, %v12394_v11  ;;  %v12399_v26 = vor.u32 %v18226_v16, %v12396_v17  ;;  %v12124_v11 = vld [vmem:[#allocation5 + $0x74] sm:$0xf0]  ;;  %v12739_v12 = vor.u32 %v18311_v63, %v12736_v0  ;;  %v18286_v16 = vld [vmem:[#allocation5 + $0x430] sm:$0xf0]  ;;  %v13150_v17 = vld [vmem:[#allocation5 + $0x830] sm:$0xf] }
  0xdd   :  { %2095 = vmatpush.bf16.msrb.mxu0 %v12115_v29  ;;  %v1889_v20 = vpop.f32.mrf.mxu0  ;;  %v12870_v29 = vld [vmem:[#allocation5 + $0x608] sm:$0xf]  ;;  %v422_v63 = vperm.slane %v19958_v24, 4 }
  0xde   :  { %2108 = vmatpush.bf16.msrb.mxu1 %v12659_v35  ;;  %v1890_v22 = vadd.f32 %v1889_v20, %v420_v6  ;;  %v1902_v23 = vpop.f32.mrf.mxu1  ;;  %v18345_v35 = vld [vmem:[#allocation5 + $0x60c] sm:$0xf]  ;;  %v12871_v38 = vor.u32 %v18353_v31, %v12870_v29  ;;  %v18278_v20 = vld [vmem:[#allocation5 + $0x3f4] sm:$0xf]  ;;  %v13152_v29 = vld [vmem:[#allocation5 + $0x874] sm:$0xf0]  ;;  %v12607_v31 = vor.u32 %v18286_v16, %v12606_v15 }
  0xdf   :  { %2121 = vmatpush.bf16.msrb.mxu2 %v12119_v36  ;;  %v12872_v36 = vld [vmem:[#allocation5 + $0x64c] sm:$0xf0] }
  0xe0   :  { %2134 = vmatpush.bf16.msrb.mxu3 %v12663_v39  ;;  %2096 = vmatmul.bf16.vlgmr.msrb.gmra.mxu0 %v19934_v8  ;;  %v19971_v34 = vadd.f32 %v1902_v23, %v1890_v22  ;;  %v12331_v39 = vor.u32 %v18209_v32, %v12328_v33  ;;  %v421_v22 = vperm.slane %v19958_v24, 3  ;;  %v13151_v33 = vor.u32 %v18422_v18, %v13150_v17 }
  0xe1   :  { %2140 = vmatpush.bf16.msra.mxu0 %v12599_v40  ;;  %2109 = vmatmul.bf16.vlgmr.msrb.gmra.mxu1 %v19936_v9  ;;  %v12258_v40 = vld [vmem:[#allocation5 + $0x140] sm:$0xf] }
  0xe2   :  { %2153 = vmatpush.bf16.msra.mxu1 %v13143_v42  ;;  %2122 = vmatmul.bf16.vlgmr.msrb.gmra.mxu2 %v19934_v8  ;;  %v12802_v42 = vld [vmem:[#allocation5 + $0x580] sm:$0xf]  ;;  %v12259_v50 = vor.u32 %v18200_v41, %v12258_v40  ;;  %v18405_v40 = vld [vmem:[#allocation5 + $0x7e8] sm:$0xf0] }
  0xe3   :  { %2166 = vmatpush.bf16.msra.mxu2 %v12603_v43  ;;  %2135 = vmatmul.bf16.vlgmr.msrb.gmra.mxu3 %v19936_v9  ;;  %v12875_v43 = vor.u32 %v18345_v35, %v12872_v36  ;;  %v12803_v53 = vor.u32 %v18336_v44, %v12802_v42  ;;  %v12538_v36 = vld [vmem:[#allocation5 + $0x368] sm:$0xf]  ;;  %v18261_v41 = vld [vmem:[#allocation5 + $0x36c] sm:$0xf]  ;;  %v12540_v42 = vld [vmem:[#allocation5 + $0x3ac] sm:$0xf0] }
  0xe4   :  { %2179 = vmatpush.bf16.msra.mxu3 %v13147_v47  ;;  %v18328_v47 = vld [vmem:[#allocation5 + $0x584] sm:$0xf]  ;;  %v18397_v44 = vld [vmem:[#allocation5 + $0x7ac] sm:$0xf] }
  0xe5   :  { %2141 = vmatpush.bf16.msra.mxu0 %v12531_v54  ;;  %v1891_v49 = vpop.f32.mrf.mxu0  ;;  %v12263_v54 = vor.u32 %v18192_v45, %v12260_v46  ;;  %v12807_v58 = vor.u32 %v18328_v47, %v12804_v48  ;;  %v1915_v23 = vpop.f32.mrf.mxu2  ;;  %v13084_v45 = vld [vmem:[#allocation5 + $0x7ec] sm:$0xf0]  ;;  %v12543_v48 = vor.u32 %v18261_v41, %v12540_v42  ;;  %v18329_v41 = vld [vmem:[#allocation5 + $0x58c] sm:$0xf] }
  0xe6   :  { %2154 = vmatpush.bf16.msra.mxu1 %v13075_v55  ;;  %v1904_v52 = vpop.f32.mrf.mxu1  ;;  %v12190_v55 = vld [vmem:[#allocation5 + $0xb8] sm:$0xf]  ;;  %v1916_v32 = vadd.f32 %v1915_v23, %v421_v22  ;;  %v12470_v49 = vld [vmem:[#allocation5 + $0x2e0] sm:$0xf]  ;;  %v18354_v23 = vld [vmem:[#allocation5 + $0x650] sm:$0xf0] }
  0xe7   :  { %2167 = vmatpush.bf16.msra.mxu2 %v12535_v56  ;;  %v18183_v56 = vld [vmem:[#allocation5 + $0xf8] sm:$0xf0]  ;;  %v13014_v52 = vld [vmem:[#allocation5 + $0x720] sm:$0xf]  ;;  %v12812_v42 = vld [vmem:[#allocation5 + $0x5cc] sm:$0xf0] }
  0xe8   :  { %2180 = vmatpush.bf16.msra.mxu3 %v13079_v61  ;;  %v18175_v61 = vld [vmem:[#allocation5 + $0xbc] sm:$0xf]  ;;  %v12191_v1 = vor.u32 %v18183_v56, %v12190_v55  ;;  %v18244_v55 = vld [vmem:[#allocation5 + $0x2e4] sm:$0xf]  ;;  %v12472_v56 = vld [vmem:[#allocation5 + $0x324] sm:$0xf0] }
  0xe9   :  { %2142 = vmatpush.bf16.msra.mxu0 %v12463_v5  ;;  %v12735_v5 = vor.u32 %v18319_v60, %v12734_v57  ;;  %v12195_v6 = vor.u32 %v18175_v61, %v12192_v62  ;;  %v18380_v60 = vld [vmem:[#allocation5 + $0x724] sm:$0xf]  ;;  %v13016_v61 = vld [vmem:[#allocation5 + $0x764] sm:$0xf0] }
  0xea   :  { %2155 = vmatpush.bf16.msra.mxu1 %v13007_v7  ;;  %v18302_v7 = vld [vmem:[#allocation5 + $0x4b0] sm:$0xf0] }
  0xeb   :  { %2168 = vmatpush.bf16.msra.mxu2 %v12467_v10  ;;  %v18158_v10 = vld [vmem:[#allocation5 + $0x34] sm:$0xf] }
  0xec   :  { %2181 = vmatpush.bf16.msra.mxu3 %v13011_v14  ;;  %v12668_v14 = vld [vmem:[#allocation5 + $0x4b4] sm:$0xf0]  ;;  %v12127_v27 = vor.u32 %v18158_v10, %v12124_v11  ;;  %v12404_v10 = vld [vmem:[#allocation5 + $0x29c] sm:$0xf0]  ;;  %v18363_v11 = vld [vmem:[#allocation5 + $0x69c] sm:$0xf] }
  0xed   :  { %2143 = vmatpush.bf16.msra.mxu0 %v12395_v21  ;;  %v12608_v21 = vld [vmem:[#allocation5 + $0x434] sm:$0xf0]  ;;  %v1917_v57 = vpop.f32.mrf.mxu2 }
  0xee   :  { %2156 = vmatpush.bf16.msra.mxu1 %v12939_v25  ;;  %v1928_v25 = vpop.f32.mrf.mxu3  ;;  %v12611_v35 = vor.u32 %v18278_v20, %v12608_v21  ;;  %v18218_v20 = vld [vmem:[#allocation5 + $0x210] sm:$0xf0]  ;;  %v12878_v21 = vld [vmem:[#allocation5 + $0x610] sm:$0xf]  ;;  %v18312_v57 = vld [vmem:[#allocation5 + $0x504] sm:$0xf] }
  0xef   :  { %2169 = vmatpush.bf16.msra.mxu2 %v12399_v26  ;;  %v12667_v26 = vor.u32 %v18302_v7, %v12666_v4  ;;  %v12946_v4 = vld [vmem:[#allocation5 + $0x698] sm:$0xf]  ;;  %v18227_v7 = vld [vmem:[#allocation5 + $0x25c] sm:$0xf] }
  0xf0   :  { %2182 = vmatpush.bf16.msra.mxu3 %v12943_v30  ;;  %v12671_v30 = vor.u32 %v18294_v13, %v12668_v14  ;;  %v12403_v14 = vor.u32 %v18235_v3, %v12402_v2  ;;  %v12407_v18 = vor.u32 %v18227_v7, %v12404_v10  ;;  %v18303_v2 = vld [vmem:[#allocation5 + $0x4b8] sm:$0xf0]  ;;  %v12676_v7 = vld [vmem:[#allocation5 + $0x4bc] sm:$0xf0]  ;;  %v12614_v10 = vld [vmem:[#allocation5 + $0x3f8] sm:$0xf] }
  0xf1   :  { %2144 = vmatpush.bf16.msra.mxu0 %v12327_v37  ;;  %v18269_v37 = vld [vmem:[#allocation5 + $0x3a8] sm:$0xf0]  ;;  %v18159_v3 = vld [vmem:[#allocation5 + $0x3c] sm:$0xf] }
  0xf2   :  { %2157 = vmatpush.bf16.msra.mxu1 %v12871_v38  ;;  %v13082_v38 = vld [vmem:[#allocation5 + $0x7a8] sm:$0xf]  ;;  %v12539_v46 = vor.u32 %v18269_v37, %v12538_v36 }
  0xf3   :  { %2170 = vmatpush.bf16.msra.mxu2 %v12331_v39  ;;  %v13155_v39 = vor.u32 %v18414_v28, %v13152_v29  ;;  %v13083_v47 = vor.u32 %v18405_v40, %v13082_v38  ;;  %v18346_v28 = vld [vmem:[#allocation5 + $0x614] sm:$0xf]  ;;  %v12880_v29 = vld [vmem:[#allocation5 + $0x654] sm:$0xf0]  ;;  %v12810_v36 = vld [vmem:[#allocation5 + $0x588] sm:$0xf] }
  0xf4   :  { %2183 = vmatpush.bf16.msra.mxu3 %v12875_v43  ;;  %v19974_v43 = vadd.f32 %v1928_v25, %v1916_v32  ;;  %v18210_v25 = vld [vmem:[#allocation5 + $0x1d4] sm:$0xf]  ;;  %v12883_v37 = vor.u32 %v18346_v28, %v12880_v29  ;;  %v18337_v38 = vld [vmem:[#allocation5 + $0x5c8] sm:$0xf0]  ;;  %v12268_v40 = vld [vmem:[#allocation5 + $0x18c] sm:$0xf0] }
  0xf5   :  { %2145 = vmatpush.bf16.msra.mxu0 %v12259_v50  ;;  %v18252_v50 = vld [vmem:[#allocation5 + $0x320] sm:$0xf0]  ;;  %v12546_v29 = vld [vmem:[#allocation5 + $0x370] sm:$0xf] }
  0xf6   :  { %2158 = vmatpush.bf16.msra.mxu1 %v12803_v53  ;;  %v13087_v53 = vor.u32 %v18397_v44, %v13084_v45  ;;  %v12471_v62 = vor.u32 %v18252_v50, %v12470_v49  ;;  %v12198_v49 = vld [vmem:[#allocation5 + $0xc0] sm:$0xf]  ;;  %v18184_v50 = vld [vmem:[#allocation5 + $0x100] sm:$0xf0] }
  0xf7   :  { %2171 = vmatpush.bf16.msra.mxu2 %v12263_v54  ;;  %v18388_v54 = vld [vmem:[#allocation5 + $0x760] sm:$0xf0] }
  0xf8   :  { %2184 = vmatpush.bf16.msra.mxu3 %v12807_v58  ;;  %v1930_v58 = vpop.f32.mrf.mxu3  ;;  %v13015_v0 = vor.u32 %v18388_v54, %v13014_v52  ;;  %v12742_v52 = vld [vmem:[#allocation5 + $0x500] sm:$0xf]  ;;  %v18320_v54 = vld [vmem:[#allocation5 + $0x540] sm:$0xf0] }
  0xf9   :  { %2146 = vmatpush.bf16.msra.mxu0 %v12191_v1  ;;  %v12475_v1 = vor.u32 %v18244_v55, %v12472_v56  ;;  %v18176_v55 = vld [vmem:[#allocation5 + $0xc4] sm:$0xf]  ;;  %v12200_v56 = vld [vmem:[#allocation5 + $0x104] sm:$0xf0] }
  0xfa   :  { %2159 = vmatpush.bf16.msra.mxu1 %v12735_v5  ;;  %v13019_v5 = vor.u32 %v18380_v60, %v13016_v61  ;;  %v12744_v58 = vld [vmem:[#allocation5 + $0x544] sm:$0xf0]  ;;  %v12199_v60 = vor.u32 %v18184_v50, %v12198_v49  ;;  %v12130_v61 = vld [vmem:[#allocation5 + $0x38] sm:$0xf]  ;;  %v18468_v49 = vld [vmem:[#allocation7 + $0x15c] sm:$0xf0] }
  0xfb   :  { %2172 = vmatpush.bf16.msra.mxu2 %v12195_v6  ;;  %v18371_v6 = vld [vmem:[#allocation5 + $0x6d8] sm:$0xf0] }
  0xfc   :  { %2185 = vmatpush.bf16.msra.mxu3 %v12739_v12  ;;  %v12948_v12 = vld [vmem:[#allocation5 + $0x6dc] sm:$0xf0]  ;;  %v12947_v17 = vor.u32 %v18371_v6, %v12946_v4  ;;  %v12747_v4 = vor.u32 %v18312_v57, %v12744_v58  ;;  %v18295_v6 = vld [vmem:[#allocation5 + $0x47c] sm:$0xf] }
  0xfd   :  { %2147 = vmatpush.bf16.msra.mxu0 %v12123_v19  ;;  %v1941_v13 = vpop.f32.mrf.mxu0  ;;  %v12334_v19 = vld [vmem:[#allocation5 + $0x1d0] sm:$0xf]  ;;  %v12951_v22 = vor.u32 %v18363_v11, %v12948_v12  ;;  %v18287_v11 = vld [vmem:[#allocation5 + $0x438] sm:$0xf0]  ;;  %v13158_v12 = vld [vmem:[#allocation5 + $0x838] sm:$0xf] }
  0xfe   :  { %2160 = vmatpush.bf16.msra.mxu1 %v12667_v26  ;;  %v1942_v15 = vadd.f32 %v1941_v13, %v422_v63  ;;  %v1954_v16 = vpop.f32.mrf.mxu1  ;;  %v12336_v26 = vld [vmem:[#allocation5 + $0x214] sm:$0xf0]  ;;  %v12743_v63 = vor.u32 %v18320_v54, %v12742_v52  ;;  %v18532_v54 = vld [vmem:[#allocation7 + $0x35c] sm:$0xf0] }
  0xff   :  { %2173 = vmatpush.bf16.msra.mxu2 %v12127_v27  ;;  %v12339_v32 = vor.u32 %v18210_v25, %v12336_v26  ;;  %v12615_v25 = vor.u32 %v18287_v11, %v12614_v10 }
 0x100   :  { %2186 = vmatpush.bf16.msra.mxu3 %v12671_v30  ;;  %2148 = vmatmul.bf16.vlgmr.msra.gmra.mxu0 %v19934_v8  ;;  %v19981_v27 = vadd.f32 %v1954_v16, %v1942_v15  ;;  %v12335_v30 = vor.u32 %v18218_v20, %v12334_v19  ;;  %v13386_v15 = vld [vmem:[#allocation7 + $0x1c0] sm:$0xf] }
 0x101   :  { %2192 = vmatpush.bf16.msrb.mxu0 %v12607_v31  ;;  %2161 = vmatmul.bf16.vlgmr.msra.gmra.mxu1 %v19936_v9  ;;  %v12879_v31 = vor.u32 %v18354_v23, %v12878_v21  ;;  %v18484_v16 = vld [vmem:[#allocation7 + $0x1dc] sm:$0xf0]  ;;  %v12679_v23 = vor.u32 %v18295_v6, %v12676_v7  ;;  %v2270_v6 = vadd.f32 3.0, %v19961_v59  ;;  %v2271_v7 = vadd.f32 3.0, %v19964_v51 }
 0x102   :  { %2205 = vmatpush.bf16.msrb.mxu1 %v13151_v33  ;;  %2174 = vmatmul.bf16.vlgmr.msra.gmra.mxu2 %v19934_v8  ;;  %v12266_v33 = vld [vmem:[#allocation5 + $0x148] sm:$0xf]  ;;  %v13642_v21 = vld [vmem:[#allocation7 + $0x3c0] sm:$0xf]  ;;  %v13387_v28 = vor.u32 %v18484_v16, %v13386_v15  ;;  %v12342_v15 = vld [vmem:[#allocation5 + $0x1d8] sm:$0xf] }
 0x103   :  { %2218 = vmatpush.bf16.msrb.mxu2 %v12611_v35  ;;  %2187 = vmatmul.bf16.vlgmr.msra.gmra.mxu3 %v19936_v9  ;;  %v18201_v35 = vld [vmem:[#allocation5 + $0x188] sm:$0xf0]  ;;  %v18219_v16 = vld [vmem:[#allocation5 + $0x218] sm:$0xf0] }
 0x104   :  { %2231 = vmatpush.bf16.msrb.mxu3 %v13155_v39  ;;  %v18193_v39 = vld [vmem:[#allocation5 + $0x14c] sm:$0xf]  ;;  %v12267_v45 = vor.u32 %v18201_v35, %v12266_v33  ;;  %v18406_v33 = vld [vmem:[#allocation5 + $0x7f0] sm:$0xf0]  ;;  %v13354_v35 = vld [vmem:[#allocation7 + $0x180] sm:$0xf] }
 0x105   :  { %2193 = vmatpush.bf16.msrb.mxu0 %v12539_v46  ;;  %v1943_v44 = vpop.f32.mrf.mxu0 }
 0x106   :  { %2206 = vmatpush.bf16.msrb.mxu1 %v13083_v47  ;;  %v1956_v46 = vpop.f32.mrf.mxu1  ;;  %v12811_v47 = vor.u32 %v18337_v38, %v12810_v36  ;;  %v18476_v36 = vld [vmem:[#allocation7 + $0x19c] sm:$0xf0]  ;;  %v18253_v44 = vld [vmem:[#allocation5 + $0x328] sm:$0xf0] }
 0x107   :  { %2219 = vmatpush.bf16.msrb.mxu2 %v12543_v48  ;;  %v12271_v48 = vor.u32 %v18193_v39, %v12268_v40  ;;  %v18540_v38 = vld [vmem:[#allocation7 + $0x39c] sm:$0xf0] }
 0x108   :  { %2232 = vmatpush.bf16.msrb.mxu3 %v13087_v53  ;;  %v12815_v53 = vor.u32 %v18329_v41, %v12812_v42  ;;  %v13355_v41 = vor.u32 %v18476_v36, %v13354_v35  ;;  %v12478_v42 = vld [vmem:[#allocation5 + $0x2e8] sm:$0xf]  ;;  %v12274_v35 = vld [vmem:[#allocation5 + $0x150] sm:$0xf]  ;;  %v18202_v36 = vld [vmem:[#allocation5 + $0x190] sm:$0xf0] }
 0x109   :  { %2194 = vmatpush.bf16.msrb.mxu0 %v12471_v62  ;;  %v18167_v62 = vld [vmem:[#allocation5 + $0x78] sm:$0xf0] }
 0x10a   :  { %2207 = vmatpush.bf16.msrb.mxu1 %v13015_v0  ;;  %v12203_v0 = vor.u32 %v18176_v55, %v12200_v56  ;;  %v12131_v13 = vor.u32 %v18167_v62, %v12130_v61  ;;  %v12479_v55 = vor.u32 %v18253_v44, %v12478_v42  ;;  %v424_v56 = vperm.slane %v19958_v24, 6  ;;  %v18236_v61 = vld [vmem:[#allocation5 + $0x2a0] sm:$0xf0]  ;;  %v12954_v62 = vld [vmem:[#allocation5 + $0x6a0] sm:$0xf] }
 0x10b   :  { %2220 = vmatpush.bf16.msrb.mxu2 %v12475_v1  ;;  %v12674_v1 = vld [vmem:[#allocation5 + $0x478] sm:$0xf]  ;;  %v13482_v42 = vld [vmem:[#allocation7 + $0x280] sm:$0xf] }
 0x10c   :  { %2233 = vmatpush.bf16.msrb.mxu3 %v13019_v5  ;;  %v12132_v5 = vld [vmem:[#allocation5 + $0x7c] sm:$0xf0]  ;;  %v12675_v19 = vor.u32 %v18303_v2, %v12674_v1 }
 0x10d   :  { %2195 = vmatpush.bf16.msrb.mxu0 %v12403_v14  ;;  %v18423_v14 = vld [vmem:[#allocation5 + $0x878] sm:$0xf0]  ;;  %v12135_v20 = vor.u32 %v18159_v3, %v12132_v5  ;;  %v13290_v1 = vld [vmem:[#allocation7 + $0x100] sm:$0xf] }
 0x10e   :  { %2208 = vmatpush.bf16.msrb.mxu1 %v12947_v17  ;;  %v19983_v17 = vpop.f32.mrf.mxu2  ;;  %v13159_v26 = vor.u32 %v18423_v14, %v13158_v12  ;;  %v18460_v2 = vld [vmem:[#allocation7 + $0x11c] sm:$0xf0] }
 0x10f   :  { %2221 = vmatpush.bf16.msrb.mxu2 %v12407_v18  ;;  %v19985_v18 = vpop.f32.mrf.mxu3  ;;  %v13546_v3 = vld [vmem:[#allocation7 + $0x300] sm:$0xf]  ;;  %v13291_v14 = vor.u32 %v18460_v2, %v13290_v1  ;;  %v18168_v1 = vld [vmem:[#allocation5 + $0x80] sm:$0xf0] }
 0x110   :  { %2234 = vmatpush.bf16.msrb.mxu3 %v12951_v22  ;;  %v18548_v22 = vld [vmem:[#allocation7 + $0x3dc] sm:$0xf0] }
 0x111   :  { %2196 = vmatpush.bf16.msrb.mxu0 %v12335_v30  ;;  %v18270_v30 = vld [vmem:[#allocation5 + $0x3b0] sm:$0xf0]  ;;  %v18508_v44 = vld [vmem:[#allocation7 + $0x29c] sm:$0xf0] }
 0x112   :  { %2209 = vmatpush.bf16.msrb.mxu1 %v12879_v31  ;;  %v13090_v31 = vld [vmem:[#allocation5 + $0x7b0] sm:$0xf]  ;;  %v12547_v39 = vor.u32 %v18270_v30, %v12546_v29  ;;  %v2287_v29 = vmax.f32 %v2270_v6, 0.0  ;;  %v2288_v30 = vmax.f32 %v2271_v7, 0.0  ;;  %v13162_v6 = vld [vmem:[#allocation7] sm:$0xf] }
 0x113   :  { %2222 = vmatpush.bf16.msrb.mxu2 %v12339_v32  ;;  %v13643_v32 = vor.u32 %v18548_v22, %v13642_v21  ;;  %v13091_v40 = vor.u32 %v18406_v33, %v13090_v31  ;;  %v18355_v21 = vld [vmem:[#allocation5 + $0x658] sm:$0xf0]  ;;  %v13258_v22 = vld [vmem:[#allocation7 + $0xc0] sm:$0xf]  ;;  %v12343_v31 = vor.u32 %v18219_v16, %v12342_v15 }
 0x114   :  { %2235 = vmatpush.bf16.msrb.mxu3 %v12883_v37  ;;  %v13610_v37 = vld [vmem:[#allocation7 + $0x380] sm:$0xf] }
 0x115   :  { %2197 = vmatpush.bf16.msrb.mxu0 %v12267_v45  ;;  %v13022_v45 = vld [vmem:[#allocation5 + $0x728] sm:$0xf]  ;;  %v13611_v46 = vor.u32 %v18540_v38, %v13610_v37  ;;  %v12818_v37 = vld [vmem:[#allocation5 + $0x590] sm:$0xf]  ;;  %v13898_v15 = vld [vmem:[#allocation7 + $0x5c0] sm:$0xf] }
 0x116   :  { %2210 = vmatpush.bf16.msrb.mxu1 %v12811_v47  ;;  %v18389_v47 = vld [vmem:[#allocation5 + $0x768] sm:$0xf0]  ;;  %v1969_v50 = vpop.f32.mrf.mxu2  ;;  %v18612_v16 = vld [vmem:[#allocation7 + $0x5dc] sm:$0xf0] }
 0x117   :  { %2223 = vmatpush.bf16.msrb.mxu2 %v12271_v48  ;;  %v13322_v48 = vld [vmem:[#allocation7 + $0x140] sm:$0xf]  ;;  %v1982_v52 = vpop.f32.mrf.mxu3  ;;  %v13023_v57 = vor.u32 %v18389_v47, %v13022_v45  ;;  %v2305_v47 = vmin.f32 %v2288_v30, 6.0 }
 0x118   :  { %2236 = vmatpush.bf16.msrb.mxu3 %v12815_v53  ;;  %v13578_v53 = vld [vmem:[#allocation7 + $0x340] sm:$0xf]  ;;  %v13323_v58 = vor.u32 %v18468_v49, %v13322_v48  ;;  %v12275_v48 = vor.u32 %v18202_v36, %v12274_v35  ;;  %v13899_v36 = vor.u32 %v18612_v16, %v13898_v15 }
 0x119   :  { %2198 = vmatpush.bf16.msrb.mxu0 %v12199_v60  ;;  %v12410_v60 = vld [vmem:[#allocation5 + $0x260] sm:$0xf] }
 0x11a   :  { %2211 = vmatpush.bf16.msrb.mxu1 %v12743_v63  ;;  %v13579_v63 = vor.u32 %v18532_v54, %v13578_v53  ;;  %v12411_v10 = vor.u32 %v18236_v61, %v12410_v60  ;;  %v12206_v53 = vld [vmem:[#allocation5 + $0xc8] sm:$0xf]  ;;  %v18185_v54 = vld [vmem:[#allocation5 + $0x108] sm:$0xf0]  ;;  %v18436_v60 = vld [vmem:[#allocation7 + $0x5c] sm:$0xf0] }
 0x11b   :  { %2224 = vmatpush.bf16.msrb.mxu2 %v12203_v0  ;;  %v18372_v0 = vld [vmem:[#allocation5 + $0x6e0] sm:$0xf0]  ;;  %v13450_v61 = vld [vmem:[#allocation7 + $0x240] sm:$0xf] }
 0x11c   :  { %2237 = vmatpush.bf16.msrb.mxu3 %v12747_v4  ;;  %v18524_v4 = vld [vmem:[#allocation7 + $0x31c] sm:$0xf0] }
 0x11d   :  { %2199 = vmatpush.bf16.msrb.mxu0 %v12131_v13  ;;  %v1993_v5 = vpop.f32.mrf.mxu0  ;;  %v12955_v13 = vor.u32 %v18372_v0, %v12954_v62  ;;  %v18500_v62 = vld [vmem:[#allocation7 + $0x25c] sm:$0xf0] }
 0x11e   :  { %2212 = vmatpush.bf16.msrb.mxu1 %v12675_v19  ;;  %v1994_v11 = vadd.f32 %v1993_v5, %v424_v56  ;;  %v2006_v12 = vpop.f32.mrf.mxu1  ;;  %v12886_v19 = vld [vmem:[#allocation5 + $0x618] sm:$0xf]  ;;  %v13483_v56 = vor.u32 %v18508_v44, %v13482_v42  ;;  %v12138_v0 = vld [vmem:[#allocation5 + $0x40] sm:$0xf]  ;;  %v18304_v5 = vld [vmem:[#allocation5 + $0x4c0] sm:$0xf0] }
 0x11f   :  { %2225 = vmatpush.bf16.msrb.mxu2 %v12135_v20  ;;  %v13547_v20 = vor.u32 %v18524_v4, %v13546_v3  ;;  %v12682_v4 = vld [vmem:[#allocation5 + $0x480] sm:$0xf] }
 0x120   :  { %2238 = vmatpush.bf16.msrb.mxu3 %v12679_v23  ;;  %2200 = vmatmul.bf16.vlgmr.msrb.gmra.mxu0 %v19934_v8  ;;  %v18452_v23 = vld [vmem:[#allocation7 + $0xdc] sm:$0xf0] }
 0x121   :  { %2244 = vmatpush.bf16.msra.mxu0 %v12615_v25  ;;  %2213 = vmatmul.bf16.vlgmr.msrb.gmra.mxu1 %v19936_v9  ;;  %v19994_v25 = vadd.f32 %v2006_v12, %v1994_v11  ;;  %v13259_v33 = vor.u32 %v18452_v23, %v13258_v22  ;;  %v13451_v11 = vor.u32 %v18500_v62, %v13450_v61  ;;  %v18428_v12 = vld [vmem:[#allocation7 + $0x1c] sm:$0xf0] }
 0x122   :  { %2257 = vmatpush.bf16.msra.mxu1 %v13159_v26  ;;  %2226 = vmatmul.bf16.vlgmr.msrb.gmra.mxu2 %v19934_v8  ;;  %v13514_v26 = vld [vmem:[#allocation7 + $0x2c0] sm:$0xf] }
 0x123   :  { %8921 = vmatpush.bf16.msra.mxu2 %v13387_v28  ;;  %2239 = vmatmul.bf16.vlgmr.msrb.gmra.mxu3 %v19936_v9  ;;  %v18516_v28 = vld [vmem:[#allocation7 + $0x2dc] sm:$0xf0] }
 0x124   :  { %8934 = vmatpush.bf16.msra.mxu3 %v13643_v32  ;;  %v12887_v32 = vor.u32 %v18355_v21, %v12886_v19  ;;  %v13515_v38 = vor.u32 %v18516_v28, %v13514_v26  ;;  %v14154_v19 = vld [vmem:[#allocation7 + $0x7c0] sm:$0xf] }
 0x125   :  { %2245 = vmatpush.bf16.msra.mxu0 %v12547_v39  ;;  %v18338_v39 = vld [vmem:[#allocation5 + $0x5d0] sm:$0xf0]  ;;  %v1995_v45 = vpop.f32.mrf.mxu0  ;;  %v18676_v21 = vld [vmem:[#allocation7 + $0x7dc] sm:$0xf0]  ;;  %v19998_v26 = vpop.f32.mrf.mxu2 }
 0x126   :  { %2258 = vmatpush.bf16.msra.mxu1 %v13091_v40  ;;  %v13226_v40 = vld [vmem:[#allocation7 + $0x80] sm:$0xf]  ;;  %v2008_v49 = vpop.f32.mrf.mxu1  ;;  %v12819_v50 = vor.u32 %v18338_v39, %v12818_v37  ;;  %v20000_v28 = vpop.f32.mrf.mxu3  ;;  %v14155_v37 = vor.u32 %v18676_v21, %v14154_v19 }
 0x127   :  { %8922 = vmatpush.bf16.msra.mxu2 %v13355_v41  ;;  %v18444_v41 = vld [vmem:[#allocation7 + $0x9c] sm:$0xf0] }
 0x128   :  { %8935 = vmatpush.bf16.msra.mxu3 %v13611_v46  ;;  %v2304_v46 = vmin.f32 %v2287_v29, 6.0  ;;  %v13227_v52 = vor.u32 %v18444_v41, %v13226_v40  ;;  %v14410_v22 = vld [vmem:[#allocation7 + $0x9c0] sm:$0xf]  ;;  %v13163_v29 = vor.u32 %v18428_v12, %v13162_v6 }
 0x129   :  { %2246 = vmatpush.bf16.msra.mxu0 %v12479_v55  ;;  %v12750_v55 = vld [vmem:[#allocation5 + $0x508] sm:$0xf]  ;;  %v18740_v23 = vld [vmem:[#allocation7 + $0x9dc] sm:$0xf0] }
 0x12a   :  { %2259 = vmatpush.bf16.msra.mxu1 %v13023_v57  ;;  %v18321_v57 = vld [vmem:[#allocation5 + $0x548] sm:$0xf0]  ;;  %v2321_v7 = vmul.f32 %v2304_v46, %v19961_v59  ;;  %v423_v59 = vperm.slane %v19958_v24, 5  ;;  %v14666_v30 = vld [vmem:[#allocation7 + $0xbc0] sm:$0xf] }
 0x12b   :  { %8923 = vmatpush.bf16.msra.mxu2 %v13323_v58  ;;  %v13194_v58 = vld [vmem:[#allocation7 + $0x40] sm:$0xf]  ;;  %v12751_v2 = vor.u32 %v18321_v57, %v12750_v55 }
 0x12c   :  { %8936 = vmatpush.bf16.msra.mxu3 %v13579_v63  ;;  %v12207_v63 = vor.u32 %v18185_v54, %v12206_v53  ;;  %v13195_v3 = vor.u32 %v18436_v60, %v13194_v58  ;;  %v13866_v39 = vld [vmem:[#allocation7 + $0x580] sm:$0xf]  ;;  %v2273_v53 = vadd.f32 3.0, %v19974_v43 }
 0x12d   :  { %2247 = vmatpush.bf16.msra.mxu0 %v12411_v10  ;;  %v2322_v10 = vmul.f32 %v2305_v47, %v19964_v51  ;;  %v12683_v51 = vor.u32 %v18304_v5, %v12682_v4  ;;  %v18604_v40 = vld [vmem:[#allocation7 + $0x59c] sm:$0xf0]  ;;  %v1968_v47 = vadd.f32 %v19983_v17, %v423_v59 }
 0x12e   :  { %2260 = vmatpush.bf16.msra.mxu1 %v12955_v13  ;;  %v13418_v13 = vld [vmem:[#allocation7 + $0x200] sm:$0xf]  ;;  %v13867_v54 = vor.u32 %v18604_v40, %v13866_v39 }
 0x12f   :  { %8924 = vmatpush.bf16.msra.mxu2 %v13291_v14  ;;  %v18492_v14 = vld [vmem:[#allocation7 + $0x21c] sm:$0xf0] }
 0x130   :  { %8937 = vmatpush.bf16.msra.mxu3 %v13547_v20  ;;  %v12139_v20 = vor.u32 %v18168_v1, %v12138_v0  ;;  %v13419_v35 = vor.u32 %v18492_v14, %v13418_v13  ;;  %v14122_v41 = vld [vmem:[#allocation7 + $0x780] sm:$0xf]  ;;  %v2021_v1 = vpop.f32.mrf.mxu2 }
 0x131   :  { %2248 = vmatpush.bf16.msra.mxu0 %v12343_v31  ;;  %v18804_v31 = vld [vmem:[#allocation7 + $0xbdc] sm:$0xf0] }
 0x132   :  { %2261 = vmatpush.bf16.msra.mxu1 %v12887_v32  ;;  %v2338_v32 = vmul.f32 0.16666667, %v2321_v7  ;;  %v14667_v42 = vor.u32 %v18804_v31, %v14666_v30  ;;  %v18668_v44 = vld [vmem:[#allocation7 + $0x79c] sm:$0xf0]  ;;  %v2290_v7 = vmax.f32 %v2273_v53, 0.0 }
 0x133   :  { %8925 = vmatpush.bf16.msra.mxu2 %v13259_v33  ;;  %v2339_v33 = vmul.f32 0.16666667, %v2322_v10  ;;  %v14378_v45 = vld [vmem:[#allocation7 + $0x980] sm:$0xf] }
 0x134   :  { %8938 = vmatpush.bf16.msra.mxu3 %v13515_v38  ;;  %v14411_v38 = vor.u32 %v18740_v23, %v14410_v22  ;;  %v18732_v46 = vld [vmem:[#allocation7 + $0x99c] sm:$0xf0] }
 0x135   :  { %2249 = vmatpush.bf16.msra.mxu0 %v12275_v48  ;;  %v14634_v48 = vld [vmem:[#allocation7 + $0xb80] sm:$0xf]  ;;  %v20008_v55 = vpack.c.bf16 %v2339_v33, %v2339_v33  ;;  %v14379_v57 = vor.u32 %v18732_v46, %v14378_v45 }
 0x136   :  { %2262 = vmatpush.bf16.msra.mxu1 %v12819_v50  ;;  %v18796_v49 = vld [vmem:[#allocation7 + $0xb9c] sm:$0xf0]  ;;  %v20004_v50 = vpack.c.bf16 %v2338_v32, %v2338_v32 }
 0x137   :  { %8926 = vmatpush.bf16.msra.mxu2 %v13227_v52  ;;  %v2272_v52 = vadd.f32 3.0, %v19971_v34  ;;  %v13834_v17 = vld [vmem:[#allocation7 + $0x540] sm:$0xf]  ;;  %v14635_v61 = vor.u32 %v18796_v49, %v14634_v48 }
 0x138   :  { %8939 = vmatpush.bf16.msra.mxu3 %v13483_v56  ;;  %v14123_v56 = vor.u32 %v18668_v44, %v14122_v41  ;;  %v18596_v58 = vld [vmem:[#allocation7 + $0x55c] sm:$0xf0] }
 0x139   :  { %2250 = vmatpush.bf16.msra.mxu0 %v12207_v63  ;;  %v14090_v60 = vld [vmem:[#allocation7 + $0x740] sm:$0xf]  ;;  %v2289_v6 = vmax.f32 %v2272_v52, 0.0 }
 0x13a   :  { %2263 = vmatpush.bf16.msra.mxu1 %v12751_v2  ;;  %v18660_v62 = vld [vmem:[#allocation7 + $0x75c] sm:$0xf0]  ;;  %v2034_v2 = vpop.f32.mrf.mxu3 }
 0x13b   :  { %8927 = vmatpush.bf16.msra.mxu2 %v13195_v3  ;;  %v14346_v63 = vld [vmem:[#allocation7 + $0x940] sm:$0xf]  ;;  %v20012_v3 = vadd.f32 %v19985_v18, %v1968_v47  ;;  %v14091_v10 = vor.u32 %v18660_v62, %v14090_v60  ;;  %v2306_v59 = vmin.f32 %v2289_v6, 6.0 }
 0x13c   :  { %8940 = vmatpush.bf16.msra.mxu3 %v13451_v11  ;;  %v18724_v0 = vld [vmem:[#allocation7 + $0x95c] sm:$0xf0] }
 0x13d   :  { %2251 = vmatpush.bf16.msra.mxu0 %v12139_v20  ;;  %v14602_v4 = vld [vmem:[#allocation7 + $0xb40] sm:$0xf]  ;;  %v14347_v11 = vor.u32 %v18724_v0, %v14346_v63  ;;  %v2274_v20 = vadd.f32 3.0, %v19981_v27  ;;  %v2275_v21 = vadd.f32 3.0, %v20012_v3  ;;  %v20019_v23 = vpop.f32.mrf.mxu0  ;;  %v2323_v46 = vmul.f32 %v2306_v59, %v19971_v34 }
 0x13e   :  { %2264 = vmatpush.bf16.msra.mxu1 %v12683_v51  ;;  %v18788_v5 = vld [vmem:[#allocation7 + $0xb5c] sm:$0xf0]  ;;  %v2307_v51 = vmin.f32 %v2290_v7, 6.0  ;;  %v20021_v30 = vpop.f32.mrf.mxu1 }
 0x13f   :  { %8928 = vmatpush.bf16.msra.mxu2 %v13163_v29  ;;  %v13802_v12 = vld [vmem:[#allocation7 + $0x500] sm:$0xf]  ;;  %v14603_v14 = vor.u32 %v18788_v5, %v14602_v4  ;;  %v2291_v41 = vmax.f32 %v2274_v20, 0.0  ;;  %v20029_v4 = vmul.f32 0.16666667, %v2323_v46  ;;  %v425_v20 = vperm.slane %v19958_v24, 7 }
 0x140   :  { %8941 = vmatpush.bf16.msra.mxu3 %v13419_v35  ;;  %2252 = vmatmul.bf16.vlgmr.msra.gmra.mxu0 %v19934_v8  ;;  %v13835_v8 = vor.u32 %v18596_v58, %v13834_v17  ;;  %v18588_v13 = vld [vmem:[#allocation7 + $0x51c] sm:$0xf0]  ;;  %v2324_v34 = vmul.f32 %v2307_v51, %v19974_v43 }
 0x141   :  { %8947 = vmatpush.bf16.msrb.mxu0 %v13899_v36  ;;  %2265 = vmatmul.bf16.vlgmr.msra.gmra.mxu1 %v19936_v9  ;;  %v14058_v18 = vld [vmem:[#allocation7 + $0x700] sm:$0xf]  ;;  %v13803_v29 = vor.u32 %v18588_v13, %v13802_v12  ;;  %v2308_v5 = vmin.f32 %v2291_v41, 6.0 }
 0x142   :  { %8960 = vmatpush.bf16.msrb.mxu1 %v14155_v37  ;;  %8929 = vmatmul.bf16.vlgmr.msra.gmra.mxu2 %v20004_v50  ;;  %v18652_v15 = vld [vmem:[#allocation7 + $0x71c] sm:$0xf0] }
 0x143   :  { %8973 = vmatpush.bf16.msrb.mxu2 %v14411_v38  ;;  %8942 = vmatmul.bf16.vlgmr.msra.gmra.mxu3 %v20008_v55  ;;  %v14314_v16 = vld [vmem:[#allocation7 + $0x900] sm:$0xf]  ;;  %v14059_v31 = vor.u32 %v18652_v15, %v14058_v18 }
 0x144   :  { %8986 = vmatpush.bf16.msrb.mxu3 %v14667_v42  ;;  %v18716_v19 = vld [vmem:[#allocation7 + $0x91c] sm:$0xf0]  ;;  %v2292_v42 = vmax.f32 %v2275_v21, 0.0  ;;  %v2341_v21 = vmul.f32 0.16666667, %v2324_v34 }
 0x145   :  { %8948 = vmatpush.bf16.msrb.mxu0 %v13867_v54  ;;  %v14570_v22 = vld [vmem:[#allocation7 + $0xb00] sm:$0xf]  ;;  %v14315_v32 = vor.u32 %v18716_v19, %v14314_v16  ;;  %v20024_v62 = vpop.f32.mrf.mxu2  ;;  %v2047_v1 = vpop.f32.mrf.mxu0 }
 0x146   :  { %8961 = vmatpush.bf16.msrb.mxu1 %v14123_v56  ;;  %v18780_v9 = vld [vmem:[#allocation7 + $0xb1c] sm:$0xf0]  ;;  %v20027_v2 = vpop.f32.mrf.mxu3 }
 0x147   :  { %8974 = vmatpush.bf16.msrb.mxu2 %v14379_v57  ;;  %v13770_v33 = vld [vmem:[#allocation7 + $0x4c0] sm:$0xf]  ;;  %v14571_v37 = vor.u32 %v18780_v9, %v14570_v22 }
 0x148   :  { %8987 = vmatpush.bf16.msrb.mxu3 %v14635_v61  ;;  %v18580_v35 = vld [vmem:[#allocation7 + $0x4dc] sm:$0xf0] }
 0x149   :  { %8949 = vmatpush.bf16.msrb.mxu0 %v13835_v8  ;;  %v14026_v36 = vld [vmem:[#allocation7 + $0x6c0] sm:$0xf]  ;;  %v13771_v47 = vor.u32 %v18580_v35, %v13770_v33  ;;  %v2060_v8 = vpop.f32.mrf.mxu1 }
 0x14a   :  { %8962 = vmatpush.bf16.msrb.mxu1 %v14091_v10  ;;  %v18644_v38 = vld [vmem:[#allocation7 + $0x6dc] sm:$0xf0] }
 0x14b   :  { %8975 = vmatpush.bf16.msrb.mxu2 %v14347_v11  ;;  %v14282_v39 = vld [vmem:[#allocation7 + $0x8c0] sm:$0xf]  ;;  %v14027_v53 = vor.u32 %v18644_v38, %v14026_v36 }
 0x14c   :  { %8988 = vmatpush.bf16.msrb.mxu3 %v14603_v14  ;;  %v18708_v40 = vld [vmem:[#allocation7 + $0x8dc] sm:$0xf0]  ;;  %v2309_v14 = vmin.f32 %v2292_v42, 6.0 }
 0x14d   :  { %v14538_v44 = vld [vmem:[#allocation7 + $0xac0] sm:$0xf]  ;;  %8950 = vmatpush.bf16.msrb.mxu0 %v13803_v29  ;;  %v14283_v54 = vor.u32 %v18708_v40, %v14282_v39  ;;  %v2020_v40 = vadd.f32 %v19998_v26, %v425_v20 }
 0x14e   :  { %v18772_v45 = vld [vmem:[#allocation7 + $0xadc] sm:$0xf0]  ;;  %8963 = vmatpush.bf16.msrb.mxu1 %v14059_v31  ;;  %v2326_v24 = vmul.f32 %v2309_v14, %v20012_v3 }
 0x14f   :  { %v13738_v48 = vld [vmem:[#allocation7 + $0x480] sm:$0xf]  ;;  %8976 = vmatpush.bf16.msrb.mxu2 %v14315_v32  ;;  %v14539_v58 = vor.u32 %v18772_v45, %v14538_v44  ;;  %v2325_v32 = vmul.f32 %v2308_v5, %v19981_v27  ;;  %v2073_v45 = vpop.f32.mrf.mxu2 }
 0x150   :  { %v18572_v49 = vld [vmem:[#allocation7 + $0x49c] sm:$0xf0]  ;;  %8989 = vmatpush.bf16.msrb.mxu3 %v14571_v37 }
 0x151   :  { %v13994_v52 = vld [vmem:[#allocation7 + $0x680] sm:$0xf]  ;;  %8951 = vmatpush.bf16.msrb.mxu0 %v13771_v47  ;;  %v13739_v6 = vor.u32 %v18572_v49, %v13738_v48  ;;  %v2086_v48 = vpop.f32.mrf.mxu3 }
 0x152   :  { %v18636_v56 = vld [vmem:[#allocation7 + $0x69c] sm:$0xf0]  ;;  %8964 = vmatpush.bf16.msrb.mxu1 %v14027_v53 }
 0x153   :  { %v14250_v57 = vld [vmem:[#allocation7 + $0x880] sm:$0xf]  ;;  %8977 = vmatpush.bf16.msrb.mxu2 %v14283_v54  ;;  %v13995_v10 = vor.u32 %v18636_v56, %v13994_v52  ;;  %v2342_v56 = vmul.f32 0.16666667, %v2325_v32 }
 0x154   :  { %v18700_v17 = vld [vmem:[#allocation7 + $0x89c] sm:$0xf0]  ;;  %8990 = vmatpush.bf16.msrb.mxu3 %v14539_v58 }
 0x155   :  { %v408_v60 = vld [vmem:[#allocation11 + $0x40] ss:$8 sm:$0xf]  ;;  %v14251_v11 = vor.u32 %v18700_v17, %v14250_v57  ;;  %8952 = vmatpush.bf16.msrb.mxu0 %v13739_v6 }
 0x156   :  { %v409_v61 = vld [vmem:[#allocation11 + $0x40] ss:$8 sm:$0xf0]  ;;  %8965 = vmatpush.bf16.msrb.mxu1 %v13995_v10 }
 0x157   :  { %v14506_v63 = vld [vmem:[#allocation7 + $0xa80] sm:$0xf]  ;;  %v20031_v43 = vor.u32 %v409_v61, %v408_v60  ;;  %8978 = vmatpush.bf16.msrb.mxu2 %v14251_v11  ;;  %v2343_v60 = vmul.f32 0.16666667, %v2326_v24  ;;  %v20040_v61 = vadd.f32 %v20000_v28, %v2020_v40  ;;  %v20047_v28 = vpack.c.bf16 %v2341_v21, %v2341_v21 }
 0x158   :  { %v18764_v0 = vld [vmem:[#allocation7 + $0xa9c] sm:$0xf0] }
 0x159   :  { %v13706_v7 = vld [vmem:[#allocation7 + $0x440] sm:$0xf]  ;;  %v14507_v15 = vor.u32 %v18764_v0, %v14506_v63  ;;  %v426_v38 = vperm.slane %v20031_v43, 0  ;;  %v427_v8 = vperm.slane %v20031_v43, 1  ;;  %v2277_v20 = vadd.f32 3.0, %v20040_v61 }
 0x15a   :  { %v18564_v12 = vld [vmem:[#allocation7 + $0x45c] sm:$0xf0] }
 0x15b   :  { %v13962_v13 = vld [vmem:[#allocation7 + $0x640] sm:$0xf]  ;;  %v13707_v59 = vor.u32 %v18564_v12, %v13706_v7  ;;  %8991 = vmatpush.bf16.msrb.mxu3 %v14507_v15  ;;  %v2046_v58 = vadd.f32 %v20019_v23, %v426_v38  ;;  %v20045_v23 = vpack.c.bf16 %v20029_v4, %v20029_v4 }
 0x15c   :  { %v18628_v18 = vld [vmem:[#allocation7 + $0x65c] sm:$0xf0] }
 0x15d   :  { %v14218_v16 = vld [vmem:[#allocation7 + $0x840] sm:$0xf]  ;;  %v13963_v33 = vor.u32 %v18628_v18, %v13962_v13  ;;  %8953 = vmatpush.bf16.msrb.mxu0 %v13707_v59  ;;  %v20050_v18 = vadd.f32 %v20021_v30, %v2046_v58  ;;  %v2072_v30 = vadd.f32 %v20024_v62, %v427_v8 }
 0x15e   :  { %v18692_v19 = vld [vmem:[#allocation7 + $0x85c] sm:$0xf0] }
 0x15f   :  { %v14474_v22 = vld [vmem:[#allocation7 + $0xa40] sm:$0xf]  ;;  %v14219_v35 = vor.u32 %v18692_v19, %v14218_v16  ;;  %8966 = vmatpush.bf16.msrb.mxu1 %v13963_v33  ;;  %v20052_v16 = vpack.c.bf16 %v2342_v56, %v2342_v56  ;;  %v2276_v19 = vadd.f32 3.0, %v19994_v25 }
 0x160   :  { %v18756_v9 = vld [vmem:[#allocation7 + $0xa5c] sm:$0xf0] }
 0x161   :  { %v13674_v51 = vld [vmem:[#allocation7 + $0x400] sm:$0xf]  ;;  %v14475_v39 = vor.u32 %v18756_v9, %v14474_v22  ;;  %8979 = vmatpush.bf16.msrb.mxu2 %v14219_v35  ;;  %v2293_v24 = vmax.f32 %v2276_v19, 0.0 }
 0x162   :  { %v18556_v29 = vld [vmem:[#allocation7 + $0x41c] sm:$0xf0] }
 0x163   :  { %v13930_v31 = vld [vmem:[#allocation7 + $0x600] sm:$0xf]  ;;  %v13675_v49 = vor.u32 %v18556_v29, %v13674_v51  ;;  %8992 = vmatpush.bf16.msrb.mxu3 %v14475_v39  ;;  %v20057_v29 = vpack.c.bf16 %v2343_v60, %v2343_v60  ;;  %v2294_v39 = vmax.f32 %v2277_v20, 0.0  ;;  %v2310_v56 = vmin.f32 %v2293_v24, 6.0 }
 0x164   :  { %v18620_v36 = vld [vmem:[#allocation7 + $0x61c] sm:$0xf0] }
 0x165   :  { %v14186_v37 = vld [vmem:[#allocation7 + $0x800] sm:$0xf]  ;;  %v13931_v3 = vor.u32 %v18620_v36, %v13930_v31  ;;  %8954 = vmatpush.bf16.msrb.mxu0 %v13675_v49  ;;  %v2278_v36 = vadd.f32 3.0, %v20050_v18 }
 0x166   :  { %v18684_v41 = vld [vmem:[#allocation7 + $0x81c] sm:$0xf0] }
 0x167   :  { %v14442_v42 = vld [vmem:[#allocation7 + $0xa00] sm:$0xf]  ;;  %v14187_v57 = vor.u32 %v18684_v41, %v14186_v37  ;;  %8967 = vmatpush.bf16.msrb.mxu1 %v13931_v3  ;;  %v2311_v3 = vmin.f32 %v2294_v39, 6.0 }
 0x168   :  { %v18748_v44 = vld [vmem:[#allocation7 + $0xa1c] sm:$0xf0]  ;;  %8955 = vmatmul.bf16.vlgmr.msrb.gmra.mxu0 %v20045_v23 }
 0x169   :  { %v14922_v46 = vld [vmem:[#allocation7 + $0xdc0] sm:$0xf]  ;;  %v14443_v34 = vor.u32 %v18748_v44, %v14442_v42  ;;  %8980 = vmatpush.bf16.msrb.mxu2 %v14187_v57 }
 0x16a   :  { %v18868_v27 = vld [vmem:[#allocation7 + $0xddc] sm:$0xf0]  ;;  %8968 = vmatmul.bf16.vlgmr.msrb.gmra.mxu1 %v20047_v28 }
 0x16b   :  { %v15178_v47 = vld [vmem:[#allocation7 + $0xfc0] sm:$0xf]  ;;  %v14923_v63 = vor.u32 %v18868_v27, %v14922_v46  ;;  %8993 = vmatpush.bf16.msrb.mxu3 %v14443_v34  ;;  %v20065_v46 = vadd.f32 %v20027_v2, %v2072_v30 }
 0x16c   :  { %v18932_v52 = vld [vmem:[#allocation7 + $0xfdc] sm:$0xf0]  ;;  %8981 = vmatmul.bf16.vlgmr.msrb.gmra.mxu2 %v20052_v16 }
 0x16d   :  { %v15434_v53 = vld [vmem:[#allocation7 + $0x11c0] sm:$0xf]  ;;  %v15179_v1 = vor.u32 %v18932_v52, %v15178_v47  ;;  %8999 = vmatpush.bf16.msra.mxu0 %v14923_v63  ;;  %v2295_v52 = vmax.f32 %v2278_v36, 0.0  ;;  %v2279_v60 = vadd.f32 3.0, %v20065_v46 }
 0x16e   :  { %v18996_v54 = vld [vmem:[#allocation7 + $0x11dc] sm:$0xf0]  ;;  %8994 = vmatmul.bf16.vlgmr.msrb.gmra.mxu3 %v20057_v29 }
 0x16f   :  { %v15690_v17 = vld [vmem:[#allocation7 + $0x13c0] sm:$0xf]  ;;  %v15435_v5 = vor.u32 %v18996_v54, %v15434_v53  ;;  %9012 = vmatpush.bf16.msra.mxu1 %v15179_v1  ;;  %v2312_v8 = vmin.f32 %v2295_v52, 6.0  ;;  %v2296_v19 = vmax.f32 %v2279_v60, 0.0 }
 0x170   :  { %v19060_v26 = vld [vmem:[#allocation7 + $0x13dc] sm:$0xf0] }
 0x171   :  { %v14890_v0 = vld [vmem:[#allocation7 + $0xd80] sm:$0xf]  ;;  %v15691_v10 = vor.u32 %v19060_v26, %v15690_v17  ;;  %9025 = vmatpush.bf16.msra.mxu2 %v15435_v5  ;;  %v20067_v26 = vpop.f32.mrf.mxu0  ;;  %v2313_v39 = vmin.f32 %v2296_v19, 6.0 }
 0x172   :  { %v18860_v6 = vld [vmem:[#allocation7 + $0xd9c] sm:$0xf0] }
 0x173   :  { %v15146_v7 = vld [vmem:[#allocation7 + $0xf80] sm:$0xf]  ;;  %v14891_v22 = vor.u32 %v18860_v6, %v14890_v0  ;;  %9038 = vmatpush.bf16.msra.mxu3 %v15691_v10  ;;  %v20070_v0 = vpop.f32.mrf.mxu1 }
 0x174   :  { %v18924_v11 = vld [vmem:[#allocation7 + $0xf9c] sm:$0xf0] }
 0x175   :  { %v15402_v12 = vld [vmem:[#allocation7 + $0x1180] sm:$0xf]  ;;  %v15147_v4 = vor.u32 %v18924_v11, %v15146_v7  ;;  %9000 = vmatpush.bf16.msra.mxu0 %v14891_v22 }
 0x176   :  { %v18988_v13 = vld [vmem:[#allocation7 + $0x119c] sm:$0xf0] }
 0x177   :  { %v15658_v14 = vld [vmem:[#allocation7 + $0x1380] sm:$0xf]  ;;  %v15403_v21 = vor.u32 %v18988_v13, %v15402_v12  ;;  %9013 = vmatpush.bf16.msra.mxu1 %v15147_v4  ;;  %v2327_v12 = vmul.f32 %v2310_v56, %v19994_v25  ;;  %v2328_v13 = vmul.f32 %v2311_v3, %v20040_v61  ;;  %v20076_v25 = vpop.f32.mrf.mxu3  ;;  %v2329_v61 = vmul.f32 %v2312_v8, %v20050_v18 }
 0x178   :  { %v19052_v15 = vld [vmem:[#allocation7 + $0x139c] sm:$0xf0] }
 0x179   :  { %v14858_v9 = vld [vmem:[#allocation7 + $0xd40] sm:$0xf]  ;;  %v15659_v31 = vor.u32 %v19052_v15, %v15658_v14  ;;  %9026 = vmatpush.bf16.msra.mxu2 %v15403_v21  ;;  %v20081_v36 = vmul.f32 0.16666667, %v2328_v13  ;;  %v2099_v24 = vpop.f32.mrf.mxu0 }
 0x17a   :  { %v18852_v59 = vld [vmem:[#allocation7 + $0xd5c] sm:$0xf0] }
 0x17b   :  { %v15114_v51 = vld [vmem:[#allocation7 + $0xf40] sm:$0xf]  ;;  %v14859_v62 = vor.u32 %v18852_v59, %v14858_v9  ;;  %9039 = vmatpush.bf16.msra.mxu3 %v15659_v31  ;;  %v20074_v9 = vpop.f32.mrf.mxu2 }
 0x17c   :  { %v18916_v32 = vld [vmem:[#allocation7 + $0xf5c] sm:$0xf0] }
 0x17d   :  { %v15370_v33 = vld [vmem:[#allocation7 + $0x1140] sm:$0xf]  ;;  %v15115_v40 = vor.u32 %v18916_v32, %v15114_v51  ;;  %9001 = vmatpush.bf16.msra.mxu0 %v14859_v62 }
 0x17e   :  { %v18980_v35 = vld [vmem:[#allocation7 + $0x115c] sm:$0xf0] }
 0x17f   :  { %v15626_v37 = vld [vmem:[#allocation7 + $0x1340] sm:$0xf]  ;;  %v15371_v41 = vor.u32 %v18980_v35, %v15370_v33  ;;  %9014 = vmatpush.bf16.msra.mxu1 %v15115_v40  ;;  %v20079_v35 = vmul.f32 0.16666667, %v2327_v12  ;;  %v2138_v8 = vpop.f32.mrf.mxu3 }
 0x180   :  { %v19044_v38 = vld [vmem:[#allocation7 + $0x135c] sm:$0xf0] }
 0x181   :  { %v14826_v42 = vld [vmem:[#allocation7 + $0xd00] sm:$0xf]  ;;  %v15627_v27 = vor.u32 %v19044_v38, %v15626_v37  ;;  %9027 = vmatpush.bf16.msra.mxu2 %v15371_v41 }
 0x182   :  { %v18844_v44 = vld [vmem:[#allocation7 + $0xd1c] sm:$0xf0] }
 0x183   :  { %v15082_v45 = vld [vmem:[#allocation7 + $0xf00] sm:$0xf]  ;;  %v14827_v57 = vor.u32 %v18844_v44, %v14826_v42  ;;  %9040 = vmatpush.bf16.msra.mxu3 %v15627_v27  ;;  %v2112_v44 = vpop.f32.mrf.mxu1 }
 0x184   :  { %v18908_v47 = vld [vmem:[#allocation7 + $0xf1c] sm:$0xf0] }
 0x185   :  { %v15338_v48 = vld [vmem:[#allocation7 + $0x1100] sm:$0xf]  ;;  %v15083_v58 = vor.u32 %v18908_v47, %v15082_v45  ;;  %9002 = vmatpush.bf16.msra.mxu0 %v14827_v57  ;;  %v2330_v57 = vmul.f32 %v2313_v39, %v20065_v46 }
 0x186   :  { %v18972_v49 = vld [vmem:[#allocation7 + $0x111c] sm:$0xf0] }
 0x187   :  { %v15594_v53 = vld [vmem:[#allocation7 + $0x1300] sm:$0xf]  ;;  %v15339_v2 = vor.u32 %v18972_v49, %v15338_v48  ;;  %9015 = vmatpush.bf16.msra.mxu1 %v15083_v58  ;;  %v20083_v48 = vmul.f32 0.16666667, %v2329_v61  ;;  %v2347_v19 = vmul.f32 0.16666667, %v2330_v57 }
 0x188   :  { %v19036_v54 = vld [vmem:[#allocation7 + $0x131c] sm:$0xf0] }
 0x189   :  { %v14794_v17 = vld [vmem:[#allocation7 + $0xcc0] sm:$0xf]  ;;  %v15595_v1 = vor.u32 %v19036_v54, %v15594_v53  ;;  %9028 = vmatpush.bf16.msra.mxu2 %v15339_v2  ;;  %v20097_v44 = vpack.c.bf16 %v2347_v19, %v2347_v19 }
 0x18a   :  { %v18836_v34 = vld [vmem:[#allocation7 + $0xcdc] sm:$0xf0] }
 0x18b   :  { %v15050_v63 = vld [vmem:[#allocation7 + $0xec0] sm:$0xf]  ;;  %v14795_v14 = vor.u32 %v18836_v34, %v14794_v17  ;;  %9041 = vmatpush.bf16.msra.mxu3 %v15595_v1 }
 0x18c   :  { %v18900_v5 = vld [vmem:[#allocation7 + $0xedc] sm:$0xf0] }
 0x18d   :  { %v15306_v6 = vld [vmem:[#allocation7 + $0x10c0] sm:$0xf]  ;;  %v15051_v20 = vor.u32 %v18900_v5, %v15050_v63  ;;  %9003 = vmatpush.bf16.msra.mxu0 %v14795_v14  ;;  %v2125_v63 = vpop.f32.mrf.mxu2 }
 0x18e   :  { %v18964_v7 = vld [vmem:[#allocation7 + $0x10dc] sm:$0xf0] }
 0x18f   :  { %v15562_v10 = vld [vmem:[#allocation7 + $0x12c0] sm:$0xf]  ;;  %v15307_v22 = vor.u32 %v18964_v7, %v15306_v6  ;;  %9016 = vmatpush.bf16.msra.mxu1 %v15051_v20  ;;  %v429_v7 = vperm.slane %v20031_v43, 3 }
 0x190   :  { %v19028_v11 = vld [vmem:[#allocation7 + $0x12dc] sm:$0xf0] }
 0x191   :  { %v14762_v15 = vld [vmem:[#allocation7 + $0xc80] sm:$0xf]  ;;  %v15563_v59 = vor.u32 %v19028_v11, %v15562_v10  ;;  %9029 = vmatpush.bf16.msra.mxu2 %v15307_v22 }
 0x192   :  { %v18828_v4 = vld [vmem:[#allocation7 + $0xc9c] sm:$0xf0] }
 0x193   :  { %v15018_v21 = vld [vmem:[#allocation7 + $0xe80] sm:$0xf]  ;;  %v14763_v37 = vor.u32 %v18828_v4, %v14762_v15  ;;  %9042 = vmatpush.bf16.msra.mxu3 %v15563_v59  ;;  %v428_v59 = vperm.slane %v20031_v43, 2 }
 0x194   :  { %v18892_v51 = vld [vmem:[#allocation7 + $0xe9c] sm:$0xf0] }
 0x195   :  { %v15274_v30 = vld [vmem:[#allocation7 + $0x1080] sm:$0xf]  ;;  %v15019_v62 = vor.u32 %v18892_v51, %v15018_v21  ;;  %9004 = vmatpush.bf16.msra.mxu0 %v14763_v37 }
 0x196   :  { %v18956_v31 = vld [vmem:[#allocation7 + $0x109c] sm:$0xf0] }
 0x197   :  { %v15530_v32 = vld [vmem:[#allocation7 + $0x1280] sm:$0xf]  ;;  %v15275_v40 = vor.u32 %v18956_v31, %v15274_v30  ;;  %9017 = vmatpush.bf16.msra.mxu1 %v15019_v62  ;;  %v2124_v31 = vadd.f32 %v20074_v9, %v429_v7 }
 0x198   :  { %v19020_v33 = vld [vmem:[#allocation7 + $0x129c] sm:$0xf0] }
 0x199   :  { %v14730_v38 = vld [vmem:[#allocation7 + $0xc40] sm:$0xf]  ;;  %v15531_v18 = vor.u32 %v19020_v33, %v15530_v32  ;;  %9030 = vmatpush.bf16.msra.mxu2 %v15275_v40 }
 0x19a   :  { %v18820_v41 = vld [vmem:[#allocation7 + $0xc5c] sm:$0xf0] }
 0x19b   :  { %v14986_v42 = vld [vmem:[#allocation7 + $0xe40] sm:$0xf]  ;;  %v14731_v53 = vor.u32 %v18820_v41, %v14730_v38  ;;  %9043 = vmatpush.bf16.msra.mxu3 %v15531_v18  ;;  %v20091_v41 = vpack.c.bf16 %v20079_v35, %v20079_v35  ;;  %v20105_v35 = vpack.c.bf16 %v20083_v48, %v20083_v48 }
 0x19c   :  { %v18884_v45 = vld [vmem:[#allocation7 + $0xe5c] sm:$0xf0] }
 0x19d   :  { %v15242_v27 = vld [vmem:[#allocation7 + $0x1040] sm:$0xf]  ;;  %v14987_v17 = vor.u32 %v18884_v45, %v14986_v42  ;;  %9005 = vmatpush.bf16.msra.mxu0 %v14731_v53  ;;  %v20095_v42 = vpack.c.bf16 %v20081_v36, %v20081_v36  ;;  %v2098_v45 = vadd.f32 %v20067_v26, %v428_v59 }
 0x19e   :  { %v18948_v47 = vld [vmem:[#allocation7 + $0x105c] sm:$0xf0] }
 0x19f   :  { %v15498_v49 = vld [vmem:[#allocation7 + $0x1240] sm:$0xf]  ;;  %v15243_v58 = vor.u32 %v18948_v47, %v15242_v27  ;;  %9018 = vmatpush.bf16.msra.mxu1 %v14987_v17  ;;  %v20101_v27 = vadd.f32 %v20076_v25, %v2124_v31  ;;  %v20111_v17 = vadd.f32 %v20070_v0, %v2098_v45 }
 0x1a0   :  { %v19012_v52 = vld [vmem:[#allocation7 + $0x125c] sm:$0xf0] }
 0x1a1   :  { %v14698_v54 = vld [vmem:[#allocation7 + $0xc00] sm:$0xf]  ;;  %v15499_v1 = vor.u32 %v19012_v52, %v15498_v49  ;;  %9031 = vmatpush.bf16.msra.mxu2 %v15243_v58  ;;  %v2281_v58 = vadd.f32 3.0, %v20101_v27 }
 0x1a2   :  { %v18812_v56 = vld [vmem:[#allocation7 + $0xc1c] sm:$0xf0] }
 0x1a3   :  { %v14954_v3 = vld [vmem:[#allocation7 + $0xe00] sm:$0xf]  ;;  %v14699_v46 = vor.u32 %v18812_v56, %v14698_v54  ;;  %9044 = vmatpush.bf16.msra.mxu3 %v15499_v1 }
 0x1a4   :  { %v18876_v2 = vld [vmem:[#allocation7 + $0xe1c] sm:$0xf0] }
 0x1a5   :  { %v15210_v60 = vld [vmem:[#allocation7 + $0x1000] sm:$0xf]  ;;  %v14955_v20 = vor.u32 %v18876_v2, %v14954_v3  ;;  %9006 = vmatpush.bf16.msra.mxu0 %v14699_v46  ;;  %v2280_v46 = vadd.f32 3.0, %v20111_v17 }
 0x1a6   :  { %v18940_v34 = vld [vmem:[#allocation7 + $0x101c] sm:$0xf0] }
 0x1a7   :  { %v15466_v5 = vld [vmem:[#allocation7 + $0x1200] sm:$0xf]  ;;  %v15211_v22 = vor.u32 %v18940_v34, %v15210_v60  ;;  %9019 = vmatpush.bf16.msra.mxu1 %v14955_v20 }
 0x1a8   :  { %v19004_v6 = vld [vmem:[#allocation7 + $0x121c] sm:$0xf0]  ;;  %9007 = vmatmul.bf16.vlgmr.msra.gmra.mxu0 %v20091_v41 }
 0x1a9   :  { %v15946_v10 = vld [vmem:[#allocation7 + $0x15c0] sm:$0xf]  ;;  %v15467_v51 = vor.u32 %v19004_v6, %v15466_v5  ;;  %9032 = vmatpush.bf16.msra.mxu2 %v15211_v22  ;;  %v430_v6 = vperm.slane %v20031_v43, 4 }
 0x1aa   :  { %v19124_v11 = vld [vmem:[#allocation7 + $0x15dc] sm:$0xf0]  ;;  %9020 = vmatmul.bf16.vlgmr.msra.gmra.mxu1 %v20095_v42 }
 0x1ab   :  { %v16202_v12 = vld [vmem:[#allocation7 + $0x17c0] sm:$0xf]  ;;  %v15947_v30 = vor.u32 %v19124_v11, %v15946_v10  ;;  %9045 = vmatpush.bf16.msra.mxu3 %v15467_v51 }
 0x1ac   :  { %v19188_v13 = vld [vmem:[#allocation7 + $0x17dc] sm:$0xf0]  ;;  %9033 = vmatmul.bf16.vlgmr.msra.gmra.mxu2 %v20105_v35 }
 0x1ad   :  { %v16458_v14 = vld [vmem:[#allocation7 + $0x19c0] sm:$0xf]  ;;  %v16203_v61 = vor.u32 %v19188_v13, %v16202_v12  ;;  %9051 = vmatpush.bf16.msrb.mxu0 %v15947_v30  ;;  %v2298_v13 = vmax.f32 %v2281_v58, 0.0 }
 0x1ae   :  { %v19252_v15 = vld [vmem:[#allocation7 + $0x19dc] sm:$0xf0]  ;;  %9046 = vmatmul.bf16.vlgmr.msra.gmra.mxu3 %v20097_v44 }
 0x1af   :  { %v16714_v4 = vld [vmem:[#allocation7 + $0x1bc0] sm:$0xf]  ;;  %v16459_v32 = vor.u32 %v19252_v15, %v16458_v14  ;;  %9064 = vmatpush.bf16.msrb.mxu1 %v16203_v61  ;;  %v2149_v15 = vpop.f32.mrf.mxu0 }
 0x1b0   :  { %v19316_v21 = vld [vmem:[#allocation7 + $0x1bdc] sm:$0xf0] }
 0x1b1   :  { %v15914_v33 = vld [vmem:[#allocation7 + $0x1580] sm:$0xf]  ;;  %v16715_v24 = vor.u32 %v19316_v21, %v16714_v4  ;;  %9077 = vmatpush.bf16.msrb.mxu2 %v16459_v32  ;;  %v2150_v4 = vadd.f32 %v2149_v15, %v430_v6  ;;  %v2162_v21 = vpop.f32.mrf.mxu1 }
 0x1b2   :  { %v19116_v37 = vld [vmem:[#allocation7 + $0x159c] sm:$0xf0] }
 0x1b3   :  { %v16170_v38 = vld [vmem:[#allocation7 + $0x1780] sm:$0xf]  ;;  %v15915_v47 = vor.u32 %v19116_v37, %v15914_v33  ;;  %9090 = vmatpush.bf16.msrb.mxu3 %v16715_v24  ;;  %v431_v33 = vperm.slane %v20031_v43, 5  ;;  %v2163_v37 = vadd.f32 %v2162_v21, %v2150_v4 }
 0x1b4   :  { %v19180_v39 = vld [vmem:[#allocation7 + $0x179c] sm:$0xf0] }
 0x1b5   :  { %v16426_v62 = vld [vmem:[#allocation7 + $0x1980] sm:$0xf]  ;;  %v16171_v36 = vor.u32 %v19180_v39, %v16170_v38  ;;  %9052 = vmatpush.bf16.msrb.mxu0 %v15915_v47  ;;  %v2315_v39 = vmin.f32 %v2298_v13, 6.0 }
 0x1b6   :  { %v19244_v40 = vld [vmem:[#allocation7 + $0x199c] sm:$0xf0] }
 0x1b7   :  { %v16682_v9 = vld [vmem:[#allocation7 + $0x1b80] sm:$0xf]  ;;  %v16427_v49 = vor.u32 %v19244_v40, %v16426_v62  ;;  %9065 = vmatpush.bf16.msrb.mxu1 %v16171_v36  ;;  %v2175_v36 = vpop.f32.mrf.mxu2  ;;  %v2151_v6 = vpop.f32.mrf.mxu0 }
 0x1b8   :  { %v19308_v18 = vld [vmem:[#allocation7 + $0x1b9c] sm:$0xf0] }
 0x1b9   :  { %v15882_v52 = vld [vmem:[#allocation7 + $0x1540] sm:$0xf]  ;;  %v16683_v26 = vor.u32 %v19308_v18, %v16682_v9  ;;  %9078 = vmatpush.bf16.msrb.mxu2 %v16427_v49  ;;  %v2297_v9 = vmax.f32 %v2280_v46, 0.0  ;;  %v2282_v18 = vadd.f32 3.0, %v2163_v37 }
 0x1ba   :  { %v19108_v53 = vld [vmem:[#allocation7 + $0x155c] sm:$0xf0] }
 0x1bb   :  { %v16138_v54 = vld [vmem:[#allocation7 + $0x1740] sm:$0xf]  ;;  %v15883_v2 = vor.u32 %v19108_v53, %v15882_v52  ;;  %9091 = vmatpush.bf16.msrb.mxu3 %v16683_v26  ;;  %v2188_v26 = vpop.f32.mrf.mxu3  ;;  %v2314_v46 = vmin.f32 %v2297_v9, 6.0 }
 0x1bc   :  { %v19172_v56 = vld [vmem:[#allocation7 + $0x175c] sm:$0xf0] }
 0x1bd   :  { %v16394_v3 = vld [vmem:[#allocation7 + $0x1940] sm:$0xf]  ;;  %v16139_v34 = vor.u32 %v19172_v56, %v16138_v54  ;;  %9053 = vmatpush.bf16.msrb.mxu0 %v15883_v2  ;;  %v2176_v54 = vadd.f32 %v2175_v36, %v431_v33  ;;  %v2332_v2 = vmul.f32 %v2315_v39, %v20101_v27  ;;  %v2331_v39 = vmul.f32 %v2314_v46, %v20111_v17  ;;  %v18472_v46 = vld [vmem:[#allocation7 + $0x184] sm:$0xf] }
 0x1be   :  { %v19236_v25 = vld [vmem:[#allocation7 + $0x195c] sm:$0xf0] }
 0x1bf   :  { %v16650_v48 = vld [vmem:[#allocation7 + $0x1b40] sm:$0xf]  ;;  %v16395_v63 = vor.u32 %v19236_v25, %v16394_v3  ;;  %9066 = vmatpush.bf16.msrb.mxu1 %v16139_v34  ;;  %v2349_v4 = vmul.f32 0.16666667, %v2332_v2 }
 0x1c0   :  { %v19300_v57 = vld [vmem:[#allocation7 + $0x1b5c] sm:$0xf0] }
 0x1c1   :  { %v15850_v60 = vld [vmem:[#allocation7 + $0x1500] sm:$0xf]  ;;  %v16651_v7 = vor.u32 %v19300_v57, %v16650_v48  ;;  %9079 = vmatpush.bf16.msrb.mxu2 %v16395_v63  ;;  %v2299_v48 = vmax.f32 %v2282_v18, 0.0 }
 0x1c2   :  { %v19100_v1 = vld [vmem:[#allocation7 + $0x151c] sm:$0xf0] }
 0x1c3   :  { %v16106_v5 = vld [vmem:[#allocation7 + $0x1700] sm:$0xf]  ;;  %v15851_v14 = vor.u32 %v19100_v1, %v15850_v60  ;;  %9092 = vmatpush.bf16.msrb.mxu3 %v16651_v7  ;;  %v2189_v60 = vadd.f32 %v2188_v26, %v2176_v54  ;;  %v2316_v7 = vmin.f32 %v2299_v48, 6.0  ;;  %v13388_v48 = vld [vmem:[#allocation7 + $0x1e0] sm:$0xf0] }
 0x1c4   :  { %v19164_v8 = vld [vmem:[#allocation7 + $0x171c] sm:$0xf0] }
 0x1c5   :  { %v16362_v0 = vld [vmem:[#allocation7 + $0x1900] sm:$0xf]  ;;  %v16107_v20 = vor.u32 %v19164_v8, %v16106_v5  ;;  %9054 = vmatpush.bf16.msrb.mxu0 %v15851_v14  ;;  %v2283_v13 = vadd.f32 3.0, %v2189_v60 }
 0x1c6   :  { %v19228_v10 = vld [vmem:[#allocation7 + $0x191c] sm:$0xf0] }
 0x1c7   :  { %v16618_v11 = vld [vmem:[#allocation7 + $0x1b00] sm:$0xf]  ;;  %v16363_v22 = vor.u32 %v19228_v10, %v16362_v0  ;;  %9067 = vmatpush.bf16.msrb.mxu1 %v16107_v20  ;;  %v2300_v21 = vmax.f32 %v2283_v13, 0.0  ;;  %v13356_v13 = vld [vmem:[#allocation7 + $0x1a0] sm:$0xf0] }
 0x1c8   :  { %v19292_v12 = vld [vmem:[#allocation7 + $0x1b1c] sm:$0xf0] }
 0x1c9   :  { %v15818_v19 = vld [vmem:[#allocation7 + $0x14c0] sm:$0xf]  ;;  %v16619_v31 = vor.u32 %v19292_v12, %v16618_v11  ;;  %9080 = vmatpush.bf16.msrb.mxu2 %v16363_v22  ;;  %v2164_v12 = vpop.f32.mrf.mxu1 }
 0x1ca   :  { %v19092_v59 = vld [vmem:[#allocation7 + $0x14dc] sm:$0xf0] }
 0x1cb   :  { %v16074_v51 = vld [vmem:[#allocation7 + $0x16c0] sm:$0xf]  ;;  %v15819_v62 = vor.u32 %v19092_v59, %v15818_v19  ;;  %9093 = vmatpush.bf16.msrb.mxu3 %v16619_v31 }
 0x1cc   :  { %v19156_v30 = vld [vmem:[#allocation7 + $0x16dc] sm:$0xf0] }
 0x1cd   :  { %v16330_v61 = vld [vmem:[#allocation7 + $0x18c0] sm:$0xf]  ;;  %v16075_v45 = vor.u32 %v19156_v30, %v16074_v51  ;;  %9055 = vmatpush.bf16.msrb.mxu0 %v15819_v62  ;;  %v2333_v30 = vmul.f32 %v2316_v7, %v2163_v37  ;;  %v2317_v62 = vmin.f32 %v2300_v21, 6.0 }
 0x1ce   :  { %v19220_v32 = vld [vmem:[#allocation7 + $0x18dc] sm:$0xf0] }
 0x1cf   :  { %v16586_v38 = vld [vmem:[#allocation7 + $0x1ac0] sm:$0xf]  ;;  %v16331_v47 = vor.u32 %v19220_v32, %v16330_v61  ;;  %9068 = vmatpush.bf16.msrb.mxu1 %v16075_v45  ;;  %v2190_v45 = vpop.f32.mrf.mxu3  ;;  %v2334_v37 = vmul.f32 %v2317_v62, %v2189_v60 }
 0x1d0   :  { %v19284_v24 = vld [vmem:[#allocation7 + $0x1adc] sm:$0xf0] }
 0x1d1   :  { %v15786_v40 = vld [vmem:[#allocation7 + $0x1480] sm:$0xf]  ;;  %v16587_v53 = vor.u32 %v19284_v24, %v16586_v38  ;;  %9081 = vmatpush.bf16.msrb.mxu2 %v16331_v47  ;;  %v2177_v24 = vpop.f32.mrf.mxu2 }
 0x1d2   :  { %v19084_v49 = vld [vmem:[#allocation7 + $0x149c] sm:$0xf0] }
 0x1d3   :  { %v16042_v52 = vld [vmem:[#allocation7 + $0x1680] sm:$0xf]  ;;  %v15787_v34 = vor.u32 %v19084_v49, %v15786_v40  ;;  %9094 = vmatpush.bf16.msrb.mxu3 %v16587_v53 }
 0x1d4   :  { %v19148_v56 = vld [vmem:[#allocation7 + $0x169c] sm:$0xf0] }
 0x1d5   :  { %v16298_v3 = vld [vmem:[#allocation7 + $0x1880] sm:$0xf]  ;;  %v16043_v8 = vor.u32 %v19148_v56, %v16042_v52  ;;  %9056 = vmatpush.bf16.msrb.mxu0 %v15787_v34  ;;  %v2350_v56 = vmul.f32 0.16666667, %v2333_v30 }
 0x1d6   :  { %v19212_v25 = vld [vmem:[#allocation7 + $0x189c] sm:$0xf0] }
 0x1d7   :  { %v16554_v57 = vld [vmem:[#allocation7 + $0x1a80] sm:$0xf]  ;;  %v16299_v0 = vor.u32 %v19212_v25, %v16298_v3  ;;  %9069 = vmatpush.bf16.msrb.mxu1 %v16043_v8  ;;  %v18480_v25 = vld [vmem:[#allocation7 + $0x1c4] sm:$0xf]  ;;  %v20122_v12 = vpack.c.bf16 %v2350_v56, %v2350_v56 }
 0x1d8   :  { %v19276_v58 = vld [vmem:[#allocation7 + $0x1a9c] sm:$0xf0]  ;;  %v13391_v7 = vor.u32 %v18480_v25, %v13388_v48 }
 0x1d9   :  { %v15754_v63 = vld [vmem:[#allocation7 + $0x1440] sm:$0xf]  ;;  %v16555_v14 = vor.u32 %v19276_v58, %v16554_v57  ;;  %9082 = vmatpush.bf16.msrb.mxu2 %v16299_v0  ;;  %v2348_v57 = vmul.f32 0.16666667, %v2331_v39  ;;  %v2351_v58 = vmul.f32 0.16666667, %v2334_v37 }
 0x1da   :  { %v19076_v1 = vld [vmem:[#allocation7 + $0x145c] sm:$0xf0]  ;;  %v13292_v37 = vld [vmem:[#allocation7 + $0x120] sm:$0xf0] }
 0x1db   :  { %v16010_v5 = vld [vmem:[#allocation7 + $0x1640] sm:$0xf]  ;;  %v15755_v59 = vor.u32 %v19076_v1, %v15754_v63  ;;  %9095 = vmatpush.bf16.msrb.mxu3 %v16555_v14  ;;  %v20124_v14 = vpack.c.bf16 %v2348_v57, %v2348_v57 }
 0x1dc   :  { %v19140_v10 = vld [vmem:[#allocation7 + $0x165c] sm:$0xf0] }
 0x1dd   :  { %v16266_v11 = vld [vmem:[#allocation7 + $0x1840] sm:$0xf]  ;;  %v16011_v31 = vor.u32 %v19140_v10, %v16010_v5  ;;  %9057 = vmatpush.bf16.msrb.mxu0 %v15755_v59  ;;  %v13359_v59 = vor.u32 %v18472_v46, %v13356_v13  ;;  %v2227_v46 = vpop.f32.mrf.mxu2 }
 0x1de   :  { %v19204_v27 = vld [vmem:[#allocation7 + $0x185c] sm:$0xf0] }
 0x1df   :  { %v16522_v15 = vld [vmem:[#allocation7 + $0x1a40] sm:$0xf]  ;;  %v16267_v61 = vor.u32 %v19204_v27, %v16266_v11  ;;  %9070 = vmatpush.bf16.msrb.mxu1 %v16011_v31  ;;  %v20120_v11 = vpack.c.bf16 %v2349_v4, %v2349_v4  ;;  %v20126_v27 = vpack.c.bf16 %v2351_v58, %v2351_v58 }
 0x1e0   :  { %v19268_v19 = vld [vmem:[#allocation7 + $0x1a5c] sm:$0xf0] }
 0x1e1   :  { %v15722_v20 = vld [vmem:[#allocation7 + $0x1400] sm:$0xf]  ;;  %v16523_v40 = vor.u32 %v19268_v19, %v16522_v15  ;;  %9083 = vmatpush.bf16.msrb.mxu2 %v16267_v61  ;;  %v18464_v61 = vld [vmem:[#allocation7 + $0x144] sm:$0xf] }
 0x1e2   :  { %v19068_v22 = vld [vmem:[#allocation7 + $0x141c] sm:$0xf0] }
 0x1e3   :  { %v15978_v51 = vld [vmem:[#allocation7 + $0x1600] sm:$0xf]  ;;  %v15723_v52 = vor.u32 %v19068_v22, %v15722_v20  ;;  %9096 = vmatpush.bf16.msrb.mxu3 %v16523_v40 }
 0x1e4   :  { %v19132_v32 = vld [vmem:[#allocation7 + $0x161c] sm:$0xf0] }
 0x1e5   :  { %v16234_v33 = vld [vmem:[#allocation7 + $0x1800] sm:$0xf]  ;;  %v15979_v3 = vor.u32 %v19132_v32, %v15978_v51  ;;  %9058 = vmatpush.bf16.msrb.mxu0 %v15723_v52  ;;  %v13324_v32 = vld [vmem:[#allocation7 + $0x160] sm:$0xf0] }
 0x1e6   :  { %v19196_v38 = vld [vmem:[#allocation7 + $0x181c] sm:$0xf0] }
 0x1e7   :  { %v16490_v9 = vld [vmem:[#allocation7 + $0x1a00] sm:$0xf]  ;;  %v16235_v17 = vor.u32 %v19196_v38, %v16234_v33  ;;  %9071 = vmatpush.bf16.msrb.mxu1 %v15979_v3 }
 0x1e8   :  { %v19260_v18 = vld [vmem:[#allocation7 + $0x1a1c] sm:$0xf0]  ;;  %9059 = vmatmul.bf16.vlgmr.msrb.gmra.mxu0 %v20124_v14 }
 0x1e9   :  { %v16970_v47 = vld [vmem:[#allocation7 + $0x1dc0] sm:$0xf]  ;;  %v16491_v2 = vor.u32 %v19260_v18, %v16490_v9  ;;  %9084 = vmatpush.bf16.msrb.mxu2 %v16235_v17  ;;  %v432_v9 = vperm.slane %v20031_v43, 6  ;;  %v13327_v18 = vor.u32 %v18464_v61, %v13324_v32  ;;  %v2214_v17 = vpop.f32.mrf.mxu1 }
 0x1ea   :  { %v19380_v36 = vld [vmem:[#allocation7 + $0x1ddc] sm:$0xf0]  ;;  %9072 = vmatmul.bf16.vlgmr.msrb.gmra.mxu1 %v20120_v11 }
 0x1eb   :  { %v17226_v49 = vld [vmem:[#allocation7 + $0x1fc0] sm:$0xf]  ;;  %v16971_v34 = vor.u32 %v19380_v36, %v16970_v47  ;;  %9097 = vmatpush.bf16.msrb.mxu3 %v16491_v2 }
 0x1ec   :  { %v19444_v53 = vld [vmem:[#allocation7 + $0x1fdc] sm:$0xf0]  ;;  %9085 = vmatmul.bf16.vlgmr.msrb.gmra.mxu2 %v20122_v12 }
 0x1ed   :  { %v17482_v54 = vld [vmem:[#allocation7 + $0x21c0] sm:$0xf]  ;;  %v17227_v63 = vor.u32 %v19444_v53, %v17226_v49  ;;  %9103 = vmatpush.bf16.msra.mxu0 %v16971_v34  ;;  %v18456_v49 = vld [vmem:[#allocation7 + $0x104] sm:$0xf]  ;;  %v2201_v53 = vpop.f32.mrf.mxu0 }
 0x1ee   :  { %v19508_v26 = vld [vmem:[#allocation7 + $0x21dc] sm:$0xf0]  ;;  %9098 = vmatmul.bf16.vlgmr.msrb.gmra.mxu3 %v20126_v27  ;;  %v2202_v3 = vadd.f32 %v2201_v53, %v432_v9  ;;  %v13295_v58 = vor.u32 %v18456_v49, %v13292_v37  ;;  %v18432_v37 = vld [vmem:[#allocation7 + $0x44] sm:$0xf] }
 0x1ef   :  { %v17483_v1 = vor.u32 %v19508_v26, %v17482_v54  ;;  %v16938_v60 = vld [vmem:[#allocation7 + $0x1d80] sm:$0xf]  ;;  %9116 = vmatpush.bf16.msra.mxu1 %v17227_v63  ;;  %9142 = vmatpush.bf16.msra.mxu3 %v13391_v7  ;;  %v433_v63 = vperm.slane %v20031_v43, 7 }
 0x1f0   :  { %v19372_v5 = vld [vmem:[#allocation7 + $0x1d9c] sm:$0xf0] }
 0x1f1   :  { %v17194_v6 = vld [vmem:[#allocation7 + $0x1f80] sm:$0xf]  ;;  %v16939_v15 = vor.u32 %v19372_v5, %v16938_v60  ;;  %9129 = vmatpush.bf16.msra.mxu2 %v17483_v1  ;;  %v2215_v1 = vadd.f32 %v2214_v17, %v2202_v3  ;;  %v18448_v60 = vld [vmem:[#allocation7 + $0xc4] sm:$0xf] }
 0x1f2   :  { %v19436_v8 = vld [vmem:[#allocation7 + $0x1f9c] sm:$0xf0]  ;;  %v13260_v5 = vld [vmem:[#allocation7 + $0xe0] sm:$0xf0] }
 0x1f3   :  { %v17450_v0 = vld [vmem:[#allocation7 + $0x2180] sm:$0xf]  ;;  %v17195_v19 = vor.u32 %v19436_v8, %v17194_v6  ;;  %9104 = vmatpush.bf16.msra.mxu0 %v16939_v15  ;;  %9143 = vmatpush.bf16.msra.mxu3 %v13359_v59  ;;  %v2284_v8 = vadd.f32 3.0, %v2215_v1 }
 0x1f4   :  { %v19500_v10 = vld [vmem:[#allocation7 + $0x219c] sm:$0xf0] }
 0x1f5   :  { %v17451_v20 = vor.u32 %v19500_v10, %v17450_v0  ;;  %v16906_v22 = vld [vmem:[#allocation7 + $0x1d40] sm:$0xf]  ;;  %9117 = vmatpush.bf16.msra.mxu1 %v17195_v19  ;;  %v13263_v19 = vor.u32 %v18448_v60, %v13260_v5  ;;  %v2301_v59 = vmax.f32 %v2284_v8, 0.0 }
 0x1f6   :  { %v19364_v4 = vld [vmem:[#allocation7 + $0x1d5c] sm:$0xf0] }
 0x1f7   :  { %v17162_v21 = vld [vmem:[#allocation7 + $0x1f40] sm:$0xf]  ;;  %v16907_v33 = vor.u32 %v19364_v4, %v16906_v22  ;;  %9130 = vmatpush.bf16.msra.mxu2 %v17451_v20  ;;  %9144 = vmatpush.bf16.msra.mxu3 %v13327_v18  ;;  %v2228_v20 = vadd.f32 %v2227_v46, %v433_v63  ;;  %v2240_v22 = vpop.f32.mrf.mxu3  ;;  %v2229_v63 = vpop.f32.mrf.mxu2 }
 0x1f8   :  { %v19428_v51 = vld [vmem:[#allocation7 + $0x1f5c] sm:$0xf0] }
 0x1f9   :  { %v17418_v30 = vld [vmem:[#allocation7 + $0x2140] sm:$0xf]  ;;  %v17163_v24 = vor.u32 %v19428_v51, %v17162_v21  ;;  %9105 = vmatpush.bf16.msra.mxu0 %v16907_v33  ;;  %v18440_v51 = vld [vmem:[#allocation7 + $0x84] sm:$0xf] }
 0x1fa   :  { %v19492_v31 = vld [vmem:[#allocation7 + $0x215c] sm:$0xf0] }
 0x1fb   :  { %v16874_v38 = vld [vmem:[#allocation7 + $0x1d00] sm:$0xf]  ;;  %v17419_v39 = vor.u32 %v19492_v31, %v17418_v30  ;;  %9118 = vmatpush.bf16.msra.mxu1 %v17163_v24  ;;  %9145 = vmatpush.bf16.msra.mxu3 %v13295_v58  ;;  %v13228_v30 = vld [vmem:[#allocation7 + $0xa0] sm:$0xf0]  ;;  %v2241_v31 = vadd.f32 %v2240_v22, %v2228_v20  ;;  %v2203_v24 = vpop.f32.mrf.mxu0 }
 0x1fc   :  { %v19356_v62 = vld [vmem:[#allocation7 + $0x1d1c] sm:$0xf0]  ;;  %v14156_v20 = vld [vmem:[#allocation7 + $0x7e0] sm:$0xf0] }
 0x1fd   :  { %v17130_v40 = vld [vmem:[#allocation7 + $0x1f00] sm:$0xf]  ;;  %v16875_v52 = vor.u32 %v19356_v62, %v16874_v38  ;;  %9131 = vmatpush.bf16.msra.mxu2 %v17419_v39  ;;  %v2318_v39 = vmin.f32 %v2301_v59, 6.0  ;;  %v18600_v24 = vld [vmem:[#allocation7 + $0x584] sm:$0xf] }
 0x1fe   :  { %v19420_v45 = vld [vmem:[#allocation7 + $0x1f1c] sm:$0xf0] }
 0x1ff   :  { %v17386_v47 = vld [vmem:[#allocation7 + $0x2100] sm:$0xf]  ;;  %v17131_v26 = vor.u32 %v19420_v45, %v17130_v40  ;;  %9106 = vmatpush.bf16.msra.mxu0 %v16875_v52  ;;  %v2216_v45 = vpop.f32.mrf.mxu1  ;;  %9146 = vmatpush.bf16.msra.mxu3 %v13263_v19  ;;  %v13196_v52 = vld [vmem:[#allocation7 + $0x60] sm:$0xf0]  ;;  %v2242_v8 = vpop.f32.mrf.mxu3 }
 0x200   :  { %v19484_v36 = vld [vmem:[#allocation7 + $0x211c] sm:$0xf0]  ;;  %v13199_v5 = vor.u32 %v18432_v37, %v13196_v52  ;;  %v18672_v19 = vld [vmem:[#allocation7 + $0x7c4] sm:$0xf] }
 0x201   :  { %v16842_v54 = vld [vmem:[#allocation7 + $0x1cc0] sm:$0xf]  ;;  %v17387_v56 = vor.u32 %v19484_v36, %v17386_v47  ;;  %9119 = vmatpush.bf16.msra.mxu1 %v17131_v26  ;;  %v2285_v47 = vadd.f32 3.0, %v2241_v31  ;;  %v13231_v36 = vor.u32 %v18440_v51, %v13228_v30  ;;  %v2335_v26 = vmul.f32 %v2318_v39, %v2215_v1  ;;  %v13644_v1 = vld [vmem:[#allocation7 + $0x3e0] sm:$0xf0] }
 0x202   :  { %v19348_v25 = vld [vmem:[#allocation7 + $0x1cdc] sm:$0xf0]  ;;  %v18728_v45 = vld [vmem:[#allocation7 + $0x984] sm:$0xf] }
 0x203   :  { %v17098_v48 = vld [vmem:[#allocation7 + $0x1ec0] sm:$0xf]  ;;  %v16843_v6 = vor.u32 %v19348_v25, %v16842_v54  ;;  %9132 = vmatpush.bf16.msra.mxu2 %v17387_v56  ;;  %v2302_v56 = vmax.f32 %v2285_v47, 0.0  ;;  %9147 = vmatpush.bf16.msra.mxu3 %v13231_v36  ;;  %v2352_v46 = vmul.f32 0.16666667, %v2335_v26 }
 0x204   :  { %v19412_v57 = vld [vmem:[#allocation7 + $0x1edc] sm:$0xf0]  ;;  %v14380_v47 = vld [vmem:[#allocation7 + $0x9a0] sm:$0xf0] }
 0x205   :  { %v17354_v2 = vld [vmem:[#allocation7 + $0x20c0] sm:$0xf]  ;;  %v17099_v0 = vor.u32 %v19412_v57, %v17098_v48  ;;  %9107 = vmatpush.bf16.msra.mxu0 %v16843_v6  ;;  %v2319_v60 = vmin.f32 %v2302_v56, 6.0  ;;  %v13164_v6 = vld [vmem:[#allocation7 + $0x20] sm:$0xf0]  ;;  %v14383_v26 = vor.u32 %v18728_v45, %v14380_v47 }
 0x206   :  { %v19476_v34 = vld [vmem:[#allocation7 + $0x20dc] sm:$0xf0]  ;;  %v18528_v52 = vld [vmem:[#allocation7 + $0x344] sm:$0xf] }
 0x207   :  { %v16810_v7 = vld [vmem:[#allocation7 + $0x1c80] sm:$0xf]  ;;  %v17355_v10 = vor.u32 %v19476_v34, %v17354_v2  ;;  %9120 = vmatpush.bf16.msra.mxu1 %v17099_v0  ;;  %v18424_v34 = vld [vmem:[#allocation7 + $0x4] sm:$0xf]  ;;  %9148 = vmatpush.bf16.msra.mxu3 %v13199_v5 }
 0x208   :  { %v19340_v13 = vld [vmem:[#allocation7 + $0x1c9c] sm:$0xf0]  ;;  %v18608_v0 = vld [vmem:[#allocation7 + $0x5c4] sm:$0xf]  ;;  %v13167_v51 = vor.u32 %v18424_v34, %v13164_v6 }
 0x209   :  { %v17066_v15 = vld [vmem:[#allocation7 + $0x1e80] sm:$0xf]  ;;  %v16811_v61 = vor.u32 %v19340_v13, %v16810_v7  ;;  %9133 = vmatpush.bf16.msra.mxu2 %v17355_v10  ;;  %v18544_v7 = vld [vmem:[#allocation7 + $0x3c4] sm:$0xf]  ;;  %v2336_v13 = vmul.f32 %v2319_v60, %v2241_v31  ;;  %v20134_v31 = vpack.c.bf16 %v2352_v46, %v2352_v46  ;;  %v2253_v46 = vpop.f32.mrf.mxu0 }
 0x20a   :  { %v19404_v4 = vld [vmem:[#allocation7 + $0x1e9c] sm:$0xf0]  ;;  %v13900_v10 = vld [vmem:[#allocation7 + $0x5e0] sm:$0xf0]  ;;  %v13647_v30 = vor.u32 %v18544_v7, %v13644_v1 }
 0x20b   :  { %v17322_v43 = vld [vmem:[#allocation7 + $0x2080] sm:$0xf]  ;;  %v17067_v62 = vor.u32 %v19404_v4, %v17066_v15  ;;  %9108 = vmatpush.bf16.msra.mxu0 %v16811_v61  ;;  %v2353_v59 = vmul.f32 0.16666667, %v2336_v13  ;;  %v13903_v61 = vor.u32 %v18608_v0, %v13900_v10  ;;  %9149 = vmatpush.bf16.msra.mxu3 %v13167_v51  ;;  %v13836_v56 = vld [vmem:[#allocation7 + $0x560] sm:$0xf0] }
 0x20c   :  { %v19468_v21 = vld [vmem:[#allocation7 + $0x209c] sm:$0xf0]  ;;  %v18520_v5 = vld [vmem:[#allocation7 + $0x304] sm:$0xf] }
 0x20d   :  { %v16778_v32 = vld [vmem:[#allocation7 + $0x1c40] sm:$0xf]  ;;  %v17323_v40 = vor.u32 %v19468_v21, %v17322_v43  ;;  %9121 = vmatpush.bf16.msra.mxu1 %v17067_v62  ;;  %v18736_v43 = vld [vmem:[#allocation7 + $0x9c4] sm:$0xf] }
 0x20e   :  { %v19332_v33 = vld [vmem:[#allocation7 + $0x1c5c] sm:$0xf0]  ;;  %v14412_v21 = vld [vmem:[#allocation7 + $0x9e0] sm:$0xf0]  ;;  %9150 = vmatmul.bf16.vlgmr.msra.gmra.mxu3 %v20004_v50 }
 0x20f   :  { %v17034_v38 = vld [vmem:[#allocation7 + $0x1e40] sm:$0xf]  ;;  %v16779_v3 = vor.u32 %v19332_v33, %v16778_v32  ;;  %9134 = vmatpush.bf16.msra.mxu2 %v17323_v40  ;;  %v14159_v32 = vor.u32 %v18672_v19, %v14156_v20  ;;  %v18536_v33 = vld [vmem:[#allocation7 + $0x384] sm:$0xf]  ;;  %v14415_v39 = vor.u32 %v18736_v43, %v14412_v21  ;;  %v2266_v21 = vpop.f32.mrf.mxu1 }
 0x210   :  { %v19396_v9 = vld [vmem:[#allocation7 + $0x1e5c] sm:$0xf0]  ;;  %v13868_v62 = vld [vmem:[#allocation7 + $0x5a0] sm:$0xf0] }
 0x211   :  { %v17290_v18 = vld [vmem:[#allocation7 + $0x2040] sm:$0xf]  ;;  %v17035_v48 = vor.u32 %v19396_v9, %v17034_v38  ;;  %9109 = vmatpush.bf16.msra.mxu0 %v16779_v3  ;;  %v13612_v38 = vld [vmem:[#allocation7 + $0x3a0] sm:$0xf0]  ;;  %9194 = vmatpush.bf16.msrb.mxu3 %v14415_v39 }
 0x212   :  { %v19460_v49 = vld [vmem:[#allocation7 + $0x205c] sm:$0xf0]  ;;  %v18664_v40 = vld [vmem:[#allocation7 + $0x784] sm:$0xf]  ;;  %v13615_v36 = vor.u32 %v18536_v33, %v13612_v38 }
 0x213   :  { %v16746_v53 = vld [vmem:[#allocation7 + $0x1c00] sm:$0xf]  ;;  %v17291_v57 = vor.u32 %v19460_v49, %v17290_v18  ;;  %9122 = vmatpush.bf16.msra.mxu1 %v17035_v48  ;;  %v14124_v9 = vld [vmem:[#allocation7 + $0x7a0] sm:$0xf0]  ;;  %v20136_v18 = vpack.c.bf16 %v2353_v59, %v2353_v59  ;;  %v13871_v49 = vor.u32 %v18600_v24, %v13868_v62 }
 0x214   :  { %v19324_v54 = vld [vmem:[#allocation7 + $0x1c1c] sm:$0xf0]  ;;  %v14127_v37 = vor.u32 %v18664_v40, %v14124_v9  ;;  %v18656_v3 = vld [vmem:[#allocation7 + $0x744] sm:$0xf] }
 0x215   :  { %v17002_v17 = vld [vmem:[#allocation7 + $0x1e00] sm:$0xf]  ;;  %v16747_v15 = vor.u32 %v19324_v54, %v16746_v53  ;;  %9135 = vmatpush.bf16.msra.mxu2 %v17291_v57  ;;  %v13580_v53 = vld [vmem:[#allocation7 + $0x360] sm:$0xf0]  ;;  %9195 = vmatpush.bf16.msrb.mxu3 %v14383_v26 }
 0x216   :  { %v19388_v25 = vld [vmem:[#allocation7 + $0x1e1c] sm:$0xf0]  ;;  %v18592_v54 = vld [vmem:[#allocation7 + $0x544] sm:$0xf] }
 0x217   :  { %v17258_v58 = vld [vmem:[#allocation7 + $0x2000] sm:$0xf]  ;;  %v17003_v22 = vor.u32 %v19388_v25, %v17002_v17  ;;  %9110 = vmatpush.bf16.msra.mxu0 %v16747_v15  ;;  %v14092_v17 = vld [vmem:[#allocation7 + $0x760] sm:$0xf0]  ;;  %v13839_v63 = vor.u32 %v18592_v54, %v13836_v56  ;;  %v8930_v56 = vpop.f32.mrf.mxu2 }
 0x218   :  { %v19452_v2 = vld [vmem:[#allocation7 + $0x201c] sm:$0xf0]  ;;  %v18720_v25 = vld [vmem:[#allocation7 + $0x944] sm:$0xf]  ;;  %v14095_v60 = vor.u32 %v18656_v3, %v14092_v17  ;;  %v8943_v3 = vpop.f32.mrf.mxu3 }
 0x219   :  { %v17259_v4 = vor.u32 %v19452_v2, %v17258_v58  ;;  %9123 = vmatpush.bf16.msra.mxu1 %v17003_v22  ;;  %v14348_v48 = vld [vmem:[#allocation7 + $0x960] sm:$0xf0]  ;;  %v19687_v57 = vld [vmem:[#allocation11 + $0x80] ss:$0 sm:$0xff]  ;;  %v13583_v58 = vor.u32 %v18528_v52, %v13580_v53 }
 0x21a   :  { %9111 = vmatmul.bf16.vlgmr.msra.gmra.mxu0 %v20134_v31  ;;  %v3444_v2 = vld [vmem:[#allocation11 + $0x1] ss:$8 sm:$0xf]  ;;  %v13548_v6 = vld [vmem:[#allocation7 + $0x320] sm:$0xf0]  ;;  %v14351_v8 = vor.u32 %v18720_v25, %v14348_v48  ;;  %v2254_v20 = vadd.f32 %v19687_v57, %v2253_v46 }
 0x21b   :  { %9136 = vmatpush.bf16.msra.mxu2 %v17259_v4  ;;  %9155 = vmatpush.bf16.msrb.mxu0 %v13647_v30  ;;  %v3445_v34 = vld [vmem:[#allocation11 + $0x1] ss:$8 sm:$0xf0]  ;;  %v18584_v7 = vld [vmem:[#allocation7 + $0x504] sm:$0xf]  ;;  %v13551_v22 = vor.u32 %v18520_v5, %v13548_v6 }
 0x21c   :  { %9124 = vmatmul.bf16.vlgmr.msra.gmra.mxu1 %v20136_v18  ;;  %v13804_v1 = vld [vmem:[#allocation7 + $0x520] sm:$0xf0]  ;;  %v20141_v19 = vor.u32 %v3445_v34, %v3444_v2  ;;  %9196 = vmatpush.bf16.msrb.mxu3 %v14351_v8  ;;  %v2255_v2 = vpop.f32.mrf.mxu0 }
 0x21d   :  { %9168 = vmatpush.bf16.msrb.mxu1 %v13903_v61  ;;  %v18648_v0 = vld [vmem:[#allocation7 + $0x704] sm:$0xf]  ;;  %v13807_v4 = vor.u32 %v18584_v7, %v13804_v1 }
 0x21e   :  { %v14060_v10 = vld [vmem:[#allocation7 + $0x720] sm:$0xf0]  ;;  %v3465_v40 = vperm.slane %v20141_v19, 0 }
 0x21f   :  { %9181 = vmatpush.bf16.msrb.mxu2 %v14159_v32  ;;  %9156 = vmatpush.bf16.msrb.mxu0 %v13615_v36  ;;  %v18712_v13 = vld [vmem:[#allocation7 + $0x904] sm:$0xf]  ;;  %v14063_v43 = vor.u32 %v18648_v0, %v14060_v10  ;;  %v2267_v32 = vadd.f32 %v2266_v21, %v2254_v20  ;;  %v2268_v0 = vpop.f32.mrf.mxu1 }
 0x220   :  { %v14316_v15 = vld [vmem:[#allocation7 + $0x920] sm:$0xf0]  ;;  %v8931_v48 = vadd.f32 %v8930_v56, %v3465_v40  ;;  %v8945_v40 = vpop.f32.mrf.mxu3 }
 0x221   :  { %9169 = vmatpush.bf16.msrb.mxu1 %v13871_v49  ;;  %v18512_v59 = vld [vmem:[#allocation7 + $0x2c4] sm:$0xf]  ;;  %v14319_v61 = vor.u32 %v18712_v13, %v14316_v15  ;;  %v2286_v9 = vadd.f32 3.0, %v2267_v32 }
 0x222   :  { %v13516_v51 = vld [vmem:[#allocation7 + $0x2e0] sm:$0xf0] }
 0x223   :  { %9182 = vmatpush.bf16.msrb.mxu2 %v14127_v37  ;;  %9157 = vmatpush.bf16.msrb.mxu0 %v13583_v58  ;;  %v18576_v30 = vld [vmem:[#allocation7 + $0x4c4] sm:$0xf]  ;;  %v13519_v45 = vor.u32 %v18512_v59, %v13516_v51  ;;  %v2303_v54 = vmax.f32 %v2286_v9, 0.0 }
 0x224   :  { %v13772_v33 = vld [vmem:[#allocation7 + $0x4e0] sm:$0xf0]  ;;  %9197 = vmatpush.bf16.msrb.mxu3 %v14319_v61 }
 0x225   :  { %9170 = vmatpush.bf16.msrb.mxu1 %v13839_v63  ;;  %v18640_v38 = vld [vmem:[#allocation7 + $0x6c4] sm:$0xf]  ;;  %v13775_v36 = vor.u32 %v18576_v30, %v13772_v33  ;;  %v2320_v34 = vmin.f32 %v2303_v54, 6.0 }
 0x226   :  { %v14028_v24 = vld [vmem:[#allocation7 + $0x6e0] sm:$0xf0] }
 0x227   :  { %9183 = vmatpush.bf16.msrb.mxu2 %v14095_v60  ;;  %v18704_v39 = vld [vmem:[#allocation7 + $0x8c4] sm:$0xf]  ;;  %9158 = vmatpush.bf16.msrb.mxu0 %v13551_v22  ;;  %v14031_v49 = vor.u32 %v18640_v38, %v14028_v24  ;;  %v20144_v60 = vadd.f32 %v8943_v3, %v8931_v48  ;;  %v2337_v10 = vmul.f32 %v2320_v34, %v2267_v32 }
 0x228   :  { %v14284_v62 = vld [vmem:[#allocation7 + $0x8e0] sm:$0xf0] }
 0x229   :  { %v18504_v47 = vld [vmem:[#allocation7 + $0x284] sm:$0xf]  ;;  %9171 = vmatpush.bf16.msrb.mxu1 %v13807_v4  ;;  %v14287_v26 = vor.u32 %v18704_v39, %v14284_v62  ;;  %v8932_v62 = vpop.f32.mrf.mxu2 }
 0x22a   :  { %v13484_v37 = vld [vmem:[#allocation7 + $0x2a0] sm:$0xf0] }
 0x22b   :  { %9184 = vmatpush.bf16.msrb.mxu2 %v14063_v43  ;;  %v18568_v52 = vld [vmem:[#allocation7 + $0x484] sm:$0xf]  ;;  %9159 = vmatpush.bf16.msrb.mxu0 %v13519_v45  ;;  %v13487_v63 = vor.u32 %v18504_v47, %v13484_v37  ;;  %v2354_v43 = vmul.f32 0.16666667, %v2337_v10 }
 0x22c   :  { %v13740_v53 = vld [vmem:[#allocation7 + $0x4a0] sm:$0xf0]  ;;  %9198 = vmatpush.bf16.msrb.mxu3 %v14287_v26 }
 0x22d   :  { %v18632_v17 = vld [vmem:[#allocation7 + $0x684] sm:$0xf]  ;;  %9172 = vmatpush.bf16.msrb.mxu1 %v13775_v36  ;;  %v13743_v5 = vor.u32 %v18568_v52, %v13740_v53  ;;  %v20146_v32 = vpack.c.bf16 %v2354_v43, %v2354_v43 }
 0x22e   :  { %v13996_v25 = vld [vmem:[#allocation7 + $0x6a0] sm:$0xf0] }
 0x22f   :  { %v18696_v57 = vld [vmem:[#allocation7 + $0x884] sm:$0xf]  ;;  %9185 = vmatpush.bf16.msrb.mxu2 %v14031_v49  ;;  %v13999_v6 = vor.u32 %v18632_v17, %v13996_v25  ;;  %9160 = vmatpush.bf16.msrb.mxu0 %v13487_v63 }
 0x230   :  { %v14252_v58 = vld [vmem:[#allocation7 + $0x8a0] sm:$0xf0]  ;;  %9137 = vmatmul.bf16.vlgmr.msra.gmra.mxu2 %v20146_v32 }
 0x231   :  { %v18496_v7 = vld [vmem:[#allocation7 + $0x244] sm:$0xf]  ;;  %v14255_v46 = vor.u32 %v18696_v57, %v14252_v58  ;;  %9173 = vmatpush.bf16.msrb.mxu1 %v13743_v5 }
 0x232   :  { %v13452_v8 = vld [vmem:[#allocation7 + $0x260] sm:$0xf0] }
 0x233   :  { %v18560_v1 = vld [vmem:[#allocation7 + $0x444] sm:$0xf]  ;;  %v13455_v21 = vor.u32 %v18496_v7, %v13452_v8  ;;  %9186 = vmatpush.bf16.msrb.mxu2 %v13999_v6  ;;  %9199 = vmatpush.bf16.msrb.mxu3 %v14255_v46 }
 0x234   :  { %v13708_v13 = vld [vmem:[#allocation7 + $0x460] sm:$0xf0] }
 0x235   :  { %v18624_v15 = vld [vmem:[#allocation7 + $0x644] sm:$0xf]  ;;  %v13711_v30 = vor.u32 %v18560_v1, %v13708_v13  ;;  %9161 = vmatpush.bf16.msrb.mxu0 %v13455_v21 }
 0x236   :  { %v13964_v20 = vld [vmem:[#allocation7 + $0x660] sm:$0xf0] }
 0x237   :  { %v18688_v22 = vld [vmem:[#allocation7 + $0x844] sm:$0xf]  ;;  %v13967_v61 = vor.u32 %v18624_v15, %v13964_v20  ;;  %9174 = vmatpush.bf16.msrb.mxu1 %v13711_v30 }
 0x238   :  { %v14220_v4 = vld [vmem:[#allocation7 + $0x860] sm:$0xf0] }
 0x239   :  { %v18488_v59 = vld [vmem:[#allocation7 + $0x204] sm:$0xf]  ;;  %v14223_v39 = vor.u32 %v18688_v22, %v14220_v4  ;;  %9187 = vmatpush.bf16.msrb.mxu2 %v13967_v61 }
 0x23a   :  { %v13420_v51 = vld [vmem:[#allocation7 + $0x220] sm:$0xf0] }
 0x23b   :  { %v18552_v33 = vld [vmem:[#allocation7 + $0x404] sm:$0xf]  ;;  %v13423_v52 = vor.u32 %v18488_v59, %v13420_v51  ;;  %9200 = vmatpush.bf16.msrb.mxu3 %v14223_v39 }
 0x23c   :  { %v13676_v38 = vld [vmem:[#allocation7 + $0x420] sm:$0xf0] }
 0x23d   :  { %v18616_v24 = vld [vmem:[#allocation7 + $0x604] sm:$0xf]  ;;  %v13679_v56 = vor.u32 %v18552_v33, %v13676_v38  ;;  %9162 = vmatpush.bf16.msrb.mxu0 %v13423_v52 }
 0x23e   :  { %v13932_v9 = vld [vmem:[#allocation7 + $0x620] sm:$0xf0] }
 0x23f   :  { %v18680_v45 = vld [vmem:[#allocation7 + $0x804] sm:$0xf]  ;;  %v13935_v3 = vor.u32 %v18616_v24, %v13932_v9  ;;  %9175 = vmatpush.bf16.msrb.mxu1 %v13679_v56 }
 0x240   :  { %v14188_v47 = vld [vmem:[#allocation7 + $0x820] sm:$0xf0]  ;;  %9163 = vmatmul.bf16.vlgmr.msrb.gmra.mxu0 %v20008_v55 }
 0x241   :  { %v18800_v36 = vld [vmem:[#allocation7 + $0xbc4] sm:$0xf]  ;;  %v14191_v48 = vor.u32 %v18680_v45, %v14188_v47  ;;  %9188 = vmatpush.bf16.msrb.mxu2 %v13935_v3 }
 0x242   :  { %v14668_v49 = vld [vmem:[#allocation7 + $0xbe0] sm:$0xf0]  ;;  %9176 = vmatmul.bf16.vlgmr.msrb.gmra.mxu1 %v20045_v23 }
 0x243   :  { %v18864_v37 = vld [vmem:[#allocation7 + $0xdc4] sm:$0xf]  ;;  %v14671_v57 = vor.u32 %v18800_v36, %v14668_v49  ;;  %9201 = vmatpush.bf16.msrb.mxu3 %v14191_v48  ;;  %v8956_v49 = vpop.f32.mrf.mxu0 }
 0x244   :  { %v14924_v53 = vld [vmem:[#allocation7 + $0xde0] sm:$0xf0]  ;;  %9189 = vmatmul.bf16.vlgmr.msrb.gmra.mxu2 %v20047_v28 }
 0x245   :  { %v18928_v54 = vld [vmem:[#allocation7 + $0xfc4] sm:$0xf]  ;;  %v14927_v58 = vor.u32 %v18864_v37, %v14924_v53  ;;  %9207 = vmatpush.bf16.msra.mxu0 %v14671_v57  ;;  %v8957_v53 = vadd.f32 %v8956_v49, %v20144_v60 }
 0x246   :  { %v15180_v26 = vld [vmem:[#allocation7 + $0xfe0] sm:$0xf0]  ;;  %9202 = vmatmul.bf16.vlgmr.msrb.gmra.mxu3 %v20052_v16 }
 0x247   :  { %v18992_v17 = vld [vmem:[#allocation7 + $0x11c4] sm:$0xf]  ;;  %v15183_v2 = vor.u32 %v18928_v54, %v15180_v26  ;;  %9220 = vmatpush.bf16.msra.mxu1 %v14927_v58  ;;  %v8969_v54 = vpop.f32.mrf.mxu1 }
 0x248   :  { %v15436_v25 = vld [vmem:[#allocation7 + $0x11e0] sm:$0xf0]  ;;  %v8970_v57 = vadd.f32 %v8969_v54, %v8957_v53 }
 0x249   :  { %v18792_v34 = vld [vmem:[#allocation7 + $0xb84] sm:$0xf]  ;;  %v15439_v6 = vor.u32 %v18992_v17, %v15436_v25  ;;  %9233 = vmatpush.bf16.msra.mxu2 %v15183_v2 }
 0x24a   :  { %v14636_v63 = vld [vmem:[#allocation7 + $0xba0] sm:$0xf0] }
 0x24b   :  { %v18856_v5 = vld [vmem:[#allocation7 + $0xd84] sm:$0xf]  ;;  %v14639_v46 = vor.u32 %v18792_v34, %v14636_v63  ;;  %9246 = vmatpush.bf16.msra.mxu3 %v15439_v6 }
 0x24c   :  { %v14892_v7 = vld [vmem:[#allocation7 + $0xda0] sm:$0xf0] }
 0x24d   :  { %v18920_v8 = vld [vmem:[#allocation7 + $0xf84] sm:$0xf]  ;;  %v14895_v13 = vor.u32 %v18856_v5, %v14892_v7  ;;  %9208 = vmatpush.bf16.msra.mxu0 %v14639_v46 }
 0x24e   :  { %v15148_v1 = vld [vmem:[#allocation7 + $0xfa0] sm:$0xf0] }
 0x24f   :  { %v18984_v0 = vld [vmem:[#allocation7 + $0x1184] sm:$0xf]  ;;  %v15151_v15 = vor.u32 %v18920_v8, %v15148_v1  ;;  %9221 = vmatpush.bf16.msra.mxu1 %v14895_v13  ;;  %v8982_v13 = vpop.f32.mrf.mxu2 }
 0x250   :  { %v15404_v10 = vld [vmem:[#allocation7 + $0x11a0] sm:$0xf0] }
 0x251   :  { %v18784_v20 = vld [vmem:[#allocation7 + $0xb44] sm:$0xf]  ;;  %v15407_v43 = vor.u32 %v18984_v0, %v15404_v10  ;;  %9234 = vmatpush.bf16.msra.mxu2 %v15151_v15 }
 0x252   :  { %v14604_v22 = vld [vmem:[#allocation7 + $0xb60] sm:$0xf0] }
 0x253   :  { %v18848_v4 = vld [vmem:[#allocation7 + $0xd44] sm:$0xf]  ;;  %v14607_v33 = vor.u32 %v18784_v20, %v14604_v22  ;;  %9247 = vmatpush.bf16.msra.mxu3 %v15407_v43  ;;  %v8995_v43 = vpop.f32.mrf.mxu3 }
 0x254   :  { %v14860_v21 = vld [vmem:[#allocation7 + $0xd60] sm:$0xf0] }
 0x255   :  { %v18912_v59 = vld [vmem:[#allocation7 + $0xf44] sm:$0xf]  ;;  %v14863_v38 = vor.u32 %v18848_v4, %v14860_v21  ;;  %9209 = vmatpush.bf16.msra.mxu0 %v14607_v33  ;;  %v8983_v4 = vadd.f32 %v8982_v13, %v8970_v57  ;;  %v8958_v21 = vpop.f32.mrf.mxu0 }
 0x256   :  { %v15116_v51 = vld [vmem:[#allocation7 + $0xf60] sm:$0xf0] }
 0x257   :  { %v18976_v30 = vld [vmem:[#allocation7 + $0x1144] sm:$0xf]  ;;  %v15119_v24 = vor.u32 %v18912_v59, %v15116_v51  ;;  %9222 = vmatpush.bf16.msra.mxu1 %v14863_v38  ;;  %v20154_v33 = vadd.f32 %v8995_v43, %v8983_v4  ;;  %v8984_v57 = vpop.f32.mrf.mxu2 }
 0x258   :  { %v15372_v61 = vld [vmem:[#allocation7 + $0x1160] sm:$0xf0] }
 0x259   :  { %v18776_v39 = vld [vmem:[#allocation7 + $0xb04] sm:$0xf]  ;;  %v15375_v9 = vor.u32 %v18976_v30, %v15372_v61  ;;  %9235 = vmatpush.bf16.msra.mxu2 %v15119_v24  ;;  %v8971_v30 = vpop.f32.mrf.mxu1 }
 0x25a   :  { %v14572_v62 = vld [vmem:[#allocation7 + $0xb20] sm:$0xf0] }
 0x25b   :  { %v18840_v40 = vld [vmem:[#allocation7 + $0xd04] sm:$0xf]  ;;  %v14575_v26 = vor.u32 %v18776_v39, %v14572_v62  ;;  %9248 = vmatpush.bf16.msra.mxu3 %v15375_v9 }
 0x25c   :  { %v14828_v45 = vld [vmem:[#allocation7 + $0xd20] sm:$0xf0] }
 0x25d   :  { %v18904_v47 = vld [vmem:[#allocation7 + $0xf04] sm:$0xf]  ;;  %v14831_v56 = vor.u32 %v18840_v40, %v14828_v45  ;;  %9210 = vmatpush.bf16.msra.mxu0 %v14575_v26 }
 0x25e   :  { %v15084_v36 = vld [vmem:[#allocation7 + $0xf20] sm:$0xf0] }
 0x25f   :  { %v18968_v37 = vld [vmem:[#allocation7 + $0x1104] sm:$0xf]  ;;  %v15087_v3 = vor.u32 %v18904_v47, %v15084_v36  ;;  %9223 = vmatpush.bf16.msra.mxu1 %v14831_v56 }
 0x260   :  { %v15340_v52 = vld [vmem:[#allocation7 + $0x1120] sm:$0xf0] }
 0x261   :  { %v18768_v17 = vld [vmem:[#allocation7 + $0xac4] sm:$0xf]  ;;  %v15343_v58 = vor.u32 %v18968_v37, %v15340_v52  ;;  %9236 = vmatpush.bf16.msra.mxu2 %v15087_v3 }
 0x262   :  { %v14540_v25 = vld [vmem:[#allocation7 + $0xae0] sm:$0xf0] }
 0x263   :  { %v18832_v48 = vld [vmem:[#allocation7 + $0xcc4] sm:$0xf]  ;;  %v14543_v60 = vor.u32 %v18768_v17, %v14540_v25  ;;  %9249 = vmatpush.bf16.msra.mxu3 %v15343_v58 }
 0x264   :  { %v14796_v2 = vld [vmem:[#allocation7 + $0xce0] sm:$0xf0] }
 0x265   :  { %v18896_v34 = vld [vmem:[#allocation7 + $0xec4] sm:$0xf]  ;;  %v14799_v7 = vor.u32 %v18832_v48, %v14796_v2  ;;  %9211 = vmatpush.bf16.msra.mxu0 %v14543_v60 }
 0x266   :  { %v15052_v63 = vld [vmem:[#allocation7 + $0xee0] sm:$0xf0] }
 0x267   :  { %v18960_v5 = vld [vmem:[#allocation7 + $0x10c4] sm:$0xf]  ;;  %v15055_v8 = vor.u32 %v18896_v34, %v15052_v63  ;;  %9224 = vmatpush.bf16.msra.mxu1 %v14799_v7  ;;  %v8997_v63 = vpop.f32.mrf.mxu3 }
 0x268   :  { %v15308_v6 = vld [vmem:[#allocation7 + $0x10e0] sm:$0xf0] }
 0x269   :  { %v18760_v1 = vld [vmem:[#allocation7 + $0xa84] sm:$0xf]  ;;  %v15311_v46 = vor.u32 %v18960_v5, %v15308_v6  ;;  %9237 = vmatpush.bf16.msra.mxu2 %v15055_v8 }
 0x26a   :  { %v14508_v0 = vld [vmem:[#allocation7 + $0xaa0] sm:$0xf0] }
 0x26b   :  { %v18824_v10 = vld [vmem:[#allocation7 + $0xc84] sm:$0xf]  ;;  %v14511_v61 = vor.u32 %v18760_v1, %v14508_v0  ;;  %9250 = vmatpush.bf16.msra.mxu3 %v15311_v46 }
 0x26c   :  { %v14764_v15 = vld [vmem:[#allocation7 + $0xca0] sm:$0xf0] }
 0x26d   :  { %v18888_v20 = vld [vmem:[#allocation7 + $0xe84] sm:$0xf]  ;;  %v14767_v38 = vor.u32 %v18824_v10, %v14764_v15  ;;  %9212 = vmatpush.bf16.msra.mxu0 %v14511_v61 }
 0x26e   :  { %v15020_v22 = vld [vmem:[#allocation7 + $0xea0] sm:$0xf0] }
 0x26f   :  { %v18952_v59 = vld [vmem:[#allocation7 + $0x1084] sm:$0xf]  ;;  %v15023_v24 = vor.u32 %v18888_v20, %v15020_v22  ;;  %9225 = vmatpush.bf16.msra.mxu1 %v14767_v38 }
 0x270   :  { %v15276_v51 = vld [vmem:[#allocation7 + $0x10a0] sm:$0xf0] }
 0x271   :  { %v18752_v39 = vld [vmem:[#allocation7 + $0xa44] sm:$0xf]  ;;  %v15279_v9 = vor.u32 %v18952_v59, %v15276_v51  ;;  %9238 = vmatpush.bf16.msra.mxu2 %v15023_v24 }
 0x272   :  { %v14476_v62 = vld [vmem:[#allocation7 + $0xa60] sm:$0xf0] }
 0x273   :  { %v18816_v40 = vld [vmem:[#allocation7 + $0xc44] sm:$0xf]  ;;  %v14479_v52 = vor.u32 %v18752_v39, %v14476_v62  ;;  %9251 = vmatpush.bf16.msra.mxu3 %v15279_v9 }
 0x274   :  { %v14732_v45 = vld [vmem:[#allocation7 + $0xc60] sm:$0xf0] }
 0x275   :  { %v18880_v47 = vld [vmem:[#allocation7 + $0xe44] sm:$0xf]  ;;  %v14735_v26 = vor.u32 %v18816_v40, %v14732_v45  ;;  %9213 = vmatpush.bf16.msra.mxu0 %v14479_v52 }
 0x276   :  { %v14988_v36 = vld [vmem:[#allocation7 + $0xe60] sm:$0xf0] }
 0x277   :  { %v18944_v49 = vld [vmem:[#allocation7 + $0x1044] sm:$0xf]  ;;  %v14991_v56 = vor.u32 %v18880_v47, %v14988_v36  ;;  %9226 = vmatpush.bf16.msra.mxu1 %v14735_v26 }
 0x278   :  { %v15244_v37 = vld [vmem:[#allocation7 + $0x1060] sm:$0xf0] }
 0x279   :  { %v18744_v53 = vld [vmem:[#allocation7 + $0xa04] sm:$0xf]  ;;  %v15247_v48 = vor.u32 %v18944_v49, %v15244_v37  ;;  %9239 = vmatpush.bf16.msra.mxu2 %v14991_v56 }
 0x27a   :  { %v14444_v54 = vld [vmem:[#allocation7 + $0xa20] sm:$0xf0] }
 0x27b   :  { %v18808_v3 = vld [vmem:[#allocation7 + $0xc04] sm:$0xf]  ;;  %v14447_v7 = vor.u32 %v18744_v53, %v14444_v54  ;;  %9252 = vmatpush.bf16.msra.mxu3 %v15247_v48 }
 0x27c   :  { %v14700_v17 = vld [vmem:[#allocation7 + $0xc20] sm:$0xf0] }
 0x27d   :  { %v18872_v25 = vld [vmem:[#allocation7 + $0xe04] sm:$0xf]  ;;  %v14703_v10 = vor.u32 %v18808_v3, %v14700_v17  ;;  %9214 = vmatpush.bf16.msra.mxu0 %v14447_v7 }
 0x27e   :  { %v14956_v58 = vld [vmem:[#allocation7 + $0xe20] sm:$0xf0] }
 0x27f   :  { %v18936_v2 = vld [vmem:[#allocation7 + $0x1004] sm:$0xf]  ;;  %v14959_v46 = vor.u32 %v18872_v25, %v14956_v58  ;;  %9227 = vmatpush.bf16.msra.mxu1 %v14703_v10 }
 0x280   :  { %v15212_v34 = vld [vmem:[#allocation7 + $0x1020] sm:$0xf0]  ;;  %9215 = vmatmul.bf16.vlgmr.msra.gmra.mxu0 %v20057_v29 }
 0x281   :  { %v19056_v5 = vld [vmem:[#allocation7 + $0x13c4] sm:$0xf]  ;;  %v15215_v20 = vor.u32 %v18936_v2, %v15212_v34  ;;  %9240 = vmatpush.bf16.msra.mxu2 %v14959_v46 }
 0x282   :  { %v15692_v6 = vld [vmem:[#allocation7 + $0x13e0] sm:$0xf0]  ;;  %9228 = vmatmul.bf16.vlgmr.msra.gmra.mxu1 %v20091_v41 }
 0x283   :  { %v19120_v60 = vld [vmem:[#allocation7 + $0x15c4] sm:$0xf]  ;;  %v15695_v22 = vor.u32 %v19056_v5, %v15692_v6  ;;  %9253 = vmatpush.bf16.msra.mxu3 %v15215_v20  ;;  %v9008_v6 = vpop.f32.mrf.mxu0 }
 0x284   :  { %v15948_v8 = vld [vmem:[#allocation7 + $0x15e0] sm:$0xf0]  ;;  %9241 = vmatmul.bf16.vlgmr.msra.gmra.mxu2 %v20095_v42 }
 0x285   :  { %v19184_v1 = vld [vmem:[#allocation7 + $0x17c4] sm:$0xf]  ;;  %v15951_v4 = vor.u32 %v19120_v60, %v15948_v8  ;;  %9259 = vmatpush.bf16.msrb.mxu0 %v15695_v22  ;;  %v9009_v8 = vadd.f32 %v9008_v6, %v20154_v33 }
 0x286   :  { %v16204_v0 = vld [vmem:[#allocation7 + $0x17e0] sm:$0xf0]  ;;  %9254 = vmatmul.bf16.vlgmr.msra.gmra.mxu3 %v20105_v35 }
 0x287   :  { %v19248_v13 = vld [vmem:[#allocation7 + $0x19c4] sm:$0xf]  ;;  %v16207_v43 = vor.u32 %v19184_v1, %v16204_v0  ;;  %9272 = vmatpush.bf16.msrb.mxu1 %v15951_v4  ;;  %v9021_v1 = vpop.f32.mrf.mxu1 }
 0x288   :  { %v16460_v15 = vld [vmem:[#allocation7 + $0x19e0] sm:$0xf0]  ;;  %v9022_v22 = vadd.f32 %v9021_v1, %v9009_v8 }
 0x289   :  { %v19048_v21 = vld [vmem:[#allocation7 + $0x1384] sm:$0xf]  ;;  %v16463_v30 = vor.u32 %v19248_v13, %v16460_v15  ;;  %9285 = vmatpush.bf16.msrb.mxu2 %v16207_v43 }
 0x28a   :  { %v15660_v59 = vld [vmem:[#allocation7 + $0x13a0] sm:$0xf0] }
 0x28b   :  { %v19112_v51 = vld [vmem:[#allocation7 + $0x1584] sm:$0xf]  ;;  %v15663_v40 = vor.u32 %v19048_v21, %v15660_v59  ;;  %9298 = vmatpush.bf16.msrb.mxu3 %v16463_v30 }
 0x28c   :  { %v15916_v61 = vld [vmem:[#allocation7 + $0x15a0] sm:$0xf0] }
 0x28d   :  { %v19176_v38 = vld [vmem:[#allocation7 + $0x1784] sm:$0xf]  ;;  %v15919_v9 = vor.u32 %v19112_v51, %v15916_v61  ;;  %9260 = vmatpush.bf16.msrb.mxu0 %v15663_v40 }
 0x28e   :  { %v16172_v24 = vld [vmem:[#allocation7 + $0x17a0] sm:$0xf0] }
 0x28f   :  { %v19240_v39 = vld [vmem:[#allocation7 + $0x1984] sm:$0xf]  ;;  %v16175_v45 = vor.u32 %v19176_v38, %v16172_v24  ;;  %9273 = vmatpush.bf16.msrb.mxu1 %v15919_v9  ;;  %v9034_v9 = vpop.f32.mrf.mxu2 }
 0x290   :  { %v16428_v62 = vld [vmem:[#allocation7 + $0x19a0] sm:$0xf0] }
 0x291   :  { %v19040_v47 = vld [vmem:[#allocation7 + $0x1344] sm:$0xf]  ;;  %v16431_v37 = vor.u32 %v19240_v39, %v16428_v62  ;;  %9286 = vmatpush.bf16.msrb.mxu2 %v16175_v45 }
 0x292   :  { %v15628_v36 = vld [vmem:[#allocation7 + $0x1360] sm:$0xf0] }
 0x293   :  { %v19104_v49 = vld [vmem:[#allocation7 + $0x1544] sm:$0xf]  ;;  %v15631_v3 = vor.u32 %v19040_v47, %v15628_v36  ;;  %9299 = vmatpush.bf16.msrb.mxu3 %v16431_v37  ;;  %v9010_v37 = vpop.f32.mrf.mxu0 }
 0x294   :  { %v15884_v52 = vld [vmem:[#allocation7 + $0x1560] sm:$0xf0] }
 0x295   :  { %v19168_v53 = vld [vmem:[#allocation7 + $0x1744] sm:$0xf]  ;;  %v15887_v17 = vor.u32 %v19104_v49, %v15884_v52  ;;  %9261 = vmatpush.bf16.msrb.mxu0 %v15631_v3  ;;  %v9035_v49 = vadd.f32 %v9034_v9, %v9022_v22  ;;  %v9047_v52 = vpop.f32.mrf.mxu3 }
 0x296   :  { %v16140_v54 = vld [vmem:[#allocation7 + $0x1760] sm:$0xf0] }
 0x297   :  { %v19232_v26 = vld [vmem:[#allocation7 + $0x1944] sm:$0xf]  ;;  %v16143_v25 = vor.u32 %v19168_v53, %v16140_v54  ;;  %9274 = vmatpush.bf16.msrb.mxu1 %v15887_v17  ;;  %v20161_v3 = vadd.f32 %v9047_v52, %v9035_v49  ;;  %v9036_v22 = vpop.f32.mrf.mxu2 }
 0x298   :  { %v16396_v56 = vld [vmem:[#allocation7 + $0x1960] sm:$0xf0] }
 0x299   :  { %v19032_v48 = vld [vmem:[#allocation7 + $0x1304] sm:$0xf]  ;;  %v16399_v2 = vor.u32 %v19232_v26, %v16396_v56  ;;  %9287 = vmatpush.bf16.msrb.mxu2 %v16143_v25  ;;  %v9023_v26 = vpop.f32.mrf.mxu1 }
 0x29a   :  { %v15596_v57 = vld [vmem:[#allocation7 + $0x1320] sm:$0xf0] }
 0x29b   :  { %v19096_v58 = vld [vmem:[#allocation7 + $0x1504] sm:$0xf]  ;;  %v15599_v0 = vor.u32 %v19032_v48, %v15596_v57  ;;  %9300 = vmatpush.bf16.msrb.mxu3 %v16399_v2 }
 0x29c   :  { %v15852_v34 = vld [vmem:[#allocation7 + $0x1520] sm:$0xf0] }
 0x29d   :  { %v19160_v63 = vld [vmem:[#allocation7 + $0x1704] sm:$0xf]  ;;  %v15855_v10 = vor.u32 %v19096_v58, %v15852_v34  ;;  %9262 = vmatpush.bf16.msrb.mxu0 %v15599_v0 }
 0x29e   :  { %v16108_v5 = vld [vmem:[#allocation7 + $0x1720] sm:$0xf0] }
 0x29f   :  { %v19224_v60 = vld [vmem:[#allocation7 + $0x1904] sm:$0xf]  ;;  %v16111_v46 = vor.u32 %v19160_v63, %v16108_v5  ;;  %9275 = vmatpush.bf16.msrb.mxu1 %v15855_v10 }
 0x2a0   :  { %v16364_v7 = vld [vmem:[#allocation7 + $0x1920] sm:$0xf0] }
 0x2a1   :  { %v19024_v13 = vld [vmem:[#allocation7 + $0x12c4] sm:$0xf]  ;;  %v16367_v4 = vor.u32 %v19224_v60, %v16364_v7  ;;  %9288 = vmatpush.bf16.msrb.mxu2 %v16111_v46 }
 0x2a2   :  { %v15564_v15 = vld [vmem:[#allocation7 + $0x12e0] sm:$0xf0] }
 0x2a3   :  { %v19088_v20 = vld [vmem:[#allocation7 + $0x14c4] sm:$0xf]  ;;  %v15567_v61 = vor.u32 %v19024_v13, %v15564_v15  ;;  %9301 = vmatpush.bf16.msrb.mxu3 %v16367_v4 }
 0x2a4   :  { %v15820_v43 = vld [vmem:[#allocation7 + $0x14e0] sm:$0xf0] }
 0x2a5   :  { %v19152_v21 = vld [vmem:[#allocation7 + $0x16c4] sm:$0xf]  ;;  %v15823_v33 = vor.u32 %v19088_v20, %v15820_v43  ;;  %9263 = vmatpush.bf16.msrb.mxu0 %v15567_v61  ;;  %v9049_v61 = vpop.f32.mrf.mxu3 }
 0x2a6   :  { %v16076_v59 = vld [vmem:[#allocation7 + $0x16e0] sm:$0xf0] }
 0x2a7   :  { %v19216_v51 = vld [vmem:[#allocation7 + $0x18c4] sm:$0xf]  ;;  %v16079_v38 = vor.u32 %v19152_v21, %v16076_v59  ;;  %9276 = vmatpush.bf16.msrb.mxu1 %v15823_v33 }
 0x2a8   :  { %v16332_v30 = vld [vmem:[#allocation7 + $0x18e0] sm:$0xf0] }
 0x2a9   :  { %v19016_v24 = vld [vmem:[#allocation7 + $0x1284] sm:$0xf]  ;;  %v16335_v40 = vor.u32 %v19216_v51, %v16332_v30  ;;  %9289 = vmatpush.bf16.msrb.mxu2 %v16079_v38 }
 0x2aa   :  { %v15532_v39 = vld [vmem:[#allocation7 + $0x12a0] sm:$0xf0] }
 0x2ab   :  { %v19080_v62 = vld [vmem:[#allocation7 + $0x1484] sm:$0xf]  ;;  %v15535_v56 = vor.u32 %v19016_v24, %v15532_v39  ;;  %9302 = vmatpush.bf16.msrb.mxu3 %v16335_v40 }
 0x2ac   :  { %v15788_v45 = vld [vmem:[#allocation7 + $0x14a0] sm:$0xf0] }
 0x2ad   :  { %v19144_v47 = vld [vmem:[#allocation7 + $0x1684] sm:$0xf]  ;;  %v15791_v17 = vor.u32 %v19080_v62, %v15788_v45  ;;  %9264 = vmatpush.bf16.msrb.mxu0 %v15535_v56 }
 0x2ae   :  { %v16044_v36 = vld [vmem:[#allocation7 + $0x16a0] sm:$0xf0] }
 0x2af   :  { %v19208_v53 = vld [vmem:[#allocation7 + $0x1884] sm:$0xf]  ;;  %v16047_v25 = vor.u32 %v19144_v47, %v16044_v36  ;;  %9277 = vmatpush.bf16.msrb.mxu1 %v15791_v17 }
 0x2b0   :  { %v16300_v54 = vld [vmem:[#allocation7 + $0x18a0] sm:$0xf0] }
 0x2b1   :  { %v19008_v48 = vld [vmem:[#allocation7 + $0x1244] sm:$0xf]  ;;  %v16303_v2 = vor.u32 %v19208_v53, %v16300_v54  ;;  %9290 = vmatpush.bf16.msrb.mxu2 %v16047_v25 }
 0x2b2   :  { %v15500_v57 = vld [vmem:[#allocation7 + $0x1260] sm:$0xf0] }
 0x2b3   :  { %v19072_v58 = vld [vmem:[#allocation7 + $0x1444] sm:$0xf]  ;;  %v15503_v7 = vor.u32 %v19008_v48, %v15500_v57  ;;  %9303 = vmatpush.bf16.msrb.mxu3 %v16303_v2 }
 0x2b4   :  { %v15756_v34 = vld [vmem:[#allocation7 + $0x1460] sm:$0xf0] }
 0x2b5   :  { %v19136_v63 = vld [vmem:[#allocation7 + $0x1644] sm:$0xf]  ;;  %v15759_v0 = vor.u32 %v19072_v58, %v15756_v34  ;;  %9265 = vmatpush.bf16.msrb.mxu0 %v15503_v7 }
 0x2b6   :  { %v16012_v5 = vld [vmem:[#allocation7 + $0x1660] sm:$0xf0] }
 0x2b7   :  { %v19200_v6 = vld [vmem:[#allocation7 + $0x1844] sm:$0xf]  ;;  %v16015_v10 = vor.u32 %v19136_v63, %v16012_v5  ;;  %9278 = vmatpush.bf16.msrb.mxu1 %v15759_v0 }
 0x2b8   :  { %v16268_v60 = vld [vmem:[#allocation7 + $0x1860] sm:$0xf0] }
 0x2b9   :  { %v19000_v8 = vld [vmem:[#allocation7 + $0x1204] sm:$0xf]  ;;  %v16271_v20 = vor.u32 %v19200_v6, %v16268_v60  ;;  %9291 = vmatpush.bf16.msrb.mxu2 %v16015_v10 }
 0x2ba   :  { %v15468_v1 = vld [vmem:[#allocation7 + $0x1220] sm:$0xf0] }
 0x2bb   :  { %v19064_v46 = vld [vmem:[#allocation7 + $0x1404] sm:$0xf]  ;;  %v15471_v33 = vor.u32 %v19000_v8, %v15468_v1  ;;  %9304 = vmatpush.bf16.msrb.mxu3 %v16271_v20 }
 0x2bc   :  { %v15724_v13 = vld [vmem:[#allocation7 + $0x1420] sm:$0xf0] }
 0x2bd   :  { %v19128_v15 = vld [vmem:[#allocation7 + $0x1604] sm:$0xf]  ;;  %v15727_v62 = vor.u32 %v19064_v46, %v15724_v13  ;;  %9266 = vmatpush.bf16.msrb.mxu0 %v15471_v33 }
 0x2be   :  { %v15980_v4 = vld [vmem:[#allocation7 + $0x1620] sm:$0xf0] }
 0x2bf   :  { %v19192_v43 = vld [vmem:[#allocation7 + $0x1804] sm:$0xf]  ;;  %v15983_v40 = vor.u32 %v19128_v15, %v15980_v4  ;;  %9279 = vmatpush.bf16.msrb.mxu1 %v15727_v62 }
 0x2c0   :  { %v16236_v21 = vld [vmem:[#allocation7 + $0x1820] sm:$0xf0]  ;;  %9267 = vmatmul.bf16.vlgmr.msrb.gmra.mxu0 %v20097_v44 }
 0x2c1   :  { %v19312_v59 = vld [vmem:[#allocation7 + $0x1bc4] sm:$0xf]  ;;  %v16239_v47 = vor.u32 %v19192_v43, %v16236_v21  ;;  %9292 = vmatpush.bf16.msrb.mxu2 %v15983_v40 }
 0x2c2   :  { %v16716_v51 = vld [vmem:[#allocation7 + $0x1be0] sm:$0xf0]  ;;  %9280 = vmatmul.bf16.vlgmr.msrb.gmra.mxu1 %v20124_v14 }
 0x2c3   :  { %v19376_v30 = vld [vmem:[#allocation7 + $0x1dc4] sm:$0xf]  ;;  %v16719_v36 = vor.u32 %v19312_v59, %v16716_v51  ;;  %9305 = vmatpush.bf16.msrb.mxu3 %v16239_v47 }
 0x2c4   :  { %v16972_v38 = vld [vmem:[#allocation7 + $0x1de0] sm:$0xf0]  ;;  %9293 = vmatmul.bf16.vlgmr.msrb.gmra.mxu2 %v20120_v11 }
 0x2c5   :  { %v19440_v24 = vld [vmem:[#allocation7 + $0x1fc4] sm:$0xf]  ;;  %v16975_v49 = vor.u32 %v19376_v30, %v16972_v38  ;;  %9311 = vmatpush.bf16.msra.mxu0 %v16719_v36  ;;  %v9060_v30 = vpop.f32.mrf.mxu0 }
 0x2c6   :  { %v17228_v39 = vld [vmem:[#allocation7 + $0x1fe0] sm:$0xf0]  ;;  %9306 = vmatmul.bf16.vlgmr.msrb.gmra.mxu3 %v20122_v12  ;;  %v9061_v38 = vadd.f32 %v9060_v30, %v20161_v3 }
 0x2c7   :  { %v19504_v9 = vld [vmem:[#allocation7 + $0x21c4] sm:$0xf]  ;;  %v17231_v37 = vor.u32 %v19440_v24, %v17228_v39  ;;  %9324 = vmatpush.bf16.msra.mxu1 %v16975_v49  ;;  %v9073_v39 = vpop.f32.mrf.mxu1 }
 0x2c8   :  { %v17484_v45 = vld [vmem:[#allocation7 + $0x21e0] sm:$0xf0]  ;;  %v9074_v49 = vadd.f32 %v9073_v39, %v9061_v38 }
 0x2c9   :  { %v19304_v52 = vld [vmem:[#allocation7 + $0x1b84] sm:$0xf]  ;;  %v17487_v26 = vor.u32 %v19504_v9, %v17484_v45  ;;  %9337 = vmatpush.bf16.msra.mxu2 %v17231_v37 }
 0x2ca   :  { %v16684_v53 = vld [vmem:[#allocation7 + $0x1ba0] sm:$0xf0] }
 0x2cb   :  { %v19368_v54 = vld [vmem:[#allocation7 + $0x1d84] sm:$0xf]  ;;  %v16687_v58 = vor.u32 %v19304_v52, %v16684_v53  ;;  %9350 = vmatpush.bf16.msra.mxu3 %v17487_v26 }
 0x2cc   :  { %v16940_v56 = vld [vmem:[#allocation7 + $0x1da0] sm:$0xf0] }
 0x2cd   :  { %v19432_v17 = vld [vmem:[#allocation7 + $0x1f84] sm:$0xf]  ;;  %v16943_v2 = vor.u32 %v19368_v54, %v16940_v56  ;;  %9312 = vmatpush.bf16.msra.mxu0 %v16687_v58 }
 0x2ce   :  { %v17196_v25 = vld [vmem:[#allocation7 + $0x1fa0] sm:$0xf0] }
 0x2cf   :  { %v19496_v48 = vld [vmem:[#allocation7 + $0x2184] sm:$0xf]  ;;  %v17199_v34 = vor.u32 %v19432_v17, %v17196_v25  ;;  %9325 = vmatpush.bf16.msra.mxu1 %v16943_v2  ;;  %v9086_v2 = vpop.f32.mrf.mxu2 }
 0x2d0   :  { %v17452_v57 = vld [vmem:[#allocation7 + $0x21a0] sm:$0xf0] }
 0x2d1   :  { %v19296_v63 = vld [vmem:[#allocation7 + $0x1b44] sm:$0xf]  ;;  %v17455_v60 = vor.u32 %v19496_v48, %v17452_v57  ;;  %9338 = vmatpush.bf16.msra.mxu2 %v17199_v34 }
 0x2d2   :  { %v16652_v5 = vld [vmem:[#allocation7 + $0x1b60] sm:$0xf0] }
 0x2d3   :  { %v19360_v6 = vld [vmem:[#allocation7 + $0x1d44] sm:$0xf]  ;;  %v16655_v46 = vor.u32 %v19296_v63, %v16652_v5  ;;  %9351 = vmatpush.bf16.msra.mxu3 %v17455_v60  ;;  %v9062_v60 = vpop.f32.mrf.mxu0 }
 0x2d4   :  { %v16908_v7 = vld [vmem:[#allocation7 + $0x1d60] sm:$0xf0] }
 0x2d5   :  { %v19424_v8 = vld [vmem:[#allocation7 + $0x1f44] sm:$0xf]  ;;  %v16911_v13 = vor.u32 %v19360_v6, %v16908_v7  ;;  %9313 = vmatpush.bf16.msra.mxu0 %v16655_v46  ;;  %v9087_v6 = vadd.f32 %v9086_v2, %v9074_v49  ;;  %v9099_v7 = vpop.f32.mrf.mxu3  ;;  %v14162_v2 = vld [vmem:[#allocation7 + $0x7c8] sm:$0xf] }
 0x2d6   :  { %v17164_v1 = vld [vmem:[#allocation7 + $0x1f60] sm:$0xf0] }
 0x2d7   :  { %v19488_v0 = vld [vmem:[#allocation7 + $0x2144] sm:$0xf]  ;;  %v17167_v15 = vor.u32 %v19424_v8, %v17164_v1  ;;  %9326 = vmatpush.bf16.msra.mxu1 %v16911_v13  ;;  %v20168_v46 = vadd.f32 %v9099_v7, %v9087_v6  ;;  %v13362_v7 = vld [vmem:[#allocation7 + $0x188] sm:$0xf] }
 0x2d8   :  { %v17420_v10 = vld [vmem:[#allocation7 + $0x2160] sm:$0xf0] }
 0x2d9   :  { %v19288_v20 = vld [vmem:[#allocation7 + $0x1b04] sm:$0xf]  ;;  %v17423_v43 = vor.u32 %v19488_v0, %v17420_v10  ;;  %9339 = vmatpush.bf16.msra.mxu2 %v17167_v15  ;;  %v9075_v10 = vpop.f32.mrf.mxu1 }
 0x2da   :  { %v16620_v22 = vld [vmem:[#allocation7 + $0x1b20] sm:$0xf0]  ;;  %v18541_v10 = vld [vmem:[#allocation7 + $0x3a4] sm:$0xf0] }
 0x2db   :  { %v19352_v4 = vld [vmem:[#allocation7 + $0x1d04] sm:$0xf]  ;;  %v16623_v24 = vor.u32 %v19288_v20, %v16620_v22  ;;  %9352 = vmatpush.bf16.msra.mxu3 %v17423_v43 }
 0x2dc   :  { %v16876_v21 = vld [vmem:[#allocation7 + $0x1d20] sm:$0xf0] }
 0x2dd   :  { %v19416_v59 = vld [vmem:[#allocation7 + $0x1f04] sm:$0xf]  ;;  %v16879_v62 = vor.u32 %v19352_v4, %v16876_v21  ;;  %9314 = vmatpush.bf16.msra.mxu0 %v16623_v24 }
 0x2de   :  { %v17132_v51 = vld [vmem:[#allocation7 + $0x1f20] sm:$0xf0] }
 0x2df   :  { %v19480_v61 = vld [vmem:[#allocation7 + $0x2104] sm:$0xf]  ;;  %v17135_v40 = vor.u32 %v19416_v59, %v17132_v51  ;;  %9327 = vmatpush.bf16.msra.mxu1 %v16879_v62 }
 0x2e0   :  { %v17388_v33 = vld [vmem:[#allocation7 + $0x2120] sm:$0xf0] }
 0x2e1   :  { %v19280_v9 = vld [vmem:[#allocation7 + $0x1ac4] sm:$0xf]  ;;  %v17391_v36 = vor.u32 %v19480_v61, %v17388_v33  ;;  %9340 = vmatpush.bf16.msra.mxu2 %v17135_v40 }
 0x2e2   :  { %v16588_v45 = vld [vmem:[#allocation7 + $0x1ae0] sm:$0xf0] }
 0x2e3   :  { %v19344_v47 = vld [vmem:[#allocation7 + $0x1cc4] sm:$0xf]  ;;  %v16591_v56 = vor.u32 %v19280_v9, %v16588_v45  ;;  %9353 = vmatpush.bf16.msra.mxu3 %v17391_v36 }
 0x2e4   :  { %v16844_v37 = vld [vmem:[#allocation7 + $0x1ce0] sm:$0xf0] }
 0x2e5   :  { %v19408_v52 = vld [vmem:[#allocation7 + $0x1ec4] sm:$0xf]  ;;  %v16847_v3 = vor.u32 %v19344_v47, %v16844_v37  ;;  %9315 = vmatpush.bf16.msra.mxu0 %v16591_v56  ;;  %v9101_v56 = vpop.f32.mrf.mxu3 }
 0x2e6   :  { %v17100_v53 = vld [vmem:[#allocation7 + $0x1ee0] sm:$0xf0]  ;;  %v14066_v56 = vld [vmem:[#allocation7 + $0x708] sm:$0xf] }
 0x2e7   :  { %v19472_v54 = vld [vmem:[#allocation7 + $0x20c4] sm:$0xf]  ;;  %v17103_v17 = vor.u32 %v19408_v52, %v17100_v53  ;;  %9328 = vmatpush.bf16.msra.mxu1 %v16847_v3  ;;  %v9088_v52 = vpop.f32.mrf.mxu2  ;;  %v13394_v53 = vld [vmem:[#allocation7 + $0x1c8] sm:$0xf] }
 0x2e8   :  { %v17356_v26 = vld [vmem:[#allocation7 + $0x20e0] sm:$0xf0]  ;;  %v18525_v52 = vld [vmem:[#allocation7 + $0x324] sm:$0xf0] }
 0x2e9   :  { %v19272_v25 = vld [vmem:[#allocation7 + $0x1a84] sm:$0xf]  ;;  %v17359_v58 = vor.u32 %v19472_v54, %v17356_v26  ;;  %9341 = vmatpush.bf16.msra.mxu2 %v17103_v17  ;;  %v18485_v54 = vld [vmem:[#allocation7 + $0x1e4] sm:$0xf0] }
 0x2ea   :  { %v16556_v48 = vld [vmem:[#allocation7 + $0x1aa0] sm:$0xf0]  ;;  %v13650_v26 = vld [vmem:[#allocation7 + $0x3c8] sm:$0xf] }
 0x2eb   :  { %v19336_v57 = vld [vmem:[#allocation7 + $0x1c84] sm:$0xf]  ;;  %v16559_v0 = vor.u32 %v19272_v25, %v16556_v48  ;;  %9354 = vmatpush.bf16.msra.mxu3 %v17359_v58  ;;  %v18549_v17 = vld [vmem:[#allocation7 + $0x3e4] sm:$0xf0] }
 0x2ec   :  { %v16812_v34 = vld [vmem:[#allocation7 + $0x1ca0] sm:$0xf0]  ;;  %v13906_v25 = vld [vmem:[#allocation7 + $0x5c8] sm:$0xf]  ;;  %v13651_v6 = vor.u32 %v18549_v17, %v13650_v26  ;;  %v9112_v26 = vpop.f32.mrf.mxu0 }
 0x2ed   :  { %v19400_v63 = vld [vmem:[#allocation7 + $0x1e84] sm:$0xf]  ;;  %v16815_v13 = vor.u32 %v19336_v57, %v16812_v34  ;;  %9316 = vmatpush.bf16.msra.mxu0 %v16559_v0  ;;  %v18613_v48 = vld [vmem:[#allocation7 + $0x5e4] sm:$0xf0]  ;;  %v9113_v17 = vadd.f32 %v9112_v26, %v20168_v46 }
 0x2ee   :  { %v17068_v5 = vld [vmem:[#allocation7 + $0x1ea0] sm:$0xf0]  ;;  %v18677_v34 = vld [vmem:[#allocation7 + $0x7e4] sm:$0xf0]  ;;  %v13907_v60 = vor.u32 %v18613_v48, %v13906_v25  ;;  %v9125_v48 = vpop.f32.mrf.mxu1 }
 0x2ef   :  { %v19464_v8 = vld [vmem:[#allocation7 + $0x2084] sm:$0xf]  ;;  %v17071_v15 = vor.u32 %v19400_v63, %v17068_v5  ;;  %9329 = vmatpush.bf16.msra.mxu1 %v16815_v13  ;;  %v13395_v5 = vor.u32 %v18485_v54, %v13394_v53  ;;  %v14163_v0 = vor.u32 %v18677_v34, %v14162_v2  ;;  %v13874_v13 = vld [vmem:[#allocation7 + $0x588] sm:$0xf] }
 0x2f0   :  { %v17324_v1 = vld [vmem:[#allocation7 + $0x20a0] sm:$0xf0]  ;;  %v13810_v53 = vld [vmem:[#allocation7 + $0x508] sm:$0xf] }
 0x2f1   :  { %v19264_v20 = vld [vmem:[#allocation7 + $0x1a44] sm:$0xf]  ;;  %v17327_v43 = vor.u32 %v19464_v8, %v17324_v1  ;;  %9342 = vmatpush.bf16.msra.mxu2 %v17071_v15  ;;  %v18477_v8 = vld [vmem:[#allocation7 + $0x1a4] sm:$0xf0] }
 0x2f2   :  { %v16524_v22 = vld [vmem:[#allocation7 + $0x1a60] sm:$0xf0]  ;;  %v13618_v1 = vld [vmem:[#allocation7 + $0x388] sm:$0xf] }
 0x2f3   :  { %v19328_v4 = vld [vmem:[#allocation7 + $0x1c44] sm:$0xf]  ;;  %v16527_v33 = vor.u32 %v19264_v20, %v16524_v22  ;;  %9355 = vmatpush.bf16.msra.mxu3 %v17327_v43  ;;  %v18605_v15 = vld [vmem:[#allocation7 + $0x5a4] sm:$0xf0]  ;;  %v13619_v43 = vor.u32 %v18541_v10, %v13618_v1 }
 0x2f4   :  { %v16780_v21 = vld [vmem:[#allocation7 + $0x1c60] sm:$0xf0]  ;;  %v14130_v20 = vld [vmem:[#allocation7 + $0x788] sm:$0xf] }
 0x2f5   :  { %v19392_v59 = vld [vmem:[#allocation7 + $0x1e44] sm:$0xf]  ;;  %v16783_v39 = vor.u32 %v19328_v4, %v16780_v21  ;;  %9317 = vmatpush.bf16.msra.mxu0 %v16527_v33  ;;  %v18669_v22 = vld [vmem:[#allocation7 + $0x7a4] sm:$0xf0]  ;;  %v13363_v4 = vor.u32 %v18477_v8, %v13362_v7  ;;  %v13875_v21 = vor.u32 %v18605_v15, %v13874_v13 }
 0x2f6   :  { %v17036_v51 = vld [vmem:[#allocation7 + $0x1e60] sm:$0xf0]  ;;  %v18533_v33 = vld [vmem:[#allocation7 + $0x364] sm:$0xf0] }
 0x2f7   :  { %v19456_v30 = vld [vmem:[#allocation7 + $0x2044] sm:$0xf]  ;;  %v17039_v62 = vor.u32 %v19392_v59, %v17036_v51  ;;  %9330 = vmatpush.bf16.msra.mxu1 %v16783_v39  ;;  %v13330_v59 = vld [vmem:[#allocation7 + $0x148] sm:$0xf] }
 0x2f8   :  { %v17292_v61 = vld [vmem:[#allocation7 + $0x2060] sm:$0xf0]  ;;  %v18469_v51 = vld [vmem:[#allocation7 + $0x164] sm:$0xf0] }
 0x2f9   :  { %v19256_v38 = vld [vmem:[#allocation7 + $0x1a04] sm:$0xf]  ;;  %v17295_v47 = vor.u32 %v19456_v30, %v17292_v61  ;;  %9343 = vmatpush.bf16.msra.mxu2 %v17039_v62  ;;  %v13586_v30 = vld [vmem:[#allocation7 + $0x348] sm:$0xf]  ;;  %v14131_v61 = vor.u32 %v18669_v22, %v14130_v20 }
 0x2fa   :  { %v16492_v24 = vld [vmem:[#allocation7 + $0x1a20] sm:$0xf0]  ;;  %v14098_v39 = vld [vmem:[#allocation7 + $0x748] sm:$0xf] }
 0x2fb   :  { %v19320_v40 = vld [vmem:[#allocation7 + $0x1c04] sm:$0xf]  ;;  %v16495_v3 = vor.u32 %v19256_v38, %v16492_v24  ;;  %9356 = vmatpush.bf16.msra.mxu3 %v17295_v47  ;;  %v13842_v38 = vld [vmem:[#allocation7 + $0x548] sm:$0xf] }
 0x2fc   :  { %v16748_v9 = vld [vmem:[#allocation7 + $0x1c20] sm:$0xf0]  ;;  %v18597_v24 = vld [vmem:[#allocation7 + $0x564] sm:$0xf0] }
 0x2fd   :  { %v19384_v45 = vld [vmem:[#allocation7 + $0x1e04] sm:$0xf]  ;;  %v16751_v57 = vor.u32 %v19320_v40, %v16748_v9  ;;  %9318 = vmatpush.bf16.msra.mxu0 %v16495_v3  ;;  %v18661_v62 = vld [vmem:[#allocation7 + $0x764] sm:$0xf0]  ;;  %v13331_v40 = vor.u32 %v18469_v51, %v13330_v59  ;;  %v13587_v9 = vor.u32 %v18533_v33, %v13586_v30  ;;  %v9114_v33 = vpop.f32.mrf.mxu0 }
 0x2fe   :  { %v17004_v36 = vld [vmem:[#allocation7 + $0x1e20] sm:$0xf0]  ;;  %v13298_v47 = vld [vmem:[#allocation7 + $0x108] sm:$0xf] }
 0x2ff   :  { %v19448_v49 = vld [vmem:[#allocation7 + $0x2004] sm:$0xf]  ;;  %v17007_v58 = vor.u32 %v19384_v45, %v17004_v36  ;;  %9331 = vmatpush.bf16.msra.mxu1 %v16751_v57  ;;  %v13843_v45 = vor.u32 %v18597_v24, %v13842_v38  ;;  %v18461_v36 = vld [vmem:[#allocation7 + $0x124] sm:$0xf0]  ;;  %v9127_v24 = vpop.f32.mrf.mxu1 }
 0x300   :  { %v17260_v37 = vld [vmem:[#allocation7 + $0x2020] sm:$0xf0]  ;;  %9319 = vmatmul.bf16.vlgmr.msra.gmra.mxu0 %v20126_v27  ;;  %v18589_v54 = vld [vmem:[#allocation7 + $0x524] sm:$0xf0]  ;;  %v13299_v25 = vor.u32 %v18461_v36, %v13298_v47 }
 0x301   :  { %v17263_v63 = vor.u32 %v19448_v49, %v17260_v37  ;;  %9344 = vmatpush.bf16.msra.mxu2 %v17007_v58  ;;  %9363 = vmatpush.bf16.msrb.mxu0 %v13395_v5  ;;  %v13554_v49 = vld [vmem:[#allocation7 + $0x308] sm:$0xf]  ;;  %v14099_v37 = vor.u32 %v18661_v62, %v14098_v39  ;;  %v13811_v58 = vor.u32 %v18589_v54, %v13810_v53 }
 0x302   :  { %9332 = vmatmul.bf16.vlgmr.msra.gmra.mxu1 %v20134_v31  ;;  %v18653_v3 = vld [vmem:[#allocation7 + $0x724] sm:$0xf0]  ;;  %v13555_v57 = vor.u32 %v18525_v52, %v13554_v49 }
 0x303   :  { %9357 = vmatpush.bf16.msra.mxu3 %v17263_v63  ;;  %9376 = vmatpush.bf16.msrb.mxu1 %v13651_v6  ;;  %v13266_v2 = vld [vmem:[#allocation7 + $0xc8] sm:$0xf]  ;;  %v14067_v5 = vor.u32 %v18653_v3, %v14066_v56  ;;  %v20175_v6 = vadd.f32 %v9125_v48, %v9113_v17 }
 0x304   :  { %9345 = vmatmul.bf16.vlgmr.msra.gmra.mxu2 %v20136_v18  ;;  %v18453_v34 = vld [vmem:[#allocation7 + $0xe4] sm:$0xf0] }
 0x305   :  { %9389 = vmatpush.bf16.msrb.mxu2 %v13907_v60  ;;  %9364 = vmatpush.bf16.msrb.mxu0 %v13363_v4  ;;  %v13522_v63 = vld [vmem:[#allocation7 + $0x2c8] sm:$0xf]  ;;  %v13267_v46 = vor.u32 %v18453_v34, %v13266_v2 }
 0x306   :  { %9358 = vmatmul.bf16.vlgmr.msra.gmra.mxu3 %v20146_v32  ;;  %v18517_v60 = vld [vmem:[#allocation7 + $0x2e4] sm:$0xf0] }
 0x307   :  { %9402 = vmatpush.bf16.msrb.mxu3 %v14163_v0  ;;  %9377 = vmatpush.bf16.msrb.mxu1 %v13619_v43  ;;  %v13778_v7 = vld [vmem:[#allocation7 + $0x4c8] sm:$0xf]  ;;  %v13523_v10 = vor.u32 %v18517_v60, %v13522_v63  ;;  %v20177_v43 = vpop.f32.mrf.mxu3 }
 0x308   :  { %v18581_v8 = vld [vmem:[#allocation7 + $0x4e4] sm:$0xf0] }
 0x309   :  { %9390 = vmatpush.bf16.msrb.mxu2 %v13875_v21  ;;  %9365 = vmatpush.bf16.msrb.mxu0 %v13331_v40  ;;  %v14034_v1 = vld [vmem:[#allocation7 + $0x6c8] sm:$0xf]  ;;  %v13779_v13 = vor.u32 %v18581_v8, %v13778_v7 }
 0x30a   :  { %v18645_v0 = vld [vmem:[#allocation7 + $0x6e4] sm:$0xf0] }
 0x30b   :  { %9403 = vmatpush.bf16.msrb.mxu3 %v14131_v61  ;;  %9378 = vmatpush.bf16.msrb.mxu1 %v13587_v9  ;;  %v13234_v15 = vld [vmem:[#allocation7 + $0x88] sm:$0xf]  ;;  %v14035_v4 = vor.u32 %v18645_v0, %v14034_v1 }
 0x30c   :  { %v18445_v20 = vld [vmem:[#allocation7 + $0xa4] sm:$0xf0] }
 0x30d   :  { %9391 = vmatpush.bf16.msrb.mxu2 %v13843_v45  ;;  %9366 = vmatpush.bf16.msrb.mxu0 %v13299_v25  ;;  %v13490_v22 = vld [vmem:[#allocation7 + $0x288] sm:$0xf]  ;;  %v13235_v38 = vor.u32 %v18445_v20, %v13234_v15 }
 0x30e   :  { %v18509_v21 = vld [vmem:[#allocation7 + $0x2a4] sm:$0xf0] }
 0x30f   :  { %9404 = vmatpush.bf16.msrb.mxu3 %v14099_v37  ;;  %9379 = vmatpush.bf16.msrb.mxu1 %v13555_v57  ;;  %v13746_v59 = vld [vmem:[#allocation7 + $0x488] sm:$0xf]  ;;  %v13491_v39 = vor.u32 %v18509_v21, %v13490_v22  ;;  %v9153_v2 = vpop.f32.mrf.mxu3 }
 0x310   :  { %v18573_v51 = vld [vmem:[#allocation7 + $0x4a4] sm:$0xf0] }
 0x311   :  { %9392 = vmatpush.bf16.msrb.mxu2 %v13811_v58  ;;  %v14002_v30 = vld [vmem:[#allocation7 + $0x688] sm:$0xf]  ;;  %9367 = vmatpush.bf16.msrb.mxu0 %v13267_v46  ;;  %v13747_v62 = vor.u32 %v18573_v51, %v13746_v59 }
 0x312   :  { %v18637_v61 = vld [vmem:[#allocation7 + $0x6a4] sm:$0xf0] }
 0x313   :  { %9405 = vmatpush.bf16.msrb.mxu3 %v14067_v5  ;;  %9380 = vmatpush.bf16.msrb.mxu1 %v13523_v10  ;;  %v13202_v40 = vld [vmem:[#allocation7 + $0x48] sm:$0xf]  ;;  %v14003_v47 = vor.u32 %v18637_v61, %v14002_v30 }
 0x314   :  { %v18437_v9 = vld [vmem:[#allocation7 + $0x64] sm:$0xf0] }
 0x315   :  { %9393 = vmatpush.bf16.msrb.mxu2 %v13779_v13  ;;  %v13458_v45 = vld [vmem:[#allocation7 + $0x248] sm:$0xf]  ;;  %9368 = vmatpush.bf16.msrb.mxu0 %v13235_v38  ;;  %v13203_v54 = vor.u32 %v18437_v9, %v13202_v40 }
 0x316   :  { %v18501_v36 = vld [vmem:[#allocation7 + $0x264] sm:$0xf0] }
 0x317   :  { %9406 = vmatpush.bf16.msrb.mxu3 %v14035_v4  ;;  %v13714_v49 = vld [vmem:[#allocation7 + $0x448] sm:$0xf]  ;;  %9381 = vmatpush.bf16.msrb.mxu1 %v13491_v39  ;;  %v13459_v3 = vor.u32 %v18501_v36, %v13458_v45  ;;  %v3466_v45 = vperm.slane %v20141_v19, 1 }
 0x318   :  { %v18565_v37 = vld [vmem:[#allocation7 + $0x464] sm:$0xf0] }
 0x319   :  { %v13970_v52 = vld [vmem:[#allocation7 + $0x648] sm:$0xf]  ;;  %9394 = vmatpush.bf16.msrb.mxu2 %v13747_v62  ;;  %v13715_v17 = vor.u32 %v18565_v37, %v13714_v49  ;;  %9369 = vmatpush.bf16.msrb.mxu0 %v13203_v54 }
 0x31a   :  { %v18629_v53 = vld [vmem:[#allocation7 + $0x664] sm:$0xf0] }
 0x31b   :  { %v13170_v26 = vld [vmem:[#allocation7 + $0x8] sm:$0xf]  ;;  %9407 = vmatpush.bf16.msrb.mxu3 %v14003_v47  ;;  %v13971_v58 = vor.u32 %v18629_v53, %v13970_v52  ;;  %9382 = vmatpush.bf16.msrb.mxu1 %v13459_v3 }
 0x31c   :  { %v18429_v56 = vld [vmem:[#allocation7 + $0x24] sm:$0xf0] }
 0x31d   :  { %v13426_v25 = vld [vmem:[#allocation7 + $0x208] sm:$0xf]  ;;  %v13171_v1 = vor.u32 %v18429_v56, %v13170_v26  ;;  %9395 = vmatpush.bf16.msrb.mxu2 %v13715_v17 }
 0x31e   :  { %v18493_v48 = vld [vmem:[#allocation7 + $0x224] sm:$0xf0] }
 0x31f   :  { %v13682_v57 = vld [vmem:[#allocation7 + $0x408] sm:$0xf]  ;;  %v13427_v13 = vor.u32 %v18493_v48, %v13426_v25  ;;  %9408 = vmatpush.bf16.msrb.mxu3 %v13971_v58  ;;  %9370 = vmatpush.bf16.msrb.mxu0 %v13171_v1 }
 0x320   :  { %v18557_v34 = vld [vmem:[#allocation7 + $0x424] sm:$0xf0] }
 0x321   :  { %v13938_v63 = vld [vmem:[#allocation7 + $0x608] sm:$0xf]  ;;  %v13683_v15 = vor.u32 %v18557_v34, %v13682_v57  ;;  %9383 = vmatpush.bf16.msrb.mxu1 %v13427_v13 }
 0x322   :  { %v18621_v5 = vld [vmem:[#allocation7 + $0x624] sm:$0xf0]  ;;  %9371 = vmatmul.bf16.vlgmr.msrb.gmra.mxu0 %v20004_v50 }
 0x323   :  { %v14418_v60 = vld [vmem:[#allocation7 + $0x9c8] sm:$0xf]  ;;  %v13939_v4 = vor.u32 %v18621_v5, %v13938_v63  ;;  %9396 = vmatpush.bf16.msrb.mxu2 %v13683_v15  ;;  %v9138_v5 = vpop.f32.mrf.mxu2 }
 0x324   :  { %v18741_v7 = vld [vmem:[#allocation7 + $0x9e4] sm:$0xf0]  ;;  %9384 = vmatmul.bf16.vlgmr.msrb.gmra.mxu1 %v20008_v55 }
 0x325   :  { %v14674_v8 = vld [vmem:[#allocation7 + $0xbc8] sm:$0xf]  ;;  %v14419_v21 = vor.u32 %v18741_v7, %v14418_v60  ;;  %9409 = vmatpush.bf16.msrb.mxu3 %v13939_v4  ;;  %v9152_v60 = vadd.f32 %v20177_v43, %v3466_v45 }
 0x326   :  { %v18805_v0 = vld [vmem:[#allocation7 + $0xbe4] sm:$0xf0]  ;;  %9397 = vmatmul.bf16.vlgmr.msrb.gmra.mxu2 %v20045_v23 }
 0x327   :  { %v14930_v46 = vld [vmem:[#allocation7 + $0xdc8] sm:$0xf]  ;;  %v14675_v59 = vor.u32 %v18805_v0, %v14674_v8  ;;  %9415 = vmatpush.bf16.msra.mxu0 %v14419_v21 }
 0x328   :  { %v18869_v10 = vld [vmem:[#allocation7 + $0xde4] sm:$0xf0]  ;;  %9410 = vmatmul.bf16.vlgmr.msrb.gmra.mxu3 %v20047_v28 }
 0x329   :  { %v15186_v20 = vld [vmem:[#allocation7 + $0xfc8] sm:$0xf]  ;;  %v14931_v51 = vor.u32 %v18869_v10, %v14930_v46  ;;  %9428 = vmatpush.bf16.msra.mxu1 %v14675_v59  ;;  %v20186_v46 = vadd.f32 %v9138_v5, %v20175_v6  ;;  %v9164_v10 = vpop.f32.mrf.mxu0 }
 0x32a   :  { %v18933_v22 = vld [vmem:[#allocation7 + $0xfe4] sm:$0xf0] }
 0x32b   :  { %v14386_v30 = vld [vmem:[#allocation7 + $0x988] sm:$0xf]  ;;  %v15187_v38 = vor.u32 %v18933_v22, %v15186_v20  ;;  %9441 = vmatpush.bf16.msra.mxu2 %v14931_v51  ;;  %v9165_v20 = vadd.f32 %v9164_v10, %v9152_v60  ;;  %v9177_v22 = vpop.f32.mrf.mxu1 }
 0x32c   :  { %v18733_v61 = vld [vmem:[#allocation7 + $0x9a4] sm:$0xf0] }
 0x32d   :  { %v14642_v33 = vld [vmem:[#allocation7 + $0xb88] sm:$0xf]  ;;  %v14387_v47 = vor.u32 %v18733_v61, %v14386_v30  ;;  %9454 = vmatpush.bf16.msra.mxu3 %v15187_v38  ;;  %v9178_v61 = vadd.f32 %v9177_v22, %v9165_v20 }
 0x32e   :  { %v18797_v24 = vld [vmem:[#allocation7 + $0xba4] sm:$0xf0] }
 0x32f   :  { %v14898_v39 = vld [vmem:[#allocation7 + $0xd88] sm:$0xf]  ;;  %v14643_v36 = vor.u32 %v18797_v24, %v14642_v33  ;;  %9416 = vmatpush.bf16.msra.mxu0 %v14387_v47 }
 0x330   :  { %v18861_v62 = vld [vmem:[#allocation7 + $0xda4] sm:$0xf0] }
 0x331   :  { %v15154_v40 = vld [vmem:[#allocation7 + $0xf88] sm:$0xf]  ;;  %v14899_v49 = vor.u32 %v18861_v62, %v14898_v39  ;;  %9429 = vmatpush.bf16.msra.mxu1 %v14643_v36 }
 0x332   :  { %v18925_v9 = vld [vmem:[#allocation7 + $0xfa4] sm:$0xf0] }
 0x333   :  { %v14354_v37 = vld [vmem:[#allocation7 + $0x948] sm:$0xf]  ;;  %v15155_v54 = vor.u32 %v18925_v9, %v15154_v40  ;;  %9442 = vmatpush.bf16.msra.mxu2 %v14899_v49 }
 0x334   :  { %v18725_v52 = vld [vmem:[#allocation7 + $0x964] sm:$0xf0] }
 0x335   :  { %v14610_v53 = vld [vmem:[#allocation7 + $0xb48] sm:$0xf]  ;;  %v14355_v48 = vor.u32 %v18725_v52, %v14354_v37  ;;  %9455 = vmatpush.bf16.msra.mxu3 %v15155_v54  ;;  %v9140_v37 = vpop.f32.mrf.mxu2 }
 0x336   :  { %v18789_v26 = vld [vmem:[#allocation7 + $0xb64] sm:$0xf0] }
 0x337   :  { %v14866_v56 = vld [vmem:[#allocation7 + $0xd48] sm:$0xf]  ;;  %v14611_v57 = vor.u32 %v18789_v26, %v14610_v53  ;;  %9417 = vmatpush.bf16.msra.mxu0 %v14355_v48  ;;  %v9203_v53 = vpop.f32.mrf.mxu3  ;;  %v9179_v48 = vpop.f32.mrf.mxu1 }
 0x338   :  { %v18853_v3 = vld [vmem:[#allocation7 + $0xd64] sm:$0xf0] }
 0x339   :  { %v15122_v17 = vld [vmem:[#allocation7 + $0xf48] sm:$0xf]  ;;  %v14867_v58 = vor.u32 %v18853_v3, %v14866_v56  ;;  %9430 = vmatpush.bf16.msra.mxu1 %v14611_v57  ;;  %v9166_v3 = vpop.f32.mrf.mxu0 }
 0x33a   :  { %v18917_v25 = vld [vmem:[#allocation7 + $0xf64] sm:$0xf0] }
 0x33b   :  { %v14322_v2 = vld [vmem:[#allocation7 + $0x908] sm:$0xf]  ;;  %v15123_v7 = vor.u32 %v18917_v25, %v15122_v17  ;;  %9443 = vmatpush.bf16.msra.mxu2 %v14867_v58 }
 0x33c   :  { %v18717_v34 = vld [vmem:[#allocation7 + $0x924] sm:$0xf0] }
 0x33d   :  { %v14578_v63 = vld [vmem:[#allocation7 + $0xb08] sm:$0xf]  ;;  %v14323_v4 = vor.u32 %v18717_v34, %v14322_v2  ;;  %9456 = vmatpush.bf16.msra.mxu3 %v15123_v7 }
 0x33e   :  { %v18781_v8 = vld [vmem:[#allocation7 + $0xb24] sm:$0xf0] }
 0x33f   :  { %v14834_v1 = vld [vmem:[#allocation7 + $0xd08] sm:$0xf]  ;;  %v14579_v21 = vor.u32 %v18781_v8, %v14578_v63  ;;  %9418 = vmatpush.bf16.msra.mxu0 %v14323_v4 }
 0x340   :  { %v18845_v0 = vld [vmem:[#allocation7 + $0xd24] sm:$0xf0] }
 0x341   :  { %v15090_v13 = vld [vmem:[#allocation7 + $0xf08] sm:$0xf]  ;;  %v14835_v59 = vor.u32 %v18845_v0, %v14834_v1  ;;  %9431 = vmatpush.bf16.msra.mxu1 %v14579_v21 }
 0x342   :  { %v18909_v15 = vld [vmem:[#allocation7 + $0xf24] sm:$0xf0] }
 0x343   :  { %v14290_v43 = vld [vmem:[#allocation7 + $0x8c8] sm:$0xf]  ;;  %v15091_v33 = vor.u32 %v18909_v15, %v15090_v13  ;;  %9444 = vmatpush.bf16.msra.mxu2 %v14835_v59 }
 0x344   :  { %v18709_v51 = vld [vmem:[#allocation7 + $0x8e4] sm:$0xf0] }
 0x345   :  { %v14546_v30 = vld [vmem:[#allocation7 + $0xac8] sm:$0xf]  ;;  %v14291_v40 = vor.u32 %v18709_v51, %v14290_v43  ;;  %9457 = vmatpush.bf16.msra.mxu3 %v15091_v33  ;;  %v9190_v51 = vpop.f32.mrf.mxu2  ;;  %v9205_v33 = vpop.f32.mrf.mxu3 }
 0x346   :  { %v18773_v38 = vld [vmem:[#allocation7 + $0xae4] sm:$0xf0] }
 0x347   :  { %v14802_v6 = vld [vmem:[#allocation7 + $0xcc8] sm:$0xf]  ;;  %v14547_v9 = vor.u32 %v18773_v38, %v14546_v30  ;;  %9419 = vmatpush.bf16.msra.mxu0 %v14291_v40 }
 0x348   :  { %v18837_v24 = vld [vmem:[#allocation7 + $0xce4] sm:$0xf0] }
 0x349   :  { %v15058_v39 = vld [vmem:[#allocation7 + $0xec8] sm:$0xf]  ;;  %v14803_v45 = vor.u32 %v18837_v24, %v14802_v6  ;;  %9432 = vmatpush.bf16.msra.mxu1 %v14547_v9 }
 0x34a   :  { %v18901_v62 = vld [vmem:[#allocation7 + $0xee4] sm:$0xf0] }
 0x34b   :  { %v14258_v47 = vld [vmem:[#allocation7 + $0x888] sm:$0xf]  ;;  %v15059_v52 = vor.u32 %v18901_v62, %v15058_v39  ;;  %9445 = vmatpush.bf16.msra.mxu2 %v14803_v45  ;;  %v9191_v39 = vadd.f32 %v9190_v51, %v9178_v61 }
 0x34c   :  { %v18701_v36 = vld [vmem:[#allocation7 + $0x8a4] sm:$0xf0] }
 0x34d   :  { %v14514_v49 = vld [vmem:[#allocation7 + $0xa88] sm:$0xf]  ;;  %v14259_v57 = vor.u32 %v18701_v36, %v14258_v47  ;;  %9458 = vmatpush.bf16.msra.mxu3 %v15059_v52  ;;  %v20188_v37 = vadd.f32 %v9203_v53, %v9191_v39 }
 0x34e   :  { %v18765_v54 = vld [vmem:[#allocation7 + $0xaa4] sm:$0xf0] }
 0x34f   :  { %v14770_v26 = vld [vmem:[#allocation7 + $0xc88] sm:$0xf]  ;;  %v14515_v58 = vor.u32 %v18765_v54, %v14514_v49  ;;  %9420 = vmatpush.bf16.msra.mxu0 %v14259_v57 }
 0x350   :  { %v18829_v56 = vld [vmem:[#allocation7 + $0xca4] sm:$0xf0] }
 0x351   :  { %v15026_v17 = vld [vmem:[#allocation7 + $0xe88] sm:$0xf]  ;;  %v14771_v2 = vor.u32 %v18829_v56, %v14770_v26  ;;  %9433 = vmatpush.bf16.msra.mxu1 %v14515_v58 }
 0x352   :  { %v18893_v25 = vld [vmem:[#allocation7 + $0xea4] sm:$0xf0] }
 0x353   :  { %v14226_v34 = vld [vmem:[#allocation7 + $0x848] sm:$0xf]  ;;  %v15027_v60 = vor.u32 %v18893_v25, %v15026_v17  ;;  %9446 = vmatpush.bf16.msra.mxu2 %v14771_v2 }
 0x354   :  { %v18693_v63 = vld [vmem:[#allocation7 + $0x864] sm:$0xf0] }
 0x355   :  { %v14482_v5 = vld [vmem:[#allocation7 + $0xa48] sm:$0xf]  ;;  %v14227_v13 = vor.u32 %v18693_v63, %v14226_v34  ;;  %9459 = vmatpush.bf16.msra.mxu3 %v15027_v60 }
 0x356   :  { %v18757_v7 = vld [vmem:[#allocation7 + $0xa64] sm:$0xf0] }
 0x357   :  { %v14738_v8 = vld [vmem:[#allocation7 + $0xc48] sm:$0xf]  ;;  %v14483_v22 = vor.u32 %v18757_v7, %v14482_v5  ;;  %9421 = vmatpush.bf16.msra.mxu0 %v14227_v13  ;;  %v9192_v7 = vpop.f32.mrf.mxu2 }
 0x358   :  { %v18821_v1 = vld [vmem:[#allocation7 + $0xc64] sm:$0xf0] }
 0x359   :  { %v14994_v0 = vld [vmem:[#allocation7 + $0xe48] sm:$0xf]  ;;  %v14739_v4 = vor.u32 %v18821_v1, %v14738_v8  ;;  %9434 = vmatpush.bf16.msra.mxu1 %v14483_v22 }
 0x35a   :  { %v18885_v10 = vld [vmem:[#allocation7 + $0xe64] sm:$0xf0] }
 0x35b   :  { %v14194_v15 = vld [vmem:[#allocation7 + $0x808] sm:$0xf]  ;;  %v14995_v30 = vor.u32 %v18885_v10, %v14994_v0  ;;  %9447 = vmatpush.bf16.msra.mxu2 %v14739_v4 }
 0x35c   :  { %v18685_v20 = vld [vmem:[#allocation7 + $0x824] sm:$0xf0] }
 0x35d   :  { %v14450_v21 = vld [vmem:[#allocation7 + $0xa08] sm:$0xf]  ;;  %v14195_v45 = vor.u32 %v18685_v20, %v14194_v15  ;;  %9460 = vmatpush.bf16.msra.mxu3 %v14995_v30 }
 0x35e   :  { %v18749_v59 = vld [vmem:[#allocation7 + $0xa24] sm:$0xf0] }
 0x35f   :  { %v14706_v43 = vld [vmem:[#allocation7 + $0xc08] sm:$0xf]  ;;  %v14451_v52 = vor.u32 %v18749_v59, %v14450_v21  ;;  %9422 = vmatpush.bf16.msra.mxu0 %v14195_v45  ;;  %v9216_v45 = vpop.f32.mrf.mxu0 }
 0x360   :  { %v18813_v38 = vld [vmem:[#allocation7 + $0xc24] sm:$0xf0] }
 0x361   :  { %v14962_v6 = vld [vmem:[#allocation7 + $0xe08] sm:$0xf]  ;;  %v14707_v54 = vor.u32 %v18813_v38, %v14706_v43  ;;  %9435 = vmatpush.bf16.msra.mxu1 %v14451_v52  ;;  %v9229_v52 = vpop.f32.mrf.mxu1 }
 0x362   :  { %v18877_v24 = vld [vmem:[#allocation7 + $0xe24] sm:$0xf0]  ;;  %9423 = vmatmul.bf16.vlgmr.msra.gmra.mxu0 %v20052_v16 }
 0x363   :  { %v15442_v62 = vld [vmem:[#allocation7 + $0x11c8] sm:$0xf]  ;;  %v14963_v3 = vor.u32 %v18877_v24, %v14962_v6  ;;  %9448 = vmatpush.bf16.msra.mxu2 %v14707_v54 }
 0x364   :  { %v18997_v40 = vld [vmem:[#allocation7 + $0x11e4] sm:$0xf0]  ;;  %9436 = vmatmul.bf16.vlgmr.msra.gmra.mxu1 %v20057_v29 }
 0x365   :  { %v15698_v9 = vld [vmem:[#allocation7 + $0x13c8] sm:$0xf]  ;;  %v15443_v17 = vor.u32 %v18997_v40, %v15442_v62  ;;  %9461 = vmatpush.bf16.msra.mxu3 %v14963_v3 }
 0x366   :  { %v19061_v47 = vld [vmem:[#allocation7 + $0x13e4] sm:$0xf0]  ;;  %9449 = vmatmul.bf16.vlgmr.msra.gmra.mxu2 %v20091_v41 }
 0x367   :  { %v15954_v36 = vld [vmem:[#allocation7 + $0x15c8] sm:$0xf]  ;;  %v15699_v61 = vor.u32 %v19061_v47, %v15698_v9  ;;  %9467 = vmatpush.bf16.msrb.mxu0 %v15443_v17 }
 0x368   :  { %v19125_v49 = vld [vmem:[#allocation7 + $0x15e4] sm:$0xf0]  ;;  %9462 = vmatmul.bf16.vlgmr.msra.gmra.mxu3 %v20095_v42 }
 0x369   :  { %v16210_v26 = vld [vmem:[#allocation7 + $0x17c8] sm:$0xf]  ;;  %v15955_v25 = vor.u32 %v19125_v49, %v15954_v36  ;;  %9480 = vmatpush.bf16.msrb.mxu1 %v15699_v61  ;;  %v9217_v49 = vadd.f32 %v9216_v45, %v20188_v37 }
 0x36a   :  { %v19189_v56 = vld [vmem:[#allocation7 + $0x17e4] sm:$0xf0] }
 0x36b   :  { %v15410_v48 = vld [vmem:[#allocation7 + $0x1188] sm:$0xf]  ;;  %v16211_v2 = vor.u32 %v19189_v56, %v16210_v26  ;;  %9493 = vmatpush.bf16.msrb.mxu2 %v15955_v25  ;;  %v9230_v25 = vadd.f32 %v9229_v52, %v9217_v49 }
 0x36c   :  { %v18989_v57 = vld [vmem:[#allocation7 + $0x11a4] sm:$0xf0] }
 0x36d   :  { %v15666_v58 = vld [vmem:[#allocation7 + $0x1388] sm:$0xf]  ;;  %v15411_v8 = vor.u32 %v18989_v57, %v15410_v48  ;;  %9506 = vmatpush.bf16.msrb.mxu3 %v16211_v2 }
 0x36e   :  { %v19053_v34 = vld [vmem:[#allocation7 + $0x13a4] sm:$0xf0] }
 0x36f   :  { %v15922_v63 = vld [vmem:[#allocation7 + $0x1588] sm:$0xf]  ;;  %v15667_v1 = vor.u32 %v19053_v34, %v15666_v58  ;;  %9468 = vmatpush.bf16.msrb.mxu0 %v15411_v8 }
 0x370   :  { %v19117_v53 = vld [vmem:[#allocation7 + $0x15a4] sm:$0xf0] }
 0x371   :  { %v16178_v5 = vld [vmem:[#allocation7 + $0x1788] sm:$0xf]  ;;  %v15923_v0 = vor.u32 %v19117_v53, %v15922_v63  ;;  %9481 = vmatpush.bf16.msrb.mxu1 %v15667_v1 }
 0x372   :  { %v19181_v60 = vld [vmem:[#allocation7 + $0x17a4] sm:$0xf0] }
 0x373   :  { %v15378_v10 = vld [vmem:[#allocation7 + $0x1148] sm:$0xf]  ;;  %v16179_v20 = vor.u32 %v19181_v60, %v16178_v5  ;;  %9494 = vmatpush.bf16.msrb.mxu2 %v15923_v0  ;;  %v9242_v0 = vpop.f32.mrf.mxu2 }
 0x374   :  { %v18981_v13 = vld [vmem:[#allocation7 + $0x1164] sm:$0xf0] }
 0x375   :  { %v15634_v15 = vld [vmem:[#allocation7 + $0x1348] sm:$0xf]  ;;  %v15379_v51 = vor.u32 %v18981_v13, %v15378_v10  ;;  %9507 = vmatpush.bf16.msrb.mxu3 %v16179_v20  ;;  %v9243_v20 = vadd.f32 %v9242_v0, %v9230_v25 }
 0x376   :  { %v19045_v22 = vld [vmem:[#allocation7 + $0x1364] sm:$0xf0] }
 0x377   :  { %v15890_v4 = vld [vmem:[#allocation7 + $0x1548] sm:$0xf]  ;;  %v15635_v30 = vor.u32 %v19045_v22, %v15634_v15  ;;  %9469 = vmatpush.bf16.msrb.mxu0 %v15379_v51  ;;  %v9255_v22 = vpop.f32.mrf.mxu3 }
 0x378   :  { %v19109_v21 = vld [vmem:[#allocation7 + $0x1564] sm:$0xf0] }
 0x379   :  { %v16146_v59 = vld [vmem:[#allocation7 + $0x1748] sm:$0xf]  ;;  %v15891_v33 = vor.u32 %v19109_v21, %v15890_v4  ;;  %9482 = vmatpush.bf16.msrb.mxu1 %v15635_v30  ;;  %v9218_v4 = vpop.f32.mrf.mxu0  ;;  %v20195_v30 = vadd.f32 %v9255_v22, %v9243_v20 }
 0x37a   :  { %v19173_v43 = vld [vmem:[#allocation7 + $0x1764] sm:$0xf0] }
 0x37b   :  { %v15346_v38 = vld [vmem:[#allocation7 + $0x1108] sm:$0xf]  ;;  %v16147_v39 = vor.u32 %v19173_v43, %v16146_v59  ;;  %9495 = vmatpush.bf16.msrb.mxu2 %v15891_v33  ;;  %v9231_v43 = vpop.f32.mrf.mxu1 }
 0x37c   :  { %v18973_v6 = vld [vmem:[#allocation7 + $0x1124] sm:$0xf0] }
 0x37d   :  { %v15602_v24 = vld [vmem:[#allocation7 + $0x1308] sm:$0xf]  ;;  %v15347_v54 = vor.u32 %v18973_v6, %v15346_v38  ;;  %9508 = vmatpush.bf16.msrb.mxu3 %v16147_v39 }
 0x37e   :  { %v19037_v62 = vld [vmem:[#allocation7 + $0x1324] sm:$0xf0] }
 0x37f   :  { %v15858_v40 = vld [vmem:[#allocation7 + $0x1508] sm:$0xf]  ;;  %v15603_v26 = vor.u32 %v19037_v62, %v15602_v24  ;;  %9470 = vmatpush.bf16.msrb.mxu0 %v15347_v54 }
 0x380   :  { %v19101_v9 = vld [vmem:[#allocation7 + $0x1524] sm:$0xf0] }
 0x381   :  { %v16114_v47 = vld [vmem:[#allocation7 + $0x1708] sm:$0xf]  ;;  %v15859_v56 = vor.u32 %v19101_v9, %v15858_v40  ;;  %9483 = vmatpush.bf16.msrb.mxu1 %v15603_v26 }
 0x382   :  { %v19165_v36 = vld [vmem:[#allocation7 + $0x1724] sm:$0xf0] }
 0x383   :  { %v15314_v3 = vld [vmem:[#allocation7 + $0x10c8] sm:$0xf]  ;;  %v16115_v48 = vor.u32 %v19165_v36, %v16114_v47  ;;  %9496 = vmatpush.bf16.msrb.mxu2 %v15859_v56 }
 0x384   :  { %v18965_v17 = vld [vmem:[#allocation7 + $0x10e4] sm:$0xf0] }
 0x385   :  { %v15570_v61 = vld [vmem:[#allocation7 + $0x12c8] sm:$0xf]  ;;  %v15315_v53 = vor.u32 %v18965_v17, %v15314_v3  ;;  %9509 = vmatpush.bf16.msrb.mxu3 %v16115_v48  ;;  %v9244_v48 = vpop.f32.mrf.mxu2 }
 0x386   :  { %v19029_v57 = vld [vmem:[#allocation7 + $0x12e4] sm:$0xf0] }
 0x387   :  { %v15826_v58 = vld [vmem:[#allocation7 + $0x14c8] sm:$0xf]  ;;  %v15571_v37 = vor.u32 %v19029_v57, %v15570_v61  ;;  %9471 = vmatpush.bf16.msrb.mxu0 %v15315_v53 }
 0x388   :  { %v19093_v2 = vld [vmem:[#allocation7 + $0x14e4] sm:$0xf0] }
 0x389   :  { %v16082_v34 = vld [vmem:[#allocation7 + $0x16c8] sm:$0xf]  ;;  %v15827_v5 = vor.u32 %v19093_v2, %v15826_v58  ;;  %9484 = vmatpush.bf16.msrb.mxu1 %v15571_v37 }
 0x38a   :  { %v19157_v63 = vld [vmem:[#allocation7 + $0x16e4] sm:$0xf0] }
 0x38b   :  { %v15282_v60 = vld [vmem:[#allocation7 + $0x1088] sm:$0xf]  ;;  %v16083_v1 = vor.u32 %v19157_v63, %v16082_v34  ;;  %9497 = vmatpush.bf16.msrb.mxu2 %v15827_v5  ;;  %v9257_v34 = vpop.f32.mrf.mxu3 }
 0x38c   :  { %v18957_v7 = vld [vmem:[#allocation7 + $0x10a4] sm:$0xf0] }
 0x38d   :  { %v15538_v8 = vld [vmem:[#allocation7 + $0x1288] sm:$0xf]  ;;  %v15283_v51 = vor.u32 %v18957_v7, %v15282_v60  ;;  %9510 = vmatpush.bf16.msrb.mxu3 %v16083_v1 }
 0x38e   :  { %v19021_v10 = vld [vmem:[#allocation7 + $0x12a4] sm:$0xf0] }
 0x38f   :  { %v15794_v13 = vld [vmem:[#allocation7 + $0x1488] sm:$0xf]  ;;  %v15539_v33 = vor.u32 %v19021_v10, %v15538_v8  ;;  %9472 = vmatpush.bf16.msrb.mxu0 %v15283_v51 }
 0x390   :  { %v19085_v15 = vld [vmem:[#allocation7 + $0x14a4] sm:$0xf0] }
 0x391   :  { %v16050_v21 = vld [vmem:[#allocation7 + $0x1688] sm:$0xf]  ;;  %v15795_v38 = vor.u32 %v19085_v15, %v15794_v13  ;;  %9485 = vmatpush.bf16.msrb.mxu1 %v15539_v33 }
 0x392   :  { %v19149_v59 = vld [vmem:[#allocation7 + $0x16a4] sm:$0xf0] }
 0x393   :  { %v15250_v6 = vld [vmem:[#allocation7 + $0x1048] sm:$0xf]  ;;  %v16051_v62 = vor.u32 %v19149_v59, %v16050_v21  ;;  %9498 = vmatpush.bf16.msrb.mxu2 %v15795_v38 }
 0x394   :  { %v18949_v24 = vld [vmem:[#allocation7 + $0x1064] sm:$0xf0] }
 0x395   :  { %v15506_v39 = vld [vmem:[#allocation7 + $0x1248] sm:$0xf]  ;;  %v15251_v49 = vor.u32 %v18949_v24, %v15250_v6  ;;  %9511 = vmatpush.bf16.msrb.mxu3 %v16051_v62 }
 0x396   :  { %v19013_v40 = vld [vmem:[#allocation7 + $0x1264] sm:$0xf0] }
 0x397   :  { %v15762_v9 = vld [vmem:[#allocation7 + $0x1448] sm:$0xf]  ;;  %v15507_v26 = vor.u32 %v19013_v40, %v15506_v39  ;;  %9473 = vmatpush.bf16.msrb.mxu0 %v15251_v49 }
 0x398   :  { %v19077_v45 = vld [vmem:[#allocation7 + $0x1464] sm:$0xf0] }
 0x399   :  { %v16018_v47 = vld [vmem:[#allocation7 + $0x1648] sm:$0xf]  ;;  %v15763_v56 = vor.u32 %v19077_v45, %v15762_v9  ;;  %9486 = vmatpush.bf16.msrb.mxu1 %v15507_v26 }
 0x39a   :  { %v19141_v36 = vld [vmem:[#allocation7 + $0x1664] sm:$0xf0] }
 0x39b   :  { %v15218_v52 = vld [vmem:[#allocation7 + $0x1008] sm:$0xf]  ;;  %v16019_v25 = vor.u32 %v19141_v36, %v16018_v47  ;;  %9499 = vmatpush.bf16.msrb.mxu2 %v15763_v56 }
 0x39c   :  { %v18941_v54 = vld [vmem:[#allocation7 + $0x1024] sm:$0xf0] }
 0x39d   :  { %v15474_v3 = vld [vmem:[#allocation7 + $0x1208] sm:$0xf]  ;;  %v15219_v5 = vor.u32 %v18941_v54, %v15218_v52  ;;  %9512 = vmatpush.bf16.msrb.mxu3 %v16019_v25 }
 0x39e   :  { %v19005_v17 = vld [vmem:[#allocation7 + $0x1224] sm:$0xf0] }
 0x39f   :  { %v15730_v61 = vld [vmem:[#allocation7 + $0x1408] sm:$0xf]  ;;  %v15475_v1 = vor.u32 %v19005_v17, %v15474_v3  ;;  %9474 = vmatpush.bf16.msrb.mxu0 %v15219_v5 }
 0x3a0   :  { %v19069_v57 = vld [vmem:[#allocation7 + $0x1424] sm:$0xf0] }
 0x3a1   :  { %v15986_v58 = vld [vmem:[#allocation7 + $0x1608] sm:$0xf]  ;;  %v15731_v0 = vor.u32 %v19069_v57, %v15730_v61  ;;  %9487 = vmatpush.bf16.msrb.mxu1 %v15475_v1 }
 0x3a2   :  { %v19133_v2 = vld [vmem:[#allocation7 + $0x1624] sm:$0xf0]  ;;  %9475 = vmatmul.bf16.vlgmr.msrb.gmra.mxu0 %v20105_v35 }
 0x3a3   :  { %v16466_v63 = vld [vmem:[#allocation7 + $0x19c8] sm:$0xf]  ;;  %v15987_v15 = vor.u32 %v19133_v2, %v15986_v58  ;;  %9500 = vmatpush.bf16.msrb.mxu2 %v15731_v0 }
 0x3a4   :  { %v19253_v53 = vld [vmem:[#allocation7 + $0x19e4] sm:$0xf0]  ;;  %9488 = vmatmul.bf16.vlgmr.msrb.gmra.mxu1 %v20097_v44 }
 0x3a5   :  { %v16722_v37 = vld [vmem:[#allocation7 + $0x1bc8] sm:$0xf]  ;;  %v16467_v20 = vor.u32 %v19253_v53, %v16466_v63  ;;  %9513 = vmatpush.bf16.msrb.mxu3 %v15987_v15 }
 0x3a6   :  { %v19317_v60 = vld [vmem:[#allocation7 + $0x1be4] sm:$0xf0]  ;;  %9501 = vmatmul.bf16.vlgmr.msrb.gmra.mxu2 %v20124_v14 }
 0x3a7   :  { %v16978_v7 = vld [vmem:[#allocation7 + $0x1dc8] sm:$0xf]  ;;  %v16723_v22 = vor.u32 %v19317_v60, %v16722_v37  ;;  %9519 = vmatpush.bf16.msra.mxu0 %v16467_v20  ;;  %v9268_v37 = vpop.f32.mrf.mxu0 }
 0x3a8   :  { %v19381_v8 = vld [vmem:[#allocation7 + $0x1de4] sm:$0xf0]  ;;  %9514 = vmatmul.bf16.vlgmr.msrb.gmra.mxu3 %v20120_v11 }
 0x3a9   :  { %v17234_v10 = vld [vmem:[#allocation7 + $0x1fc8] sm:$0xf]  ;;  %v16979_v4 = vor.u32 %v19381_v8, %v16978_v7  ;;  %9532 = vmatpush.bf16.msra.mxu1 %v16723_v22  ;;  %v9269_v7 = vadd.f32 %v9268_v37, %v20195_v30  ;;  %v9281_v8 = vpop.f32.mrf.mxu1 }
 0x3aa   :  { %v19445_v13 = vld [vmem:[#allocation7 + $0x1fe4] sm:$0xf0] }
 0x3ab   :  { %v16434_v21 = vld [vmem:[#allocation7 + $0x1988] sm:$0xf]  ;;  %v17235_v51 = vor.u32 %v19445_v13, %v17234_v10  ;;  %9545 = vmatpush.bf16.msra.mxu2 %v16979_v4  ;;  %v9282_v22 = vadd.f32 %v9281_v8, %v9269_v7 }
 0x3ac   :  { %v19245_v59 = vld [vmem:[#allocation7 + $0x19a4] sm:$0xf0] }
 0x3ad   :  { %v16690_v43 = vld [vmem:[#allocation7 + $0x1b88] sm:$0xf]  ;;  %v16435_v62 = vor.u32 %v19245_v59, %v16434_v21  ;;  %9558 = vmatpush.bf16.msra.mxu3 %v17235_v51 }
 0x3ae   :  { %v19309_v33 = vld [vmem:[#allocation7 + $0x1ba4] sm:$0xf0] }
 0x3af   :  { %v16946_v38 = vld [vmem:[#allocation7 + $0x1d88] sm:$0xf]  ;;  %v16691_v40 = vor.u32 %v19309_v33, %v16690_v43  ;;  %9520 = vmatpush.bf16.msra.mxu0 %v16435_v62 }
 0x3b0   :  { %v19373_v6 = vld [vmem:[#allocation7 + $0x1da4] sm:$0xf0] }
 0x3b1   :  { %v17202_v24 = vld [vmem:[#allocation7 + $0x1f88] sm:$0xf]  ;;  %v16947_v9 = vor.u32 %v19373_v6, %v16946_v38  ;;  %9533 = vmatpush.bf16.msra.mxu1 %v16691_v40 }
 0x3b2   :  { %v19437_v39 = vld [vmem:[#allocation7 + $0x1fa4] sm:$0xf0] }
 0x3b3   :  { %v16402_v45 = vld [vmem:[#allocation7 + $0x1948] sm:$0xf]  ;;  %v17203_v49 = vor.u32 %v19437_v39, %v17202_v24  ;;  %9546 = vmatpush.bf16.msra.mxu2 %v16947_v9  ;;  %v9294_v9 = vpop.f32.mrf.mxu2 }
 0x3b4   :  { %v19237_v47 = vld [vmem:[#allocation7 + $0x1964] sm:$0xf0] }
 0x3b5   :  { %v16658_v36 = vld [vmem:[#allocation7 + $0x1b48] sm:$0xf]  ;;  %v16403_v17 = vor.u32 %v19237_v47, %v16402_v45  ;;  %9559 = vmatpush.bf16.msra.mxu3 %v17203_v49  ;;  %v9295_v49 = vadd.f32 %v9294_v9, %v9282_v22 }
 0x3b6   :  { %v19301_v52 = vld [vmem:[#allocation7 + $0x1b64] sm:$0xf0] }
 0x3b7   :  { %v16914_v54 = vld [vmem:[#allocation7 + $0x1d48] sm:$0xf]  ;;  %v16659_v61 = vor.u32 %v19301_v52, %v16658_v36  ;;  %9521 = vmatpush.bf16.msra.mxu0 %v16403_v17  ;;  %v9307_v52 = vpop.f32.mrf.mxu3 }
 0x3b8   :  { %v19365_v26 = vld [vmem:[#allocation7 + $0x1d64] sm:$0xf0] }
 0x3b9   :  { %v17170_v56 = vld [vmem:[#allocation7 + $0x1f48] sm:$0xf]  ;;  %v16915_v25 = vor.u32 %v19365_v26, %v16914_v54  ;;  %9534 = vmatpush.bf16.msra.mxu1 %v16659_v61  ;;  %v9270_v54 = vpop.f32.mrf.mxu0  ;;  %v20202_v61 = vadd.f32 %v9307_v52, %v9295_v49 }
 0x3ba   :  { %v19429_v3 = vld [vmem:[#allocation7 + $0x1f64] sm:$0xf0] }
 0x3bb   :  { %v16370_v48 = vld [vmem:[#allocation7 + $0x1908] sm:$0xf]  ;;  %v17171_v2 = vor.u32 %v19429_v3, %v17170_v56  ;;  %9547 = vmatpush.bf16.msra.mxu2 %v16915_v25  ;;  %v9283_v3 = vpop.f32.mrf.mxu1 }
 0x3bc   :  { %v19229_v57 = vld [vmem:[#allocation7 + $0x1924] sm:$0xf0]  ;;  %v18473_v3 = vld [vmem:[#allocation7 + $0x18c] sm:$0xf] }
 0x3bd   :  { %v16626_v58 = vld [vmem:[#allocation7 + $0x1b08] sm:$0xf]  ;;  %v16371_v1 = vor.u32 %v19229_v57, %v16370_v48  ;;  %9560 = vmatpush.bf16.msra.mxu3 %v17171_v2 }
 0x3be   :  { %v19293_v34 = vld [vmem:[#allocation7 + $0x1b24] sm:$0xf0] }
 0x3bf   :  { %v16882_v63 = vld [vmem:[#allocation7 + $0x1d08] sm:$0xf]  ;;  %v16627_v0 = vor.u32 %v19293_v34, %v16626_v58  ;;  %9522 = vmatpush.bf16.msra.mxu0 %v16371_v1 }
 0x3c0   :  { %v19357_v53 = vld [vmem:[#allocation7 + $0x1d24] sm:$0xf0] }
 0x3c1   :  { %v17138_v5 = vld [vmem:[#allocation7 + $0x1f08] sm:$0xf]  ;;  %v16883_v10 = vor.u32 %v19357_v53, %v16882_v63  ;;  %9535 = vmatpush.bf16.msra.mxu1 %v16627_v0 }
 0x3c2   :  { %v19421_v60 = vld [vmem:[#allocation7 + $0x1f24] sm:$0xf0] }
 0x3c3   :  { %v16338_v13 = vld [vmem:[#allocation7 + $0x18c8] sm:$0xf]  ;;  %v17139_v4 = vor.u32 %v19421_v60, %v17138_v5  ;;  %9548 = vmatpush.bf16.msra.mxu2 %v16883_v10 }
 0x3c4   :  { %v19221_v15 = vld [vmem:[#allocation7 + $0x18e4] sm:$0xf0] }
 0x3c5   :  { %v16594_v20 = vld [vmem:[#allocation7 + $0x1ac8] sm:$0xf]  ;;  %v16339_v38 = vor.u32 %v19221_v15, %v16338_v13  ;;  %9561 = vmatpush.bf16.msra.mxu3 %v17139_v4  ;;  %v9296_v4 = vpop.f32.mrf.mxu2 }
 0x3c6   :  { %v19285_v21 = vld [vmem:[#allocation7 + $0x1ae4] sm:$0xf0] }
 0x3c7   :  { %v16850_v59 = vld [vmem:[#allocation7 + $0x1cc8] sm:$0xf]  ;;  %v16595_v30 = vor.u32 %v19285_v21, %v16594_v20  ;;  %9523 = vmatpush.bf16.msra.mxu0 %v16339_v38 }
 0x3c8   :  { %v19349_v43 = vld [vmem:[#allocation7 + $0x1ce4] sm:$0xf0] }
 0x3c9   :  { %v17106_v51 = vld [vmem:[#allocation7 + $0x1ec8] sm:$0xf]  ;;  %v16851_v6 = vor.u32 %v19349_v43, %v16850_v59  ;;  %9536 = vmatpush.bf16.msra.mxu1 %v16595_v30  ;;  %v18481_v30 = vld [vmem:[#allocation7 + $0x1cc] sm:$0xf] }
 0x3ca   :  { %v19413_v33 = vld [vmem:[#allocation7 + $0x1ee4] sm:$0xf0] }
 0x3cb   :  { %v16306_v24 = vld [vmem:[#allocation7 + $0x1888] sm:$0xf]  ;;  %v17107_v40 = vor.u32 %v19413_v33, %v17106_v51  ;;  %9549 = vmatpush.bf16.msra.mxu2 %v16851_v6  ;;  %v9309_v51 = vpop.f32.mrf.mxu3 }
 0x3cc   :  { %v19213_v39 = vld [vmem:[#allocation7 + $0x18a4] sm:$0xf0]  ;;  %v13300_v51 = vld [vmem:[#allocation7 + $0x128] sm:$0xf0] }
 0x3cd   :  { %v16562_v62 = vld [vmem:[#allocation7 + $0x1a88] sm:$0xf]  ;;  %v16307_v17 = vor.u32 %v19213_v39, %v16306_v24  ;;  %9562 = vmatpush.bf16.msra.mxu3 %v17107_v40  ;;  %v13396_v24 = vld [vmem:[#allocation7 + $0x1e8] sm:$0xf0] }
 0x3ce   :  { %v19277_v45 = vld [vmem:[#allocation7 + $0x1aa4] sm:$0xf0]  ;;  %v18545_v39 = vld [vmem:[#allocation7 + $0x3cc] sm:$0xf]  ;;  %v13399_v52 = vor.u32 %v18481_v30, %v13396_v24  ;;  %v9320_v30 = vpop.f32.mrf.mxu0 }
 0x3cf   :  { %v16818_v47 = vld [vmem:[#allocation7 + $0x1c88] sm:$0xf]  ;;  %v16563_v25 = vor.u32 %v19277_v45, %v16562_v62  ;;  %9524 = vmatpush.bf16.msra.mxu0 %v16307_v17  ;;  %v13652_v62 = vld [vmem:[#allocation7 + $0x3e8] sm:$0xf0] }
 0x3d0   :  { %v19341_v36 = vld [vmem:[#allocation7 + $0x1ca4] sm:$0xf0]  ;;  %v18609_v45 = vld [vmem:[#allocation7 + $0x5cc] sm:$0xf]  ;;  %v13655_v54 = vor.u32 %v18545_v39, %v13652_v62  ;;  %v9321_v39 = vadd.f32 %v9320_v30, %v20202_v61  ;;  %v9333_v62 = vpop.f32.mrf.mxu1 }
 0x3d1   :  { %v17074_v26 = vld [vmem:[#allocation7 + $0x1e88] sm:$0xf]  ;;  %v16819_v48 = vor.u32 %v19341_v36, %v16818_v47  ;;  %9537 = vmatpush.bf16.msra.mxu1 %v16563_v25  ;;  %v13908_v47 = vld [vmem:[#allocation7 + $0x5e8] sm:$0xf0] }
 0x3d2   :  { %v19405_v56 = vld [vmem:[#allocation7 + $0x1ea4] sm:$0xf0]  ;;  %v13911_v17 = vor.u32 %v18609_v45, %v13908_v47  ;;  %v13364_v25 = vld [vmem:[#allocation7 + $0x1a8] sm:$0xf0] }
 0x3d3   :  { %v16274_v57 = vld [vmem:[#allocation7 + $0x1848] sm:$0xf]  ;;  %v17075_v34 = vor.u32 %v19405_v56, %v17074_v26  ;;  %9550 = vmatpush.bf16.msra.mxu2 %v16819_v48  ;;  %v18537_v48 = vld [vmem:[#allocation7 + $0x38c] sm:$0xf] }
 0x3d4   :  { %v19205_v58 = vld [vmem:[#allocation7 + $0x1864] sm:$0xf0]  ;;  %v13812_v24 = vld [vmem:[#allocation7 + $0x528] sm:$0xf0] }
 0x3d5   :  { %v16530_v2 = vld [vmem:[#allocation7 + $0x1a48] sm:$0xf]  ;;  %v16275_v7 = vor.u32 %v19205_v58, %v16274_v57  ;;  %9563 = vmatpush.bf16.msra.mxu3 %v17075_v34  ;;  %v13620_v57 = vld [vmem:[#allocation7 + $0x3a8] sm:$0xf0] }
 0x3d6   :  { %v19269_v63 = vld [vmem:[#allocation7 + $0x1a64] sm:$0xf0]  ;;  %v18601_v58 = vld [vmem:[#allocation7 + $0x58c] sm:$0xf] }
 0x3d7   :  { %v16786_v53 = vld [vmem:[#allocation7 + $0x1c48] sm:$0xf]  ;;  %v16531_v0 = vor.u32 %v19269_v63, %v16530_v2  ;;  %9525 = vmatpush.bf16.msra.mxu0 %v16275_v7  ;;  %v13876_v2 = vld [vmem:[#allocation7 + $0x5a8] sm:$0xf0]  ;;  %v13367_v63 = vor.u32 %v18473_v3, %v13364_v25 }
 0x3d8   :  { %v19333_v37 = vld [vmem:[#allocation7 + $0x1c64] sm:$0xf0]  ;;  %v13879_v7 = vor.u32 %v18601_v58, %v13876_v2  ;;  %v13524_v3 = vld [vmem:[#allocation7 + $0x2e8] sm:$0xf0] }
 0x3d9   :  { %v17042_v5 = vld [vmem:[#allocation7 + $0x1e48] sm:$0xf]  ;;  %v16787_v10 = vor.u32 %v19333_v37, %v16786_v53  ;;  %9538 = vmatpush.bf16.msra.mxu1 %v16531_v0  ;;  %v13623_v53 = vor.u32 %v18537_v48, %v13620_v57  ;;  %v13588_v0 = vld [vmem:[#allocation7 + $0x368] sm:$0xf0] }
 0x3da   :  { %v19397_v60 = vld [vmem:[#allocation7 + $0x1e64] sm:$0xf0]  ;;  %v13780_v25 = vld [vmem:[#allocation7 + $0x4e8] sm:$0xf0] }
 0x3db   :  { %v16242_v8 = vld [vmem:[#allocation7 + $0x1808] sm:$0xf]  ;;  %v17043_v22 = vor.u32 %v19397_v60, %v17042_v5  ;;  %9551 = vmatpush.bf16.msra.mxu2 %v16787_v10  ;;  %v18465_v60 = vld [vmem:[#allocation7 + $0x14c] sm:$0xf] }
 0x3dc   :  { %v19197_v1 = vld [vmem:[#allocation7 + $0x1824] sm:$0xf0]  ;;  %v18593_v10 = vld [vmem:[#allocation7 + $0x54c] sm:$0xf] }
 0x3dd   :  { %v16498_v13 = vld [vmem:[#allocation7 + $0x1a08] sm:$0xf]  ;;  %v16243_v6 = vor.u32 %v19197_v1, %v16242_v8  ;;  %9564 = vmatpush.bf16.msra.mxu3 %v17043_v22  ;;  %v13332_v8 = vld [vmem:[#allocation7 + $0x168] sm:$0xf0] }
 0x3de   :  { %v19261_v15 = vld [vmem:[#allocation7 + $0x1a24] sm:$0xf0]  ;;  %v18529_v1 = vld [vmem:[#allocation7 + $0x34c] sm:$0xf] }
 0x3df   :  { %v16754_v20 = vld [vmem:[#allocation7 + $0x1c08] sm:$0xf]  ;;  %v16499_v40 = vor.u32 %v19261_v15, %v16498_v13  ;;  %9526 = vmatpush.bf16.msra.mxu0 %v16243_v6  ;;  %v13844_v13 = vld [vmem:[#allocation7 + $0x568] sm:$0xf0]  ;;  %v13591_v22 = vor.u32 %v18529_v1, %v13588_v0  ;;  %v9322_v1 = vpop.f32.mrf.mxu0 }
 0x3e0   :  { %v19325_v21 = vld [vmem:[#allocation7 + $0x1c24] sm:$0xf0]  ;;  %v18585_v6 = vld [vmem:[#allocation7 + $0x50c] sm:$0xf] }
 0x3e1   :  { %v17010_v59 = vld [vmem:[#allocation7 + $0x1e08] sm:$0xf]  ;;  %v16755_v9 = vor.u32 %v19325_v21, %v16754_v20  ;;  %9539 = vmatpush.bf16.msra.mxu1 %v16499_v40  ;;  %v13335_v20 = vor.u32 %v18465_v60, %v13332_v8  ;;  %v13492_v60 = vld [vmem:[#allocation7 + $0x2a8] sm:$0xf0]  ;;  %v9359_v8 = vpop.f32.mrf.mxu3 }
 0x3e2   :  { %v19389_v43 = vld [vmem:[#allocation7 + $0x1e24] sm:$0xf0]  ;;  %9527 = vmatmul.bf16.vlgmr.msra.gmra.mxu0 %v20122_v12  ;;  %v18569_v0 = vld [vmem:[#allocation7 + $0x48c] sm:$0xf] }
 0x3e3   :  { %v17490_v33 = vld [vmem:[#allocation7 + $0x21c8] sm:$0xf]  ;;  %v17011_v36 = vor.u32 %v19389_v43, %v17010_v59  ;;  %9552 = vmatpush.bf16.msra.mxu2 %v16755_v9  ;;  %v18457_v59 = vld [vmem:[#allocation7 + $0x10c] sm:$0xf]  ;;  %v13847_v43 = vor.u32 %v18593_v10, %v13844_v13  ;;  %v9335_v13 = vpop.f32.mrf.mxu1 }
 0x3e4   :  { %v19509_v38 = vld [vmem:[#allocation7 + $0x21e4] sm:$0xf0]  ;;  %9540 = vmatmul.bf16.vlgmr.msra.gmra.mxu1 %v20126_v27  ;;  %v13303_v9 = vor.u32 %v18457_v59, %v13300_v51  ;;  %v13748_v10 = vld [vmem:[#allocation7 + $0x4a8] sm:$0xf0] }
 0x3e5   :  { %v17491_v49 = vor.u32 %v19509_v38, %v17490_v33  ;;  %v17458_v26 = vld [vmem:[#allocation7 + $0x2188] sm:$0xf]  ;;  %9565 = vmatpush.bf16.msra.mxu3 %v17011_v36  ;;  %9584 = vmatpush.bf16.msrb.mxu1 %v13399_v52  ;;  %v18521_v33 = vld [vmem:[#allocation7 + $0x30c] sm:$0xf]  ;;  %v9334_v52 = vadd.f32 %v9333_v62, %v9321_v39  ;;  %v13751_v51 = vor.u32 %v18569_v0, %v13748_v10 }
 0x3e6   :  { %v19501_v56 = vld [vmem:[#allocation7 + $0x21a4] sm:$0xf0]  ;;  %9553 = vmatmul.bf16.vlgmr.msra.gmra.mxu2 %v20134_v31  ;;  %v13556_v38 = vld [vmem:[#allocation7 + $0x328] sm:$0xf0] }
 0x3e7   :  { %9571 = vmatpush.bf16.msrb.mxu0 %v17491_v49  ;;  %v17459_v34 = vor.u32 %v19501_v56, %v17458_v26  ;;  %9597 = vmatpush.bf16.msrb.mxu2 %v13655_v54  ;;  %v17426_v37 = vld [vmem:[#allocation7 + $0x2148] sm:$0xf]  ;;  %v13559_v45 = vor.u32 %v18521_v33, %v13556_v38  ;;  %v18449_v49 = vld [vmem:[#allocation7 + $0xcc] sm:$0xf]  ;;  %v13815_v54 = vor.u32 %v18585_v6, %v13812_v24 }
 0x3e8   :  { %v19493_v5 = vld [vmem:[#allocation7 + $0x2164] sm:$0xf0]  ;;  %9566 = vmatmul.bf16.vlgmr.msra.gmra.mxu3 %v20136_v18  ;;  %v13268_v26 = vld [vmem:[#allocation7 + $0xe8] sm:$0xf0] }
 0x3e9   :  { %9610 = vmatpush.bf16.msrb.mxu3 %v13911_v17  ;;  %v17427_v15 = vor.u32 %v19493_v5, %v17426_v37  ;;  %9585 = vmatpush.bf16.msrb.mxu1 %v13367_v63  ;;  %v17394_v4 = vld [vmem:[#allocation7 + $0x2108] sm:$0xf]  ;;  %v18513_v56 = vld [vmem:[#allocation7 + $0x2cc] sm:$0xf]  ;;  %v13271_v61 = vor.u32 %v18449_v49, %v13268_v26 }
 0x3ea   :  { %v19485_v21 = vld [vmem:[#allocation7 + $0x2124] sm:$0xf0]  ;;  %v18577_v17 = vld [vmem:[#allocation7 + $0x4cc] sm:$0xf]  ;;  %v13527_v57 = vor.u32 %v18513_v56, %v13524_v3 }
 0x3eb   :  { %9572 = vmatpush.bf16.msrb.mxu0 %v17459_v34  ;;  %9598 = vmatpush.bf16.msrb.mxu2 %v13623_v53  ;;  %v17395_v40 = vor.u32 %v19485_v21, %v17394_v4  ;;  %v17362_v47 = vld [vmem:[#allocation7 + $0x20c8] sm:$0xf]  ;;  %v18441_v34 = vld [vmem:[#allocation7 + $0x8c] sm:$0xf]  ;;  %v13783_v63 = vor.u32 %v18577_v17, %v13780_v25  ;;  %v9346_v53 = vpop.f32.mrf.mxu2  ;;  %v9361_v17 = vpop.f32.mrf.mxu3 }
 0x3ec   :  { %v19477_v36 = vld [vmem:[#allocation7 + $0x20e4] sm:$0xf0]  ;;  %v13236_v37 = vld [vmem:[#allocation7 + $0xa8] sm:$0xf0] }
 0x3ed   :  { %9611 = vmatpush.bf16.msrb.mxu3 %v13879_v7  ;;  %9586 = vmatpush.bf16.msrb.mxu1 %v13335_v20  ;;  %v17363_v48 = vor.u32 %v19477_v36, %v17362_v47  ;;  %v17330_v58 = vld [vmem:[#allocation7 + $0x2088] sm:$0xf]  ;;  %v18505_v5 = vld [vmem:[#allocation7 + $0x28c] sm:$0xf]  ;;  %v9347_v7 = vadd.f32 %v9346_v53, %v9334_v52 }
 0x3ee   :  { %v19469_v2 = vld [vmem:[#allocation7 + $0x20a4] sm:$0xf0]  ;;  %v13495_v4 = vor.u32 %v18505_v5, %v13492_v60  ;;  %v13204_v33 = vld [vmem:[#allocation7 + $0x68] sm:$0xf0] }
 0x3ef   :  { %9573 = vmatpush.bf16.msrb.mxu0 %v17427_v15  ;;  %9599 = vmatpush.bf16.msrb.mxu2 %v13591_v22  ;;  %v17331_v15 = vor.u32 %v19469_v2, %v17330_v58  ;;  %v20209_v20 = vadd.f32 %v9359_v8, %v9347_v7  ;;  %v13239_v22 = vor.u32 %v18441_v34, %v13236_v37  ;;  %v17298_v21 = vld [vmem:[#allocation7 + $0x2048] sm:$0xf]  ;;  %v18497_v38 = vld [vmem:[#allocation7 + $0x24c] sm:$0xf] }
 0x3f0   :  { %v19461_v59 = vld [vmem:[#allocation7 + $0x2064] sm:$0xf0]  ;;  %v13460_v30 = vld [vmem:[#allocation7 + $0x268] sm:$0xf0] }
 0x3f1   :  { %9612 = vmatpush.bf16.msrb.mxu3 %v13847_v43  ;;  %9587 = vmatpush.bf16.msrb.mxu1 %v13303_v9  ;;  %v18433_v43 = vld [vmem:[#allocation7 + $0x4c] sm:$0xf]  ;;  %v17299_v39 = vor.u32 %v19461_v59, %v17298_v21  ;;  %v17266_v62 = vld [vmem:[#allocation7 + $0x2008] sm:$0xf] }
 0x3f2   :  { %v18561_v6 = vld [vmem:[#allocation7 + $0x44c] sm:$0xf]  ;;  %v13207_v9 = vor.u32 %v18433_v43, %v13204_v33 }
 0x3f3   :  { %9574 = vmatpush.bf16.msrb.mxu0 %v17395_v40  ;;  %9600 = vmatpush.bf16.msrb.mxu2 %v13559_v45  ;;  %v13716_v24 = vld [vmem:[#allocation7 + $0x468] sm:$0xf0]  ;;  %v19453_v40 = vld [vmem:[#allocation7 + $0x2024] sm:$0xf0]  ;;  %v13463_v45 = vor.u32 %v18497_v38, %v13460_v30 }
 0x3f4   :  { %v18425_v47 = vld [vmem:[#allocation7 + $0xc] sm:$0xf]  ;;  %v13719_v52 = vor.u32 %v18561_v6, %v13716_v24 }
 0x3f5   :  { %9613 = vmatpush.bf16.msrb.mxu3 %v13815_v54  ;;  %9588 = vmatpush.bf16.msrb.mxu1 %v13271_v61  ;;  %v13172_v36 = vld [vmem:[#allocation7 + $0x28] sm:$0xf0]  ;;  %v9348_v54 = vpop.f32.mrf.mxu2 }
 0x3f6   :  { %v18489_v49 = vld [vmem:[#allocation7 + $0x20c] sm:$0xf] }
 0x3f7   :  { %9575 = vmatpush.bf16.msrb.mxu0 %v17363_v48  ;;  %9601 = vmatpush.bf16.msrb.mxu2 %v13527_v57  ;;  %v13428_v26 = vld [vmem:[#allocation7 + $0x228] sm:$0xf0]  ;;  %v17267_v57 = vor.u32 %v19453_v40, %v17266_v62 }
 0x3f8   :  { %v18553_v56 = vld [vmem:[#allocation7 + $0x40c] sm:$0xf]  ;;  %v13431_v53 = vor.u32 %v18489_v49, %v13428_v26  ;;  %v3467_v49 = vperm.slane %v20141_v19, 2 }
 0x3f9   :  { %9614 = vmatpush.bf16.msrb.mxu3 %v13783_v63  ;;  %9589 = vmatpush.bf16.msrb.mxu1 %v13239_v22  ;;  %v13684_v3 = vld [vmem:[#allocation7 + $0x428] sm:$0xf0]  ;;  %v13175_v63 = vor.u32 %v18425_v47, %v13172_v36 }
 0x3fa   :  { %v18673_v25 = vld [vmem:[#allocation7 + $0x7cc] sm:$0xf]  ;;  %v13687_v60 = vor.u32 %v18553_v56, %v13684_v3 }
 0x3fb   :  { %9576 = vmatpush.bf16.msrb.mxu0 %v17331_v15  ;;  %9602 = vmatpush.bf16.msrb.mxu2 %v13495_v4  ;;  %v14164_v48 = vld [vmem:[#allocation7 + $0x7e8] sm:$0xf0] }
 0x3fc   :  { %v18737_v61 = vld [vmem:[#allocation7 + $0x9cc] sm:$0xf]  ;;  %v14167_v7 = vor.u32 %v18673_v25, %v14164_v48 }
 0x3fd   :  { %9615 = vmatpush.bf16.msrb.mxu3 %v13751_v51  ;;  %v14420_v58 = vld [vmem:[#allocation7 + $0x9e8] sm:$0xf0]  ;;  %9590 = vmatpush.bf16.msrb.mxu1 %v13207_v9 }
 0x3fe   :  { %v18801_v2 = vld [vmem:[#allocation7 + $0xbcc] sm:$0xf]  ;;  %v14423_v8 = vor.u32 %v18737_v61, %v14420_v58 }
 0x3ff   :  { %9577 = vmatpush.bf16.msrb.mxu0 %v17299_v39  ;;  %v14676_v34 = vld [vmem:[#allocation7 + $0xbe8] sm:$0xf0]  ;;  %9603 = vmatpush.bf16.msrb.mxu2 %v13463_v45 }
 0x400   :  { %v18865_v37 = vld [vmem:[#allocation7 + $0xdcc] sm:$0xf]  ;;  %v14679_v1 = vor.u32 %v18801_v2, %v14676_v34 }
 0x401   :  { %v14932_v5 = vld [vmem:[#allocation7 + $0xde8] sm:$0xf0]  ;;  %9616 = vmatpush.bf16.msrb.mxu3 %v13719_v52  ;;  %9591 = vmatpush.bf16.msrb.mxu1 %v13175_v63  ;;  %v9385_v63 = vpop.f32.mrf.mxu1 }
 0x402   :  { %v18665_v0 = vld [vmem:[#allocation7 + $0x78c] sm:$0xf]  ;;  %v14935_v15 = vor.u32 %v18865_v37, %v14932_v5 }
 0x403   :  { %v14132_v10 = vld [vmem:[#allocation7 + $0x7a8] sm:$0xf0]  ;;  %9578 = vmatpush.bf16.msrb.mxu0 %v17267_v57  ;;  %9604 = vmatpush.bf16.msrb.mxu2 %v13431_v53  ;;  %v9372_v57 = vpop.f32.mrf.mxu0 }
 0x404   :  { %v18729_v13 = vld [vmem:[#allocation7 + $0x98c] sm:$0xf]  ;;  %v14135_v51 = vor.u32 %v18665_v0, %v14132_v10  ;;  %9592 = vmatmul.bf16.vlgmr.msrb.gmra.mxu1 %v20004_v50  ;;  %v9373_v34 = vadd.f32 %v9372_v57, %v3467_v49 }
 0x405   :  { %v14388_v22 = vld [vmem:[#allocation7 + $0x9a8] sm:$0xf0]  ;;  %9617 = vmatpush.bf16.msrb.mxu3 %v13687_v60  ;;  %9636 = vmatpush.bf16.msra.mxu1 %v14423_v8 }
 0x406   :  { %v18793_v4 = vld [vmem:[#allocation7 + $0xb8c] sm:$0xf]  ;;  %v14391_v33 = vor.u32 %v18729_v13, %v14388_v22  ;;  %9579 = vmatmul.bf16.vlgmr.msrb.gmra.mxu0 %v20146_v32  ;;  %9605 = vmatmul.bf16.vlgmr.msrb.gmra.mxu2 %v20008_v55 }
 0x407   :  { %v14644_v21 = vld [vmem:[#allocation7 + $0xba8] sm:$0xf0]  ;;  %9623 = vmatpush.bf16.msra.mxu0 %v14167_v7  ;;  %9649 = vmatpush.bf16.msra.mxu2 %v14679_v1  ;;  %v9386_v1 = vadd.f32 %v9385_v63, %v9373_v34 }
 0x408   :  { %v18857_v59 = vld [vmem:[#allocation7 + $0xd8c] sm:$0xf]  ;;  %v14647_v38 = vor.u32 %v18793_v4, %v14644_v21  ;;  %9618 = vmatmul.bf16.vlgmr.msrb.gmra.mxu3 %v20045_v23 }
 0x409   :  { %v14900_v43 = vld [vmem:[#allocation7 + $0xda8] sm:$0xf0]  ;;  %9662 = vmatpush.bf16.msra.mxu3 %v14935_v15  ;;  %9637 = vmatpush.bf16.msra.mxu1 %v14391_v33  ;;  %v9387_v49 = vpop.f32.mrf.mxu1 }
 0x40a   :  { %v18657_v30 = vld [vmem:[#allocation7 + $0x74c] sm:$0xf]  ;;  %v14903_v39 = vor.u32 %v18857_v59, %v14900_v43 }
 0x40b   :  { %v14100_v6 = vld [vmem:[#allocation7 + $0x768] sm:$0xf0]  ;;  %9624 = vmatpush.bf16.msra.mxu0 %v14135_v51  ;;  %9650 = vmatpush.bf16.msra.mxu2 %v14647_v38 }
 0x40c   :  { %v18721_v24 = vld [vmem:[#allocation7 + $0x94c] sm:$0xf]  ;;  %v14103_v36 = vor.u32 %v18657_v30, %v14100_v6  ;;  %v9398_v6 = vpop.f32.mrf.mxu2 }
 0x40d   :  { %v14356_v62 = vld [vmem:[#allocation7 + $0x968] sm:$0xf0]  ;;  %9663 = vmatpush.bf16.msra.mxu3 %v14903_v39 }
 0x40e   :  { %v18785_v40 = vld [vmem:[#allocation7 + $0xb4c] sm:$0xf]  ;;  %v14359_v52 = vor.u32 %v18721_v24, %v14356_v62 }
 0x40f   :  { %v14612_v9 = vld [vmem:[#allocation7 + $0xb68] sm:$0xf0]  ;;  %9625 = vmatpush.bf16.msra.mxu0 %v14103_v36 }
 0x410   :  { %v18849_v45 = vld [vmem:[#allocation7 + $0xd4c] sm:$0xf]  ;;  %v14615_v54 = vor.u32 %v18785_v40, %v14612_v9  ;;  %9638 = vmatpush.bf16.msra.mxu1 %v14359_v52  ;;  %v9399_v40 = vadd.f32 %v9398_v6, %v9386_v1  ;;  %v9411_v9 = vpop.f32.mrf.mxu3 }
 0x411   :  { %v14868_v47 = vld [vmem:[#allocation7 + $0xd68] sm:$0xf0] }
 0x412   :  { %v18649_v26 = vld [vmem:[#allocation7 + $0x70c] sm:$0xf]  ;;  %v14871_v17 = vor.u32 %v18849_v45, %v14868_v47  ;;  %9651 = vmatpush.bf16.msra.mxu2 %v14615_v54  ;;  %v9374_v45 = vpop.f32.mrf.mxu0  ;;  %v20216_v54 = vadd.f32 %v9411_v9, %v9399_v40 }
 0x413   :  { %v14068_v56 = vld [vmem:[#allocation7 + $0x728] sm:$0xf0] }
 0x414   :  { %v18713_v3 = vld [vmem:[#allocation7 + $0x90c] sm:$0xf]  ;;  %v14071_v53 = vor.u32 %v18649_v26, %v14068_v56  ;;  %9664 = vmatpush.bf16.msra.mxu3 %v14871_v17 }
 0x415   :  { %v14324_v25 = vld [vmem:[#allocation7 + $0x928] sm:$0xf0] }
 0x416   :  { %v18777_v48 = vld [vmem:[#allocation7 + $0xb0c] sm:$0xf]  ;;  %v14327_v37 = vor.u32 %v18713_v3, %v14324_v25  ;;  %9626 = vmatpush.bf16.msra.mxu0 %v14071_v53 }
 0x417   :  { %v14580_v61 = vld [vmem:[#allocation7 + $0xb28] sm:$0xf0] }
 0x418   :  { %v18841_v58 = vld [vmem:[#allocation7 + $0xd0c] sm:$0xf]  ;;  %v14583_v5 = vor.u32 %v18777_v48, %v14580_v61  ;;  %9639 = vmatpush.bf16.msra.mxu1 %v14327_v37 }
 0x419   :  { %v14836_v2 = vld [vmem:[#allocation7 + $0xd28] sm:$0xf0] }
 0x41a   :  { %v18641_v60 = vld [vmem:[#allocation7 + $0x6cc] sm:$0xf]  ;;  %v14839_v0 = vor.u32 %v18841_v58, %v14836_v2  ;;  %9652 = vmatpush.bf16.msra.mxu2 %v14583_v5 }
 0x41b   :  { %v14036_v7 = vld [vmem:[#allocation7 + $0x6e8] sm:$0xf0] }
 0x41c   :  { %v18705_v8 = vld [vmem:[#allocation7 + $0x8cc] sm:$0xf]  ;;  %v14039_v21 = vor.u32 %v18641_v60, %v14036_v7  ;;  %9665 = vmatpush.bf16.msra.mxu3 %v14839_v0 }
 0x41d   :  { %v14292_v10 = vld [vmem:[#allocation7 + $0x8e8] sm:$0xf0] }
 0x41e   :  { %v18769_v13 = vld [vmem:[#allocation7 + $0xacc] sm:$0xf]  ;;  %v14295_v59 = vor.u32 %v18705_v8, %v14292_v10  ;;  %9627 = vmatpush.bf16.msra.mxu0 %v14039_v21  ;;  %v9400_v10 = vpop.f32.mrf.mxu2 }
 0x41f   :  { %v14548_v15 = vld [vmem:[#allocation7 + $0xae8] sm:$0xf0] }
 0x420   :  { %v18833_v22 = vld [vmem:[#allocation7 + $0xccc] sm:$0xf]  ;;  %v14551_v43 = vor.u32 %v18769_v13, %v14548_v15  ;;  %9640 = vmatpush.bf16.msra.mxu1 %v14295_v59 }
 0x421   :  { %v14804_v4 = vld [vmem:[#allocation7 + $0xce8] sm:$0xf0] }
 0x422   :  { %v18633_v51 = vld [vmem:[#allocation7 + $0x68c] sm:$0xf]  ;;  %v14807_v30 = vor.u32 %v18833_v22, %v14804_v4  ;;  %9653 = vmatpush.bf16.msra.mxu2 %v14551_v43  ;;  %v9413_v4 = vpop.f32.mrf.mxu3 }
 0x423   :  { %v14004_v33 = vld [vmem:[#allocation7 + $0x6a8] sm:$0xf0] }
 0x424   :  { %v18697_v38 = vld [vmem:[#allocation7 + $0x88c] sm:$0xf]  ;;  %v14007_v52 = vor.u32 %v18633_v51, %v14004_v33  ;;  %9666 = vmatpush.bf16.msra.mxu3 %v14807_v30 }
 0x425   :  { %v14260_v24 = vld [vmem:[#allocation7 + $0x8a8] sm:$0xf0] }
 0x426   :  { %v18761_v39 = vld [vmem:[#allocation7 + $0xa8c] sm:$0xf]  ;;  %v14263_v26 = vor.u32 %v18697_v38, %v14260_v24  ;;  %9628 = vmatpush.bf16.msra.mxu0 %v14007_v52 }
 0x427   :  { %v14516_v62 = vld [vmem:[#allocation7 + $0xaa8] sm:$0xf0] }
 0x428   :  { %v18825_v47 = vld [vmem:[#allocation7 + $0xc8c] sm:$0xf]  ;;  %v14519_v56 = vor.u32 %v18761_v39, %v14516_v62  ;;  %9641 = vmatpush.bf16.msra.mxu1 %v14263_v26 }
 0x429   :  { %v14772_v36 = vld [vmem:[#allocation7 + $0xca8] sm:$0xf0] }
 0x42a   :  { %v18625_v3 = vld [vmem:[#allocation7 + $0x64c] sm:$0xf]  ;;  %v14775_v48 = vor.u32 %v18825_v47, %v14772_v36  ;;  %9654 = vmatpush.bf16.msra.mxu2 %v14519_v56 }
 0x42b   :  { %v13972_v17 = vld [vmem:[#allocation7 + $0x668] sm:$0xf0] }
 0x42c   :  { %v18689_v25 = vld [vmem:[#allocation7 + $0x84c] sm:$0xf]  ;;  %v13975_v63 = vor.u32 %v18625_v3, %v13972_v17  ;;  %9667 = vmatpush.bf16.msra.mxu3 %v14775_v48 }
 0x42d   :  { %v14228_v61 = vld [vmem:[#allocation7 + $0x868] sm:$0xf0] }
 0x42e   :  { %v18753_v57 = vld [vmem:[#allocation7 + $0xa4c] sm:$0xf]  ;;  %v14231_v5 = vor.u32 %v18689_v25, %v14228_v61  ;;  %9629 = vmatpush.bf16.msra.mxu0 %v13975_v63 }
 0x42f   :  { %v14484_v58 = vld [vmem:[#allocation7 + $0xa68] sm:$0xf0] }
 0x430   :  { %v18817_v2 = vld [vmem:[#allocation7 + $0xc4c] sm:$0xf]  ;;  %v14487_v60 = vor.u32 %v18753_v57, %v14484_v58  ;;  %9642 = vmatpush.bf16.msra.mxu1 %v14231_v5 }
 0x431   :  { %v14740_v34 = vld [vmem:[#allocation7 + $0xc68] sm:$0xf0] }
 0x432   :  { %v18617_v53 = vld [vmem:[#allocation7 + $0x60c] sm:$0xf]  ;;  %v14743_v0 = vor.u32 %v18817_v2, %v14740_v34  ;;  %9655 = vmatpush.bf16.msra.mxu2 %v14487_v60 }
 0x433   :  { %v13940_v37 = vld [vmem:[#allocation7 + $0x628] sm:$0xf0] }
 0x434   :  { %v18681_v7 = vld [vmem:[#allocation7 + $0x80c] sm:$0xf]  ;;  %v13943_v51 = vor.u32 %v18617_v53, %v13940_v37  ;;  %9668 = vmatpush.bf16.msra.mxu3 %v14743_v0 }
 0x435   :  { %v14196_v8 = vld [vmem:[#allocation7 + $0x828] sm:$0xf0] }
 0x436   :  { %v18745_v1 = vld [vmem:[#allocation7 + $0xa0c] sm:$0xf]  ;;  %v14199_v6 = vor.u32 %v18681_v7, %v14196_v8  ;;  %9630 = vmatpush.bf16.msra.mxu0 %v13943_v51  ;;  %v9424_v51 = vpop.f32.mrf.mxu0 }
 0x437   :  { %v14452_v13 = vld [vmem:[#allocation7 + $0xa28] sm:$0xf0] }
 0x438   :  { %v18809_v15 = vld [vmem:[#allocation7 + $0xc0c] sm:$0xf]  ;;  %v14455_v24 = vor.u32 %v18745_v1, %v14452_v13  ;;  %9643 = vmatpush.bf16.msra.mxu1 %v14199_v6  ;;  %v9437_v6 = vpop.f32.mrf.mxu1 }
 0x439   :  { %v14708_v22 = vld [vmem:[#allocation7 + $0xc28] sm:$0xf0]  ;;  %9631 = vmatmul.bf16.vlgmr.msra.gmra.mxu0 %v20047_v28 }
 0x43a   :  { %v18929_v21 = vld [vmem:[#allocation7 + $0xfcc] sm:$0xf]  ;;  %v14711_v40 = vor.u32 %v18809_v15, %v14708_v22  ;;  %9656 = vmatpush.bf16.msra.mxu2 %v14455_v24 }
 0x43b   :  { %v15188_v59 = vld [vmem:[#allocation7 + $0xfe8] sm:$0xf0]  ;;  %9644 = vmatmul.bf16.vlgmr.msra.gmra.mxu1 %v20052_v16 }
 0x43c   :  { %v18993_v43 = vld [vmem:[#allocation7 + $0x11cc] sm:$0xf]  ;;  %v15191_v9 = vor.u32 %v18929_v21, %v15188_v59  ;;  %9669 = vmatpush.bf16.msra.mxu3 %v14711_v40 }
 0x43d   :  { %v15444_v33 = vld [vmem:[#allocation7 + $0x11e8] sm:$0xf0]  ;;  %9657 = vmatmul.bf16.vlgmr.msra.gmra.mxu2 %v20057_v29 }
 0x43e   :  { %v19057_v38 = vld [vmem:[#allocation7 + $0x13cc] sm:$0xf]  ;;  %v15447_v45 = vor.u32 %v18993_v43, %v15444_v33  ;;  %9675 = vmatpush.bf16.msrb.mxu0 %v15191_v9 }
 0x43f   :  { %v15700_v30 = vld [vmem:[#allocation7 + $0x13e8] sm:$0xf0]  ;;  %9670 = vmatmul.bf16.vlgmr.msra.gmra.mxu3 %v20091_v41 }
 0x440   :  { %v19121_v39 = vld [vmem:[#allocation7 + $0x15cc] sm:$0xf]  ;;  %v15703_v47 = vor.u32 %v19057_v38, %v15700_v30  ;;  %9688 = vmatpush.bf16.msrb.mxu1 %v15447_v45  ;;  %v9425_v30 = vadd.f32 %v9424_v51, %v20216_v54 }
 0x441   :  { %v15956_v62 = vld [vmem:[#allocation7 + $0x15e8] sm:$0xf0] }
 0x442   :  { %v18921_v36 = vld [vmem:[#allocation7 + $0xf8c] sm:$0xf]  ;;  %v15959_v26 = vor.u32 %v19121_v39, %v15956_v62  ;;  %9701 = vmatpush.bf16.msrb.mxu2 %v15703_v47  ;;  %v9438_v47 = vadd.f32 %v9437_v6, %v9425_v30 }
 0x443   :  { %v15156_v49 = vld [vmem:[#allocation7 + $0xfa8] sm:$0xf0] }
 0x444   :  { %v18985_v52 = vld [vmem:[#allocation7 + $0x118c] sm:$0xf]  ;;  %v15159_v61 = vor.u32 %v18921_v36, %v15156_v49  ;;  %9714 = vmatpush.bf16.msrb.mxu3 %v15959_v26 }
 0x445   :  { %v15412_v56 = vld [vmem:[#allocation7 + $0x11a8] sm:$0xf0] }
 0x446   :  { %v19049_v3 = vld [vmem:[#allocation7 + $0x138c] sm:$0xf]  ;;  %v15415_v57 = vor.u32 %v18985_v52, %v15412_v56  ;;  %9676 = vmatpush.bf16.msrb.mxu0 %v15159_v61 }
 0x447   :  { %v15668_v17 = vld [vmem:[#allocation7 + $0x13a8] sm:$0xf0] }
 0x448   :  { %v19113_v25 = vld [vmem:[#allocation7 + $0x158c] sm:$0xf]  ;;  %v15671_v58 = vor.u32 %v19049_v3, %v15668_v17  ;;  %9689 = vmatpush.bf16.msrb.mxu1 %v15415_v57 }
 0x449   :  { %v15924_v48 = vld [vmem:[#allocation7 + $0x15a8] sm:$0xf0] }
 0x44a   :  { %v18913_v2 = vld [vmem:[#allocation7 + $0xf4c] sm:$0xf]  ;;  %v15927_v53 = vor.u32 %v19113_v25, %v15924_v48  ;;  %9702 = vmatpush.bf16.msrb.mxu2 %v15671_v58 }
 0x44b   :  { %v15124_v34 = vld [vmem:[#allocation7 + $0xf68] sm:$0xf0] }
 0x44c   :  { %v18977_v63 = vld [vmem:[#allocation7 + $0x114c] sm:$0xf]  ;;  %v15127_v1 = vor.u32 %v18913_v2, %v15124_v34  ;;  %9715 = vmatpush.bf16.msrb.mxu3 %v15927_v53  ;;  %v9450_v2 = vpop.f32.mrf.mxu2 }
 0x44d   :  { %v15380_v37 = vld [vmem:[#allocation7 + $0x1168] sm:$0xf0] }
 0x44e   :  { %v19041_v5 = vld [vmem:[#allocation7 + $0x134c] sm:$0xf]  ;;  %v15383_v0 = vor.u32 %v18977_v63, %v15380_v37  ;;  %9677 = vmatpush.bf16.msrb.mxu0 %v15127_v1  ;;  %v9451_v37 = vadd.f32 %v9450_v2, %v9438_v47  ;;  %v9439_v1 = vpop.f32.mrf.mxu1 }
 0x44f   :  { %v15636_v60 = vld [vmem:[#allocation7 + $0x1368] sm:$0xf0] }
 0x450   :  { %v19105_v7 = vld [vmem:[#allocation7 + $0x154c] sm:$0xf]  ;;  %v15639_v10 = vor.u32 %v19041_v5, %v15636_v60  ;;  %9690 = vmatpush.bf16.msrb.mxu1 %v15383_v0  ;;  %v9463_v5 = vpop.f32.mrf.mxu3  ;;  %v9426_v60 = vpop.f32.mrf.mxu0 }
 0x451   :  { %v15892_v8 = vld [vmem:[#allocation7 + $0x1568] sm:$0xf0] }
 0x452   :  { %v18905_v13 = vld [vmem:[#allocation7 + $0xf0c] sm:$0xf]  ;;  %v15895_v4 = vor.u32 %v19105_v7, %v15892_v8  ;;  %9703 = vmatpush.bf16.msrb.mxu2 %v15639_v10  ;;  %v20223_v10 = vadd.f32 %v9463_v5, %v9451_v37 }
 0x453   :  { %v15092_v15 = vld [vmem:[#allocation7 + $0xf28] sm:$0xf0] }
 0x454   :  { %v18969_v22 = vld [vmem:[#allocation7 + $0x110c] sm:$0xf]  ;;  %v15095_v24 = vor.u32 %v18905_v13, %v15092_v15  ;;  %9716 = vmatpush.bf16.msrb.mxu3 %v15895_v4 }
 0x455   :  { %v15348_v21 = vld [vmem:[#allocation7 + $0x1128] sm:$0xf0] }
 0x456   :  { %v19033_v59 = vld [vmem:[#allocation7 + $0x130c] sm:$0xf]  ;;  %v15351_v39 = vor.u32 %v18969_v22, %v15348_v21  ;;  %9678 = vmatpush.bf16.msrb.mxu0 %v15095_v24 }
 0x457   :  { %v15604_v43 = vld [vmem:[#allocation7 + $0x1328] sm:$0xf0] }
 0x458   :  { %v19097_v33 = vld [vmem:[#allocation7 + $0x150c] sm:$0xf]  ;;  %v15607_v62 = vor.u32 %v19033_v59, %v15604_v43  ;;  %9691 = vmatpush.bf16.msrb.mxu1 %v15351_v39 }
 0x459   :  { %v15860_v38 = vld [vmem:[#allocation7 + $0x1528] sm:$0xf0] }
 0x45a   :  { %v18897_v40 = vld [vmem:[#allocation7 + $0xecc] sm:$0xf]  ;;  %v15863_v36 = vor.u32 %v19097_v33, %v15860_v38  ;;  %9704 = vmatpush.bf16.msrb.mxu2 %v15607_v62 }
 0x45b   :  { %v15060_v9 = vld [vmem:[#allocation7 + $0xee8] sm:$0xf0] }
 0x45c   :  { %v18961_v45 = vld [vmem:[#allocation7 + $0x10cc] sm:$0xf]  ;;  %v15063_v17 = vor.u32 %v18897_v40, %v15060_v9  ;;  %9717 = vmatpush.bf16.msrb.mxu3 %v15863_v36 }
 0x45d   :  { %v15316_v49 = vld [vmem:[#allocation7 + $0x10e8] sm:$0xf0] }
 0x45e   :  { %v19025_v52 = vld [vmem:[#allocation7 + $0x12cc] sm:$0xf]  ;;  %v15319_v54 = vor.u32 %v18961_v45, %v15316_v49  ;;  %9679 = vmatpush.bf16.msrb.mxu0 %v15063_v17  ;;  %v9452_v49 = vpop.f32.mrf.mxu2 }
 0x45f   :  { %v15572_v26 = vld [vmem:[#allocation7 + $0x12e8] sm:$0xf0] }
 0x460   :  { %v19089_v56 = vld [vmem:[#allocation7 + $0x14cc] sm:$0xf]  ;;  %v15575_v25 = vor.u32 %v19025_v52, %v15572_v26  ;;  %9692 = vmatpush.bf16.msrb.mxu1 %v15319_v54 }
 0x461   :  { %v15828_v3 = vld [vmem:[#allocation7 + $0x14e8] sm:$0xf0] }
 0x462   :  { %v18889_v48 = vld [vmem:[#allocation7 + $0xe8c] sm:$0xf]  ;;  %v15831_v58 = vor.u32 %v19089_v56, %v15828_v3  ;;  %9705 = vmatpush.bf16.msrb.mxu2 %v15575_v25  ;;  %v9465_v3 = vpop.f32.mrf.mxu3 }
 0x463   :  { %v15028_v61 = vld [vmem:[#allocation7 + $0xea8] sm:$0xf0] }
 0x464   :  { %v18953_v57 = vld [vmem:[#allocation7 + $0x108c] sm:$0xf]  ;;  %v15031_v0 = vor.u32 %v18889_v48, %v15028_v61  ;;  %9718 = vmatpush.bf16.msrb.mxu3 %v15831_v58 }
 0x465   :  { %v15284_v34 = vld [vmem:[#allocation7 + $0x10a8] sm:$0xf0] }
 0x466   :  { %v19017_v63 = vld [vmem:[#allocation7 + $0x128c] sm:$0xf]  ;;  %v15287_v13 = vor.u32 %v18953_v57, %v15284_v34  ;;  %9680 = vmatpush.bf16.msrb.mxu0 %v15031_v0 }
 0x467   :  { %v15540_v53 = vld [vmem:[#allocation7 + $0x12a8] sm:$0xf0] }
 0x468   :  { %v19081_v7 = vld [vmem:[#allocation7 + $0x148c] sm:$0xf]  ;;  %v15543_v15 = vor.u32 %v19017_v63, %v15540_v53  ;;  %9693 = vmatpush.bf16.msrb.mxu1 %v15287_v13 }
 0x469   :  { %v15796_v8 = vld [vmem:[#allocation7 + $0x14a8] sm:$0xf0] }
 0x46a   :  { %v18881_v22 = vld [vmem:[#allocation7 + $0xe4c] sm:$0xf]  ;;  %v15799_v59 = vor.u32 %v19081_v7, %v15796_v8  ;;  %9706 = vmatpush.bf16.msrb.mxu2 %v15543_v15 }
 0x46b   :  { %v14996_v4 = vld [vmem:[#allocation7 + $0xe68] sm:$0xf0] }
 0x46c   :  { %v18945_v21 = vld [vmem:[#allocation7 + $0x104c] sm:$0xf]  ;;  %v14999_v6 = vor.u32 %v18881_v22, %v14996_v4  ;;  %9719 = vmatpush.bf16.msrb.mxu3 %v15799_v59 }
 0x46d   :  { %v15252_v43 = vld [vmem:[#allocation7 + $0x1068] sm:$0xf0] }
 0x46e   :  { %v19009_v51 = vld [vmem:[#allocation7 + $0x124c] sm:$0xf]  ;;  %v15255_v62 = vor.u32 %v18945_v21, %v15252_v43  ;;  %9681 = vmatpush.bf16.msrb.mxu0 %v14999_v6 }
 0x46f   :  { %v15508_v33 = vld [vmem:[#allocation7 + $0x1268] sm:$0xf0] }
 0x470   :  { %v19073_v38 = vld [vmem:[#allocation7 + $0x144c] sm:$0xf]  ;;  %v15511_v40 = vor.u32 %v19009_v51, %v15508_v33  ;;  %9694 = vmatpush.bf16.msrb.mxu1 %v15255_v62 }
 0x471   :  { %v15764_v30 = vld [vmem:[#allocation7 + $0x1468] sm:$0xf0] }
 0x472   :  { %v18873_v24 = vld [vmem:[#allocation7 + $0xe0c] sm:$0xf]  ;;  %v15767_v36 = vor.u32 %v19073_v38, %v15764_v30  ;;  %9707 = vmatpush.bf16.msrb.mxu2 %v15511_v40 }
 0x473   :  { %v14964_v39 = vld [vmem:[#allocation7 + $0xe28] sm:$0xf0] }
 0x474   :  { %v18937_v9 = vld [vmem:[#allocation7 + $0x100c] sm:$0xf]  ;;  %v14967_v48 = vor.u32 %v18873_v24, %v14964_v39  ;;  %9720 = vmatpush.bf16.msrb.mxu3 %v15767_v36 }
 0x475   :  { %v15220_v45 = vld [vmem:[#allocation7 + $0x1028] sm:$0xf0] }
 0x476   :  { %v19001_v47 = vld [vmem:[#allocation7 + $0x120c] sm:$0xf]  ;;  %v15223_v2 = vor.u32 %v18937_v9, %v15220_v45  ;;  %9682 = vmatpush.bf16.msrb.mxu0 %v14967_v48  ;;  %v9476_v48 = vpop.f32.mrf.mxu0 }
 0x477   :  { %v15476_v52 = vld [vmem:[#allocation7 + $0x1228] sm:$0xf0] }
 0x478   :  { %v19065_v26 = vld [vmem:[#allocation7 + $0x140c] sm:$0xf]  ;;  %v15479_v34 = vor.u32 %v19001_v47, %v15476_v52  ;;  %9695 = vmatpush.bf16.msrb.mxu1 %v15223_v2  ;;  %v9489_v2 = vpop.f32.mrf.mxu1 }
 0x479   :  { %v15732_v56 = vld [vmem:[#allocation7 + $0x1428] sm:$0xf0]  ;;  %9683 = vmatmul.bf16.vlgmr.msrb.gmra.mxu0 %v20095_v42 }
 0x47a   :  { %v19185_v17 = vld [vmem:[#allocation7 + $0x17cc] sm:$0xf]  ;;  %v15735_v37 = vor.u32 %v19065_v26, %v15732_v56  ;;  %9708 = vmatpush.bf16.msrb.mxu2 %v15479_v34 }
 0x47b   :  { %v16212_v54 = vld [vmem:[#allocation7 + $0x17e8] sm:$0xf0]  ;;  %9696 = vmatmul.bf16.vlgmr.msrb.gmra.mxu1 %v20105_v35 }
 0x47c   :  { %v19249_v25 = vld [vmem:[#allocation7 + $0x19cc] sm:$0xf]  ;;  %v16215_v5 = vor.u32 %v19185_v17, %v16212_v54  ;;  %9721 = vmatpush.bf16.msrb.mxu3 %v15735_v37 }
 0x47d   :  { %v16468_v61 = vld [vmem:[#allocation7 + $0x19e8] sm:$0xf0]  ;;  %9709 = vmatmul.bf16.vlgmr.msrb.gmra.mxu2 %v20097_v44 }
 0x47e   :  { %v19313_v57 = vld [vmem:[#allocation7 + $0x1bcc] sm:$0xf]  ;;  %v16471_v60 = vor.u32 %v19249_v25, %v16468_v61  ;;  %9727 = vmatpush.bf16.msra.mxu0 %v16215_v5 }
 0x47f   :  { %v16724_v58 = vld [vmem:[#allocation7 + $0x1be8] sm:$0xf0]  ;;  %9722 = vmatmul.bf16.vlgmr.msrb.gmra.mxu3 %v20124_v14 }
 0x480   :  { %v19377_v63 = vld [vmem:[#allocation7 + $0x1dcc] sm:$0xf]  ;;  %v16727_v7 = vor.u32 %v19313_v57, %v16724_v58  ;;  %9740 = vmatpush.bf16.msra.mxu1 %v16471_v60  ;;  %v9477_v58 = vadd.f32 %v9476_v48, %v20223_v10 }
 0x481   :  { %v16980_v53 = vld [vmem:[#allocation7 + $0x1de8] sm:$0xf0] }
 0x482   :  { %v19177_v8 = vld [vmem:[#allocation7 + $0x178c] sm:$0xf]  ;;  %v16983_v13 = vor.u32 %v19377_v63, %v16980_v53  ;;  %9753 = vmatpush.bf16.msra.mxu2 %v16727_v7  ;;  %v9490_v7 = vadd.f32 %v9489_v2, %v9477_v58 }
 0x483   :  { %v16180_v1 = vld [vmem:[#allocation7 + $0x17a8] sm:$0xf0] }
 0x484   :  { %v19241_v0 = vld [vmem:[#allocation7 + $0x198c] sm:$0xf]  ;;  %v16183_v43 = vor.u32 %v19177_v8, %v16180_v1  ;;  %9766 = vmatpush.bf16.msra.mxu3 %v16983_v13 }
 0x485   :  { %v16436_v15 = vld [vmem:[#allocation7 + $0x19a8] sm:$0xf0] }
 0x486   :  { %v19305_v22 = vld [vmem:[#allocation7 + $0x1b8c] sm:$0xf]  ;;  %v16439_v51 = vor.u32 %v19241_v0, %v16436_v15  ;;  %9728 = vmatpush.bf16.msra.mxu0 %v16183_v43 }
 0x487   :  { %v16692_v4 = vld [vmem:[#allocation7 + $0x1ba8] sm:$0xf0] }
 0x488   :  { %v19369_v21 = vld [vmem:[#allocation7 + $0x1d8c] sm:$0xf]  ;;  %v16695_v33 = vor.u32 %v19305_v22, %v16692_v4  ;;  %9741 = vmatpush.bf16.msra.mxu1 %v16439_v51 }
 0x489   :  { %v16948_v59 = vld [vmem:[#allocation7 + $0x1da8] sm:$0xf0] }
 0x48a   :  { %v19169_v38 = vld [vmem:[#allocation7 + $0x174c] sm:$0xf]  ;;  %v16951_v24 = vor.u32 %v19369_v21, %v16948_v59  ;;  %9754 = vmatpush.bf16.msra.mxu2 %v16695_v33 }
 0x48b   :  { %v16148_v30 = vld [vmem:[#allocation7 + $0x1768] sm:$0xf0] }
 0x48c   :  { %v19233_v6 = vld [vmem:[#allocation7 + $0x194c] sm:$0xf]  ;;  %v16151_v47 = vor.u32 %v19169_v38, %v16148_v30  ;;  %9767 = vmatpush.bf16.msra.mxu3 %v16951_v24  ;;  %v9502_v38 = vpop.f32.mrf.mxu2 }
 0x48d   :  { %v16404_v39 = vld [vmem:[#allocation7 + $0x1968] sm:$0xf0] }
 0x48e   :  { %v19297_v62 = vld [vmem:[#allocation7 + $0x1b4c] sm:$0xf]  ;;  %v16407_v36 = vor.u32 %v19233_v6, %v16404_v39  ;;  %9729 = vmatpush.bf16.msra.mxu0 %v16151_v47  ;;  %v9503_v39 = vadd.f32 %v9502_v38, %v9490_v7  ;;  %v9491_v47 = vpop.f32.mrf.mxu1 }
 0x48f   :  { %v16660_v40 = vld [vmem:[#allocation7 + $0x1b68] sm:$0xf0] }
 0x490   :  { %v19361_v9 = vld [vmem:[#allocation7 + $0x1d4c] sm:$0xf]  ;;  %v16663_v49 = vor.u32 %v19297_v62, %v16660_v40  ;;  %9742 = vmatpush.bf16.msra.mxu1 %v16407_v36  ;;  %v9515_v62 = vpop.f32.mrf.mxu3  ;;  %v9478_v40 = vpop.f32.mrf.mxu0 }
 0x491   :  { %v16916_v45 = vld [vmem:[#allocation7 + $0x1d68] sm:$0xf0] }
 0x492   :  { %v19161_v52 = vld [vmem:[#allocation7 + $0x170c] sm:$0xf]  ;;  %v16919_v3 = vor.u32 %v19361_v9, %v16916_v45  ;;  %9755 = vmatpush.bf16.msra.mxu2 %v16663_v49  ;;  %v20230_v49 = vadd.f32 %v9515_v62, %v9503_v39 }
 0x493   :  { %v16116_v26 = vld [vmem:[#allocation7 + $0x1728] sm:$0xf0] }
 0x494   :  { %v19225_v56 = vld [vmem:[#allocation7 + $0x190c] sm:$0xf]  ;;  %v16119_v34 = vor.u32 %v19161_v52, %v16116_v26  ;;  %9768 = vmatpush.bf16.msra.mxu3 %v16919_v3 }
 0x495   :  { %v16372_v17 = vld [vmem:[#allocation7 + $0x1928] sm:$0xf0] }
 0x496   :  { %v19289_v54 = vld [vmem:[#allocation7 + $0x1b0c] sm:$0xf]  ;;  %v16375_v63 = vor.u32 %v19225_v56, %v16372_v17  ;;  %9730 = vmatpush.bf16.msra.mxu0 %v16119_v34 }
 0x497   :  { %v16628_v25 = vld [vmem:[#allocation7 + $0x1b28] sm:$0xf0] }
 0x498   :  { %v19353_v61 = vld [vmem:[#allocation7 + $0x1d0c] sm:$0xf]  ;;  %v16631_v53 = vor.u32 %v19289_v54, %v16628_v25  ;;  %9743 = vmatpush.bf16.msra.mxu1 %v16375_v63 }
 0x499   :  { %v16884_v57 = vld [vmem:[#allocation7 + $0x1d28] sm:$0xf0] }
 0x49a   :  { %v19153_v37 = vld [vmem:[#allocation7 + $0x16cc] sm:$0xf]  ;;  %v16887_v8 = vor.u32 %v19353_v61, %v16884_v57  ;;  %9756 = vmatpush.bf16.msra.mxu2 %v16631_v53 }
 0x49b   :  { %v16084_v5 = vld [vmem:[#allocation7 + $0x16e8] sm:$0xf0] }
 0x49c   :  { %v19217_v60 = vld [vmem:[#allocation7 + $0x18cc] sm:$0xf]  ;;  %v16087_v4 = vor.u32 %v19153_v37, %v16084_v5  ;;  %9769 = vmatpush.bf16.msra.mxu3 %v16887_v8 }
 0x49d   :  { %v16340_v1 = vld [vmem:[#allocation7 + $0x18e8] sm:$0xf0] }
 0x49e   :  { %v19281_v0 = vld [vmem:[#allocation7 + $0x1acc] sm:$0xf]  ;;  %v16343_v10 = vor.u32 %v19217_v60, %v16340_v1  ;;  %9731 = vmatpush.bf16.msra.mxu0 %v16087_v4  ;;  %v9504_v1 = vpop.f32.mrf.mxu2 }
 0x49f   :  { %v16596_v13 = vld [vmem:[#allocation7 + $0x1ae8] sm:$0xf0] }
 0x4a0   :  { %v19345_v15 = vld [vmem:[#allocation7 + $0x1ccc] sm:$0xf]  ;;  %v16599_v21 = vor.u32 %v19281_v0, %v16596_v13  ;;  %9744 = vmatpush.bf16.msra.mxu1 %v16343_v10 }
 0x4a1   :  { %v16852_v22 = vld [vmem:[#allocation7 + $0x1ce8] sm:$0xf0] }
 0x4a2   :  { %v19145_v59 = vld [vmem:[#allocation7 + $0x168c] sm:$0xf]  ;;  %v16855_v33 = vor.u32 %v19345_v15, %v16852_v22  ;;  %9757 = vmatpush.bf16.msra.mxu2 %v16599_v21  ;;  %v9517_v22 = vpop.f32.mrf.mxu3 }
 0x4a3   :  { %v16052_v43 = vld [vmem:[#allocation7 + $0x16a8] sm:$0xf0] }
 0x4a4   :  { %v19209_v51 = vld [vmem:[#allocation7 + $0x188c] sm:$0xf]  ;;  %v16055_v36 = vor.u32 %v19145_v59, %v16052_v43  ;;  %9770 = vmatpush.bf16.msra.mxu3 %v16855_v33  ;;  %v18486_v33 = vld [vmem:[#allocation7 + $0x1ec] sm:$0xf0] }
 0x4a5   :  { %v16308_v30 = vld [vmem:[#allocation7 + $0x18a8] sm:$0xf0] }
 0x4a6   :  { %v19273_v6 = vld [vmem:[#allocation7 + $0x1a8c] sm:$0xf]  ;;  %v16311_v52 = vor.u32 %v19209_v51, %v16308_v30  ;;  %9732 = vmatpush.bf16.msra.mxu0 %v16055_v36  ;;  %v13402_v51 = vld [vmem:[#allocation7 + $0x1d0] sm:$0xf] }
 0x4a7   :  { %v16564_v24 = vld [vmem:[#allocation7 + $0x1aa8] sm:$0xf0] }
 0x4a8   :  { %v19337_v9 = vld [vmem:[#allocation7 + $0x1c8c] sm:$0xf]  ;;  %v16567_v26 = vor.u32 %v19273_v6, %v16564_v24  ;;  %9745 = vmatpush.bf16.msra.mxu1 %v16311_v52  ;;  %v13658_v6 = vld [vmem:[#allocation7 + $0x3d0] sm:$0xf] }
 0x4a9   :  { %v16820_v45 = vld [vmem:[#allocation7 + $0x1ca8] sm:$0xf0]  ;;  %v18550_v24 = vld [vmem:[#allocation7 + $0x3ec] sm:$0xf0] }
 0x4aa   :  { %v19137_v56 = vld [vmem:[#allocation7 + $0x164c] sm:$0xf]  ;;  %v16823_v54 = vor.u32 %v19337_v9, %v16820_v45  ;;  %9758 = vmatpush.bf16.msra.mxu2 %v16567_v26  ;;  %v13403_v9 = vor.u32 %v18486_v33, %v13402_v51  ;;  %v13659_v52 = vor.u32 %v18550_v24, %v13658_v6  ;;  %v18526_v51 = vld [vmem:[#allocation7 + $0x32c] sm:$0xf0] }
 0x4ab   :  { %v16020_v3 = vld [vmem:[#allocation7 + $0x1668] sm:$0xf0] }
 0x4ac   :  { %v19201_v17 = vld [vmem:[#allocation7 + $0x184c] sm:$0xf]  ;;  %v16023_v2 = vor.u32 %v19137_v56, %v16020_v3  ;;  %9771 = vmatpush.bf16.msra.mxu3 %v16823_v54  ;;  %v13370_v56 = vld [vmem:[#allocation7 + $0x190] sm:$0xf] }
 0x4ad   :  { %v16276_v25 = vld [vmem:[#allocation7 + $0x1868] sm:$0xf0]  ;;  %v18478_v3 = vld [vmem:[#allocation7 + $0x1ac] sm:$0xf0] }
 0x4ae   :  { %v19265_v48 = vld [vmem:[#allocation7 + $0x1a4c] sm:$0xf]  ;;  %v16279_v53 = vor.u32 %v19201_v17, %v16276_v25  ;;  %9733 = vmatpush.bf16.msra.mxu0 %v16023_v2  ;;  %v13626_v17 = vld [vmem:[#allocation7 + $0x390] sm:$0xf] }
 0x4af   :  { %v16532_v61 = vld [vmem:[#allocation7 + $0x1a68] sm:$0xf0]  ;;  %v18542_v54 = vld [vmem:[#allocation7 + $0x3ac] sm:$0xf0] }
 0x4b0   :  { %v19329_v57 = vld [vmem:[#allocation7 + $0x1c4c] sm:$0xf]  ;;  %v16535_v37 = vor.u32 %v19265_v48, %v16532_v61  ;;  %9746 = vmatpush.bf16.msra.mxu1 %v16279_v53  ;;  %v13371_v61 = vor.u32 %v18478_v3, %v13370_v56  ;;  %v13338_v53 = vld [vmem:[#allocation7 + $0x150] sm:$0xf] }
 0x4b1   :  { %v16788_v58 = vld [vmem:[#allocation7 + $0x1c68] sm:$0xf0]  ;;  %v18518_v56 = vld [vmem:[#allocation7 + $0x2ec] sm:$0xf0] }
 0x4b2   :  { %v19129_v34 = vld [vmem:[#allocation7 + $0x160c] sm:$0xf]  ;;  %v16791_v8 = vor.u32 %v19329_v57, %v16788_v58  ;;  %9759 = vmatpush.bf16.msra.mxu2 %v16535_v37  ;;  %v18470_v37 = vld [vmem:[#allocation7 + $0x16c] sm:$0xf0] }
 0x4b3   :  { %v15988_v63 = vld [vmem:[#allocation7 + $0x1628] sm:$0xf0]  ;;  %v13339_v1 = vor.u32 %v18470_v37, %v13338_v53  ;;  %v9567_v53 = vpop.f32.mrf.mxu3 }
 0x4b4   :  { %v19193_v5 = vld [vmem:[#allocation7 + $0x180c] sm:$0xf]  ;;  %v15991_v59 = vor.u32 %v19129_v34, %v15988_v63  ;;  %9772 = vmatpush.bf16.msra.mxu3 %v16791_v8  ;;  %v13627_v34 = vor.u32 %v18542_v54, %v13626_v17 }
 0x4b5   :  { %v16244_v60 = vld [vmem:[#allocation7 + $0x1828] sm:$0xf0] }
 0x4b6   :  { %v19257_v7 = vld [vmem:[#allocation7 + $0x1a0c] sm:$0xf]  ;;  %v16247_v38 = vor.u32 %v19193_v5, %v16244_v60  ;;  %9734 = vmatpush.bf16.msra.mxu0 %v15991_v59  ;;  %v13594_v5 = vld [vmem:[#allocation7 + $0x350] sm:$0xf]  ;;  %v9528_v59 = vpop.f32.mrf.mxu0 }
 0x4b7   :  { %v16500_v0 = vld [vmem:[#allocation7 + $0x1a28] sm:$0xf0]  ;;  %v18534_v60 = vld [vmem:[#allocation7 + $0x36c] sm:$0xf0]  ;;  %v9529_v33 = vadd.f32 %v9528_v59, %v20230_v49 }
 0x4b8   :  { %v19321_v13 = vld [vmem:[#allocation7 + $0x1c0c] sm:$0xf]  ;;  %v16503_v30 = vor.u32 %v19257_v7, %v16500_v0  ;;  %9747 = vmatpush.bf16.msra.mxu1 %v16247_v38  ;;  %v13595_v22 = vor.u32 %v18534_v60, %v13594_v5  ;;  %v9541_v38 = vpop.f32.mrf.mxu1  ;;  %v13498_v5 = vld [vmem:[#allocation7 + $0x290] sm:$0xf] }
 0x4b9   :  { %v16756_v15 = vld [vmem:[#allocation7 + $0x1c28] sm:$0xf0]  ;;  %9735 = vmatmul.bf16.vlgmr.msra.gmra.mxu0 %v20120_v11  ;;  %v18510_v60 = vld [vmem:[#allocation7 + $0x2ac] sm:$0xf0] }
 0x4ba   :  { %v19441_v4 = vld [vmem:[#allocation7 + $0x1fcc] sm:$0xf]  ;;  %v16759_v39 = vor.u32 %v19321_v13, %v16756_v15  ;;  %9760 = vmatpush.bf16.msra.mxu2 %v16503_v30  ;;  %v13210_v59 = vld [vmem:[#allocation7 + $0x50] sm:$0xf] }
 0x4bb   :  { %v17236_v10 = vld [vmem:[#allocation7 + $0x1fe8] sm:$0xf0]  ;;  %9748 = vmatmul.bf16.vlgmr.msra.gmra.mxu1 %v20122_v12 }
 0x4bc   :  { %v19505_v21 = vld [vmem:[#allocation7 + $0x21cc] sm:$0xf]  ;;  %v17239_v62 = vor.u32 %v19441_v4, %v17236_v10  ;;  %9773 = vmatpush.bf16.msra.mxu3 %v16759_v39  ;;  %v13306_v10 = vld [vmem:[#allocation7 + $0x110] sm:$0xf] }
 0x4bd   :  { %v17492_v43 = vld [vmem:[#allocation7 + $0x21e8] sm:$0xf0]  ;;  %9761 = vmatmul.bf16.vlgmr.msra.gmra.mxu2 %v20126_v27 }
 0x4be   :  { %v17495_v40 = vor.u32 %v19505_v21, %v17492_v43  ;;  %v19433_v45 = vld [vmem:[#allocation7 + $0x1f8c] sm:$0xf]  ;;  %9779 = vmatpush.bf16.msrb.mxu0 %v17239_v62  ;;  %9805 = vmatpush.bf16.msrb.mxu2 %v13403_v9  ;;  %v18462_v21 = vld [vmem:[#allocation7 + $0x12c] sm:$0xf0]  ;;  %v9542_v9 = vadd.f32 %v9541_v38, %v9529_v33  ;;  %v9530_v37 = vpop.f32.mrf.mxu0 }
 0x4bf   :  { %v17204_v47 = vld [vmem:[#allocation7 + $0x1fa8] sm:$0xf0]  ;;  %9774 = vmatmul.bf16.vlgmr.msra.gmra.mxu3 %v20134_v31  ;;  %v13562_v43 = vld [vmem:[#allocation7 + $0x310] sm:$0xf]  ;;  %v13307_v24 = vor.u32 %v18462_v21, %v13306_v10  ;;  %v13499_v10 = vor.u32 %v18510_v60, %v13498_v5 }
 0x4c0   :  { %v19497_v36 = vld [vmem:[#allocation7 + $0x218c] sm:$0xf]  ;;  %v17207_v25 = vor.u32 %v19433_v45, %v17204_v47  ;;  %9792 = vmatpush.bf16.msrb.mxu1 %v17495_v40  ;;  %9818 = vmatpush.bf16.msrb.mxu3 %v13659_v52  ;;  %v13563_v45 = vor.u32 %v18526_v51, %v13562_v43  ;;  %v18454_v52 = vld [vmem:[#allocation7 + $0xec] sm:$0xf0] }
 0x4c1   :  { %v17460_v26 = vld [vmem:[#allocation7 + $0x21a8] sm:$0xf0]  ;;  %v18438_v43 = vld [vmem:[#allocation7 + $0x6c] sm:$0xf0] }
 0x4c2   :  { %v17463_v48 = vor.u32 %v19497_v36, %v17460_v26  ;;  %v19425_v57 = vld [vmem:[#allocation7 + $0x1f4c] sm:$0xf]  ;;  %9780 = vmatpush.bf16.msrb.mxu0 %v17207_v25  ;;  %9806 = vmatpush.bf16.msrb.mxu2 %v13371_v61  ;;  %v13274_v36 = vld [vmem:[#allocation7 + $0xd0] sm:$0xf] }
 0x4c3   :  { %v17172_v58 = vld [vmem:[#allocation7 + $0x1f68] sm:$0xf0]  ;;  %v13530_v26 = vld [vmem:[#allocation7 + $0x2d0] sm:$0xf]  ;;  %v13275_v17 = vor.u32 %v18454_v52, %v13274_v36 }
 0x4c4   :  { %v19489_v2 = vld [vmem:[#allocation7 + $0x214c] sm:$0xf]  ;;  %v17175_v7 = vor.u32 %v19425_v57, %v17172_v58  ;;  %9793 = vmatpush.bf16.msrb.mxu1 %v17463_v48  ;;  %9819 = vmatpush.bf16.msrb.mxu3 %v13627_v34  ;;  %v13531_v61 = vor.u32 %v18518_v56, %v13530_v26  ;;  %v9554_v57 = vpop.f32.mrf.mxu2  ;;  %v18446_v34 = vld [vmem:[#allocation7 + $0xac] sm:$0xf0]  ;;  %v9569_v56 = vpop.f32.mrf.mxu3 }
 0x4c5   :  { %v17428_v63 = vld [vmem:[#allocation7 + $0x2168] sm:$0xf0]  ;;  %v13466_v51 = vld [vmem:[#allocation7 + $0x250] sm:$0xf] }
 0x4c6   :  { %v17431_v8 = vor.u32 %v19489_v2, %v17428_v63  ;;  %v19417_v0 = vld [vmem:[#allocation7 + $0x1f0c] sm:$0xf]  ;;  %9781 = vmatpush.bf16.msrb.mxu0 %v17175_v7  ;;  %9807 = vmatpush.bf16.msrb.mxu2 %v13339_v1  ;;  %v13242_v2 = vld [vmem:[#allocation7 + $0x90] sm:$0xf]  ;;  %v9555_v63 = vadd.f32 %v9554_v57, %v9542_v9  ;;  %v9543_v7 = vpop.f32.mrf.mxu1 }
 0x4c7   :  { %v17140_v13 = vld [vmem:[#allocation7 + $0x1f28] sm:$0xf0]  ;;  %v18502_v33 = vld [vmem:[#allocation7 + $0x26c] sm:$0xf0] }
 0x4c8   :  { %v19481_v15 = vld [vmem:[#allocation7 + $0x210c] sm:$0xf]  ;;  %v17143_v30 = vor.u32 %v19417_v0, %v17140_v13  ;;  %9794 = vmatpush.bf16.msrb.mxu1 %v17431_v8  ;;  %9820 = vmatpush.bf16.msrb.mxu3 %v13595_v22  ;;  %v20237_v1 = vadd.f32 %v9567_v53, %v9555_v63  ;;  %v13243_v13 = vor.u32 %v18446_v34, %v13242_v2  ;;  %v13178_v9 = vld [vmem:[#allocation7 + $0x10] sm:$0xf] }
 0x4c9   :  { %v17396_v4 = vld [vmem:[#allocation7 + $0x2128] sm:$0xf0]  ;;  %v18430_v36 = vld [vmem:[#allocation7 + $0x2c] sm:$0xf0] }
 0x4ca   :  { %v17399_v6 = vor.u32 %v19481_v15, %v17396_v4  ;;  %v19409_v39 = vld [vmem:[#allocation7 + $0x1ecc] sm:$0xf]  ;;  %9782 = vmatpush.bf16.msrb.mxu0 %v17143_v30  ;;  %9808 = vmatpush.bf16.msrb.mxu2 %v13307_v24  ;;  %v13434_v52 = vld [vmem:[#allocation7 + $0x210] sm:$0xf] }
 0x4cb   :  { %v17108_v62 = vld [vmem:[#allocation7 + $0x1ee8] sm:$0xf0]  ;;  %v18494_v26 = vld [vmem:[#allocation7 + $0x22c] sm:$0xf0] }
 0x4cc   :  { %v19473_v40 = vld [vmem:[#allocation7 + $0x20cc] sm:$0xf]  ;;  %v17111_v3 = vor.u32 %v19409_v39, %v17108_v62  ;;  %9795 = vmatpush.bf16.msrb.mxu1 %v17399_v6  ;;  %9821 = vmatpush.bf16.msrb.mxu3 %v13563_v45  ;;  %v13211_v39 = vor.u32 %v18438_v43, %v13210_v59  ;;  %v13467_v45 = vor.u32 %v18502_v33, %v13466_v51  ;;  %v14682_v2 = vld [vmem:[#allocation7 + $0xbd0] sm:$0xf] }
 0x4cd   :  { %v17364_v47 = vld [vmem:[#allocation7 + $0x20e8] sm:$0xf0]  ;;  %v18806_v34 = vld [vmem:[#allocation7 + $0xbec] sm:$0xf0]  ;;  %v13435_v63 = vor.u32 %v18494_v26, %v13434_v52 }
 0x4ce   :  { %v17367_v49 = vor.u32 %v19473_v40, %v17364_v47  ;;  %v19401_v54 = vld [vmem:[#allocation7 + $0x1e8c] sm:$0xf]  ;;  %9783 = vmatpush.bf16.msrb.mxu0 %v17111_v3  ;;  %9809 = vmatpush.bf16.msrb.mxu2 %v13275_v17  ;;  %v9556_v47 = vpop.f32.mrf.mxu2  ;;  %v13914_v3 = vld [vmem:[#allocation7 + $0x5d0] sm:$0xf] }
 0x4cf   :  { %v17076_v25 = vld [vmem:[#allocation7 + $0x1ea8] sm:$0xf0]  ;;  %v14170_v17 = vld [vmem:[#allocation7 + $0x7d0] sm:$0xf] }
 0x4d0   :  { %v19465_v48 = vld [vmem:[#allocation7 + $0x208c] sm:$0xf]  ;;  %v17079_v8 = vor.u32 %v19401_v54, %v17076_v25  ;;  %9796 = vmatpush.bf16.msrb.mxu1 %v17367_v49  ;;  %9822 = vmatpush.bf16.msrb.mxu3 %v13531_v61  ;;  %v18614_v49 = vld [vmem:[#allocation7 + $0x5ec] sm:$0xf0] }
 0x4d1   :  { %v17332_v58 = vld [vmem:[#allocation7 + $0x20a8] sm:$0xf0]  ;;  %v18678_v25 = vld [vmem:[#allocation7 + $0x7ec] sm:$0xf0]  ;;  %v13915_v53 = vor.u32 %v18614_v49, %v13914_v3 }
 0x4d2   :  { %v17335_v0 = vor.u32 %v19465_v48, %v17332_v58  ;;  %v19393_v15 = vld [vmem:[#allocation7 + $0x1e4c] sm:$0xf]  ;;  %9784 = vmatpush.bf16.msrb.mxu0 %v17079_v8  ;;  %9810 = vmatpush.bf16.msrb.mxu2 %v13243_v13  ;;  %v14426_v48 = vld [vmem:[#allocation7 + $0x9d0] sm:$0xf]  ;;  %v13179_v58 = vor.u32 %v18430_v36, %v13178_v9  ;;  %v14171_v37 = vor.u32 %v18678_v25, %v14170_v17 }
 0x4d3   :  { %v17044_v22 = vld [vmem:[#allocation7 + $0x1e68] sm:$0xf0]  ;;  %v18742_v61 = vld [vmem:[#allocation7 + $0x9ec] sm:$0xf0] }
 0x4d4   :  { %v19457_v4 = vld [vmem:[#allocation7 + $0x204c] sm:$0xf]  ;;  %v17047_v38 = vor.u32 %v19393_v15, %v17044_v22  ;;  %9797 = vmatpush.bf16.msrb.mxu1 %v17335_v0  ;;  %9823 = vmatpush.bf16.msrb.mxu3 %v13499_v10  ;;  %v14427_v5 = vor.u32 %v18742_v61, %v14426_v48  ;;  %v13882_v60 = vld [vmem:[#allocation7 + $0x590] sm:$0xf]  ;;  %v14683_v0 = vor.u32 %v18806_v34, %v14682_v2 }
 0x4d5   :  { %v17300_v21 = vld [vmem:[#allocation7 + $0x2068] sm:$0xf0]  ;;  %v18606_v7 = vld [vmem:[#allocation7 + $0x5ac] sm:$0xf0] }
 0x4d6   :  { %v19385_v30 = vld [vmem:[#allocation7 + $0x1e0c] sm:$0xf]  ;;  %v17303_v24 = vor.u32 %v19457_v4, %v17300_v21  ;;  %9785 = vmatpush.bf16.msrb.mxu0 %v17047_v38  ;;  %9811 = vmatpush.bf16.msrb.mxu2 %v13211_v39  ;;  %v14138_v8 = vld [vmem:[#allocation7 + $0x790] sm:$0xf]  ;;  %v13883_v21 = vor.u32 %v18606_v7, %v13882_v60 }
 0x4d7   :  { %v17012_v6 = vld [vmem:[#allocation7 + $0x1e28] sm:$0xf0]  ;;  %v18670_v13 = vld [vmem:[#allocation7 + $0x7ac] sm:$0xf0] }
 0x4d8   :  { %v19449_v62 = vld [vmem:[#allocation7 + $0x200c] sm:$0xf]  ;;  %v17015_v54 = vor.u32 %v19385_v30, %v17012_v6  ;;  %9798 = vmatpush.bf16.msrb.mxu1 %v17303_v24  ;;  %9824 = vmatpush.bf16.msrb.mxu3 %v13467_v45  ;;  %v14394_v15 = vld [vmem:[#allocation7 + $0x990] sm:$0xf]  ;;  %v14139_v59 = vor.u32 %v18670_v13, %v14138_v8 }
 0x4d9   :  { %v17268_v40 = vld [vmem:[#allocation7 + $0x2028] sm:$0xf0]  ;;  %v18734_v22 = vld [vmem:[#allocation7 + $0x9ac] sm:$0xf0] }
 0x4da   :  { %v17271_v57 = vor.u32 %v19449_v62, %v17268_v40  ;;  %9786 = vmatpush.bf16.msrb.mxu0 %v17015_v54  ;;  %9812 = vmatpush.bf16.msrb.mxu2 %v13179_v58  ;;  %v14650_v4 = vld [vmem:[#allocation7 + $0xb90] sm:$0xf]  ;;  %v14395_v43 = vor.u32 %v18734_v22, %v14394_v15  ;;  %v9580_v54 = vpop.f32.mrf.mxu0  ;;  %v9593_v58 = vpop.f32.mrf.mxu1 }
 0x4db   :  { %v18798_v10 = vld [vmem:[#allocation7 + $0xbac] sm:$0xf0]  ;;  %v20244_v61 = vadd.f32 %v9580_v54, %v20237_v1 }
 0x4dc   :  { %9799 = vmatpush.bf16.msrb.mxu1 %v17271_v57  ;;  %9825 = vmatpush.bf16.msrb.mxu3 %v13435_v63  ;;  %v13850_v51 = vld [vmem:[#allocation7 + $0x550] sm:$0xf]  ;;  %v14651_v30 = vor.u32 %v18798_v10, %v14650_v4  ;;  %v3468_v57 = vperm.slane %v20141_v19, 3 }
 0x4dd   :  { %v18598_v33 = vld [vmem:[#allocation7 + $0x56c] sm:$0xf0]  ;;  %9787 = vmatmul.bf16.vlgmr.msrb.gmra.mxu0 %v20136_v18  ;;  %9813 = vmatmul.bf16.vlgmr.msrb.gmra.mxu2 %v20004_v50 }
 0x4de   :  { %9831 = vmatpush.bf16.msra.mxu0 %v13915_v53  ;;  %9857 = vmatpush.bf16.msra.mxu2 %v14427_v5  ;;  %v14106_v38 = vld [vmem:[#allocation7 + $0x750] sm:$0xf]  ;;  %v13851_v9 = vor.u32 %v18598_v33, %v13850_v51  ;;  %v9594_v22 = vadd.f32 %v9593_v58, %v3468_v57  ;;  %v9606_v33 = vpop.f32.mrf.mxu2 }
 0x4df   :  { %v18662_v6 = vld [vmem:[#allocation7 + $0x76c] sm:$0xf0]  ;;  %9800 = vmatmul.bf16.vlgmr.msrb.gmra.mxu1 %v20146_v32  ;;  %9826 = vmatmul.bf16.vlgmr.msrb.gmra.mxu3 %v20008_v55 }
 0x4e0   :  { %9844 = vmatpush.bf16.msra.mxu1 %v14171_v37  ;;  %9870 = vmatpush.bf16.msra.mxu3 %v14683_v0  ;;  %v14362_v24 = vld [vmem:[#allocation7 + $0x950] sm:$0xf]  ;;  %v14107_v45 = vor.u32 %v18662_v6, %v14106_v38 }
 0x4e1   :  { %v18726_v39 = vld [vmem:[#allocation7 + $0x96c] sm:$0xf0] }
 0x4e2   :  { %v14618_v62 = vld [vmem:[#allocation7 + $0xb50] sm:$0xf]  ;;  %9832 = vmatpush.bf16.msra.mxu0 %v13883_v21  ;;  %9858 = vmatpush.bf16.msra.mxu2 %v14395_v43  ;;  %v14363_v47 = vor.u32 %v18726_v39, %v14362_v24  ;;  %v9607_v24 = vadd.f32 %v9606_v33, %v9594_v22  ;;  %v9619_v39 = vpop.f32.mrf.mxu3 }
 0x4e3   :  { %v18790_v40 = vld [vmem:[#allocation7 + $0xb6c] sm:$0xf0] }
 0x4e4   :  { %9845 = vmatpush.bf16.msra.mxu1 %v14139_v59  ;;  %v13818_v36 = vld [vmem:[#allocation7 + $0x510] sm:$0xf]  ;;  %9871 = vmatpush.bf16.msra.mxu3 %v14651_v30  ;;  %v14619_v56 = vor.u32 %v18790_v40, %v14618_v62  ;;  %v9582_v62 = vpop.f32.mrf.mxu0 }
 0x4e5   :  { %v18590_v52 = vld [vmem:[#allocation7 + $0x52c] sm:$0xf0] }
 0x4e6   :  { %v14074_v26 = vld [vmem:[#allocation7 + $0x710] sm:$0xf]  ;;  %9833 = vmatpush.bf16.msra.mxu0 %v13851_v9  ;;  %v13819_v2 = vor.u32 %v18590_v52, %v13818_v36  ;;  %9859 = vmatpush.bf16.msra.mxu2 %v14363_v47  ;;  %v20247_v36 = vadd.f32 %v9619_v39, %v9607_v24 }
 0x4e7   :  { %v18654_v3 = vld [vmem:[#allocation7 + $0x72c] sm:$0xf0] }
 0x4e8   :  { %v14330_v49 = vld [vmem:[#allocation7 + $0x910] sm:$0xf]  ;;  %9846 = vmatpush.bf16.msra.mxu1 %v14107_v45  ;;  %v14075_v34 = vor.u32 %v18654_v3, %v14074_v26  ;;  %9872 = vmatpush.bf16.msra.mxu3 %v14619_v56  ;;  %v9595_v45 = vpop.f32.mrf.mxu1 }
 0x4e9   :  { %v18718_v17 = vld [vmem:[#allocation7 + $0x92c] sm:$0xf0] }
 0x4ea   :  { %v14586_v25 = vld [vmem:[#allocation7 + $0xb10] sm:$0xf]  ;;  %v14331_v63 = vor.u32 %v18718_v17, %v14330_v49  ;;  %9834 = vmatpush.bf16.msra.mxu0 %v13819_v2  ;;  %v9621_v22 = vpop.f32.mrf.mxu3 }
 0x4eb   :  { %v18782_v48 = vld [vmem:[#allocation7 + $0xb2c] sm:$0xf0] }
 0x4ec   :  { %v13786_v53 = vld [vmem:[#allocation7 + $0x4d0] sm:$0xf]  ;;  %v14587_v60 = vor.u32 %v18782_v48, %v14586_v25  ;;  %9847 = vmatpush.bf16.msra.mxu1 %v14075_v34  ;;  %9860 = vmatpush.bf16.msra.mxu2 %v14331_v63 }
 0x4ed   :  { %v18582_v37 = vld [vmem:[#allocation7 + $0x4ec] sm:$0xf0] }
 0x4ee   :  { %v14042_v5 = vld [vmem:[#allocation7 + $0x6d0] sm:$0xf]  ;;  %v13787_v1 = vor.u32 %v18582_v37, %v13786_v53  ;;  %9873 = vmatpush.bf16.msra.mxu3 %v14587_v60 }
 0x4ef   :  { %v18646_v7 = vld [vmem:[#allocation7 + $0x6ec] sm:$0xf0] }
 0x4f0   :  { %v14298_v8 = vld [vmem:[#allocation7 + $0x8d0] sm:$0xf]  ;;  %v14043_v4 = vor.u32 %v18646_v7, %v14042_v5  ;;  %9835 = vmatpush.bf16.msra.mxu0 %v13787_v1 }
 0x4f1   :  { %v18710_v0 = vld [vmem:[#allocation7 + $0x8ec] sm:$0xf0] }
 0x4f2   :  { %v14554_v13 = vld [vmem:[#allocation7 + $0xad0] sm:$0xf]  ;;  %v14299_v10 = vor.u32 %v18710_v0, %v14298_v8  ;;  %9848 = vmatpush.bf16.msra.mxu1 %v14043_v4  ;;  %v9608_v0 = vpop.f32.mrf.mxu2 }
 0x4f3   :  { %v18774_v15 = vld [vmem:[#allocation7 + $0xaec] sm:$0xf0] }
 0x4f4   :  { %v13754_v21 = vld [vmem:[#allocation7 + $0x490] sm:$0xf]  ;;  %v14555_v51 = vor.u32 %v18774_v15, %v14554_v13  ;;  %9861 = vmatpush.bf16.msra.mxu2 %v14299_v10 }
 0x4f5   :  { %v18574_v59 = vld [vmem:[#allocation7 + $0x4ac] sm:$0xf0] }
 0x4f6   :  { %v14010_v43 = vld [vmem:[#allocation7 + $0x690] sm:$0xf]  ;;  %v13755_v47 = vor.u32 %v18574_v59, %v13754_v21  ;;  %9874 = vmatpush.bf16.msra.mxu3 %v14555_v51 }
 0x4f7   :  { %v18638_v38 = vld [vmem:[#allocation7 + $0x6ac] sm:$0xf0] }
 0x4f8   :  { %v14266_v30 = vld [vmem:[#allocation7 + $0x890] sm:$0xf]  ;;  %v14011_v52 = vor.u32 %v18638_v38, %v14010_v43  ;;  %9836 = vmatpush.bf16.msra.mxu0 %v13755_v47 }
 0x4f9   :  { %v18702_v6 = vld [vmem:[#allocation7 + $0x8ac] sm:$0xf0] }
 0x4fa   :  { %v14522_v40 = vld [vmem:[#allocation7 + $0xa90] sm:$0xf]  ;;  %v14267_v26 = vor.u32 %v18702_v6, %v14266_v30  ;;  %9849 = vmatpush.bf16.msra.mxu1 %v14011_v52 }
 0x4fb   :  { %v18766_v9 = vld [vmem:[#allocation7 + $0xaac] sm:$0xf0] }
 0x4fc   :  { %v13722_v56 = vld [vmem:[#allocation7 + $0x450] sm:$0xf]  ;;  %v14523_v17 = vor.u32 %v18766_v9, %v14522_v40  ;;  %9862 = vmatpush.bf16.msra.mxu2 %v14267_v26 }
 0x4fd   :  { %v18566_v3 = vld [vmem:[#allocation7 + $0x46c] sm:$0xf0] }
 0x4fe   :  { %v13978_v49 = vld [vmem:[#allocation7 + $0x650] sm:$0xf]  ;;  %v13723_v2 = vor.u32 %v18566_v3, %v13722_v56  ;;  %9875 = vmatpush.bf16.msra.mxu3 %v14523_v17 }
 0x4ff   :  { %v18630_v54 = vld [vmem:[#allocation7 + $0x66c] sm:$0xf0] }
 0x500   :  { %v14234_v25 = vld [vmem:[#allocation7 + $0x850] sm:$0xf]  ;;  %v13979_v53 = vor.u32 %v18630_v54, %v13978_v49  ;;  %9837 = vmatpush.bf16.msra.mxu0 %v13723_v2 }
 0x501   :  { %v18694_v48 = vld [vmem:[#allocation7 + $0x86c] sm:$0xf0] }
 0x502   :  { %v14490_v57 = vld [vmem:[#allocation7 + $0xa50] sm:$0xf]  ;;  %v14235_v37 = vor.u32 %v18694_v48, %v14234_v25  ;;  %9850 = vmatpush.bf16.msra.mxu1 %v13979_v53 }
 0x503   :  { %v18758_v58 = vld [vmem:[#allocation7 + $0xa6c] sm:$0xf0] }
 0x504   :  { %v13690_v34 = vld [vmem:[#allocation7 + $0x410] sm:$0xf]  ;;  %v14491_v8 = vor.u32 %v18758_v58, %v14490_v57  ;;  %9863 = vmatpush.bf16.msra.mxu2 %v14235_v37 }
 0x505   :  { %v18558_v63 = vld [vmem:[#allocation7 + $0x42c] sm:$0xf0] }
 0x506   :  { %v13946_v5 = vld [vmem:[#allocation7 + $0x610] sm:$0xf]  ;;  %v13691_v59 = vor.u32 %v18558_v63, %v13690_v34  ;;  %9876 = vmatpush.bf16.msra.mxu3 %v14491_v8 }
 0x507   :  { %v18622_v60 = vld [vmem:[#allocation7 + $0x62c] sm:$0xf0] }
 0x508   :  { %v14202_v7 = vld [vmem:[#allocation7 + $0x810] sm:$0xf]  ;;  %v13947_v38 = vor.u32 %v18622_v60, %v13946_v5  ;;  %9838 = vmatpush.bf16.msra.mxu0 %v13691_v59 }
 0x509   :  { %v18686_v13 = vld [vmem:[#allocation7 + $0x82c] sm:$0xf0] }
 0x50a   :  { %v14458_v15 = vld [vmem:[#allocation7 + $0xa10] sm:$0xf]  ;;  %v14203_v30 = vor.u32 %v18686_v13, %v14202_v7  ;;  %9851 = vmatpush.bf16.msra.mxu1 %v13947_v38 }
 0x50b   :  { %v18750_v1 = vld [vmem:[#allocation7 + $0xa2c] sm:$0xf0]  ;;  %9839 = vmatmul.bf16.vlgmr.msra.gmra.mxu0 %v20045_v23 }
 0x50c   :  { %v14938_v4 = vld [vmem:[#allocation7 + $0xdd0] sm:$0xf]  ;;  %v14459_v39 = vor.u32 %v18750_v1, %v14458_v15  ;;  %9864 = vmatpush.bf16.msra.mxu2 %v14203_v30  ;;  %v9645_v30 = vpop.f32.mrf.mxu1 }
 0x50d   :  { %v18870_v10 = vld [vmem:[#allocation7 + $0xdec] sm:$0xf0]  ;;  %9852 = vmatmul.bf16.vlgmr.msra.gmra.mxu1 %v20047_v28 }
 0x50e   :  { %v15194_v21 = vld [vmem:[#allocation7 + $0xfd0] sm:$0xf]  ;;  %v14939_v62 = vor.u32 %v18870_v10, %v14938_v4  ;;  %9877 = vmatpush.bf16.msra.mxu3 %v14459_v39 }
 0x50f   :  { %v18934_v43 = vld [vmem:[#allocation7 + $0xfec] sm:$0xf0]  ;;  %9865 = vmatmul.bf16.vlgmr.msra.gmra.mxu2 %v20052_v16 }
 0x510   :  { %v15450_v51 = vld [vmem:[#allocation7 + $0x11d0] sm:$0xf]  ;;  %v15195_v40 = vor.u32 %v18934_v43, %v15194_v21  ;;  %9883 = vmatpush.bf16.msrb.mxu0 %v14939_v62  ;;  %v9632_v43 = vpop.f32.mrf.mxu0 }
 0x511   :  { %v18998_v33 = vld [vmem:[#allocation7 + $0x11ec] sm:$0xf0]  ;;  %9878 = vmatmul.bf16.vlgmr.msra.gmra.mxu3 %v20057_v29  ;;  %v9633_v38 = vadd.f32 %v9632_v43, %v20247_v36 }
 0x512   :  { %v15706_v6 = vld [vmem:[#allocation7 + $0x13d0] sm:$0xf]  ;;  %v15451_v9 = vor.u32 %v18998_v33, %v15450_v51  ;;  %9896 = vmatpush.bf16.msrb.mxu1 %v15195_v40 }
 0x513   :  { %v19062_v24 = vld [vmem:[#allocation7 + $0x13ec] sm:$0xf0] }
 0x514   :  { %v14906_v45 = vld [vmem:[#allocation7 + $0xd90] sm:$0xf]  ;;  %v15707_v26 = vor.u32 %v19062_v24, %v15706_v6  ;;  %9909 = vmatpush.bf16.msrb.mxu2 %v15451_v9 }
 0x515   :  { %v18862_v47 = vld [vmem:[#allocation7 + $0xdac] sm:$0xf0] }
 0x516   :  { %v15162_v52 = vld [vmem:[#allocation7 + $0xf90] sm:$0xf]  ;;  %v14907_v25 = vor.u32 %v18862_v47, %v14906_v45  ;;  %9922 = vmatpush.bf16.msrb.mxu3 %v15707_v26  ;;  %v9646_v45 = vadd.f32 %v9645_v30, %v9633_v38 }
 0x517   :  { %v18926_v56 = vld [vmem:[#allocation7 + $0xfac] sm:$0xf0] }
 0x518   :  { %v15418_v3 = vld [vmem:[#allocation7 + $0x1190] sm:$0xf]  ;;  %v15163_v48 = vor.u32 %v18926_v56, %v15162_v52  ;;  %9884 = vmatpush.bf16.msrb.mxu0 %v14907_v25 }
 0x519   :  { %v18990_v49 = vld [vmem:[#allocation7 + $0x11ac] sm:$0xf0] }
 0x51a   :  { %v15674_v17 = vld [vmem:[#allocation7 + $0x1390] sm:$0xf]  ;;  %v15419_v57 = vor.u32 %v18990_v49, %v15418_v3  ;;  %9897 = vmatpush.bf16.msrb.mxu1 %v15163_v48 }
 0x51b   :  { %v19054_v54 = vld [vmem:[#allocation7 + $0x13ac] sm:$0xf0] }
 0x51c   :  { %v14874_v58 = vld [vmem:[#allocation7 + $0xd50] sm:$0xf]  ;;  %v15675_v63 = vor.u32 %v19054_v54, %v15674_v17  ;;  %9910 = vmatpush.bf16.msrb.mxu2 %v15419_v57 }
 0x51d   :  { %v18854_v2 = vld [vmem:[#allocation7 + $0xd6c] sm:$0xf0] }
 0x51e   :  { %v15130_v34 = vld [vmem:[#allocation7 + $0xf50] sm:$0xf]  ;;  %v14875_v8 = vor.u32 %v18854_v2, %v14874_v58  ;;  %9923 = vmatpush.bf16.msrb.mxu3 %v15675_v63  ;;  %v9658_v2 = vpop.f32.mrf.mxu2 }
 0x51f   :  { %v18918_v53 = vld [vmem:[#allocation7 + $0xf6c] sm:$0xf0] }
 0x520   :  { %v15386_v37 = vld [vmem:[#allocation7 + $0x1150] sm:$0xf]  ;;  %v15131_v0 = vor.u32 %v18918_v53, %v15130_v34  ;;  %9885 = vmatpush.bf16.msrb.mxu0 %v14875_v8 }
 0x521   :  { %v18982_v5 = vld [vmem:[#allocation7 + $0x116c] sm:$0xf0] }
 0x522   :  { %v15642_v60 = vld [vmem:[#allocation7 + $0x1350] sm:$0xf]  ;;  %v15387_v13 = vor.u32 %v18982_v5, %v15386_v37  ;;  %9898 = vmatpush.bf16.msrb.mxu1 %v15131_v0  ;;  %v9659_v37 = vadd.f32 %v9658_v2, %v9646_v45  ;;  %v9671_v5 = vpop.f32.mrf.mxu3  ;;  %v9647_v0 = vpop.f32.mrf.mxu1 }
 0x523   :  { %v19046_v7 = vld [vmem:[#allocation7 + $0x136c] sm:$0xf0] }
 0x524   :  { %v14842_v15 = vld [vmem:[#allocation7 + $0xd10] sm:$0xf]  ;;  %v15643_v4 = vor.u32 %v19046_v7, %v15642_v60  ;;  %9911 = vmatpush.bf16.msrb.mxu2 %v15387_v13  ;;  %v9634_v60 = vpop.f32.mrf.mxu0 }
 0x525   :  { %v18846_v1 = vld [vmem:[#allocation7 + $0xd2c] sm:$0xf0] }
 0x526   :  { %v15098_v22 = vld [vmem:[#allocation7 + $0xf10] sm:$0xf]  ;;  %v14843_v6 = vor.u32 %v18846_v1, %v14842_v15  ;;  %9924 = vmatpush.bf16.msrb.mxu3 %v15643_v4  ;;  %v20254_v15 = vadd.f32 %v9671_v5, %v9659_v37 }
 0x527   :  { %v18910_v10 = vld [vmem:[#allocation7 + $0xf2c] sm:$0xf0] }
 0x528   :  { %v15354_v21 = vld [vmem:[#allocation7 + $0x1110] sm:$0xf]  ;;  %v15099_v24 = vor.u32 %v18910_v10, %v15098_v22  ;;  %9886 = vmatpush.bf16.msrb.mxu0 %v14843_v6 }
 0x529   :  { %v18974_v59 = vld [vmem:[#allocation7 + $0x112c] sm:$0xf0] }
 0x52a   :  { %v15610_v51 = vld [vmem:[#allocation7 + $0x1310] sm:$0xf]  ;;  %v15355_v39 = vor.u32 %v18974_v59, %v15354_v21  ;;  %9899 = vmatpush.bf16.msrb.mxu1 %v15099_v24 }
 0x52b   :  { %v19038_v33 = vld [vmem:[#allocation7 + $0x132c] sm:$0xf0] }
 0x52c   :  { %v14810_v62 = vld [vmem:[#allocation7 + $0xcd0] sm:$0xf]  ;;  %v15611_v47 = vor.u32 %v19038_v33, %v15610_v51  ;;  %9912 = vmatpush.bf16.msrb.mxu2 %v15355_v39 }
 0x52d   :  { %v18838_v40 = vld [vmem:[#allocation7 + $0xcec] sm:$0xf0] }
 0x52e   :  { %v15066_v9 = vld [vmem:[#allocation7 + $0xed0] sm:$0xf]  ;;  %v14811_v17 = vor.u32 %v18838_v40, %v14810_v62  ;;  %9925 = vmatpush.bf16.msrb.mxu3 %v15611_v47 }
 0x52f   :  { %v18902_v52 = vld [vmem:[#allocation7 + $0xeec] sm:$0xf0] }
 0x530   :  { %v15322_v26 = vld [vmem:[#allocation7 + $0x10d0] sm:$0xf]  ;;  %v15067_v36 = vor.u32 %v18902_v52, %v15066_v9  ;;  %9887 = vmatpush.bf16.msrb.mxu0 %v14811_v17  ;;  %v9673_v17 = vpop.f32.mrf.mxu3 }
 0x531   :  { %v18966_v56 = vld [vmem:[#allocation7 + $0x10ec] sm:$0xf0] }
 0x532   :  { %v15578_v3 = vld [vmem:[#allocation7 + $0x12d0] sm:$0xf]  ;;  %v15323_v54 = vor.u32 %v18966_v56, %v15322_v26  ;;  %9900 = vmatpush.bf16.msrb.mxu1 %v15067_v36  ;;  %v9660_v26 = vpop.f32.mrf.mxu2 }
 0x533   :  { %v19030_v49 = vld [vmem:[#allocation7 + $0x12ec] sm:$0xf0] }
 0x534   :  { %v14778_v25 = vld [vmem:[#allocation7 + $0xc90] sm:$0xf]  ;;  %v15579_v58 = vor.u32 %v19030_v49, %v15578_v3  ;;  %9913 = vmatpush.bf16.msrb.mxu2 %v15323_v54 }
 0x535   :  { %v18830_v48 = vld [vmem:[#allocation7 + $0xcac] sm:$0xf0] }
 0x536   :  { %v15034_v57 = vld [vmem:[#allocation7 + $0xe90] sm:$0xf]  ;;  %v14779_v13 = vor.u32 %v18830_v48, %v14778_v25  ;;  %9926 = vmatpush.bf16.msrb.mxu3 %v15579_v58 }
 0x537   :  { %v18894_v34 = vld [vmem:[#allocation7 + $0xeac] sm:$0xf0] }
 0x538   :  { %v15290_v63 = vld [vmem:[#allocation7 + $0x1090] sm:$0xf]  ;;  %v15035_v1 = vor.u32 %v18894_v34, %v15034_v57  ;;  %9888 = vmatpush.bf16.msrb.mxu0 %v14779_v13 }
 0x539   :  { %v18958_v53 = vld [vmem:[#allocation7 + $0x10ac] sm:$0xf0] }
 0x53a   :  { %v15546_v7 = vld [vmem:[#allocation7 + $0x1290] sm:$0xf]  ;;  %v15291_v22 = vor.u32 %v18958_v53, %v15290_v63  ;;  %9901 = vmatpush.bf16.msrb.mxu1 %v15035_v1 }
 0x53b   :  { %v19022_v8 = vld [vmem:[#allocation7 + $0x12ac] sm:$0xf0] }
 0x53c   :  { %v14746_v4 = vld [vmem:[#allocation7 + $0xc50] sm:$0xf]  ;;  %v15547_v59 = vor.u32 %v19022_v8, %v15546_v7  ;;  %9914 = vmatpush.bf16.msrb.mxu2 %v15291_v22 }
 0x53d   :  { %v18822_v10 = vld [vmem:[#allocation7 + $0xc6c] sm:$0xf0] }
 0x53e   :  { %v15002_v21 = vld [vmem:[#allocation7 + $0xe50] sm:$0xf]  ;;  %v14747_v6 = vor.u32 %v18822_v10, %v14746_v4  ;;  %9927 = vmatpush.bf16.msrb.mxu3 %v15547_v59 }
 0x53f   :  { %v18886_v43 = vld [vmem:[#allocation7 + $0xe6c] sm:$0xf0] }
 0x540   :  { %v15258_v51 = vld [vmem:[#allocation7 + $0x1050] sm:$0xf]  ;;  %v15003_v62 = vor.u32 %v18886_v43, %v15002_v21  ;;  %9889 = vmatpush.bf16.msrb.mxu0 %v14747_v6 }
 0x541   :  { %v18950_v33 = vld [vmem:[#allocation7 + $0x106c] sm:$0xf0] }
 0x542   :  { %v15514_v38 = vld [vmem:[#allocation7 + $0x1250] sm:$0xf]  ;;  %v15259_v40 = vor.u32 %v18950_v33, %v15258_v51  ;;  %9902 = vmatpush.bf16.msrb.mxu1 %v15003_v62 }
 0x543   :  { %v19014_v30 = vld [vmem:[#allocation7 + $0x126c] sm:$0xf0] }
 0x544   :  { %v14714_v24 = vld [vmem:[#allocation7 + $0xc10] sm:$0xf]  ;;  %v15515_v52 = vor.u32 %v19014_v30, %v15514_v38  ;;  %9915 = vmatpush.bf16.msrb.mxu2 %v15259_v40 }
 0x545   :  { %v18814_v39 = vld [vmem:[#allocation7 + $0xc2c] sm:$0xf0] }
 0x546   :  { %v14970_v9 = vld [vmem:[#allocation7 + $0xe10] sm:$0xf]  ;;  %v14715_v48 = vor.u32 %v18814_v39, %v14714_v24  ;;  %9928 = vmatpush.bf16.msrb.mxu3 %v15515_v52 }
 0x547   :  { %v18878_v45 = vld [vmem:[#allocation7 + $0xe2c] sm:$0xf0] }
 0x548   :  { %v15226_v47 = vld [vmem:[#allocation7 + $0x1010] sm:$0xf]  ;;  %v14971_v34 = vor.u32 %v18878_v45, %v14970_v9  ;;  %9890 = vmatpush.bf16.msrb.mxu0 %v14715_v48 }
 0x549   :  { %v18942_v56 = vld [vmem:[#allocation7 + $0x102c] sm:$0xf0] }
 0x54a   :  { %v15482_v3 = vld [vmem:[#allocation7 + $0x1210] sm:$0xf]  ;;  %v15227_v63 = vor.u32 %v18942_v56, %v15226_v47  ;;  %9903 = vmatpush.bf16.msrb.mxu1 %v14971_v34 }
 0x54b   :  { %v19006_v49 = vld [vmem:[#allocation7 + $0x122c] sm:$0xf0]  ;;  %9891 = vmatmul.bf16.vlgmr.msrb.gmra.mxu0 %v20091_v41 }
 0x54c   :  { %v15962_v36 = vld [vmem:[#allocation7 + $0x15d0] sm:$0xf]  ;;  %v15483_v5 = vor.u32 %v19006_v49, %v15482_v3  ;;  %9916 = vmatpush.bf16.msrb.mxu2 %v15227_v63  ;;  %v9697_v63 = vpop.f32.mrf.mxu1 }
 0x54d   :  { %v19126_v54 = vld [vmem:[#allocation7 + $0x15ec] sm:$0xf0]  ;;  %9904 = vmatmul.bf16.vlgmr.msrb.gmra.mxu1 %v20095_v42 }
 0x54e   :  { %v16218_v25 = vld [vmem:[#allocation7 + $0x17d0] sm:$0xf]  ;;  %v15963_v60 = vor.u32 %v19126_v54, %v15962_v36  ;;  %9929 = vmatpush.bf16.msrb.mxu3 %v15483_v5 }
 0x54f   :  { %v19190_v57 = vld [vmem:[#allocation7 + $0x17ec] sm:$0xf0]  ;;  %9917 = vmatmul.bf16.vlgmr.msrb.gmra.mxu2 %v20105_v35 }
 0x550   :  { %v16474_v58 = vld [vmem:[#allocation7 + $0x19d0] sm:$0xf]  ;;  %v16219_v7 = vor.u32 %v19190_v57, %v16218_v25  ;;  %9935 = vmatpush.bf16.msra.mxu0 %v15963_v60  ;;  %v9684_v57 = vpop.f32.mrf.mxu0 }
 0x551   :  { %v19254_v2 = vld [vmem:[#allocation7 + $0x19ec] sm:$0xf0]  ;;  %9930 = vmatmul.bf16.vlgmr.msrb.gmra.mxu3 %v20097_v44  ;;  %v9685_v34 = vadd.f32 %v9684_v57, %v20254_v15 }
 0x552   :  { %v16730_v53 = vld [vmem:[#allocation7 + $0x1bd0] sm:$0xf]  ;;  %v16475_v8 = vor.u32 %v19254_v2, %v16474_v58  ;;  %9948 = vmatpush.bf16.msra.mxu1 %v16219_v7 }
 0x553   :  { %v19318_v37 = vld [vmem:[#allocation7 + $0x1bec] sm:$0xf0] }
 0x554   :  { %v15930_v0 = vld [vmem:[#allocation7 + $0x1590] sm:$0xf]  ;;  %v16731_v22 = vor.u32 %v19318_v37, %v16730_v53  ;;  %9961 = vmatpush.bf16.msra.mxu2 %v16475_v8 }
 0x555   :  { %v19118_v13 = vld [vmem:[#allocation7 + $0x15ac] sm:$0xf0] }
 0x556   :  { %v16186_v1 = vld [vmem:[#allocation7 + $0x1790] sm:$0xf]  ;;  %v15931_v51 = vor.u32 %v19118_v13, %v15930_v0  ;;  %9974 = vmatpush.bf16.msra.mxu3 %v16731_v22  ;;  %v9698_v0 = vadd.f32 %v9697_v63, %v9685_v34 }
 0x557   :  { %v19182_v4 = vld [vmem:[#allocation7 + $0x17ac] sm:$0xf0] }
 0x558   :  { %v16442_v10 = vld [vmem:[#allocation7 + $0x1990] sm:$0xf]  ;;  %v16187_v33 = vor.u32 %v19182_v4, %v16186_v1  ;;  %9936 = vmatpush.bf16.msra.mxu0 %v15931_v51 }
 0x559   :  { %v19246_v21 = vld [vmem:[#allocation7 + $0x19ac] sm:$0xf0] }
 0x55a   :  { %v16698_v59 = vld [vmem:[#allocation7 + $0x1b90] sm:$0xf]  ;;  %v16443_v38 = vor.u32 %v19246_v21, %v16442_v10  ;;  %9949 = vmatpush.bf16.msra.mxu1 %v16187_v33 }
 0x55b   :  { %v19310_v43 = vld [vmem:[#allocation7 + $0x1bac] sm:$0xf0] }
 0x55c   :  { %v15898_v30 = vld [vmem:[#allocation7 + $0x1550] sm:$0xf]  ;;  %v16699_v39 = vor.u32 %v19310_v43, %v16698_v59  ;;  %9962 = vmatpush.bf16.msra.mxu2 %v16443_v38 }
 0x55d   :  { %v19110_v6 = vld [vmem:[#allocation7 + $0x156c] sm:$0xf0] }
 0x55e   :  { %v16154_v24 = vld [vmem:[#allocation7 + $0x1750] sm:$0xf]  ;;  %v15899_v52 = vor.u32 %v19110_v6, %v15898_v30  ;;  %9975 = vmatpush.bf16.msra.mxu3 %v16699_v39  ;;  %v9710_v6 = vpop.f32.mrf.mxu2 }
 0x55f   :  { %v19174_v62 = vld [vmem:[#allocation7 + $0x176c] sm:$0xf0] }
 0x560   :  { %v16410_v40 = vld [vmem:[#allocation7 + $0x1950] sm:$0xf]  ;;  %v16155_v26 = vor.u32 %v19174_v62, %v16154_v24  ;;  %9937 = vmatpush.bf16.msra.mxu0 %v15899_v52 }
 0x561   :  { %v19238_v9 = vld [vmem:[#allocation7 + $0x196c] sm:$0xf0] }
 0x562   :  { %v16666_v45 = vld [vmem:[#allocation7 + $0x1b50] sm:$0xf]  ;;  %v16411_v56 = vor.u32 %v19238_v9, %v16410_v40  ;;  %9950 = vmatpush.bf16.msra.mxu1 %v16155_v26  ;;  %v9711_v40 = vadd.f32 %v9710_v6, %v9698_v0  ;;  %v9723_v9 = vpop.f32.mrf.mxu3  ;;  %v9699_v26 = vpop.f32.mrf.mxu1 }
 0x563   :  { %v19302_v47 = vld [vmem:[#allocation7 + $0x1b6c] sm:$0xf0] }
 0x564   :  { %v15866_v3 = vld [vmem:[#allocation7 + $0x1510] sm:$0xf]  ;;  %v16667_v36 = vor.u32 %v19302_v47, %v16666_v45  ;;  %9963 = vmatpush.bf16.msra.mxu2 %v16411_v56  ;;  %v9686_v45 = vpop.f32.mrf.mxu0 }
 0x565   :  { %v19102_v49 = vld [vmem:[#allocation7 + $0x152c] sm:$0xf0] }
 0x566   :  { %v16122_v17 = vld [vmem:[#allocation7 + $0x1710] sm:$0xf]  ;;  %v15867_v53 = vor.u32 %v19102_v49, %v15866_v3  ;;  %9976 = vmatpush.bf16.msra.mxu3 %v16667_v36  ;;  %v20261_v3 = vadd.f32 %v9723_v9, %v9711_v40  ;;  %v13404_v40 = vld [vmem:[#allocation7 + $0x1f0] sm:$0xf0] }
 0x567   :  { %v19166_v54 = vld [vmem:[#allocation7 + $0x172c] sm:$0xf0] }
 0x568   :  { %v16378_v25 = vld [vmem:[#allocation7 + $0x1910] sm:$0xf]  ;;  %v16123_v37 = vor.u32 %v19166_v54, %v16122_v17  ;;  %9938 = vmatpush.bf16.msra.mxu0 %v15867_v53 }
 0x569   :  { %v19230_v48 = vld [vmem:[#allocation7 + $0x192c] sm:$0xf0] }
 0x56a   :  { %v16634_v58 = vld [vmem:[#allocation7 + $0x1b10] sm:$0xf]  ;;  %v16379_v5 = vor.u32 %v19230_v48, %v16378_v25  ;;  %9951 = vmatpush.bf16.msra.mxu1 %v16123_v37 }
 0x56b   :  { %v19294_v2 = vld [vmem:[#allocation7 + $0x1b2c] sm:$0xf0] }
 0x56c   :  { %v15834_v60 = vld [vmem:[#allocation7 + $0x14d0] sm:$0xf]  ;;  %v16635_v13 = vor.u32 %v19294_v2, %v16634_v58  ;;  %9964 = vmatpush.bf16.msra.mxu2 %v16379_v5 }
 0x56d   :  { %v19094_v7 = vld [vmem:[#allocation7 + $0x14ec] sm:$0xf0] }
 0x56e   :  { %v16090_v8 = vld [vmem:[#allocation7 + $0x16d0] sm:$0xf]  ;;  %v15835_v59 = vor.u32 %v19094_v7, %v15834_v60  ;;  %9977 = vmatpush.bf16.msra.mxu3 %v16635_v13 }
 0x56f   :  { %v19158_v1 = vld [vmem:[#allocation7 + $0x16ec] sm:$0xf0] }
 0x570   :  { %v16346_v22 = vld [vmem:[#allocation7 + $0x18d0] sm:$0xf]  ;;  %v16091_v15 = vor.u32 %v19158_v1, %v16090_v8  ;;  %9939 = vmatpush.bf16.msra.mxu0 %v15835_v59  ;;  %v9725_v59 = vpop.f32.mrf.mxu3 }
 0x571   :  { %v19222_v4 = vld [vmem:[#allocation7 + $0x18ec] sm:$0xf0] }
 0x572   :  { %v16602_v10 = vld [vmem:[#allocation7 + $0x1ad0] sm:$0xf]  ;;  %v16347_v43 = vor.u32 %v19222_v4, %v16346_v22  ;;  %9952 = vmatpush.bf16.msra.mxu1 %v16091_v15  ;;  %v9712_v22 = vpop.f32.mrf.mxu2 }
 0x573   :  { %v19286_v21 = vld [vmem:[#allocation7 + $0x1aec] sm:$0xf0] }
 0x574   :  { %v15802_v51 = vld [vmem:[#allocation7 + $0x1490] sm:$0xf]  ;;  %v16603_v30 = vor.u32 %v19286_v21, %v16602_v10  ;;  %9965 = vmatpush.bf16.msra.mxu2 %v16347_v43 }
 0x575   :  { %v19086_v33 = vld [vmem:[#allocation7 + $0x14ac] sm:$0xf0] }
 0x576   :  { %v16058_v38 = vld [vmem:[#allocation7 + $0x1690] sm:$0xf]  ;;  %v15803_v56 = vor.u32 %v19086_v33, %v15802_v51  ;;  %9978 = vmatpush.bf16.msra.mxu3 %v16603_v30 }
 0x577   :  { %v19150_v24 = vld [vmem:[#allocation7 + $0x16ac] sm:$0xf0] }
 0x578   :  { %v16314_v39 = vld [vmem:[#allocation7 + $0x1890] sm:$0xf]  ;;  %v16059_v49 = vor.u32 %v19150_v24, %v16058_v38  ;;  %9940 = vmatpush.bf16.msra.mxu0 %v15803_v56 }
 0x579   :  { %v19214_v62 = vld [vmem:[#allocation7 + $0x18ac] sm:$0xf0] }
 0x57a   :  { %v16570_v47 = vld [vmem:[#allocation7 + $0x1a90] sm:$0xf]  ;;  %v16315_v17 = vor.u32 %v19214_v62, %v16314_v39  ;;  %9953 = vmatpush.bf16.msra.mxu1 %v16059_v49  ;;  %v18482_v62 = vld [vmem:[#allocation7 + $0x1d4] sm:$0xf] }
 0x57b   :  { %v19278_v52 = vld [vmem:[#allocation7 + $0x1aac] sm:$0xf0] }
 0x57c   :  { %v15770_v36 = vld [vmem:[#allocation7 + $0x1450] sm:$0xf]  ;;  %v16571_v48 = vor.u32 %v19278_v52, %v16570_v47  ;;  %9966 = vmatpush.bf16.msra.mxu2 %v16315_v17  ;;  %v13407_v17 = vor.u32 %v18482_v62, %v13404_v40 }
 0x57d   :  { %v19078_v54 = vld [vmem:[#allocation7 + $0x146c] sm:$0xf0] }
 0x57e   :  { %v16026_v25 = vld [vmem:[#allocation7 + $0x1650] sm:$0xf]  ;;  %v15771_v53 = vor.u32 %v19078_v54, %v15770_v36  ;;  %9979 = vmatpush.bf16.msra.mxu3 %v16571_v48  ;;  %v18474_v48 = vld [vmem:[#allocation7 + $0x194] sm:$0xf] }
 0x57f   :  { %v19142_v57 = vld [vmem:[#allocation7 + $0x166c] sm:$0xf0] }
 0x580   :  { %v16282_v58 = vld [vmem:[#allocation7 + $0x1850] sm:$0xf]  ;;  %v16027_v60 = vor.u32 %v19142_v57, %v16026_v25  ;;  %9941 = vmatpush.bf16.msra.mxu0 %v15771_v53  ;;  %v13372_v57 = vld [vmem:[#allocation7 + $0x1b0] sm:$0xf0] }
 0x581   :  { %v19206_v2 = vld [vmem:[#allocation7 + $0x186c] sm:$0xf0] }
 0x582   :  { %v16538_v34 = vld [vmem:[#allocation7 + $0x1a50] sm:$0xf]  ;;  %v16283_v7 = vor.u32 %v19206_v2, %v16282_v58  ;;  %9954 = vmatpush.bf16.msra.mxu1 %v16027_v60 }
 0x583   :  { %v19270_v63 = vld [vmem:[#allocation7 + $0x1a6c] sm:$0xf0] }
 0x584   :  { %v15738_v37 = vld [vmem:[#allocation7 + $0x1410] sm:$0xf]  ;;  %v16539_v1 = vor.u32 %v19270_v63, %v16538_v34  ;;  %9967 = vmatpush.bf16.msra.mxu2 %v16283_v7 }
 0x585   :  { %v19070_v5 = vld [vmem:[#allocation7 + $0x142c] sm:$0xf0] }
 0x586   :  { %v15994_v8 = vld [vmem:[#allocation7 + $0x1610] sm:$0xf]  ;;  %v15739_v33 = vor.u32 %v19070_v5, %v15738_v37  ;;  %9980 = vmatpush.bf16.msra.mxu3 %v16539_v1  ;;  %v13375_v5 = vor.u32 %v18474_v48, %v13372_v57 }
 0x587   :  { %v19134_v0 = vld [vmem:[#allocation7 + $0x162c] sm:$0xf0] }
 0x588   :  { %v16250_v13 = vld [vmem:[#allocation7 + $0x1810] sm:$0xf]  ;;  %v15995_v24 = vor.u32 %v19134_v0, %v15994_v8  ;;  %9942 = vmatpush.bf16.msra.mxu0 %v15739_v33  ;;  %v18466_v0 = vld [vmem:[#allocation7 + $0x154] sm:$0xf] }
 0x589   :  { %v19198_v4 = vld [vmem:[#allocation7 + $0x182c] sm:$0xf0] }
 0x58a   :  { %v16506_v10 = vld [vmem:[#allocation7 + $0x1a10] sm:$0xf]  ;;  %v16251_v39 = vor.u32 %v19198_v4, %v16250_v13  ;;  %9955 = vmatpush.bf16.msra.mxu1 %v15995_v24  ;;  %v13340_v13 = vld [vmem:[#allocation7 + $0x170] sm:$0xf0] }
 0x58b   :  { %v19262_v21 = vld [vmem:[#allocation7 + $0x1a2c] sm:$0xf0]  ;;  %9943 = vmatmul.bf16.vlgmr.msra.gmra.mxu0 %v20124_v14 }
 0x58c   :  { %v16986_v15 = vld [vmem:[#allocation7 + $0x1dd0] sm:$0xf]  ;;  %v16507_v9 = vor.u32 %v19262_v21, %v16506_v10  ;;  %9968 = vmatpush.bf16.msra.mxu2 %v16251_v39  ;;  %v9749_v39 = vpop.f32.mrf.mxu1 }
 0x58d   :  { %v19382_v43 = vld [vmem:[#allocation7 + $0x1dec] sm:$0xf0]  ;;  %9956 = vmatmul.bf16.vlgmr.msra.gmra.mxu1 %v20120_v11 }
 0x58e   :  { %v17242_v51 = vld [vmem:[#allocation7 + $0x1fd0] sm:$0xf]  ;;  %v16987_v45 = vor.u32 %v19382_v43, %v16986_v15  ;;  %9981 = vmatpush.bf16.msra.mxu3 %v16507_v9  ;;  %v13343_v15 = vor.u32 %v18466_v0, %v13340_v13  ;;  %v18442_v13 = vld [vmem:[#allocation7 + $0x94] sm:$0xf] }
 0x58f   :  { %v19446_v38 = vld [vmem:[#allocation7 + $0x1fec] sm:$0xf0]  ;;  %9969 = vmatmul.bf16.vlgmr.msra.gmra.mxu2 %v20122_v12 }
 0x590   :  { %v17498_v30 = vld [vmem:[#allocation7 + $0x21d0] sm:$0xf]  ;;  %v17243_v47 = vor.u32 %v19446_v38, %v17242_v51  ;;  %9987 = vmatpush.bf16.msrb.mxu0 %v16987_v45  ;;  %v9736_v38 = vpop.f32.mrf.mxu0 }
 0x591   :  { %v19510_v6 = vld [vmem:[#allocation7 + $0x21ec] sm:$0xf0]  ;;  %9982 = vmatmul.bf16.vlgmr.msra.gmra.mxu3 %v20126_v27  ;;  %v9737_v24 = vadd.f32 %v9736_v38, %v20261_v3 }
 0x592   :  { %v17499_v52 = vor.u32 %v19510_v6, %v17498_v30  ;;  %v16954_v26 = vld [vmem:[#allocation7 + $0x1d90] sm:$0xf]  ;;  %10000 = vmatpush.bf16.msrb.mxu1 %v17243_v47  ;;  %10026 = vmatpush.bf16.msrb.mxu3 %v13407_v17  ;;  %v18458_v30 = vld [vmem:[#allocation7 + $0x114] sm:$0xf] }
 0x593   :  { %v19374_v56 = vld [vmem:[#allocation7 + $0x1dac] sm:$0xf0]  ;;  %v13308_v6 = vld [vmem:[#allocation7 + $0x130] sm:$0xf0] }
 0x594   :  { %v17210_v49 = vld [vmem:[#allocation7 + $0x1f90] sm:$0xf]  ;;  %v16955_v58 = vor.u32 %v19374_v56, %v16954_v26  ;;  %10013 = vmatpush.bf16.msrb.mxu2 %v17499_v52  ;;  %v9750_v26 = vadd.f32 %v9749_v39, %v9737_v24  ;;  %v13311_v56 = vor.u32 %v18458_v30, %v13308_v6  ;;  %v18434_v24 = vld [vmem:[#allocation7 + $0x54] sm:$0xf] }
 0x595   :  { %v19438_v36 = vld [vmem:[#allocation7 + $0x1fac] sm:$0xf0]  ;;  %v13212_v39 = vld [vmem:[#allocation7 + $0x70] sm:$0xf0] }
 0x596   :  { %v17466_v54 = vld [vmem:[#allocation7 + $0x2190] sm:$0xf]  ;;  %v17211_v2 = vor.u32 %v19438_v36, %v17210_v49  ;;  %9988 = vmatpush.bf16.msrb.mxu0 %v16955_v58  ;;  %10027 = vmatpush.bf16.msrb.mxu3 %v13375_v5 }
 0x597   :  { %v19502_v25 = vld [vmem:[#allocation7 + $0x21ac] sm:$0xf0] }
 0x598   :  { %v17467_v34 = vor.u32 %v19502_v25, %v17466_v54  ;;  %v16922_v63 = vld [vmem:[#allocation7 + $0x1d50] sm:$0xf]  ;;  %10001 = vmatpush.bf16.msrb.mxu1 %v17211_v2  ;;  %v18450_v54 = vld [vmem:[#allocation7 + $0xd4] sm:$0xf]  ;;  %v9738_v0 = vpop.f32.mrf.mxu0 }
 0x599   :  { %v19366_v53 = vld [vmem:[#allocation7 + $0x1d6c] sm:$0xf0]  ;;  %v13276_v25 = vld [vmem:[#allocation7 + $0xf0] sm:$0xf0] }
 0x59a   :  { %v17178_v37 = vld [vmem:[#allocation7 + $0x1f50] sm:$0xf]  ;;  %v16923_v1 = vor.u32 %v19366_v53, %v16922_v63  ;;  %10014 = vmatpush.bf16.msrb.mxu2 %v17467_v34  ;;  %10028 = vmatpush.bf16.msrb.mxu3 %v13343_v15  ;;  %v13279_v63 = vor.u32 %v18450_v54, %v13276_v25  ;;  %v9762_v53 = vpop.f32.mrf.mxu2  ;;  %v18426_v54 = vld [vmem:[#allocation7 + $0x14] sm:$0xf] }
 0x59b   :  { %v19430_v60 = vld [vmem:[#allocation7 + $0x1f6c] sm:$0xf0]  ;;  %v13180_v25 = vld [vmem:[#allocation7 + $0x30] sm:$0xf0] }
 0x59c   :  { %v17434_v7 = vld [vmem:[#allocation7 + $0x2150] sm:$0xf]  ;;  %v17179_v22 = vor.u32 %v19430_v60, %v17178_v37  ;;  %9989 = vmatpush.bf16.msrb.mxu0 %v16923_v1  ;;  %v13244_v1 = vld [vmem:[#allocation7 + $0xb0] sm:$0xf0] }
 0x59d   :  { %v19494_v8 = vld [vmem:[#allocation7 + $0x216c] sm:$0xf0] }
 0x59e   :  { %v17435_v4 = vor.u32 %v19494_v8, %v17434_v7  ;;  %v16890_v10 = vld [vmem:[#allocation7 + $0x1d10] sm:$0xf]  ;;  %10002 = vmatpush.bf16.msrb.mxu1 %v17179_v22  ;;  %10029 = vmatpush.bf16.msrb.mxu3 %v13311_v56  ;;  %v9763_v7 = vadd.f32 %v9762_v53, %v9750_v26  ;;  %v9775_v8 = vpop.f32.mrf.mxu3  ;;  %v9751_v22 = vpop.f32.mrf.mxu1  ;;  %v14172_v53 = vld [vmem:[#allocation7 + $0x7f0] sm:$0xf0] }
 0x59f   :  { %v19358_v21 = vld [vmem:[#allocation7 + $0x1d2c] sm:$0xf0]  ;;  %v18538_v22 = vld [vmem:[#allocation7 + $0x394] sm:$0xf] }
 0x5a0   :  { %v17146_v59 = vld [vmem:[#allocation7 + $0x1f10] sm:$0xf]  ;;  %v16891_v62 = vor.u32 %v19358_v21, %v16890_v10  ;;  %10015 = vmatpush.bf16.msrb.mxu2 %v17435_v4  ;;  %v20268_v10 = vadd.f32 %v9775_v8, %v9763_v7  ;;  %v14428_v7 = vld [vmem:[#allocation7 + $0x9f0] sm:$0xf0]  ;;  %v13183_v8 = vor.u32 %v18426_v54, %v13180_v25 }
 0x5a1   :  { %v19422_v43 = vld [vmem:[#allocation7 + $0x1f2c] sm:$0xf0]  ;;  %v18522_v54 = vld [vmem:[#allocation7 + $0x314] sm:$0xf] }
 0x5a2   :  { %v17402_v51 = vld [vmem:[#allocation7 + $0x2110] sm:$0xf]  ;;  %v17147_v40 = vor.u32 %v19422_v43, %v17146_v59  ;;  %9990 = vmatpush.bf16.msrb.mxu0 %v16891_v62  ;;  %10030 = vmatpush.bf16.msrb.mxu3 %v13279_v63  ;;  %v18674_v63 = vld [vmem:[#allocation7 + $0x7d4] sm:$0xf] }
 0x5a3   :  { %v19486_v33 = vld [vmem:[#allocation7 + $0x212c] sm:$0xf0]  ;;  %v13564_v25 = vld [vmem:[#allocation7 + $0x330] sm:$0xf0] }
 0x5a4   :  { %v17403_v9 = vor.u32 %v19486_v33, %v17402_v51  ;;  %v16858_v45 = vld [vmem:[#allocation7 + $0x1cd0] sm:$0xf]  ;;  %10003 = vmatpush.bf16.msrb.mxu1 %v17147_v40  ;;  %v13247_v33 = vor.u32 %v18442_v13, %v13244_v1  ;;  %v14175_v1 = vor.u32 %v18674_v63, %v14172_v53  ;;  %v18714_v63 = vld [vmem:[#allocation7 + $0x914] sm:$0xf] }
 0x5a5   :  { %v19350_v47 = vld [vmem:[#allocation7 + $0x1cec] sm:$0xf0]  ;;  %v14332_v53 = vld [vmem:[#allocation7 + $0x930] sm:$0xf0] }
 0x5a6   :  { %v17114_v52 = vld [vmem:[#allocation7 + $0x1ed0] sm:$0xf]  ;;  %v16859_v48 = vor.u32 %v19350_v47, %v16858_v45  ;;  %10016 = vmatpush.bf16.msrb.mxu2 %v17403_v9  ;;  %10031 = vmatpush.bf16.msrb.mxu3 %v13247_v33  ;;  %v18730_v33 = vld [vmem:[#allocation7 + $0x994] sm:$0xf] }
 0x5a7   :  { %v19414_v49 = vld [vmem:[#allocation7 + $0x1eec] sm:$0xf0] }
 0x5a8   :  { %v17370_v17 = vld [vmem:[#allocation7 + $0x20d0] sm:$0xf]  ;;  %v17115_v3 = vor.u32 %v19414_v49, %v17114_v52  ;;  %9991 = vmatpush.bf16.msrb.mxu0 %v16859_v48  ;;  %v13215_v49 = vor.u32 %v18434_v24, %v13212_v39  ;;  %v9777_v48 = vpop.f32.mrf.mxu3  ;;  %v18530_v39 = vld [vmem:[#allocation7 + $0x354] sm:$0xf] }
 0x5a9   :  { %v19478_v36 = vld [vmem:[#allocation7 + $0x20ec] sm:$0xf0]  ;;  %v18586_v48 = vld [vmem:[#allocation7 + $0x514] sm:$0xf] }
 0x5aa   :  { %v17371_v57 = vor.u32 %v19478_v36, %v17370_v17  ;;  %v16826_v58 = vld [vmem:[#allocation7 + $0x1c90] sm:$0xf]  ;;  %10004 = vmatpush.bf16.msrb.mxu1 %v17115_v3  ;;  %v9764_v17 = vpop.f32.mrf.mxu2  ;;  %v18546_v3 = vld [vmem:[#allocation7 + $0x3d4] sm:$0xf]  ;;  %10032 = vmatpush.bf16.msrb.mxu3 %v13215_v49 }
 0x5ab   :  { %v19342_v2 = vld [vmem:[#allocation7 + $0x1cac] sm:$0xf0] }
 0x5ac   :  { %v17082_v34 = vld [vmem:[#allocation7 + $0x1e90] sm:$0xf]  ;;  %v16827_v4 = vor.u32 %v19342_v2, %v16826_v58  ;;  %10017 = vmatpush.bf16.msrb.mxu2 %v17371_v57  ;;  %v13660_v57 = vld [vmem:[#allocation7 + $0x3f0] sm:$0xf0] }
 0x5ad   :  { %v19406_v37 = vld [vmem:[#allocation7 + $0x1eac] sm:$0xf0]  ;;  %v18610_v58 = vld [vmem:[#allocation7 + $0x5d4] sm:$0xf]  ;;  %v13663_v0 = vor.u32 %v18546_v3, %v13660_v57 }
 0x5ae   :  { %v17338_v5 = vld [vmem:[#allocation7 + $0x2090] sm:$0xf]  ;;  %v17083_v21 = vor.u32 %v19406_v37, %v17082_v34  ;;  %9992 = vmatpush.bf16.msrb.mxu0 %v16827_v4  ;;  %v13916_v34 = vld [vmem:[#allocation7 + $0x5f0] sm:$0xf0]  ;;  %10033 = vmatpush.bf16.msrb.mxu3 %v13183_v8 }
 0x5af   :  { %v19470_v60 = vld [vmem:[#allocation7 + $0x20ac] sm:$0xf0]  ;;  %v13919_v13 = vor.u32 %v18610_v58, %v13916_v34  ;;  %v13628_v4 = vld [vmem:[#allocation7 + $0x3b0] sm:$0xf0]  ;;  %v9788_v34 = vpop.f32.mrf.mxu0 }
 0x5b0   :  { %v17339_v59 = vor.u32 %v19470_v60, %v17338_v5  ;;  %v16794_v15 = vld [vmem:[#allocation7 + $0x1c50] sm:$0xf]  ;;  %10005 = vmatpush.bf16.msrb.mxu1 %v17083_v21  ;;  %v18738_v60 = vld [vmem:[#allocation7 + $0x9d4] sm:$0xf] }
 0x5b1   :  { %v19334_v43 = vld [vmem:[#allocation7 + $0x1c6c] sm:$0xf0]  ;;  %v18602_v21 = vld [vmem:[#allocation7 + $0x594] sm:$0xf]  ;;  %10034 = vmatmul.bf16.vlgmr.msrb.gmra.mxu3 %v20004_v50 }
 0x5b2   :  { %v17050_v51 = vld [vmem:[#allocation7 + $0x1e50] sm:$0xf]  ;;  %v16795_v62 = vor.u32 %v19334_v43, %v16794_v15  ;;  %10018 = vmatpush.bf16.msrb.mxu2 %v17339_v59  ;;  %v14431_v59 = vor.u32 %v18738_v60, %v14428_v7  ;;  %v13884_v15 = vld [vmem:[#allocation7 + $0x5b0] sm:$0xf0]  ;;  %v13567_v60 = vor.u32 %v18522_v54, %v13564_v25 }
 0x5b3   :  { %v19398_v38 = vld [vmem:[#allocation7 + $0x1e6c] sm:$0xf0]  ;;  %v18666_v43 = vld [vmem:[#allocation7 + $0x794] sm:$0xf] }
 0x5b4   :  { %v17306_v30 = vld [vmem:[#allocation7 + $0x2050] sm:$0xf]  ;;  %v17051_v45 = vor.u32 %v19398_v38, %v17050_v51  ;;  %9993 = vmatpush.bf16.msrb.mxu0 %v16795_v62  ;;  %v14140_v51 = vld [vmem:[#allocation7 + $0x7b0] sm:$0xf0]  ;;  %10078 = vmatpush.bf16.msra.mxu3 %v14431_v59 }
 0x5b5   :  { %v19462_v6 = vld [vmem:[#allocation7 + $0x206c] sm:$0xf0]  ;;  %v14396_v38 = vld [vmem:[#allocation7 + $0x9b0] sm:$0xf0]  ;;  %v14143_v24 = vor.u32 %v18666_v43, %v14140_v51 }
 0x5b6   :  { %v16762_v40 = vld [vmem:[#allocation7 + $0x1c10] sm:$0xf]  ;;  %v17307_v47 = vor.u32 %v19462_v6, %v17306_v30  ;;  %10006 = vmatpush.bf16.msrb.mxu1 %v17051_v45  ;;  %v13631_v30 = vor.u32 %v18538_v22, %v13628_v4  ;;  %v13887_v6 = vor.u32 %v18602_v21, %v13884_v15  ;;  %v13596_v62 = vld [vmem:[#allocation7 + $0x370] sm:$0xf0]  ;;  %v14335_v4 = vor.u32 %v18714_v63, %v14332_v53 }
 0x5b7   :  { %v19326_v9 = vld [vmem:[#allocation7 + $0x1c2c] sm:$0xf0]  ;;  %v13852_v45 = vld [vmem:[#allocation7 + $0x570] sm:$0xf0]  ;;  %v13599_v49 = vor.u32 %v18530_v39, %v13596_v62 }
 0x5b8   :  { %v17018_v52 = vld [vmem:[#allocation7 + $0x1e10] sm:$0xf]  ;;  %v16763_v2 = vor.u32 %v19326_v9, %v16762_v40  ;;  %10019 = vmatpush.bf16.msrb.mxu2 %v17307_v47  ;;  %v18594_v40 = vld [vmem:[#allocation7 + $0x554] sm:$0xf]  ;;  %v14399_v9 = vor.u32 %v18730_v33, %v14396_v38 }
 0x5b9   :  { %v19390_v26 = vld [vmem:[#allocation7 + $0x1e2c] sm:$0xf0]  ;;  %v18658_v47 = vld [vmem:[#allocation7 + $0x754] sm:$0xf]  ;;  %v13855_v17 = vor.u32 %v18594_v40, %v13852_v45  ;;  %v9814_v40 = vpop.f32.mrf.mxu2 }
 0x5ba   :  { %v17274_v56 = vld [vmem:[#allocation7 + $0x2010] sm:$0xf]  ;;  %v17019_v37 = vor.u32 %v19390_v26, %v17018_v52  ;;  %9994 = vmatpush.bf16.msrb.mxu0 %v16763_v2  ;;  %v14108_v52 = vld [vmem:[#allocation7 + $0x770] sm:$0xf0]  ;;  %10079 = vmatpush.bf16.msra.mxu3 %v14399_v9 }
 0x5bb   :  { %v19454_v36 = vld [vmem:[#allocation7 + $0x202c] sm:$0xf0]  ;;  %v18722_v26 = vld [vmem:[#allocation7 + $0x954] sm:$0xf] }
 0x5bc   :  { %v17275_v5 = vor.u32 %v19454_v36, %v17274_v56  ;;  %10007 = vmatpush.bf16.msrb.mxu1 %v17019_v37  ;;  %v14364_v56 = vld [vmem:[#allocation7 + $0x970] sm:$0xf0]  ;;  %v14111_v36 = vor.u32 %v18658_v47, %v14108_v52  ;;  %v9789_v37 = vadd.f32 %v9788_v34, %v20268_v10  ;;  %v3469_v10 = vperm.slane %v20141_v19, 4 }
 0x5bd   :  { %9995 = vmatmul.bf16.vlgmr.msrb.gmra.mxu0 %v20134_v31  ;;  %v14367_v3 = vor.u32 %v18722_v26, %v14364_v56  ;;  %v13820_v57 = vld [vmem:[#allocation7 + $0x530] sm:$0xf0]  ;;  %v9827_v26 = vpop.f32.mrf.mxu3  ;;  %v9790_v56 = vpop.f32.mrf.mxu0 }
 0x5be   :  { %10020 = vmatpush.bf16.msrb.mxu2 %v17275_v5  ;;  %10039 = vmatpush.bf16.msra.mxu0 %v13663_v0  ;;  %v18650_v58 = vld [vmem:[#allocation7 + $0x714] sm:$0xf]  ;;  %v9801_v5 = vpop.f32.mrf.mxu1  ;;  %v13823_v7 = vor.u32 %v18586_v48, %v13820_v57  ;;  %v9815_v52 = vadd.f32 %v9814_v40, %v3469_v10 }
 0x5bf   :  { %10008 = vmatmul.bf16.vlgmr.msrb.gmra.mxu1 %v20136_v18  ;;  %v14076_v2 = vld [vmem:[#allocation7 + $0x730] sm:$0xf0]  ;;  %10080 = vmatpush.bf16.msra.mxu3 %v14367_v3  ;;  %v20275_v22 = vadd.f32 %v9801_v5, %v9789_v37 }
 0x5c0   :  { %10052 = vmatpush.bf16.msra.mxu1 %v13919_v13  ;;  %v14079_v8 = vor.u32 %v18650_v58, %v14076_v2  ;;  %v18514_v0 = vld [vmem:[#allocation7 + $0x2d4] sm:$0xf]  ;;  %v20278_v25 = vadd.f32 %v9827_v26, %v9815_v52 }
 0x5c1   :  { %10021 = vmatmul.bf16.vlgmr.msrb.gmra.mxu2 %v20146_v32  ;;  %v13532_v13 = vld [vmem:[#allocation7 + $0x2f0] sm:$0xf0] }
 0x5c2   :  { %10065 = vmatpush.bf16.msra.mxu2 %v14175_v1  ;;  %10040 = vmatpush.bf16.msra.mxu0 %v13631_v30  ;;  %v18578_v1 = vld [vmem:[#allocation7 + $0x4d4] sm:$0xf]  ;;  %v13535_v33 = vor.u32 %v18514_v0, %v13532_v13 }
 0x5c3   :  { %v13788_v21 = vld [vmem:[#allocation7 + $0x4f0] sm:$0xf0]  ;;  %10081 = vmatpush.bf16.msra.mxu3 %v14335_v4 }
 0x5c4   :  { %10053 = vmatpush.bf16.msra.mxu1 %v13887_v6  ;;  %v18642_v59 = vld [vmem:[#allocation7 + $0x6d4] sm:$0xf]  ;;  %v13791_v38 = vor.u32 %v18578_v1, %v13788_v21 }
 0x5c5   :  { %v14044_v15 = vld [vmem:[#allocation7 + $0x6f0] sm:$0xf0] }
 0x5c6   :  { %10066 = vmatpush.bf16.msra.mxu2 %v14143_v24  ;;  %10041 = vmatpush.bf16.msra.mxu0 %v13599_v49  ;;  %v18706_v43 = vld [vmem:[#allocation7 + $0x8d4] sm:$0xf]  ;;  %v14047_v30 = vor.u32 %v18642_v59, %v14044_v15 }
 0x5c7   :  { %v14300_v51 = vld [vmem:[#allocation7 + $0x8f0] sm:$0xf0] }
 0x5c8   :  { %10054 = vmatpush.bf16.msra.mxu1 %v13855_v17  ;;  %v18506_v6 = vld [vmem:[#allocation7 + $0x294] sm:$0xf]  ;;  %v14303_v62 = vor.u32 %v18706_v43, %v14300_v51  ;;  %v9816_v43 = vpop.f32.mrf.mxu2 }
 0x5c9   :  { %v13500_v24 = vld [vmem:[#allocation7 + $0x2b0] sm:$0xf0] }
 0x5ca   :  { %10067 = vmatpush.bf16.msra.mxu2 %v14111_v36  ;;  %10042 = vmatpush.bf16.msra.mxu0 %v13567_v60  ;;  %v18570_v39 = vld [vmem:[#allocation7 + $0x494] sm:$0xf]  ;;  %v9803_v36 = vpop.f32.mrf.mxu1  ;;  %v13503_v54 = vor.u32 %v18506_v6, %v13500_v24 }
 0x5cb   :  { %v13756_v9 = vld [vmem:[#allocation7 + $0x4b0] sm:$0xf0]  ;;  %10082 = vmatpush.bf16.msra.mxu3 %v14303_v62 }
 0x5cc   :  { %10055 = vmatpush.bf16.msra.mxu1 %v13823_v7  ;;  %v18634_v45 = vld [vmem:[#allocation7 + $0x694] sm:$0xf]  ;;  %v13759_v48 = vor.u32 %v18570_v39, %v13756_v9 }
 0x5cd   :  { %v14012_v47 = vld [vmem:[#allocation7 + $0x6b0] sm:$0xf0] }
 0x5ce   :  { %10068 = vmatpush.bf16.msra.mxu2 %v14079_v8  ;;  %v18698_v49 = vld [vmem:[#allocation7 + $0x894] sm:$0xf]  ;;  %10043 = vmatpush.bf16.msra.mxu0 %v13535_v33  ;;  %v14015_v3 = vor.u32 %v18634_v45, %v14012_v47 }
 0x5cf   :  { %v14268_v17 = vld [vmem:[#allocation7 + $0x8b0] sm:$0xf0] }
 0x5d0   :  { %10056 = vmatpush.bf16.msra.mxu1 %v13791_v38  ;;  %v18498_v57 = vld [vmem:[#allocation7 + $0x254] sm:$0xf]  ;;  %v14271_v34 = vor.u32 %v18698_v49, %v14268_v17  ;;  %v9829_v38 = vpop.f32.mrf.mxu3 }
 0x5d1   :  { %v13468_v58 = vld [vmem:[#allocation7 + $0x270] sm:$0xf0] }
 0x5d2   :  { %10069 = vmatpush.bf16.msra.mxu2 %v14047_v30  ;;  %v18562_v2 = vld [vmem:[#allocation7 + $0x454] sm:$0xf]  ;;  %10044 = vmatpush.bf16.msra.mxu0 %v13503_v54  ;;  %v13471_v7 = vor.u32 %v18498_v57, %v13468_v58 }
 0x5d3   :  { %v13724_v63 = vld [vmem:[#allocation7 + $0x470] sm:$0xf0]  ;;  %10083 = vmatpush.bf16.msra.mxu3 %v14271_v34 }
 0x5d4   :  { %v18626_v53 = vld [vmem:[#allocation7 + $0x654] sm:$0xf]  ;;  %10057 = vmatpush.bf16.msra.mxu1 %v13759_v48  ;;  %v13727_v13 = vor.u32 %v18562_v2, %v13724_v63 }
 0x5d5   :  { %v13980_v37 = vld [vmem:[#allocation7 + $0x670] sm:$0xf0] }
 0x5d6   :  { %v18690_v5 = vld [vmem:[#allocation7 + $0x854] sm:$0xf]  ;;  %10070 = vmatpush.bf16.msra.mxu2 %v14015_v3  ;;  %v13983_v1 = vor.u32 %v18626_v53, %v13980_v37  ;;  %10045 = vmatpush.bf16.msra.mxu0 %v13471_v7 }
 0x5d7   :  { %v14236_v60 = vld [vmem:[#allocation7 + $0x870] sm:$0xf0] }
 0x5d8   :  { %v18490_v8 = vld [vmem:[#allocation7 + $0x214] sm:$0xf]  ;;  %v14239_v15 = vor.u32 %v18690_v5, %v14236_v60  ;;  %10058 = vmatpush.bf16.msra.mxu1 %v13727_v13 }
 0x5d9   :  { %v13436_v0 = vld [vmem:[#allocation7 + $0x230] sm:$0xf0] }
 0x5da   :  { %v18554_v4 = vld [vmem:[#allocation7 + $0x414] sm:$0xf]  ;;  %v13439_v39 = vor.u32 %v18490_v8, %v13436_v0  ;;  %10071 = vmatpush.bf16.msra.mxu2 %v13983_v1  ;;  %10084 = vmatpush.bf16.msra.mxu3 %v14239_v15 }
 0x5db   :  { %v13692_v21 = vld [vmem:[#allocation7 + $0x430] sm:$0xf0] }
 0x5dc   :  { %v18618_v59 = vld [vmem:[#allocation7 + $0x614] sm:$0xf]  ;;  %v13695_v45 = vor.u32 %v18554_v4, %v13692_v21  ;;  %10046 = vmatpush.bf16.msra.mxu0 %v13439_v39 }
 0x5dd   :  { %v13948_v51 = vld [vmem:[#allocation7 + $0x630] sm:$0xf0] }
 0x5de   :  { %v18682_v10 = vld [vmem:[#allocation7 + $0x814] sm:$0xf]  ;;  %v13951_v47 = vor.u32 %v18618_v59, %v13948_v51  ;;  %10059 = vmatpush.bf16.msra.mxu1 %v13695_v45 }
 0x5df   :  { %v14204_v33 = vld [vmem:[#allocation7 + $0x830] sm:$0xf0]  ;;  %10047 = vmatmul.bf16.vlgmr.msra.gmra.mxu0 %v20008_v55 }
 0x5e0   :  { %v18802_v30 = vld [vmem:[#allocation7 + $0xbd4] sm:$0xf]  ;;  %v14207_v56 = vor.u32 %v18682_v10, %v14204_v33  ;;  %10072 = vmatpush.bf16.msra.mxu2 %v13951_v47 }
 0x5e1   :  { %v14684_v6 = vld [vmem:[#allocation7 + $0xbf0] sm:$0xf0]  ;;  %10060 = vmatmul.bf16.vlgmr.msra.gmra.mxu1 %v20045_v23 }
 0x5e2   :  { %v18866_v24 = vld [vmem:[#allocation7 + $0xdd4] sm:$0xf]  ;;  %v14687_v49 = vor.u32 %v18802_v30, %v14684_v6  ;;  %10085 = vmatpush.bf16.msra.mxu3 %v14207_v56 }
 0x5e3   :  { %v14940_v62 = vld [vmem:[#allocation7 + $0xdf0] sm:$0xf0]  ;;  %10073 = vmatmul.bf16.vlgmr.msra.gmra.mxu2 %v20047_v28 }
 0x5e4   :  { %v18930_v40 = vld [vmem:[#allocation7 + $0xfd4] sm:$0xf]  ;;  %v14943_v17 = vor.u32 %v18866_v24, %v14940_v62  ;;  %10091 = vmatpush.bf16.msrb.mxu0 %v14687_v49 }
 0x5e5   :  { %v15196_v9 = vld [vmem:[#allocation7 + $0xff0] sm:$0xf0]  ;;  %10086 = vmatmul.bf16.vlgmr.msra.gmra.mxu3 %v20052_v16 }
 0x5e6   :  { %v18994_v52 = vld [vmem:[#allocation7 + $0x11d4] sm:$0xf]  ;;  %v15199_v36 = vor.u32 %v18930_v40, %v15196_v9  ;;  %10104 = vmatpush.bf16.msrb.mxu1 %v14943_v17  ;;  %v9840_v40 = vpop.f32.mrf.mxu0 }
 0x5e7   :  { %v15452_v26 = vld [vmem:[#allocation7 + $0x11f0] sm:$0xf0]  ;;  %v9841_v47 = vadd.f32 %v9840_v40, %v20278_v25 }
 0x5e8   :  { %v18794_v54 = vld [vmem:[#allocation7 + $0xb94] sm:$0xf]  ;;  %v15455_v57 = vor.u32 %v18994_v52, %v15452_v26  ;;  %10117 = vmatpush.bf16.msrb.mxu2 %v15199_v36  ;;  %v9853_v52 = vpop.f32.mrf.mxu1 }
 0x5e9   :  { %v14652_v48 = vld [vmem:[#allocation7 + $0xbb0] sm:$0xf0] }
 0x5ea   :  { %v18858_v3 = vld [vmem:[#allocation7 + $0xd94] sm:$0xf]  ;;  %v14655_v37 = vor.u32 %v18794_v54, %v14652_v48  ;;  %10130 = vmatpush.bf16.msrb.mxu3 %v15455_v57  ;;  %v9854_v48 = vadd.f32 %v9853_v52, %v9841_v47 }
 0x5eb   :  { %v14908_v58 = vld [vmem:[#allocation7 + $0xdb0] sm:$0xf0] }
 0x5ec   :  { %v18922_v2 = vld [vmem:[#allocation7 + $0xf94] sm:$0xf]  ;;  %v14911_v5 = vor.u32 %v18858_v3, %v14908_v58  ;;  %10092 = vmatpush.bf16.msrb.mxu0 %v14655_v37 }
 0x5ed   :  { %v15164_v34 = vld [vmem:[#allocation7 + $0xfb0] sm:$0xf0] }
 0x5ee   :  { %v18986_v63 = vld [vmem:[#allocation7 + $0x1194] sm:$0xf]  ;;  %v15167_v60 = vor.u32 %v18922_v2, %v15164_v34  ;;  %10105 = vmatpush.bf16.msrb.mxu1 %v14911_v5 }
 0x5ef   :  { %v15420_v53 = vld [vmem:[#allocation7 + $0x11b0] sm:$0xf0] }
 0x5f0   :  { %v18786_v7 = vld [vmem:[#allocation7 + $0xb54] sm:$0xf]  ;;  %v15423_v13 = vor.u32 %v18986_v63, %v15420_v53  ;;  %10118 = vmatpush.bf16.msrb.mxu2 %v15167_v60 }
 0x5f1   :  { %v14620_v8 = vld [vmem:[#allocation7 + $0xb70] sm:$0xf0] }
 0x5f2   :  { %v18850_v0 = vld [vmem:[#allocation7 + $0xd54] sm:$0xf]  ;;  %v14623_v43 = vor.u32 %v18786_v7, %v14620_v8  ;;  %10131 = vmatpush.bf16.msrb.mxu3 %v15423_v13 }
 0x5f3   :  { %v14876_v1 = vld [vmem:[#allocation7 + $0xd70] sm:$0xf0] }
 0x5f4   :  { %v18914_v4 = vld [vmem:[#allocation7 + $0xf54] sm:$0xf]  ;;  %v14879_v51 = vor.u32 %v18850_v0, %v14876_v1  ;;  %10093 = vmatpush.bf16.msrb.mxu0 %v14623_v43  ;;  %v9866_v0 = vpop.f32.mrf.mxu2 }
 0x5f5   :  { %v15132_v21 = vld [vmem:[#allocation7 + $0xf70] sm:$0xf0] }
 0x5f6   :  { %v18978_v59 = vld [vmem:[#allocation7 + $0x1154] sm:$0xf]  ;;  %v15135_v10 = vor.u32 %v18914_v4, %v15132_v21  ;;  %10106 = vmatpush.bf16.msrb.mxu1 %v14879_v51  ;;  %v9867_v21 = vadd.f32 %v9866_v0, %v9854_v48 }
 0x5f7   :  { %v15388_v15 = vld [vmem:[#allocation7 + $0x1170] sm:$0xf0] }
 0x5f8   :  { %v18778_v33 = vld [vmem:[#allocation7 + $0xb14] sm:$0xf]  ;;  %v15391_v6 = vor.u32 %v18978_v59, %v15388_v15  ;;  %10119 = vmatpush.bf16.msrb.mxu2 %v15135_v10  ;;  %v9879_v59 = vpop.f32.mrf.mxu3  ;;  %v9842_v15 = vpop.f32.mrf.mxu0 }
 0x5f9   :  { %v14588_v38 = vld [vmem:[#allocation7 + $0xb30] sm:$0xf0]  ;;  %v9855_v10 = vpop.f32.mrf.mxu1 }
 0x5fa   :  { %v18842_v30 = vld [vmem:[#allocation7 + $0xd14] sm:$0xf]  ;;  %v14591_v26 = vor.u32 %v18778_v33, %v14588_v38  ;;  %10132 = vmatpush.bf16.msrb.mxu3 %v15391_v6  ;;  %v20285_v38 = vadd.f32 %v9879_v59, %v9867_v21 }
 0x5fb   :  { %v14844_v24 = vld [vmem:[#allocation7 + $0xd30] sm:$0xf0] }
 0x5fc   :  { %v18906_v39 = vld [vmem:[#allocation7 + $0xf14] sm:$0xf]  ;;  %v14847_v56 = vor.u32 %v18842_v30, %v14844_v24  ;;  %10094 = vmatpush.bf16.msrb.mxu0 %v14591_v26 }
 0x5fd   :  { %v15100_v62 = vld [vmem:[#allocation7 + $0xf30] sm:$0xf0] }
 0x5fe   :  { %v18970_v9 = vld [vmem:[#allocation7 + $0x1114] sm:$0xf]  ;;  %v15103_v49 = vor.u32 %v18906_v39, %v15100_v62  ;;  %10107 = vmatpush.bf16.msrb.mxu1 %v14847_v56 }
 0x5ff   :  { %v15356_v45 = vld [vmem:[#allocation7 + $0x1130] sm:$0xf0] }
 0x600   :  { %v18770_v17 = vld [vmem:[#allocation7 + $0xad4] sm:$0xf]  ;;  %v15359_v3 = vor.u32 %v18970_v9, %v15356_v45  ;;  %10120 = vmatpush.bf16.msrb.mxu2 %v15103_v49 }
 0x601   :  { %v14556_v36 = vld [vmem:[#allocation7 + $0xaf0] sm:$0xf0] }
 0x602   :  { %v18834_v54 = vld [vmem:[#allocation7 + $0xcd4] sm:$0xf]  ;;  %v14559_v53 = vor.u32 %v18770_v17, %v14556_v36  ;;  %10133 = vmatpush.bf16.msrb.mxu3 %v15359_v3 }
 0x603   :  { %v14812_v57 = vld [vmem:[#allocation7 + $0xcf0] sm:$0xf0] }
 0x604   :  { %v18898_v58 = vld [vmem:[#allocation7 + $0xed4] sm:$0xf]  ;;  %v14815_v25 = vor.u32 %v18834_v54, %v14812_v57  ;;  %10095 = vmatpush.bf16.msrb.mxu0 %v14559_v53 }
 0x605   :  { %v15068_v2 = vld [vmem:[#allocation7 + $0xef0] sm:$0xf0] }
 0x606   :  { %v18962_v34 = vld [vmem:[#allocation7 + $0x10d4] sm:$0xf]  ;;  %v15071_v37 = vor.u32 %v18898_v58, %v15068_v2  ;;  %10108 = vmatpush.bf16.msrb.mxu1 %v14815_v25  ;;  %v9868_v2 = vpop.f32.mrf.mxu2  ;;  %v9881_v25 = vpop.f32.mrf.mxu3 }
 0x607   :  { %v15324_v63 = vld [vmem:[#allocation7 + $0x10f0] sm:$0xf0] }
 0x608   :  { %v18762_v5 = vld [vmem:[#allocation7 + $0xa94] sm:$0xf]  ;;  %v15327_v8 = vor.u32 %v18962_v34, %v15324_v63  ;;  %10121 = vmatpush.bf16.msrb.mxu2 %v15071_v37 }
 0x609   :  { %v14524_v60 = vld [vmem:[#allocation7 + $0xab0] sm:$0xf0] }
 0x60a   :  { %v18826_v7 = vld [vmem:[#allocation7 + $0xc94] sm:$0xf]  ;;  %v14527_v33 = vor.u32 %v18762_v5, %v14524_v60  ;;  %10134 = vmatpush.bf16.msrb.mxu3 %v15327_v8 }
 0x60b   :  { %v14780_v13 = vld [vmem:[#allocation7 + $0xcb0] sm:$0xf0] }
 0x60c   :  { %v18890_v1 = vld [vmem:[#allocation7 + $0xe94] sm:$0xf]  ;;  %v14783_v30 = vor.u32 %v18826_v7, %v14780_v13  ;;  %10096 = vmatpush.bf16.msrb.mxu0 %v14527_v33 }
 0x60d   :  { %v15036_v4 = vld [vmem:[#allocation7 + $0xeb0] sm:$0xf0] }
 0x60e   :  { %v18954_v43 = vld [vmem:[#allocation7 + $0x1094] sm:$0xf]  ;;  %v15039_v6 = vor.u32 %v18890_v1, %v15036_v4  ;;  %10109 = vmatpush.bf16.msrb.mxu1 %v14783_v30 }
 0x60f   :  { %v15292_v51 = vld [vmem:[#allocation7 + $0x10b0] sm:$0xf0] }
 0x610   :  { %v18754_v24 = vld [vmem:[#allocation7 + $0xa54] sm:$0xf]  ;;  %v15295_v40 = vor.u32 %v18954_v43, %v15292_v51  ;;  %10122 = vmatpush.bf16.msrb.mxu2 %v15039_v6 }
 0x611   :  { %v14492_v39 = vld [vmem:[#allocation7 + $0xa70] sm:$0xf0] }
 0x612   :  { %v18818_v62 = vld [vmem:[#allocation7 + $0xc54] sm:$0xf]  ;;  %v14495_v56 = vor.u32 %v18754_v24, %v14492_v39  ;;  %10135 = vmatpush.bf16.msrb.mxu3 %v15295_v40 }
 0x613   :  { %v14748_v9 = vld [vmem:[#allocation7 + $0xc70] sm:$0xf0] }
 0x614   :  { %v18882_v45 = vld [vmem:[#allocation7 + $0xe54] sm:$0xf]  ;;  %v14751_v36 = vor.u32 %v18818_v62, %v14748_v9  ;;  %10097 = vmatpush.bf16.msrb.mxu0 %v14495_v56 }
 0x615   :  { %v15004_v47 = vld [vmem:[#allocation7 + $0xe70] sm:$0xf0] }
 0x616   :  { %v18946_v52 = vld [vmem:[#allocation7 + $0x1054] sm:$0xf]  ;;  %v15007_v54 = vor.u32 %v18882_v45, %v15004_v47  ;;  %10110 = vmatpush.bf16.msrb.mxu1 %v14751_v36 }
 0x617   :  { %v15260_v26 = vld [vmem:[#allocation7 + $0x1070] sm:$0xf0] }
 0x618   :  { %v18746_v49 = vld [vmem:[#allocation7 + $0xa14] sm:$0xf]  ;;  %v15263_v58 = vor.u32 %v18946_v52, %v15260_v26  ;;  %10123 = vmatpush.bf16.msrb.mxu2 %v15007_v54 }
 0x619   :  { %v14460_v17 = vld [vmem:[#allocation7 + $0xa30] sm:$0xf0] }
 0x61a   :  { %v18810_v48 = vld [vmem:[#allocation7 + $0xc14] sm:$0xf]  ;;  %v14463_v7 = vor.u32 %v18746_v49, %v14460_v17  ;;  %10136 = vmatpush.bf16.msrb.mxu3 %v15263_v58 }
 0x61b   :  { %v14716_v3 = vld [vmem:[#allocation7 + $0xc30] sm:$0xf0] }
 0x61c   :  { %v18874_v57 = vld [vmem:[#allocation7 + $0xe14] sm:$0xf]  ;;  %v14719_v1 = vor.u32 %v18810_v48, %v14716_v3  ;;  %10098 = vmatpush.bf16.msrb.mxu0 %v14463_v7 }
 0x61d   :  { %v14972_v34 = vld [vmem:[#allocation7 + $0xe30] sm:$0xf0] }
 0x61e   :  { %v18938_v63 = vld [vmem:[#allocation7 + $0x1014] sm:$0xf]  ;;  %v14975_v4 = vor.u32 %v18874_v57, %v14972_v34  ;;  %10111 = vmatpush.bf16.msrb.mxu1 %v14719_v1 }
 0x61f   :  { %v15228_v53 = vld [vmem:[#allocation7 + $0x1030] sm:$0xf0]  ;;  %10099 = vmatmul.bf16.vlgmr.msrb.gmra.mxu0 %v20057_v29 }
 0x620   :  { %v19058_v37 = vld [vmem:[#allocation7 + $0x13d4] sm:$0xf]  ;;  %v15231_v15 = vor.u32 %v18938_v63, %v15228_v53  ;;  %10124 = vmatpush.bf16.msrb.mxu2 %v14975_v4 }
 0x621   :  { %v15708_v5 = vld [vmem:[#allocation7 + $0x13f0] sm:$0xf0]  ;;  %10112 = vmatmul.bf16.vlgmr.msrb.gmra.mxu1 %v20091_v41 }
 0x622   :  { %v19122_v60 = vld [vmem:[#allocation7 + $0x15d4] sm:$0xf]  ;;  %v15711_v43 = vor.u32 %v19058_v37, %v15708_v5  ;;  %10137 = vmatpush.bf16.msrb.mxu3 %v15231_v15 }
 0x623   :  { %v15964_v8 = vld [vmem:[#allocation7 + $0x15f0] sm:$0xf0]  ;;  %10125 = vmatmul.bf16.vlgmr.msrb.gmra.mxu2 %v20095_v42 }
 0x624   :  { %v19186_v0 = vld [vmem:[#allocation7 + $0x17d4] sm:$0xf]  ;;  %v15967_v51 = vor.u32 %v19122_v60, %v15964_v8  ;;  %10143 = vmatpush.bf16.msra.mxu0 %v15711_v43 }
 0x625   :  { %v16220_v13 = vld [vmem:[#allocation7 + $0x17f0] sm:$0xf0]  ;;  %10138 = vmatmul.bf16.vlgmr.msrb.gmra.mxu3 %v20105_v35 }
 0x626   :  { %v19250_v21 = vld [vmem:[#allocation7 + $0x19d4] sm:$0xf]  ;;  %v16223_v10 = vor.u32 %v19186_v0, %v16220_v13  ;;  %10156 = vmatpush.bf16.msra.mxu1 %v15967_v51  ;;  %v9892_v0 = vpop.f32.mrf.mxu0 }
 0x627   :  { %v16476_v59 = vld [vmem:[#allocation7 + $0x19f0] sm:$0xf0]  ;;  %v9893_v4 = vadd.f32 %v9892_v0, %v20285_v38 }
 0x628   :  { %v19050_v33 = vld [vmem:[#allocation7 + $0x1394] sm:$0xf]  ;;  %v16479_v24 = vor.u32 %v19250_v21, %v16476_v59  ;;  %10169 = vmatpush.bf16.msra.mxu2 %v16223_v10  ;;  %v9905_v21 = vpop.f32.mrf.mxu1 }
 0x629   :  { %v15676_v30 = vld [vmem:[#allocation7 + $0x13b0] sm:$0xf0] }
 0x62a   :  { %v19114_v6 = vld [vmem:[#allocation7 + $0x1594] sm:$0xf]  ;;  %v15679_v47 = vor.u32 %v19050_v33, %v15676_v30  ;;  %10182 = vmatpush.bf16.msra.mxu3 %v16479_v24  ;;  %v9906_v30 = vadd.f32 %v9905_v21, %v9893_v4 }
 0x62b   :  { %v15932_v39 = vld [vmem:[#allocation7 + $0x15b0] sm:$0xf0] }
 0x62c   :  { %v19178_v62 = vld [vmem:[#allocation7 + $0x1794] sm:$0xf]  ;;  %v15935_v52 = vor.u32 %v19114_v6, %v15932_v39  ;;  %10144 = vmatpush.bf16.msra.mxu0 %v15679_v47 }
 0x62d   :  { %v16188_v40 = vld [vmem:[#allocation7 + $0x17b0] sm:$0xf0] }
 0x62e   :  { %v19242_v9 = vld [vmem:[#allocation7 + $0x1994] sm:$0xf]  ;;  %v16191_v26 = vor.u32 %v19178_v62, %v16188_v40  ;;  %10157 = vmatpush.bf16.msra.mxu1 %v15935_v52 }
 0x62f   :  { %v16444_v45 = vld [vmem:[#allocation7 + $0x19b0] sm:$0xf0] }
 0x630   :  { %v19042_v56 = vld [vmem:[#allocation7 + $0x1354] sm:$0xf]  ;;  %v16447_v36 = vor.u32 %v19242_v9, %v16444_v45  ;;  %10170 = vmatpush.bf16.msra.mxu2 %v16191_v26 }
 0x631   :  { %v15644_v49 = vld [vmem:[#allocation7 + $0x1370] sm:$0xf0] }
 0x632   :  { %v19106_v17 = vld [vmem:[#allocation7 + $0x1554] sm:$0xf]  ;;  %v15647_v2 = vor.u32 %v19042_v56, %v15644_v49  ;;  %10183 = vmatpush.bf16.msra.mxu3 %v16447_v36 }
 0x633   :  { %v15900_v54 = vld [vmem:[#allocation7 + $0x1570] sm:$0xf0] }
 0x634   :  { %v19170_v48 = vld [vmem:[#allocation7 + $0x1754] sm:$0xf]  ;;  %v15903_v34 = vor.u32 %v19106_v17, %v15900_v54  ;;  %10145 = vmatpush.bf16.msra.mxu0 %v15647_v2  ;;  %v9918_v17 = vpop.f32.mrf.mxu2 }
 0x635   :  { %v16156_v3 = vld [vmem:[#allocation7 + $0x1770] sm:$0xf0] }
 0x636   :  { %v19234_v57 = vld [vmem:[#allocation7 + $0x1954] sm:$0xf]  ;;  %v16159_v63 = vor.u32 %v19170_v48, %v16156_v3  ;;  %10158 = vmatpush.bf16.msra.mxu1 %v15903_v34  ;;  %v9919_v3 = vadd.f32 %v9918_v17, %v9906_v30 }
 0x637   :  { %v16412_v58 = vld [vmem:[#allocation7 + $0x1970] sm:$0xf0] }
 0x638   :  { %v19034_v53 = vld [vmem:[#allocation7 + $0x1314] sm:$0xf]  ;;  %v16415_v5 = vor.u32 %v19234_v57, %v16412_v58  ;;  %10171 = vmatpush.bf16.msra.mxu2 %v16159_v63  ;;  %v9931_v57 = vpop.f32.mrf.mxu3  ;;  %v9894_v58 = vpop.f32.mrf.mxu0 }
 0x639   :  { %v15612_v25 = vld [vmem:[#allocation7 + $0x1330] sm:$0xf0]  ;;  %v9907_v63 = vpop.f32.mrf.mxu1 }
 0x63a   :  { %v19098_v37 = vld [vmem:[#allocation7 + $0x1514] sm:$0xf]  ;;  %v15615_v59 = vor.u32 %v19034_v53, %v15612_v25  ;;  %10184 = vmatpush.bf16.msra.mxu3 %v16415_v5  ;;  %v20292_v25 = vadd.f32 %v9931_v57, %v9919_v3 }
 0x63b   :  { %v15868_v60 = vld [vmem:[#allocation7 + $0x1530] sm:$0xf0] }
 0x63c   :  { %v19162_v7 = vld [vmem:[#allocation7 + $0x1714] sm:$0xf]  ;;  %v15871_v15 = vor.u32 %v19098_v37, %v15868_v60  ;;  %10146 = vmatpush.bf16.msra.mxu0 %v15615_v59 }
 0x63d   :  { %v16124_v8 = vld [vmem:[#allocation7 + $0x1730] sm:$0xf0] }
 0x63e   :  { %v19226_v13 = vld [vmem:[#allocation7 + $0x1914] sm:$0xf]  ;;  %v16127_v43 = vor.u32 %v19162_v7, %v16124_v8  ;;  %10159 = vmatpush.bf16.msra.mxu1 %v15871_v15 }
 0x63f   :  { %v16380_v1 = vld [vmem:[#allocation7 + $0x1930] sm:$0xf0] }
 0x640   :  { %v19026_v51 = vld [vmem:[#allocation7 + $0x12d4] sm:$0xf]  ;;  %v16383_v6 = vor.u32 %v19226_v13, %v16380_v1  ;;  %10172 = vmatpush.bf16.msra.mxu2 %v16127_v43 }
 0x641   :  { %v15580_v10 = vld [vmem:[#allocation7 + $0x12f0] sm:$0xf0] }
 0x642   :  { %v19090_v33 = vld [vmem:[#allocation7 + $0x14d4] sm:$0xf]  ;;  %v15583_v45 = vor.u32 %v19026_v51, %v15580_v10  ;;  %10185 = vmatpush.bf16.msra.mxu3 %v16383_v6 }
 0x643   :  { %v15836_v24 = vld [vmem:[#allocation7 + $0x14f0] sm:$0xf0] }
 0x644   :  { %v19154_v39 = vld [vmem:[#allocation7 + $0x16d4] sm:$0xf]  ;;  %v15839_v38 = vor.u32 %v19090_v33, %v15836_v24  ;;  %10147 = vmatpush.bf16.msra.mxu0 %v15583_v45 }
 0x645   :  { %v16092_v62 = vld [vmem:[#allocation7 + $0x16f0] sm:$0xf0] }
 0x646   :  { %v19218_v40 = vld [vmem:[#allocation7 + $0x18d4] sm:$0xf]  ;;  %v16095_v47 = vor.u32 %v19154_v39, %v16092_v62  ;;  %10160 = vmatpush.bf16.msra.mxu1 %v15839_v38  ;;  %v9920_v62 = vpop.f32.mrf.mxu2  ;;  %v9933_v38 = vpop.f32.mrf.mxu3 }
 0x647   :  { %v16348_v9 = vld [vmem:[#allocation7 + $0x18f0] sm:$0xf0] }
 0x648   :  { %v19018_v52 = vld [vmem:[#allocation7 + $0x1294] sm:$0xf]  ;;  %v16351_v49 = vor.u32 %v19218_v40, %v16348_v9  ;;  %10173 = vmatpush.bf16.msra.mxu2 %v16095_v47 }
 0x649   :  { %v15548_v26 = vld [vmem:[#allocation7 + $0x12b0] sm:$0xf0] }
 0x64a   :  { %v19082_v56 = vld [vmem:[#allocation7 + $0x1494] sm:$0xf]  ;;  %v15551_v53 = vor.u32 %v19018_v52, %v15548_v26  ;;  %10186 = vmatpush.bf16.msra.mxu3 %v16351_v49 }
 0x64b   :  { %v15804_v36 = vld [vmem:[#allocation7 + $0x14b0] sm:$0xf0] }
 0x64c   :  { %v19146_v54 = vld [vmem:[#allocation7 + $0x1694] sm:$0xf]  ;;  %v15807_v37 = vor.u32 %v19082_v56, %v15804_v36  ;;  %10148 = vmatpush.bf16.msra.mxu0 %v15551_v53 }
 0x64d   :  { %v16060_v48 = vld [vmem:[#allocation7 + $0x16b0] sm:$0xf0] }
 0x64e   :  { %v19210_v2 = vld [vmem:[#allocation7 + $0x1894] sm:$0xf]  ;;  %v16063_v5 = vor.u32 %v19146_v54, %v16060_v48  ;;  %10161 = vmatpush.bf16.msra.mxu1 %v15807_v37 }
 0x64f   :  { %v16316_v34 = vld [vmem:[#allocation7 + $0x18b0] sm:$0xf0] }
 0x650   :  { %v19010_v60 = vld [vmem:[#allocation7 + $0x1254] sm:$0xf]  ;;  %v16319_v0 = vor.u32 %v19210_v2, %v16316_v34  ;;  %10174 = vmatpush.bf16.msra.mxu2 %v16063_v5 }
 0x651   :  { %v15516_v7 = vld [vmem:[#allocation7 + $0x1270] sm:$0xf0] }
 0x652   :  { %v19074_v8 = vld [vmem:[#allocation7 + $0x1454] sm:$0xf]  ;;  %v15519_v15 = vor.u32 %v19010_v60, %v15516_v7  ;;  %10187 = vmatpush.bf16.msra.mxu3 %v16319_v0 }
 0x653   :  { %v15772_v13 = vld [vmem:[#allocation7 + $0x1470] sm:$0xf0] }
 0x654   :  { %v19138_v1 = vld [vmem:[#allocation7 + $0x1654] sm:$0xf]  ;;  %v15775_v10 = vor.u32 %v19074_v8, %v15772_v13  ;;  %10149 = vmatpush.bf16.msra.mxu0 %v15519_v15 }
 0x655   :  { %v16028_v4 = vld [vmem:[#allocation7 + $0x1670] sm:$0xf0] }
 0x656   :  { %v19202_v21 = vld [vmem:[#allocation7 + $0x1854] sm:$0xf]  ;;  %v16031_v33 = vor.u32 %v19138_v1, %v16028_v4  ;;  %10162 = vmatpush.bf16.msra.mxu1 %v15775_v10 }
 0x657   :  { %v16284_v59 = vld [vmem:[#allocation7 + $0x1870] sm:$0xf0] }
 0x658   :  { %v19002_v43 = vld [vmem:[#allocation7 + $0x1214] sm:$0xf]  ;;  %v16287_v39 = vor.u32 %v19202_v21, %v16284_v59  ;;  %10175 = vmatpush.bf16.msra.mxu2 %v16031_v33 }
 0x659   :  { %v15484_v51 = vld [vmem:[#allocation7 + $0x1230] sm:$0xf0] }
 0x65a   :  { %v19066_v30 = vld [vmem:[#allocation7 + $0x1414] sm:$0xf]  ;;  %v15487_v56 = vor.u32 %v19002_v43, %v15484_v51  ;;  %10188 = vmatpush.bf16.msra.mxu3 %v16287_v39 }
 0x65b   :  { %v15740_v6 = vld [vmem:[#allocation7 + $0x1430] sm:$0xf0] }
 0x65c   :  { %v19130_v24 = vld [vmem:[#allocation7 + $0x1614] sm:$0xf]  ;;  %v15743_v54 = vor.u32 %v19066_v30, %v15740_v6  ;;  %10150 = vmatpush.bf16.msra.mxu0 %v15487_v56 }
 0x65d   :  { %v15996_v40 = vld [vmem:[#allocation7 + $0x1630] sm:$0xf0] }
 0x65e   :  { %v19194_v9 = vld [vmem:[#allocation7 + $0x1814] sm:$0xf]  ;;  %v15999_v48 = vor.u32 %v19130_v24, %v15996_v40  ;;  %10163 = vmatpush.bf16.msra.mxu1 %v15743_v54 }
 0x65f   :  { %v16252_v45 = vld [vmem:[#allocation7 + $0x1830] sm:$0xf0]  ;;  %10151 = vmatmul.bf16.vlgmr.msra.gmra.mxu0 %v20097_v44 }
 0x660   :  { %v19314_v47 = vld [vmem:[#allocation7 + $0x1bd4] sm:$0xf]  ;;  %v16255_v58 = vor.u32 %v19194_v9, %v16252_v45  ;;  %10176 = vmatpush.bf16.msra.mxu2 %v15999_v48 }
 0x661   :  { %v16732_v52 = vld [vmem:[#allocation7 + $0x1bf0] sm:$0xf0]  ;;  %10164 = vmatmul.bf16.vlgmr.msra.gmra.mxu1 %v20124_v14 }
 0x662   :  { %v19378_v26 = vld [vmem:[#allocation7 + $0x1dd4] sm:$0xf]  ;;  %v16735_v2 = vor.u32 %v19314_v47, %v16732_v52  ;;  %10189 = vmatpush.bf16.msra.mxu3 %v16255_v58 }
 0x663   :  { %v16988_v49 = vld [vmem:[#allocation7 + $0x1df0] sm:$0xf0]  ;;  %10177 = vmatmul.bf16.vlgmr.msra.gmra.mxu2 %v20120_v11 }
 0x664   :  { %v19442_v17 = vld [vmem:[#allocation7 + $0x1fd4] sm:$0xf]  ;;  %v16991_v34 = vor.u32 %v19378_v26, %v16988_v49  ;;  %10195 = vmatpush.bf16.msrb.mxu0 %v16735_v2 }
 0x665   :  { %v17244_v36 = vld [vmem:[#allocation7 + $0x1ff0] sm:$0xf0]  ;;  %10190 = vmatmul.bf16.vlgmr.msra.gmra.mxu3 %v20122_v12 }
 0x666   :  { %v19506_v3 = vld [vmem:[#allocation7 + $0x21d4] sm:$0xf]  ;;  %v17247_v63 = vor.u32 %v19442_v17, %v17244_v36  ;;  %10208 = vmatpush.bf16.msrb.mxu1 %v16991_v34  ;;  %v9944_v17 = vpop.f32.mrf.mxu0 }
 0x667   :  { %v17500_v57 = vld [vmem:[#allocation7 + $0x21f0] sm:$0xf0]  ;;  %v9945_v48 = vadd.f32 %v9944_v17, %v20292_v25 }
 0x668   :  { %v19306_v53 = vld [vmem:[#allocation7 + $0x1b94] sm:$0xf]  ;;  %v17503_v60 = vor.u32 %v19506_v3, %v17500_v57  ;;  %10221 = vmatpush.bf16.msrb.mxu2 %v17247_v63  ;;  %v9957_v3 = vpop.f32.mrf.mxu1 }
 0x669   :  { %v16700_v37 = vld [vmem:[#allocation7 + $0x1bb0] sm:$0xf0] }
 0x66a   :  { %v19370_v5 = vld [vmem:[#allocation7 + $0x1d94] sm:$0xf]  ;;  %v16703_v4 = vor.u32 %v19306_v53, %v16700_v37  ;;  %10234 = vmatpush.bf16.msrb.mxu3 %v17503_v60  ;;  %v9958_v37 = vadd.f32 %v9957_v3, %v9945_v48 }
 0x66b   :  { %v16956_v7 = vld [vmem:[#allocation7 + $0x1db0] sm:$0xf0] }
 0x66c   :  { %v19434_v8 = vld [vmem:[#allocation7 + $0x1f94] sm:$0xf]  ;;  %v16959_v21 = vor.u32 %v19370_v5, %v16956_v7  ;;  %10196 = vmatpush.bf16.msrb.mxu0 %v16703_v4 }
 0x66d   :  { %v17212_v0 = vld [vmem:[#allocation7 + $0x1fb0] sm:$0xf0] }
 0x66e   :  { %v19498_v13 = vld [vmem:[#allocation7 + $0x2194] sm:$0xf]  ;;  %v17215_v59 = vor.u32 %v19434_v8, %v17212_v0  ;;  %10209 = vmatpush.bf16.msrb.mxu1 %v16959_v21 }
 0x66f   :  { %v17468_v1 = vld [vmem:[#allocation7 + $0x21b0] sm:$0xf0] }
 0x670   :  { %v19298_v15 = vld [vmem:[#allocation7 + $0x1b54] sm:$0xf]  ;;  %v17471_v10 = vor.u32 %v19498_v13, %v17468_v1  ;;  %10222 = vmatpush.bf16.msrb.mxu2 %v17215_v59 }
 0x671   :  { %v16668_v43 = vld [vmem:[#allocation7 + $0x1b70] sm:$0xf0] }
 0x672   :  { %v19362_v51 = vld [vmem:[#allocation7 + $0x1d54] sm:$0xf]  ;;  %v16671_v62 = vor.u32 %v19298_v15, %v16668_v43  ;;  %10235 = vmatpush.bf16.msrb.mxu3 %v17471_v10 }
 0x673   :  { %v16924_v33 = vld [vmem:[#allocation7 + $0x1d70] sm:$0xf0] }
 0x674   :  { %v19426_v30 = vld [vmem:[#allocation7 + $0x1f54] sm:$0xf]  ;;  %v16927_v40 = vor.u32 %v19362_v51, %v16924_v33  ;;  %10197 = vmatpush.bf16.msrb.mxu0 %v16671_v62  ;;  %v9970_v51 = vpop.f32.mrf.mxu2 }
 0x675   :  { %v17180_v6 = vld [vmem:[#allocation7 + $0x1f70] sm:$0xf0] }
 0x676   :  { %v19490_v24 = vld [vmem:[#allocation7 + $0x2154] sm:$0xf]  ;;  %v17183_v9 = vor.u32 %v19426_v30, %v17180_v6  ;;  %10210 = vmatpush.bf16.msrb.mxu1 %v16927_v40  ;;  %v9971_v6 = vadd.f32 %v9970_v51, %v9958_v37  ;;  %v13922_v51 = vld [vmem:[#allocation7 + $0x5d8] sm:$0xf] }
 0x677   :  { %v17436_v39 = vld [vmem:[#allocation7 + $0x2170] sm:$0xf0] }
 0x678   :  { %v19290_v45 = vld [vmem:[#allocation7 + $0x1b14] sm:$0xf]  ;;  %v17439_v52 = vor.u32 %v19490_v24, %v17436_v39  ;;  %10223 = vmatpush.bf16.msrb.mxu2 %v17183_v9  ;;  %v9983_v24 = vpop.f32.mrf.mxu3  ;;  %v9946_v39 = vpop.f32.mrf.mxu0 }
 0x679   :  { %v16636_v38 = vld [vmem:[#allocation7 + $0x1b30] sm:$0xf0]  ;;  %v9959_v9 = vpop.f32.mrf.mxu1 }
 0x67a   :  { %v19354_v47 = vld [vmem:[#allocation7 + $0x1d14] sm:$0xf]  ;;  %v16639_v57 = vor.u32 %v19290_v45, %v16636_v38  ;;  %10236 = vmatpush.bf16.msrb.mxu3 %v17439_v52  ;;  %v20299_v38 = vadd.f32 %v9983_v24, %v9971_v6  ;;  %v14178_v6 = vld [vmem:[#allocation7 + $0x7d8] sm:$0xf] }
 0x67b   :  { %v16892_v26 = vld [vmem:[#allocation7 + $0x1d30] sm:$0xf0]  ;;  %v18679_v24 = vld [vmem:[#allocation7 + $0x7f4] sm:$0xf0] }
 0x67c   :  { %v19418_v56 = vld [vmem:[#allocation7 + $0x1f14] sm:$0xf]  ;;  %v16895_v58 = vor.u32 %v19354_v47, %v16892_v26  ;;  %10198 = vmatpush.bf16.msrb.mxu0 %v16639_v57 }
 0x67d   :  { %v17148_v49 = vld [vmem:[#allocation7 + $0x1f30] sm:$0xf0] }
 0x67e   :  { %v19482_v36 = vld [vmem:[#allocation7 + $0x2114] sm:$0xf]  ;;  %v17151_v2 = vor.u32 %v19418_v56, %v17148_v49  ;;  %10211 = vmatpush.bf16.msrb.mxu1 %v16895_v58 }
 0x67f   :  { %v17404_v54 = vld [vmem:[#allocation7 + $0x2130] sm:$0xf0] }
 0x680   :  { %v19282_v34 = vld [vmem:[#allocation7 + $0x1ad4] sm:$0xf]  ;;  %v17407_v5 = vor.u32 %v19482_v36, %v17404_v54  ;;  %10224 = vmatpush.bf16.msrb.mxu2 %v17151_v2 }
 0x681   :  { %v16604_v63 = vld [vmem:[#allocation7 + $0x1af0] sm:$0xf0] }
 0x682   :  { %v19346_v53 = vld [vmem:[#allocation7 + $0x1cd4] sm:$0xf]  ;;  %v16607_v1 = vor.u32 %v19282_v34, %v16604_v63  ;;  %10237 = vmatpush.bf16.msrb.mxu3 %v17407_v5 }
 0x683   :  { %v16860_v60 = vld [vmem:[#allocation7 + $0x1cf0] sm:$0xf0] }
 0x684   :  { %v19410_v7 = vld [vmem:[#allocation7 + $0x1ed4] sm:$0xf]  ;;  %v16863_v25 = vor.u32 %v19346_v53, %v16860_v60  ;;  %10199 = vmatpush.bf16.msrb.mxu0 %v16607_v1 }
 0x685   :  { %v17116_v8 = vld [vmem:[#allocation7 + $0x1ef0] sm:$0xf0] }
 0x686   :  { %v19474_v0 = vld [vmem:[#allocation7 + $0x20d4] sm:$0xf]  ;;  %v17119_v4 = vor.u32 %v19410_v7, %v17116_v8  ;;  %10212 = vmatpush.bf16.msrb.mxu1 %v16863_v25  ;;  %v9972_v8 = vpop.f32.mrf.mxu2  ;;  %v9985_v25 = vpop.f32.mrf.mxu3 }
 0x687   :  { %v17372_v13 = vld [vmem:[#allocation7 + $0x20f0] sm:$0xf0]  ;;  %v18463_v25 = vld [vmem:[#allocation7 + $0x134] sm:$0xf0] }
 0x688   :  { %v19274_v21 = vld [vmem:[#allocation7 + $0x1a94] sm:$0xf]  ;;  %v17375_v43 = vor.u32 %v19474_v0, %v17372_v13  ;;  %10225 = vmatpush.bf16.msrb.mxu2 %v17119_v4  ;;  %v13410_v4 = vld [vmem:[#allocation7 + $0x1d8] sm:$0xf] }
 0x689   :  { %v16572_v59 = vld [vmem:[#allocation7 + $0x1ab0] sm:$0xf0] }
 0x68a   :  { %v19338_v15 = vld [vmem:[#allocation7 + $0x1c94] sm:$0xf]  ;;  %v16575_v45 = vor.u32 %v19274_v21, %v16572_v59  ;;  %10238 = vmatpush.bf16.msrb.mxu3 %v17375_v43  ;;  %v18487_v21 = vld [vmem:[#allocation7 + $0x1f4] sm:$0xf0] }
 0x68b   :  { %v16828_v10 = vld [vmem:[#allocation7 + $0x1cb0] sm:$0xf0]  ;;  %v13666_v59 = vld [vmem:[#allocation7 + $0x3d8] sm:$0xf] }
 0x68c   :  { %v19402_v33 = vld [vmem:[#allocation7 + $0x1e94] sm:$0xf]  ;;  %v16831_v47 = vor.u32 %v19338_v15, %v16828_v10  ;;  %10200 = vmatpush.bf16.msrb.mxu0 %v16575_v45  ;;  %v18551_v43 = vld [vmem:[#allocation7 + $0x3f4] sm:$0xf0] }
 0x68d   :  { %v17084_v30 = vld [vmem:[#allocation7 + $0x1eb0] sm:$0xf0]  ;;  %v18615_v10 = vld [vmem:[#allocation7 + $0x5f4] sm:$0xf0] }
 0x68e   :  { %v19466_v62 = vld [vmem:[#allocation7 + $0x2094] sm:$0xf]  ;;  %v17087_v52 = vor.u32 %v19402_v33, %v17084_v30  ;;  %10213 = vmatpush.bf16.msrb.mxu1 %v16831_v47  ;;  %v13923_v9 = vor.u32 %v18615_v10, %v13922_v51  ;;  %v13378_v45 = vld [vmem:[#allocation7 + $0x198] sm:$0xf]  ;;  %v9996_v51 = vpop.f32.mrf.mxu0 }
 0x68f   :  { %v17340_v40 = vld [vmem:[#allocation7 + $0x20b0] sm:$0xf0]  ;;  %v18479_v47 = vld [vmem:[#allocation7 + $0x1b4] sm:$0xf0] }
 0x690   :  { %v19266_v26 = vld [vmem:[#allocation7 + $0x1a54] sm:$0xf]  ;;  %v17343_v17 = vor.u32 %v19466_v62, %v17340_v40  ;;  %10226 = vmatpush.bf16.msrb.mxu2 %v17087_v52  ;;  %v13411_v62 = vor.u32 %v18487_v21, %v13410_v4  ;;  %v13667_v40 = vor.u32 %v18551_v43, %v13666_v59  ;;  %v13634_v52 = vld [vmem:[#allocation7 + $0x398] sm:$0xf] }
 0x691   :  { %v16540_v56 = vld [vmem:[#allocation7 + $0x1a70] sm:$0xf0]  ;;  %v13570_v4 = vld [vmem:[#allocation7 + $0x318] sm:$0xf] }
 0x692   :  { %v19330_v49 = vld [vmem:[#allocation7 + $0x1c54] sm:$0xf]  ;;  %v16543_v58 = vor.u32 %v19266_v26, %v16540_v56  ;;  %10239 = vmatpush.bf16.msrb.mxu3 %v17343_v17  ;;  %v14179_v26 = vor.u32 %v18679_v24, %v14178_v6  ;;  %v18543_v56 = vld [vmem:[#allocation7 + $0x3b4] sm:$0xf0]  ;;  %v10009_v6 = vpop.f32.mrf.mxu1 }
 0x693   :  { %v16796_v36 = vld [vmem:[#allocation7 + $0x1c70] sm:$0xf0]  ;;  %v18607_v17 = vld [vmem:[#allocation7 + $0x5b4] sm:$0xf0] }
 0x694   :  { %v19394_v54 = vld [vmem:[#allocation7 + $0x1e54] sm:$0xf]  ;;  %v16799_v63 = vor.u32 %v19330_v49, %v16796_v36  ;;  %10201 = vmatpush.bf16.msrb.mxu0 %v16543_v58  ;;  %v13890_v49 = vld [vmem:[#allocation7 + $0x598] sm:$0xf] }
 0x695   :  { %v17052_v48 = vld [vmem:[#allocation7 + $0x1e70] sm:$0xf0]  ;;  %v14146_v36 = vld [vmem:[#allocation7 + $0x798] sm:$0xf] }
 0x696   :  { %v19458_v3 = vld [vmem:[#allocation7 + $0x2054] sm:$0xf]  ;;  %v17055_v53 = vor.u32 %v19394_v54, %v17052_v48  ;;  %10214 = vmatpush.bf16.msrb.mxu1 %v16799_v63  ;;  %v18671_v54 = vld [vmem:[#allocation7 + $0x7b4] sm:$0xf0]  ;;  %v13379_v48 = vor.u32 %v18479_v47, %v13378_v45 }
 0x697   :  { %v17308_v57 = vld [vmem:[#allocation7 + $0x2070] sm:$0xf0]  ;;  %v13346_v58 = vld [vmem:[#allocation7 + $0x158] sm:$0xf]  ;;  %v14147_v63 = vor.u32 %v18671_v54, %v14146_v36 }
 0x698   :  { %v19258_v2 = vld [vmem:[#allocation7 + $0x1a14] sm:$0xf]  ;;  %v17311_v7 = vor.u32 %v19458_v3, %v17308_v57  ;;  %10227 = vmatpush.bf16.msrb.mxu2 %v17055_v53  ;;  %v13635_v3 = vor.u32 %v18543_v56, %v13634_v52  ;;  %v13891_v57 = vor.u32 %v18607_v17, %v13890_v49  ;;  %v18535_v53 = vld [vmem:[#allocation7 + $0x374] sm:$0xf0] }
 0x699   :  { %v16508_v34 = vld [vmem:[#allocation7 + $0x1a30] sm:$0xf0]  ;;  %v18527_v59 = vld [vmem:[#allocation7 + $0x334] sm:$0xf0] }
 0x69a   :  { %v19322_v37 = vld [vmem:[#allocation7 + $0x1c14] sm:$0xf]  ;;  %v16511_v15 = vor.u32 %v19258_v2, %v16508_v34  ;;  %10240 = vmatpush.bf16.msrb.mxu3 %v17311_v7  ;;  %v18471_v2 = vld [vmem:[#allocation7 + $0x174] sm:$0xf0] }
 0x69b   :  { %v16764_v5 = vld [vmem:[#allocation7 + $0x1c30] sm:$0xf0]  ;;  %v13602_v34 = vld [vmem:[#allocation7 + $0x358] sm:$0xf]  ;;  %v13347_v8 = vor.u32 %v18471_v2, %v13346_v58 }
 0x69c   :  { %v19386_v60 = vld [vmem:[#allocation7 + $0x1e14] sm:$0xf]  ;;  %v16767_v33 = vor.u32 %v19322_v37, %v16764_v5  ;;  %10202 = vmatpush.bf16.msrb.mxu0 %v16511_v15  ;;  %v13858_v37 = vld [vmem:[#allocation7 + $0x558] sm:$0xf] }
 0x69d   :  { %v17020_v0 = vld [vmem:[#allocation7 + $0x1e30] sm:$0xf0]  ;;  %v18599_v5 = vld [vmem:[#allocation7 + $0x574] sm:$0xf0] }
 0x69e   :  { %v19450_v13 = vld [vmem:[#allocation7 + $0x2014] sm:$0xf]  ;;  %v17023_v30 = vor.u32 %v19386_v60, %v17020_v0  ;;  %10215 = vmatpush.bf16.msrb.mxu1 %v16767_v33  ;;  %v14114_v60 = vld [vmem:[#allocation7 + $0x758] sm:$0xf]  ;;  %v13603_v0 = vor.u32 %v18535_v53, %v13602_v34  ;;  %v10022_v34 = vpop.f32.mrf.mxu2 }
 0x69f   :  { %v17276_v1 = vld [vmem:[#allocation7 + $0x2030] sm:$0xf0]  ;;  %10203 = vmatmul.bf16.vlgmr.msrb.gmra.mxu0 %v20126_v27  ;;  %v18663_v7 = vld [vmem:[#allocation7 + $0x774] sm:$0xf0] }
 0x6a0   :  { %v17279_v39 = vor.u32 %v19450_v13, %v17276_v1  ;;  %10228 = vmatpush.bf16.msrb.mxu2 %v17023_v30  ;;  %10247 = vmatpush.bf16.msra.mxu0 %v13411_v62  ;;  %v13859_v13 = vor.u32 %v18599_v5, %v13858_v37  ;;  %v13314_v1 = vld [vmem:[#allocation7 + $0x118] sm:$0xf]  ;;  %v14115_v21 = vor.u32 %v18663_v7, %v14114_v60  ;;  %v20308_v60 = vpop.f32.mrf.mxu3  ;;  %v9998_v7 = vpop.f32.mrf.mxu0 }
 0x6a1   :  { %10216 = vmatmul.bf16.vlgmr.msrb.gmra.mxu1 %v20134_v31  ;;  %v13826_v15 = vld [vmem:[#allocation7 + $0x518] sm:$0xf]  ;;  %v9997_v30 = vadd.f32 %v9996_v51, %v20299_v38  ;;  %v13315_v24 = vor.u32 %v18463_v25, %v13314_v1 }
 0x6a2   :  { %10241 = vmatpush.bf16.msrb.mxu3 %v17279_v39  ;;  %10260 = vmatpush.bf16.msra.mxu1 %v13667_v40  ;;  %v18591_v43 = vld [vmem:[#allocation7 + $0x534] sm:$0xf0]  ;;  %v13571_v39 = vor.u32 %v18527_v59, %v13570_v4 }
 0x6a3   :  { %10229 = vmatmul.bf16.vlgmr.msrb.gmra.mxu2 %v20136_v18  ;;  %v14082_v10 = vld [vmem:[#allocation7 + $0x718] sm:$0xf]  ;;  %v13827_v62 = vor.u32 %v18591_v43, %v13826_v15  ;;  %v10010_v47 = vadd.f32 %v10009_v6, %v9997_v30 }
 0x6a4   :  { %10273 = vmatpush.bf16.msra.mxu2 %v13923_v9  ;;  %10248 = vmatpush.bf16.msra.mxu0 %v13379_v48  ;;  %v18655_v33 = vld [vmem:[#allocation7 + $0x734] sm:$0xf0] }
 0x6a5   :  { %10242 = vmatmul.bf16.vlgmr.msrb.gmra.mxu3 %v20146_v32  ;;  %v13282_v40 = vld [vmem:[#allocation7 + $0xd8] sm:$0xf]  ;;  %v14083_v52 = vor.u32 %v18655_v33, %v14082_v10  ;;  %v20306_v5 = vadd.f32 %v10022_v34, %v10010_v47 }
 0x6a6   :  { %10286 = vmatpush.bf16.msra.mxu3 %v14179_v26  ;;  %10261 = vmatpush.bf16.msra.mxu1 %v13635_v3  ;;  %v18455_v9 = vld [vmem:[#allocation7 + $0xf4] sm:$0xf0] }
 0x6a7   :  { %v13538_v45 = vld [vmem:[#allocation7 + $0x2d8] sm:$0xf]  ;;  %v13283_v54 = vor.u32 %v18455_v9, %v13282_v40 }
 0x6a8   :  { %10274 = vmatpush.bf16.msra.mxu2 %v13891_v57  ;;  %10249 = vmatpush.bf16.msra.mxu0 %v13347_v8  ;;  %v18519_v26 = vld [vmem:[#allocation7 + $0x2f4] sm:$0xf0] }
 0x6a9   :  { %v13794_v56 = vld [vmem:[#allocation7 + $0x4d8] sm:$0xf]  ;;  %v13539_v38 = vor.u32 %v18519_v26, %v13538_v45 }
 0x6aa   :  { %10287 = vmatpush.bf16.msra.mxu3 %v14147_v63  ;;  %10262 = vmatpush.bf16.msra.mxu1 %v13603_v0  ;;  %v18583_v49 = vld [vmem:[#allocation7 + $0x4f4] sm:$0xf0] }
 0x6ab   :  { %v14050_v17 = vld [vmem:[#allocation7 + $0x6d8] sm:$0xf]  ;;  %v13795_v48 = vor.u32 %v18583_v49, %v13794_v56  ;;  %v10024_v56 = vpop.f32.mrf.mxu2 }
 0x6ac   :  { %10275 = vmatpush.bf16.msra.mxu2 %v13859_v13  ;;  %v18647_v36 = vld [vmem:[#allocation7 + $0x6f4] sm:$0xf0]  ;;  %10250 = vmatpush.bf16.msra.mxu0 %v13315_v24  ;;  %v10011_v13 = vpop.f32.mrf.mxu1 }
 0x6ad   :  { %v13250_v3 = vld [vmem:[#allocation7 + $0x98] sm:$0xf]  ;;  %v14051_v2 = vor.u32 %v18647_v36, %v14050_v17 }
 0x6ae   :  { %10288 = vmatpush.bf16.msra.mxu3 %v14115_v21  ;;  %10263 = vmatpush.bf16.msra.mxu1 %v13571_v39  ;;  %v18447_v57 = vld [vmem:[#allocation7 + $0xb4] sm:$0xf0] }
 0x6af   :  { %v13506_v58 = vld [vmem:[#allocation7 + $0x298] sm:$0xf]  ;;  %v13251_v1 = vor.u32 %v18447_v57, %v13250_v3 }
 0x6b0   :  { %10276 = vmatpush.bf16.msra.mxu2 %v13827_v62  ;;  %v18511_v63 = vld [vmem:[#allocation7 + $0x2b4] sm:$0xf0]  ;;  %10251 = vmatpush.bf16.msra.mxu0 %v13283_v54  ;;  %v10037_v54 = vpop.f32.mrf.mxu3 }
 0x6b1   :  { %v13762_v53 = vld [vmem:[#allocation7 + $0x498] sm:$0xf]  ;;  %v13507_v25 = vor.u32 %v18511_v63, %v13506_v58 }
 0x6b2   :  { %10289 = vmatpush.bf16.msra.mxu3 %v14083_v52  ;;  %v18575_v37 = vld [vmem:[#allocation7 + $0x4b4] sm:$0xf0]  ;;  %10264 = vmatpush.bf16.msra.mxu1 %v13539_v38 }
 0x6b3   :  { %v14018_v8 = vld [vmem:[#allocation7 + $0x698] sm:$0xf]  ;;  %v13763_v4 = vor.u32 %v18575_v37, %v13762_v53 }
 0x6b4   :  { %v18639_v0 = vld [vmem:[#allocation7 + $0x6b4] sm:$0xf0]  ;;  %10277 = vmatpush.bf16.msra.mxu2 %v13795_v48  ;;  %10252 = vmatpush.bf16.msra.mxu0 %v13251_v1 }
 0x6b5   :  { %v13218_v21 = vld [vmem:[#allocation7 + $0x58] sm:$0xf]  ;;  %v14019_v43 = vor.u32 %v18639_v0, %v14018_v8 }
 0x6b6   :  { %v18439_v59 = vld [vmem:[#allocation7 + $0x74] sm:$0xf0]  ;;  %10290 = vmatpush.bf16.msra.mxu3 %v14051_v2  ;;  %10265 = vmatpush.bf16.msra.mxu1 %v13507_v25 }
 0x6b7   :  { %v13474_v15 = vld [vmem:[#allocation7 + $0x258] sm:$0xf]  ;;  %v13219_v24 = vor.u32 %v18439_v59, %v13218_v21 }
 0x6b8   :  { %v18503_v51 = vld [vmem:[#allocation7 + $0x274] sm:$0xf0]  ;;  %10278 = vmatpush.bf16.msra.mxu2 %v13763_v4 }
 0x6b9   :  { %v13730_v10 = vld [vmem:[#allocation7 + $0x458] sm:$0xf]  ;;  %v13475_v40 = vor.u32 %v18503_v51, %v13474_v15  ;;  %10253 = vmatpush.bf16.msra.mxu0 %v13219_v24 }
 0x6ba   :  { %v18567_v33 = vld [vmem:[#allocation7 + $0x474] sm:$0xf0]  ;;  %10291 = vmatpush.bf16.msra.mxu3 %v14019_v43 }
 0x6bb   :  { %v13986_v30 = vld [vmem:[#allocation7 + $0x658] sm:$0xf]  ;;  %v13731_v9 = vor.u32 %v18567_v33, %v13730_v10  ;;  %10266 = vmatpush.bf16.msra.mxu1 %v13475_v40 }
 0x6bc   :  { %v18631_v6 = vld [vmem:[#allocation7 + $0x674] sm:$0xf0] }
 0x6bd   :  { %v13186_v39 = vld [vmem:[#allocation7 + $0x18] sm:$0xf]  ;;  %v13987_v26 = vor.u32 %v18631_v6, %v13986_v30  ;;  %10279 = vmatpush.bf16.msra.mxu2 %v13731_v9  ;;  %v3470_v30 = vperm.slane %v20141_v19, 5 }
 0x6be   :  { %v18431_v62 = vld [vmem:[#allocation7 + $0x34] sm:$0xf0] }
 0x6bf   :  { %v13442_v45 = vld [vmem:[#allocation7 + $0x218] sm:$0xf]  ;;  %v13187_v57 = vor.u32 %v18431_v62, %v13186_v39  ;;  %10292 = vmatpush.bf16.msra.mxu3 %v13987_v26 }
 0x6c0   :  { %v18495_v47 = vld [vmem:[#allocation7 + $0x234] sm:$0xf0] }
 0x6c1   :  { %v13698_v52 = vld [vmem:[#allocation7 + $0x418] sm:$0xf]  ;;  %v13443_v63 = vor.u32 %v18495_v47, %v13442_v45  ;;  %10254 = vmatpush.bf16.msra.mxu0 %v13187_v57  ;;  %v10036_v57 = vadd.f32 %v20308_v60, %v3470_v30 }
 0x6c2   :  { %v18559_v49 = vld [vmem:[#allocation7 + $0x434] sm:$0xf0] }
 0x6c3   :  { %v13954_v17 = vld [vmem:[#allocation7 + $0x618] sm:$0xf]  ;;  %v13699_v53 = vor.u32 %v18559_v49, %v13698_v52  ;;  %10267 = vmatpush.bf16.msra.mxu1 %v13443_v63 }
 0x6c4   :  { %v18623_v36 = vld [vmem:[#allocation7 + $0x634] sm:$0xf0]  ;;  %10255 = vmatmul.bf16.vlgmr.msra.gmra.mxu0 %v20004_v50 }
 0x6c5   :  { %v14434_v38 = vld [vmem:[#allocation7 + $0x9d8] sm:$0xf]  ;;  %v13955_v8 = vor.u32 %v18623_v36, %v13954_v17  ;;  %10280 = vmatpush.bf16.msra.mxu2 %v13699_v53  ;;  %v10048_v53 = vpop.f32.mrf.mxu0 }
 0x6c6   :  { %v18743_v48 = vld [vmem:[#allocation7 + $0x9f4] sm:$0xf0]  ;;  %10268 = vmatmul.bf16.vlgmr.msra.gmra.mxu1 %v20008_v55 }
 0x6c7   :  { %v14690_v3 = vld [vmem:[#allocation7 + $0xbd8] sm:$0xf]  ;;  %v14435_v0 = vor.u32 %v18743_v48, %v14434_v38  ;;  %10293 = vmatpush.bf16.msra.mxu3 %v13955_v8  ;;  %v10049_v8 = vadd.f32 %v10048_v53, %v10036_v57 }
 0x6c8   :  { %v18807_v58 = vld [vmem:[#allocation7 + $0xbf4] sm:$0xf0]  ;;  %10281 = vmatmul.bf16.vlgmr.msra.gmra.mxu2 %v20045_v23 }
 0x6c9   :  { %v14946_v2 = vld [vmem:[#allocation7 + $0xdd8] sm:$0xf]  ;;  %v14691_v13 = vor.u32 %v18807_v58, %v14690_v3  ;;  %10299 = vmatpush.bf16.msrb.mxu0 %v14435_v0  ;;  %v10061_v0 = vpop.f32.mrf.mxu1 }
 0x6ca   :  { %v18871_v34 = vld [vmem:[#allocation7 + $0xdf4] sm:$0xf0]  ;;  %10294 = vmatmul.bf16.vlgmr.msra.gmra.mxu3 %v20047_v28  ;;  %v10062_v60 = vadd.f32 %v10061_v0, %v10049_v8 }
 0x6cb   :  { %v15202_v37 = vld [vmem:[#allocation7 + $0xfd8] sm:$0xf]  ;;  %v14947_v1 = vor.u32 %v18871_v34, %v14946_v2  ;;  %10312 = vmatpush.bf16.msrb.mxu1 %v14691_v13 }
 0x6cc   :  { %v18935_v7 = vld [vmem:[#allocation7 + $0xff4] sm:$0xf0] }
 0x6cd   :  { %v14402_v25 = vld [vmem:[#allocation7 + $0x998] sm:$0xf]  ;;  %v15203_v59 = vor.u32 %v18935_v7, %v15202_v37  ;;  %10325 = vmatpush.bf16.msrb.mxu2 %v14947_v1 }
 0x6ce   :  { %v18735_v4 = vld [vmem:[#allocation7 + $0x9b4] sm:$0xf0] }
 0x6cf   :  { %v14658_v21 = vld [vmem:[#allocation7 + $0xb98] sm:$0xf]  ;;  %v14403_v6 = vor.u32 %v18735_v4, %v14402_v25  ;;  %10338 = vmatpush.bf16.msrb.mxu3 %v15203_v59 }
 0x6d0   :  { %v18799_v15 = vld [vmem:[#allocation7 + $0xbb4] sm:$0xf0] }
 0x6d1   :  { %v14914_v43 = vld [vmem:[#allocation7 + $0xd98] sm:$0xf]  ;;  %v14659_v24 = vor.u32 %v18799_v15, %v14658_v21  ;;  %10300 = vmatpush.bf16.msrb.mxu0 %v14403_v6 }
 0x6d2   :  { %v18863_v51 = vld [vmem:[#allocation7 + $0xdb4] sm:$0xf0] }
 0x6d3   :  { %v15170_v10 = vld [vmem:[#allocation7 + $0xf98] sm:$0xf]  ;;  %v14915_v39 = vor.u32 %v18863_v51, %v14914_v43  ;;  %10313 = vmatpush.bf16.msrb.mxu1 %v14659_v24 }
 0x6d4   :  { %v18927_v33 = vld [vmem:[#allocation7 + $0xfb4] sm:$0xf0] }
 0x6d5   :  { %v14370_v62 = vld [vmem:[#allocation7 + $0x958] sm:$0xf]  ;;  %v15171_v45 = vor.u32 %v18927_v33, %v15170_v10  ;;  %10326 = vmatpush.bf16.msrb.mxu2 %v14915_v39 }
 0x6d6   :  { %v18727_v40 = vld [vmem:[#allocation7 + $0x974] sm:$0xf0] }
 0x6d7   :  { %v14626_v9 = vld [vmem:[#allocation7 + $0xb58] sm:$0xf]  ;;  %v14371_v17 = vor.u32 %v18727_v40, %v14370_v62  ;;  %10339 = vmatpush.bf16.msrb.mxu3 %v15171_v45 }
 0x6d8   :  { %v18791_v47 = vld [vmem:[#allocation7 + $0xb74] sm:$0xf0] }
 0x6d9   :  { %v14882_v52 = vld [vmem:[#allocation7 + $0xd58] sm:$0xf]  ;;  %v14627_v36 = vor.u32 %v18791_v47, %v14626_v9  ;;  %10301 = vmatpush.bf16.msrb.mxu0 %v14371_v17  ;;  %v10074_v47 = vpop.f32.mrf.mxu2  ;;  %v10087_v17 = vpop.f32.mrf.mxu3 }
 0x6da   :  { %v18855_v26 = vld [vmem:[#allocation7 + $0xd74] sm:$0xf0] }
 0x6db   :  { %v15138_v56 = vld [vmem:[#allocation7 + $0xf58] sm:$0xf]  ;;  %v14883_v54 = vor.u32 %v18855_v26, %v14882_v52  ;;  %10314 = vmatpush.bf16.msrb.mxu1 %v14627_v36  ;;  %v10050_v36 = vpop.f32.mrf.mxu0 }
 0x6dc   :  { %v18919_v49 = vld [vmem:[#allocation7 + $0xf74] sm:$0xf0] }
 0x6dd   :  { %v14338_v38 = vld [vmem:[#allocation7 + $0x918] sm:$0xf]  ;;  %v15139_v58 = vor.u32 %v18919_v49, %v15138_v56  ;;  %10327 = vmatpush.bf16.msrb.mxu2 %v14883_v54  ;;  %v10075_v49 = vadd.f32 %v10074_v47, %v10062_v60 }
 0x6de   :  { %v18719_v48 = vld [vmem:[#allocation7 + $0x934] sm:$0xf0] }
 0x6df   :  { %v14594_v3 = vld [vmem:[#allocation7 + $0xb18] sm:$0xf]  ;;  %v14339_v13 = vor.u32 %v18719_v48, %v14338_v38  ;;  %10340 = vmatpush.bf16.msrb.mxu3 %v15139_v58  ;;  %v10063_v48 = vpop.f32.mrf.mxu1  ;;  %v20316_v57 = vadd.f32 %v10087_v17, %v10075_v49 }
 0x6e0   :  { %v18783_v2 = vld [vmem:[#allocation7 + $0xb34] sm:$0xf0] }
 0x6e1   :  { %v14850_v34 = vld [vmem:[#allocation7 + $0xd18] sm:$0xf]  ;;  %v14595_v1 = vor.u32 %v18783_v2, %v14594_v3  ;;  %10302 = vmatpush.bf16.msrb.mxu0 %v14339_v13 }
 0x6e2   :  { %v18847_v63 = vld [vmem:[#allocation7 + $0xd34] sm:$0xf0] }
 0x6e3   :  { %v15106_v37 = vld [vmem:[#allocation7 + $0xf18] sm:$0xf]  ;;  %v14851_v25 = vor.u32 %v18847_v63, %v14850_v34  ;;  %10315 = vmatpush.bf16.msrb.mxu1 %v14595_v1 }
 0x6e4   :  { %v18911_v7 = vld [vmem:[#allocation7 + $0xf34] sm:$0xf0] }
 0x6e5   :  { %v14306_v4 = vld [vmem:[#allocation7 + $0x8d8] sm:$0xf]  ;;  %v15107_v15 = vor.u32 %v18911_v7, %v15106_v37  ;;  %10328 = vmatpush.bf16.msrb.mxu2 %v14851_v25 }
 0x6e6   :  { %v18711_v21 = vld [vmem:[#allocation7 + $0x8f4] sm:$0xf0] }
 0x6e7   :  { %v14562_v59 = vld [vmem:[#allocation7 + $0xad8] sm:$0xf]  ;;  %v14307_v6 = vor.u32 %v18711_v21, %v14306_v4  ;;  %10341 = vmatpush.bf16.msrb.mxu3 %v15107_v15 }
 0x6e8   :  { %v18775_v43 = vld [vmem:[#allocation7 + $0xaf4] sm:$0xf0] }
 0x6e9   :  { %v14818_v51 = vld [vmem:[#allocation7 + $0xcd8] sm:$0xf]  ;;  %v14563_v24 = vor.u32 %v18775_v43, %v14562_v59  ;;  %10303 = vmatpush.bf16.msrb.mxu0 %v14307_v6 }
 0x6ea   :  { %v18839_v10 = vld [vmem:[#allocation7 + $0xcf4] sm:$0xf0] }
 0x6eb   :  { %v15074_v33 = vld [vmem:[#allocation7 + $0xed8] sm:$0xf]  ;;  %v14819_v39 = vor.u32 %v18839_v10, %v14818_v51  ;;  %10316 = vmatpush.bf16.msrb.mxu1 %v14563_v24 }
 0x6ec   :  { %v18903_v30 = vld [vmem:[#allocation7 + $0xef4] sm:$0xf0] }
 0x6ed   :  { %v14274_v62 = vld [vmem:[#allocation7 + $0x898] sm:$0xf]  ;;  %v15075_v45 = vor.u32 %v18903_v30, %v15074_v33  ;;  %10329 = vmatpush.bf16.msrb.mxu2 %v14819_v39  ;;  %v10076_v33 = vpop.f32.mrf.mxu2  ;;  %v10089_v39 = vpop.f32.mrf.mxu3 }
 0x6ee   :  { %v18703_v40 = vld [vmem:[#allocation7 + $0x8b4] sm:$0xf0] }
 0x6ef   :  { %v14530_v9 = vld [vmem:[#allocation7 + $0xa98] sm:$0xf]  ;;  %v14275_v3 = vor.u32 %v18703_v40, %v14274_v62  ;;  %10342 = vmatpush.bf16.msrb.mxu3 %v15075_v45 }
 0x6f0   :  { %v18767_v52 = vld [vmem:[#allocation7 + $0xab4] sm:$0xf0] }
 0x6f1   :  { %v14786_v26 = vld [vmem:[#allocation7 + $0xc98] sm:$0xf]  ;;  %v14531_v58 = vor.u32 %v18767_v52, %v14530_v9  ;;  %10304 = vmatpush.bf16.msrb.mxu0 %v14275_v3 }
 0x6f2   :  { %v18831_v56 = vld [vmem:[#allocation7 + $0xcb4] sm:$0xf0] }
 0x6f3   :  { %v15042_v54 = vld [vmem:[#allocation7 + $0xe98] sm:$0xf]  ;;  %v14787_v2 = vor.u32 %v18831_v56, %v14786_v26  ;;  %10317 = vmatpush.bf16.msrb.mxu1 %v14531_v58 }
 0x6f4   :  { %v18895_v38 = vld [vmem:[#allocation7 + $0xeb4] sm:$0xf0] }
 0x6f5   :  { %v14242_v34 = vld [vmem:[#allocation7 + $0x858] sm:$0xf]  ;;  %v15043_v37 = vor.u32 %v18895_v38, %v15042_v54  ;;  %10330 = vmatpush.bf16.msrb.mxu2 %v14787_v2 }
 0x6f6   :  { %v18695_v63 = vld [vmem:[#allocation7 + $0x874] sm:$0xf0] }
 0x6f7   :  { %v14498_v53 = vld [vmem:[#allocation7 + $0xa58] sm:$0xf]  ;;  %v14243_v25 = vor.u32 %v18695_v63, %v14242_v34  ;;  %10343 = vmatpush.bf16.msrb.mxu3 %v15043_v37 }
 0x6f8   :  { %v18759_v7 = vld [vmem:[#allocation7 + $0xa74] sm:$0xf0] }
 0x6f9   :  { %v14754_v8 = vld [vmem:[#allocation7 + $0xc58] sm:$0xf]  ;;  %v14499_v59 = vor.u32 %v18759_v7, %v14498_v53  ;;  %10305 = vmatpush.bf16.msrb.mxu0 %v14243_v25 }
 0x6fa   :  { %v18823_v0 = vld [vmem:[#allocation7 + $0xc74] sm:$0xf0] }
 0x6fb   :  { %v15010_v13 = vld [vmem:[#allocation7 + $0xe58] sm:$0xf]  ;;  %v14755_v60 = vor.u32 %v18823_v0, %v14754_v8  ;;  %10318 = vmatpush.bf16.msrb.mxu1 %v14499_v59 }
 0x6fc   :  { %v18887_v1 = vld [vmem:[#allocation7 + $0xe74] sm:$0xf0] }
 0x6fd   :  { %v14210_v4 = vld [vmem:[#allocation7 + $0x818] sm:$0xf]  ;;  %v15011_v10 = vor.u32 %v18887_v1, %v15010_v13  ;;  %10331 = vmatpush.bf16.msrb.mxu2 %v14755_v60 }
 0x6fe   :  { %v18687_v21 = vld [vmem:[#allocation7 + $0x834] sm:$0xf0] }
 0x6ff   :  { %v14466_v15 = vld [vmem:[#allocation7 + $0xa18] sm:$0xf]  ;;  %v14211_v45 = vor.u32 %v18687_v21, %v14210_v4  ;;  %10344 = vmatpush.bf16.msrb.mxu3 %v15011_v10 }
 0x700   :  { %v18751_v43 = vld [vmem:[#allocation7 + $0xa34] sm:$0xf0] }
 0x701   :  { %v14722_v51 = vld [vmem:[#allocation7 + $0xc18] sm:$0xf]  ;;  %v14467_v56 = vor.u32 %v18751_v43, %v14466_v15  ;;  %10306 = vmatpush.bf16.msrb.mxu0 %v14211_v45 }
 0x702   :  { %v18815_v30 = vld [vmem:[#allocation7 + $0xc34] sm:$0xf0] }
 0x703   :  { %v14978_v6 = vld [vmem:[#allocation7 + $0xe18] sm:$0xf]  ;;  %v14723_v49 = vor.u32 %v18815_v30, %v14722_v51  ;;  %10319 = vmatpush.bf16.msrb.mxu1 %v14467_v56 }
 0x704   :  { %v18879_v24 = vld [vmem:[#allocation7 + $0xe34] sm:$0xf0]  ;;  %10307 = vmatmul.bf16.vlgmr.msrb.gmra.mxu0 %v20052_v16 }
 0x705   :  { %v15458_v62 = vld [vmem:[#allocation7 + $0x11d8] sm:$0xf]  ;;  %v14979_v54 = vor.u32 %v18879_v24, %v14978_v6  ;;  %10332 = vmatpush.bf16.msrb.mxu2 %v14723_v49 }
 0x706   :  { %v18999_v40 = vld [vmem:[#allocation7 + $0x11f4] sm:$0xf0]  ;;  %10320 = vmatmul.bf16.vlgmr.msrb.gmra.mxu1 %v20057_v29 }
 0x707   :  { %v15714_v9 = vld [vmem:[#allocation7 + $0x13d8] sm:$0xf]  ;;  %v15459_v38 = vor.u32 %v18999_v40, %v15458_v62  ;;  %10345 = vmatpush.bf16.msrb.mxu3 %v14979_v54 }
 0x708   :  { %v19063_v47 = vld [vmem:[#allocation7 + $0x13f4] sm:$0xf0]  ;;  %10333 = vmatmul.bf16.vlgmr.msrb.gmra.mxu2 %v20091_v41 }
 0x709   :  { %v15970_v52 = vld [vmem:[#allocation7 + $0x15d8] sm:$0xf]  ;;  %v15715_v48 = vor.u32 %v19063_v47, %v15714_v9  ;;  %10351 = vmatpush.bf16.msra.mxu0 %v15459_v38 }
 0x70a   :  { %v19127_v26 = vld [vmem:[#allocation7 + $0x15f4] sm:$0xf0]  ;;  %10346 = vmatmul.bf16.vlgmr.msrb.gmra.mxu3 %v20095_v42 }
 0x70b   :  { %v16226_v17 = vld [vmem:[#allocation7 + $0x17d8] sm:$0xf]  ;;  %v15971_v3 = vor.u32 %v19127_v26, %v15970_v52  ;;  %10364 = vmatpush.bf16.msra.mxu1 %v15715_v48  ;;  %v10100_v26 = vpop.f32.mrf.mxu0 }
 0x70c   :  { %v19191_v36 = vld [vmem:[#allocation7 + $0x17f4] sm:$0xf0] }
 0x70d   :  { %v15426_v58 = vld [vmem:[#allocation7 + $0x1198] sm:$0xf]  ;;  %v16227_v63 = vor.u32 %v19191_v36, %v16226_v17  ;;  %10377 = vmatpush.bf16.msra.mxu2 %v15971_v3  ;;  %v10101_v17 = vadd.f32 %v10100_v26, %v20316_v57  ;;  %v10113_v36 = vpop.f32.mrf.mxu1 }
 0x70e   :  { %v18991_v2 = vld [vmem:[#allocation7 + $0x11b4] sm:$0xf0] }
 0x70f   :  { %v15682_v34 = vld [vmem:[#allocation7 + $0x1398] sm:$0xf]  ;;  %v15427_v13 = vor.u32 %v18991_v2, %v15426_v58  ;;  %10390 = vmatpush.bf16.msra.mxu3 %v16227_v63 }
 0x710   :  { %v19055_v53 = vld [vmem:[#allocation7 + $0x13b4] sm:$0xf0] }
 0x711   :  { %v15938_v37 = vld [vmem:[#allocation7 + $0x1598] sm:$0xf]  ;;  %v15683_v1 = vor.u32 %v19055_v53, %v15682_v34  ;;  %10352 = vmatpush.bf16.msra.mxu0 %v15427_v13  ;;  %v10114_v34 = vadd.f32 %v10113_v36, %v10101_v17 }
 0x712   :  { %v19119_v7 = vld [vmem:[#allocation7 + $0x15b4] sm:$0xf0] }
 0x713   :  { %v16194_v8 = vld [vmem:[#allocation7 + $0x1798] sm:$0xf]  ;;  %v15939_v25 = vor.u32 %v19119_v7, %v15938_v37  ;;  %10365 = vmatpush.bf16.msra.mxu1 %v15683_v1 }
 0x714   :  { %v19183_v0 = vld [vmem:[#allocation7 + $0x17b4] sm:$0xf0] }
 0x715   :  { %v15394_v4 = vld [vmem:[#allocation7 + $0x1158] sm:$0xf]  ;;  %v16195_v60 = vor.u32 %v19183_v0, %v16194_v8  ;;  %10378 = vmatpush.bf16.msra.mxu2 %v15939_v25 }
 0x716   :  { %v18983_v21 = vld [vmem:[#allocation7 + $0x1174] sm:$0xf0] }
 0x717   :  { %v15650_v59 = vld [vmem:[#allocation7 + $0x1358] sm:$0xf]  ;;  %v15395_v30 = vor.u32 %v18983_v21, %v15394_v4  ;;  %10391 = vmatpush.bf16.msra.mxu3 %v16195_v60  ;;  %v10126_v60 = vpop.f32.mrf.mxu2 }
 0x718   :  { %v19047_v15 = vld [vmem:[#allocation7 + $0x1374] sm:$0xf0] }
 0x719   :  { %v15906_v43 = vld [vmem:[#allocation7 + $0x1558] sm:$0xf]  ;;  %v15651_v6 = vor.u32 %v19047_v15, %v15650_v59  ;;  %10353 = vmatpush.bf16.msra.mxu0 %v15395_v30  ;;  %v10102_v30 = vpop.f32.mrf.mxu0 }
 0x71a   :  { %v19111_v51 = vld [vmem:[#allocation7 + $0x1574] sm:$0xf0] }
 0x71b   :  { %v16162_v10 = vld [vmem:[#allocation7 + $0x1758] sm:$0xf]  ;;  %v15907_v24 = vor.u32 %v19111_v51, %v15906_v43  ;;  %10366 = vmatpush.bf16.msra.mxu1 %v15651_v6 }
 0x71c   :  { %v19175_v33 = vld [vmem:[#allocation7 + $0x1774] sm:$0xf0] }
 0x71d   :  { %v15362_v39 = vld [vmem:[#allocation7 + $0x1118] sm:$0xf]  ;;  %v16163_v9 = vor.u32 %v19175_v33, %v16162_v10  ;;  %10379 = vmatpush.bf16.msra.mxu2 %v15907_v24  ;;  %v10127_v10 = vadd.f32 %v10126_v60, %v10114_v34  ;;  %v10139_v33 = vpop.f32.mrf.mxu3 }
 0x71e   :  { %v18975_v62 = vld [vmem:[#allocation7 + $0x1134] sm:$0xf0] }
 0x71f   :  { %v15618_v40 = vld [vmem:[#allocation7 + $0x1318] sm:$0xf]  ;;  %v15363_v54 = vor.u32 %v18975_v62, %v15362_v39  ;;  %10392 = vmatpush.bf16.msra.mxu3 %v16163_v9  ;;  %v10115_v39 = vpop.f32.mrf.mxu1 }
 0x720   :  { %v19039_v45 = vld [vmem:[#allocation7 + $0x1334] sm:$0xf0] }
 0x721   :  { %v15874_v47 = vld [vmem:[#allocation7 + $0x1518] sm:$0xf]  ;;  %v15619_v38 = vor.u32 %v19039_v45, %v15618_v40  ;;  %10354 = vmatpush.bf16.msra.mxu0 %v15363_v54  ;;  %v20323_v40 = vadd.f32 %v10139_v33, %v10127_v10 }
 0x722   :  { %v19103_v52 = vld [vmem:[#allocation7 + $0x1534] sm:$0xf0] }
 0x723   :  { %v16130_v56 = vld [vmem:[#allocation7 + $0x1718] sm:$0xf]  ;;  %v15875_v48 = vor.u32 %v19103_v52, %v15874_v47  ;;  %10367 = vmatpush.bf16.msra.mxu1 %v15619_v38 }
 0x724   :  { %v19167_v49 = vld [vmem:[#allocation7 + $0x1734] sm:$0xf0] }
 0x725   :  { %v15330_v3 = vld [vmem:[#allocation7 + $0x10d8] sm:$0xf]  ;;  %v16131_v63 = vor.u32 %v19167_v49, %v16130_v56  ;;  %10380 = vmatpush.bf16.msra.mxu2 %v15875_v48 }
 0x726   :  { %v18967_v58 = vld [vmem:[#allocation7 + $0x10f4] sm:$0xf0] }
 0x727   :  { %v15586_v2 = vld [vmem:[#allocation7 + $0x12d8] sm:$0xf]  ;;  %v15331_v13 = vor.u32 %v18967_v58, %v15330_v3  ;;  %10393 = vmatpush.bf16.msra.mxu3 %v16131_v63 }
 0x728   :  { %v19031_v53 = vld [vmem:[#allocation7 + $0x12f4] sm:$0xf0] }
 0x729   :  { %v15842_v37 = vld [vmem:[#allocation7 + $0x14d8] sm:$0xf]  ;;  %v15587_v57 = vor.u32 %v19031_v53, %v15586_v2  ;;  %10355 = vmatpush.bf16.msra.mxu0 %v15331_v13 }
 0x72a   :  { %v19095_v7 = vld [vmem:[#allocation7 + $0x14f4] sm:$0xf0] }
 0x72b   :  { %v16098_v8 = vld [vmem:[#allocation7 + $0x16d8] sm:$0xf]  ;;  %v15843_v1 = vor.u32 %v19095_v7, %v15842_v37  ;;  %10368 = vmatpush.bf16.msra.mxu1 %v15587_v57 }
 0x72c   :  { %v19159_v0 = vld [vmem:[#allocation7 + $0x16f4] sm:$0xf0] }
 0x72d   :  { %v15298_v25 = vld [vmem:[#allocation7 + $0x1098] sm:$0xf]  ;;  %v16099_v59 = vor.u32 %v19159_v0, %v16098_v8  ;;  %10381 = vmatpush.bf16.msra.mxu2 %v15843_v1  ;;  %v10128_v8 = vpop.f32.mrf.mxu2  ;;  %v10141_v1 = vpop.f32.mrf.mxu3 }
 0x72e   :  { %v18959_v4 = vld [vmem:[#allocation7 + $0x10b4] sm:$0xf0] }
 0x72f   :  { %v15554_v21 = vld [vmem:[#allocation7 + $0x1298] sm:$0xf]  ;;  %v15299_v62 = vor.u32 %v18959_v4, %v15298_v25  ;;  %10394 = vmatpush.bf16.msra.mxu3 %v16099_v59 }
 0x730   :  { %v19023_v15 = vld [vmem:[#allocation7 + $0x12b4] sm:$0xf0] }
 0x731   :  { %v15810_v43 = vld [vmem:[#allocation7 + $0x1498] sm:$0xf]  ;;  %v15555_v9 = vor.u32 %v19023_v15, %v15554_v21  ;;  %10356 = vmatpush.bf16.msra.mxu0 %v15299_v62 }
 0x732   :  { %v19087_v51 = vld [vmem:[#allocation7 + $0x14b4] sm:$0xf0] }
 0x733   :  { %v16066_v6 = vld [vmem:[#allocation7 + $0x1698] sm:$0xf]  ;;  %v15811_v45 = vor.u32 %v19087_v51, %v15810_v43  ;;  %10369 = vmatpush.bf16.msra.mxu1 %v15555_v9 }
 0x734   :  { %v19151_v24 = vld [vmem:[#allocation7 + $0x16b4] sm:$0xf0] }
 0x735   :  { %v15266_v47 = vld [vmem:[#allocation7 + $0x1058] sm:$0xf]  ;;  %v16067_v56 = vor.u32 %v19151_v24, %v16066_v6  ;;  %10382 = vmatpush.bf16.msra.mxu2 %v15811_v45 }
 0x736   :  { %v18951_v52 = vld [vmem:[#allocation7 + $0x1074] sm:$0xf0] }
 0x737   :  { %v15522_v26 = vld [vmem:[#allocation7 + $0x1258] sm:$0xf]  ;;  %v15267_v48 = vor.u32 %v18951_v52, %v15266_v47  ;;  %10395 = vmatpush.bf16.msra.mxu3 %v16067_v56 }
 0x738   :  { %v19015_v49 = vld [vmem:[#allocation7 + $0x1274] sm:$0xf0] }
 0x739   :  { %v15778_v17 = vld [vmem:[#allocation7 + $0x1458] sm:$0xf]  ;;  %v15523_v2 = vor.u32 %v19015_v49, %v15522_v26  ;;  %10357 = vmatpush.bf16.msra.mxu0 %v15267_v48 }
 0x73a   :  { %v19079_v36 = vld [vmem:[#allocation7 + $0x1474] sm:$0xf0] }
 0x73b   :  { %v16034_v54 = vld [vmem:[#allocation7 + $0x1658] sm:$0xf]  ;;  %v15779_v34 = vor.u32 %v19079_v36, %v15778_v17  ;;  %10370 = vmatpush.bf16.msra.mxu1 %v15523_v2 }
 0x73c   :  { %v19143_v38 = vld [vmem:[#allocation7 + $0x1674] sm:$0xf0] }
 0x73d   :  { %v15234_v3 = vld [vmem:[#allocation7 + $0x1018] sm:$0xf]  ;;  %v16035_v7 = vor.u32 %v19143_v38, %v16034_v54  ;;  %10383 = vmatpush.bf16.msra.mxu2 %v15779_v34 }
 0x73e   :  { %v18943_v58 = vld [vmem:[#allocation7 + $0x1034] sm:$0xf0] }
 0x73f   :  { %v15490_v63 = vld [vmem:[#allocation7 + $0x1218] sm:$0xf]  ;;  %v15235_v59 = vor.u32 %v18943_v58, %v15234_v3  ;;  %10396 = vmatpush.bf16.msra.mxu3 %v16035_v7 }
 0x740   :  { %v19007_v53 = vld [vmem:[#allocation7 + $0x1234] sm:$0xf0] }
 0x741   :  { %v15746_v37 = vld [vmem:[#allocation7 + $0x1418] sm:$0xf]  ;;  %v15491_v51 = vor.u32 %v19007_v53, %v15490_v63  ;;  %10358 = vmatpush.bf16.msra.mxu0 %v15235_v59 }
 0x742   :  { %v19071_v0 = vld [vmem:[#allocation7 + $0x1434] sm:$0xf0] }
 0x743   :  { %v16002_v13 = vld [vmem:[#allocation7 + $0x1618] sm:$0xf]  ;;  %v15747_v10 = vor.u32 %v19071_v0, %v15746_v37  ;;  %10371 = vmatpush.bf16.msra.mxu1 %v15491_v51 }
 0x744   :  { %v19135_v57 = vld [vmem:[#allocation7 + $0x1634] sm:$0xf0]  ;;  %10359 = vmatmul.bf16.vlgmr.msra.gmra.mxu0 %v20105_v35 }
 0x745   :  { %v16482_v25 = vld [vmem:[#allocation7 + $0x19d8] sm:$0xf]  ;;  %v16003_v6 = vor.u32 %v19135_v57, %v16002_v13  ;;  %10384 = vmatpush.bf16.msra.mxu2 %v15747_v10 }
 0x746   :  { %v19255_v4 = vld [vmem:[#allocation7 + $0x19f4] sm:$0xf0]  ;;  %10372 = vmatmul.bf16.vlgmr.msra.gmra.mxu1 %v20097_v44 }
 0x747   :  { %v16738_v21 = vld [vmem:[#allocation7 + $0x1bd8] sm:$0xf]  ;;  %v16483_v24 = vor.u32 %v19255_v4, %v16482_v25  ;;  %10397 = vmatpush.bf16.msra.mxu3 %v16003_v6 }
 0x748   :  { %v19319_v60 = vld [vmem:[#allocation7 + $0x1bf4] sm:$0xf0]  ;;  %10385 = vmatmul.bf16.vlgmr.msra.gmra.mxu2 %v20124_v14 }
 0x749   :  { %v16994_v15 = vld [vmem:[#allocation7 + $0x1dd8] sm:$0xf]  ;;  %v16739_v39 = vor.u32 %v19319_v60, %v16738_v21  ;;  %10403 = vmatpush.bf16.msrb.mxu0 %v16483_v24 }
 0x74a   :  { %v19383_v43 = vld [vmem:[#allocation7 + $0x1df4] sm:$0xf0]  ;;  %10398 = vmatmul.bf16.vlgmr.msra.gmra.mxu3 %v20120_v11 }
 0x74b   :  { %v17250_v33 = vld [vmem:[#allocation7 + $0x1fd8] sm:$0xf]  ;;  %v16995_v62 = vor.u32 %v19383_v43, %v16994_v15  ;;  %10416 = vmatpush.bf16.msrb.mxu1 %v16739_v39  ;;  %v10152_v43 = vpop.f32.mrf.mxu0 }
 0x74c   :  { %v19447_v30 = vld [vmem:[#allocation7 + $0x1ff4] sm:$0xf0] }
 0x74d   :  { %v16450_v9 = vld [vmem:[#allocation7 + $0x1998] sm:$0xf]  ;;  %v17251_v52 = vor.u32 %v19447_v30, %v17250_v33  ;;  %10429 = vmatpush.bf16.msrb.mxu2 %v16995_v62  ;;  %v10153_v33 = vadd.f32 %v10152_v43, %v20323_v40  ;;  %v10165_v30 = vpop.f32.mrf.mxu1 }
 0x74e   :  { %v19247_v45 = vld [vmem:[#allocation7 + $0x19b4] sm:$0xf0] }
 0x74f   :  { %v16706_v47 = vld [vmem:[#allocation7 + $0x1b98] sm:$0xf]  ;;  %v16451_v54 = vor.u32 %v19247_v45, %v16450_v9  ;;  %10442 = vmatpush.bf16.msrb.mxu3 %v17251_v52 }
 0x750   :  { %v19311_v26 = vld [vmem:[#allocation7 + $0x1bb4] sm:$0xf0] }
 0x751   :  { %v16962_v56 = vld [vmem:[#allocation7 + $0x1d98] sm:$0xf]  ;;  %v16707_v38 = vor.u32 %v19311_v26, %v16706_v47  ;;  %10404 = vmatpush.bf16.msrb.mxu0 %v16451_v54  ;;  %v10166_v47 = vadd.f32 %v10165_v30, %v10153_v33 }
 0x752   :  { %v19375_v49 = vld [vmem:[#allocation7 + $0x1db4] sm:$0xf0] }
 0x753   :  { %v17218_v17 = vld [vmem:[#allocation7 + $0x1f98] sm:$0xf]  ;;  %v16963_v48 = vor.u32 %v19375_v49, %v16962_v56  ;;  %10417 = vmatpush.bf16.msrb.mxu1 %v16707_v38 }
 0x754   :  { %v19439_v36 = vld [vmem:[#allocation7 + $0x1fb4] sm:$0xf0] }
 0x755   :  { %v16418_v3 = vld [vmem:[#allocation7 + $0x1958] sm:$0xf]  ;;  %v17219_v34 = vor.u32 %v19439_v36, %v17218_v17  ;;  %10430 = vmatpush.bf16.msrb.mxu2 %v16963_v48 }
 0x756   :  { %v19239_v58 = vld [vmem:[#allocation7 + $0x1974] sm:$0xf0] }
 0x757   :  { %v16674_v2 = vld [vmem:[#allocation7 + $0x1b58] sm:$0xf]  ;;  %v16419_v0 = vor.u32 %v19239_v58, %v16418_v3  ;;  %10443 = vmatpush.bf16.msrb.mxu3 %v17219_v34  ;;  %v10178_v34 = vpop.f32.mrf.mxu2 }
 0x758   :  { %v19303_v63 = vld [vmem:[#allocation7 + $0x1b74] sm:$0xf0] }
 0x759   :  { %v16930_v53 = vld [vmem:[#allocation7 + $0x1d58] sm:$0xf]  ;;  %v16675_v13 = vor.u32 %v19303_v63, %v16674_v2  ;;  %10405 = vmatpush.bf16.msrb.mxu0 %v16419_v0  ;;  %v10154_v0 = vpop.f32.mrf.mxu0 }
 0x75a   :  { %v19367_v37 = vld [vmem:[#allocation7 + $0x1d74] sm:$0xf0]  ;;  %v13924_v0 = vld [vmem:[#allocation7 + $0x5f8] sm:$0xf0] }
 0x75b   :  { %v17186_v7 = vld [vmem:[#allocation7 + $0x1f58] sm:$0xf]  ;;  %v16931_v57 = vor.u32 %v19367_v37, %v16930_v53  ;;  %10418 = vmatpush.bf16.msrb.mxu1 %v16675_v13 }
 0x75c   :  { %v19431_v8 = vld [vmem:[#allocation7 + $0x1f74] sm:$0xf0] }
 0x75d   :  { %v16386_v1 = vld [vmem:[#allocation7 + $0x1918] sm:$0xf]  ;;  %v17187_v21 = vor.u32 %v19431_v8, %v17186_v7  ;;  %10431 = vmatpush.bf16.msrb.mxu2 %v16931_v57  ;;  %v10179_v7 = vadd.f32 %v10178_v34, %v10166_v47  ;;  %v10191_v8 = vpop.f32.mrf.mxu3  ;;  %v13412_v34 = vld [vmem:[#allocation7 + $0x1f8] sm:$0xf0] }
 0x75e   :  { %v19231_v25 = vld [vmem:[#allocation7 + $0x1934] sm:$0xf0] }
 0x75f   :  { %v16642_v4 = vld [vmem:[#allocation7 + $0x1b18] sm:$0xf]  ;;  %v16387_v6 = vor.u32 %v19231_v25, %v16386_v1  ;;  %10444 = vmatpush.bf16.msrb.mxu3 %v17187_v21  ;;  %v10167_v1 = vpop.f32.mrf.mxu1 }
 0x760   :  { %v19295_v59 = vld [vmem:[#allocation7 + $0x1b34] sm:$0xf0] }
 0x761   :  { %v16898_v60 = vld [vmem:[#allocation7 + $0x1d18] sm:$0xf]  ;;  %v16643_v24 = vor.u32 %v19295_v59, %v16642_v4  ;;  %10406 = vmatpush.bf16.msrb.mxu0 %v16387_v6  ;;  %v20330_v4 = vadd.f32 %v10191_v8, %v10179_v7  ;;  %v18611_v8 = vld [vmem:[#allocation7 + $0x5dc] sm:$0xf] }
 0x762   :  { %v19359_v15 = vld [vmem:[#allocation7 + $0x1d34] sm:$0xf0] }
 0x763   :  { %v17154_v51 = vld [vmem:[#allocation7 + $0x1f18] sm:$0xf]  ;;  %v16899_v39 = vor.u32 %v19359_v15, %v16898_v60  ;;  %10419 = vmatpush.bf16.msrb.mxu1 %v16643_v24 }
 0x764   :  { %v19423_v10 = vld [vmem:[#allocation7 + $0x1f34] sm:$0xf0] }
 0x765   :  { %v16354_v62 = vld [vmem:[#allocation7 + $0x18d8] sm:$0xf]  ;;  %v17155_v52 = vor.u32 %v19423_v10, %v17154_v51  ;;  %10432 = vmatpush.bf16.msrb.mxu2 %v16899_v39 }
 0x766   :  { %v19223_v9 = vld [vmem:[#allocation7 + $0x18f4] sm:$0xf0] }
 0x767   :  { %v16610_v45 = vld [vmem:[#allocation7 + $0x1ad8] sm:$0xf]  ;;  %v16355_v54 = vor.u32 %v19223_v9, %v16354_v62  ;;  %10445 = vmatpush.bf16.msrb.mxu3 %v17155_v52 }
 0x768   :  { %v19287_v26 = vld [vmem:[#allocation7 + $0x1af4] sm:$0xf0] }
 0x769   :  { %v16866_v56 = vld [vmem:[#allocation7 + $0x1cd8] sm:$0xf]  ;;  %v16611_v40 = vor.u32 %v19287_v26, %v16610_v45  ;;  %10407 = vmatpush.bf16.msrb.mxu0 %v16355_v54 }
 0x76a   :  { %v19351_v49 = vld [vmem:[#allocation7 + $0x1cf4] sm:$0xf0] }
 0x76b   :  { %v17122_v17 = vld [vmem:[#allocation7 + $0x1ed8] sm:$0xf]  ;;  %v16867_v38 = vor.u32 %v19351_v49, %v16866_v56  ;;  %10420 = vmatpush.bf16.msrb.mxu1 %v16611_v40 }
 0x76c   :  { %v19415_v36 = vld [vmem:[#allocation7 + $0x1ef4] sm:$0xf0] }
 0x76d   :  { %v16322_v48 = vld [vmem:[#allocation7 + $0x1898] sm:$0xf]  ;;  %v17123_v2 = vor.u32 %v19415_v36, %v17122_v17  ;;  %10433 = vmatpush.bf16.msrb.mxu2 %v16867_v38  ;;  %v10180_v17 = vpop.f32.mrf.mxu2  ;;  %v10193_v38 = vpop.f32.mrf.mxu3 }
 0x76e   :  { %v19215_v3 = vld [vmem:[#allocation7 + $0x18b4] sm:$0xf0]  ;;  %v13860_v17 = vld [vmem:[#allocation7 + $0x578] sm:$0xf0] }
 0x76f   :  { %v16578_v58 = vld [vmem:[#allocation7 + $0x1a98] sm:$0xf]  ;;  %v16323_v25 = vor.u32 %v19215_v3, %v16322_v48  ;;  %10446 = vmatpush.bf16.msrb.mxu3 %v17123_v2 }
 0x770   :  { %v19279_v63 = vld [vmem:[#allocation7 + $0x1ab4] sm:$0xf0] }
 0x771   :  { %v16834_v53 = vld [vmem:[#allocation7 + $0x1c98] sm:$0xf]  ;;  %v16579_v21 = vor.u32 %v19279_v63, %v16578_v58  ;;  %10408 = vmatpush.bf16.msrb.mxu0 %v16323_v25  ;;  %v18483_v58 = vld [vmem:[#allocation7 + $0x1dc] sm:$0xf] }
 0x772   :  { %v19343_v37 = vld [vmem:[#allocation7 + $0x1cb4] sm:$0xf0]  ;;  %v18547_v63 = vld [vmem:[#allocation7 + $0x3dc] sm:$0xf]  ;;  %v13415_v1 = vor.u32 %v18483_v58, %v13412_v34 }
 0x773   :  { %v17090_v13 = vld [vmem:[#allocation7 + $0x1e98] sm:$0xf]  ;;  %v16835_v59 = vor.u32 %v19343_v37, %v16834_v53  ;;  %10421 = vmatpush.bf16.msrb.mxu1 %v16579_v21  ;;  %v13668_v53 = vld [vmem:[#allocation7 + $0x3f8] sm:$0xf0] }
 0x774   :  { %v19407_v57 = vld [vmem:[#allocation7 + $0x1eb4] sm:$0xf0]  ;;  %v13671_v25 = vor.u32 %v18547_v63, %v13668_v53  ;;  %v18523_v34 = vld [vmem:[#allocation7 + $0x31c] sm:$0xf]  ;;  %v10204_v53 = vpop.f32.mrf.mxu0 }
 0x775   :  { %v16290_v60 = vld [vmem:[#allocation7 + $0x1858] sm:$0xf]  ;;  %v17091_v51 = vor.u32 %v19407_v57, %v17090_v13  ;;  %10434 = vmatpush.bf16.msrb.mxu2 %v16835_v59  ;;  %v13572_v63 = vld [vmem:[#allocation7 + $0x338] sm:$0xf0] }
 0x776   :  { %v19207_v15 = vld [vmem:[#allocation7 + $0x1874] sm:$0xf0] }
 0x777   :  { %v16546_v43 = vld [vmem:[#allocation7 + $0x1a58] sm:$0xf]  ;;  %v16291_v39 = vor.u32 %v19207_v15, %v16290_v60  ;;  %10447 = vmatpush.bf16.msrb.mxu3 %v17091_v51  ;;  %v18475_v60 = vld [vmem:[#allocation7 + $0x19c] sm:$0xf]  ;;  %v13927_v15 = vor.u32 %v18611_v8, %v13924_v0  ;;  %v10205_v8 = vadd.f32 %v10204_v53, %v20330_v4  ;;  %v10217_v0 = vpop.f32.mrf.mxu1 }
 0x778   :  { %v19271_v10 = vld [vmem:[#allocation7 + $0x1a74] sm:$0xf0]  ;;  %v18539_v51 = vld [vmem:[#allocation7 + $0x39c] sm:$0xf] }
 0x779   :  { %v16802_v33 = vld [vmem:[#allocation7 + $0x1c58] sm:$0xf]  ;;  %v16547_v45 = vor.u32 %v19271_v10, %v16546_v43  ;;  %10409 = vmatpush.bf16.msrb.mxu0 %v16291_v39  ;;  %v13380_v43 = vld [vmem:[#allocation7 + $0x1b8] sm:$0xf0] }
 0x77a   :  { %v19335_v30 = vld [vmem:[#allocation7 + $0x1c74] sm:$0xf0]  ;;  %v13636_v10 = vld [vmem:[#allocation7 + $0x3b8] sm:$0xf0] }
 0x77b   :  { %v17058_v6 = vld [vmem:[#allocation7 + $0x1e58] sm:$0xf]  ;;  %v16803_v47 = vor.u32 %v19335_v30, %v16802_v33  ;;  %10422 = vmatpush.bf16.msrb.mxu1 %v16547_v45  ;;  %v18603_v33 = vld [vmem:[#allocation7 + $0x59c] sm:$0xf]  ;;  %v13639_v39 = vor.u32 %v18539_v51, %v13636_v10 }
 0x77c   :  { %v19399_v24 = vld [vmem:[#allocation7 + $0x1e74] sm:$0xf0]  ;;  %v13892_v30 = vld [vmem:[#allocation7 + $0x5b8] sm:$0xf0] }
 0x77d   :  { %v16258_v62 = vld [vmem:[#allocation7 + $0x1818] sm:$0xf]  ;;  %v17059_v49 = vor.u32 %v19399_v24, %v17058_v6  ;;  %10435 = vmatpush.bf16.msrb.mxu2 %v16803_v47  ;;  %v13383_v24 = vor.u32 %v18475_v60, %v13380_v43  ;;  %v18467_v45 = vld [vmem:[#allocation7 + $0x15c] sm:$0xf]  ;;  %v13895_v47 = vor.u32 %v18603_v33, %v13892_v30  ;;  %v10218_v60 = vadd.f32 %v10217_v0, %v10205_v8 }
 0x77e   :  { %v19199_v9 = vld [vmem:[#allocation7 + $0x1834] sm:$0xf0]  ;;  %v13284_v43 = vld [vmem:[#allocation7 + $0xf8] sm:$0xf0] }
 0x77f   :  { %v16514_v52 = vld [vmem:[#allocation7 + $0x1a18] sm:$0xf]  ;;  %v16259_v2 = vor.u32 %v19199_v9, %v16258_v62  ;;  %10448 = vmatpush.bf16.msrb.mxu3 %v17059_v49  ;;  %v18595_v49 = vld [vmem:[#allocation7 + $0x55c] sm:$0xf] }
 0x780   :  { %v19263_v26 = vld [vmem:[#allocation7 + $0x1a34] sm:$0xf0]  ;;  %v13863_v58 = vor.u32 %v18595_v49, %v13860_v17  ;;  %v18515_v51 = vld [vmem:[#allocation7 + $0x2dc] sm:$0xf]  ;;  %v10243_v17 = vpop.f32.mrf.mxu3 }
 0x781   :  { %v16770_v56 = vld [vmem:[#allocation7 + $0x1c18] sm:$0xf]  ;;  %v16515_v37 = vor.u32 %v19263_v26, %v16514_v52  ;;  %10410 = vmatpush.bf16.msrb.mxu0 %v16259_v2  ;;  %v13348_v52 = vld [vmem:[#allocation7 + $0x178] sm:$0xf0] }
 0x782   :  { %v19327_v36 = vld [vmem:[#allocation7 + $0x1c34] sm:$0xf0]  ;;  %v18531_v26 = vld [vmem:[#allocation7 + $0x35c] sm:$0xf] }
 0x783   :  { %v17026_v54 = vld [vmem:[#allocation7 + $0x1e18] sm:$0xf]  ;;  %v16771_v7 = vor.u32 %v19327_v36, %v16770_v56  ;;  %10423 = vmatpush.bf16.msrb.mxu1 %v16515_v37  ;;  %v13604_v56 = vld [vmem:[#allocation7 + $0x378] sm:$0xf0] }
 0x784   :  { %v19391_v40 = vld [vmem:[#allocation7 + $0x1e34] sm:$0xf0]  ;;  %10411 = vmatmul.bf16.vlgmr.msrb.gmra.mxu0 %v20122_v12  ;;  %v13316_v2 = vld [vmem:[#allocation7 + $0x138] sm:$0xf0] }
 0x785   :  { %v17506_v48 = vld [vmem:[#allocation7 + $0x21d8] sm:$0xf]  ;;  %v17027_v13 = vor.u32 %v19391_v40, %v17026_v54  ;;  %10436 = vmatpush.bf16.msrb.mxu2 %v16771_v7  ;;  %v13351_v54 = vor.u32 %v18467_v45, %v13348_v52  ;;  %v13607_v40 = vor.u32 %v18531_v26, %v13604_v56  ;;  %v18587_v37 = vld [vmem:[#allocation7 + $0x51c] sm:$0xf] }
 0x786   :  { %v19511_v3 = vld [vmem:[#allocation7 + $0x21f4] sm:$0xf0]  ;;  %10424 = vmatmul.bf16.vlgmr.msrb.gmra.mxu1 %v20126_v27  ;;  %v13828_v7 = vld [vmem:[#allocation7 + $0x538] sm:$0xf0] }
 0x787   :  { %v17507_v57 = vor.u32 %v19511_v3, %v17506_v48  ;;  %v17474_v21 = vld [vmem:[#allocation7 + $0x2198] sm:$0xf]  ;;  %10449 = vmatpush.bf16.msrb.mxu3 %v17027_v13  ;;  %10468 = vmatpush.bf16.msra.mxu1 %v13415_v1  ;;  %v18459_v3 = vld [vmem:[#allocation7 + $0x11c] sm:$0xf]  ;;  %v13575_v1 = vor.u32 %v18523_v34, %v13572_v63 }
 0x788   :  { %v19503_v59 = vld [vmem:[#allocation7 + $0x21b4] sm:$0xf0]  ;;  %10437 = vmatmul.bf16.vlgmr.msrb.gmra.mxu2 %v20134_v31  ;;  %v13540_v10 = vld [vmem:[#allocation7 + $0x2f8] sm:$0xf0] }
 0x789   :  { %10455 = vmatpush.bf16.msra.mxu0 %v17507_v57  ;;  %v17475_v6 = vor.u32 %v19503_v59, %v17474_v21  ;;  %10481 = vmatpush.bf16.msra.mxu2 %v13671_v25  ;;  %v17442_v62 = vld [vmem:[#allocation7 + $0x2158] sm:$0xf]  ;;  %v13319_v57 = vor.u32 %v18459_v3, %v13316_v2  ;;  %v18451_v59 = vld [vmem:[#allocation7 + $0xdc] sm:$0xf] }
 0x78a   :  { %v19495_v9 = vld [vmem:[#allocation7 + $0x2174] sm:$0xf0]  ;;  %10450 = vmatmul.bf16.vlgmr.msrb.gmra.mxu3 %v20136_v18  ;;  %v18579_v33 = vld [vmem:[#allocation7 + $0x4dc] sm:$0xf]  ;;  %v13287_v4 = vor.u32 %v18451_v59, %v13284_v43 }
 0x78b   :  { %10494 = vmatpush.bf16.msra.mxu3 %v13927_v15  ;;  %v17443_v36 = vor.u32 %v19495_v9, %v17442_v62  ;;  %10469 = vmatpush.bf16.msra.mxu1 %v13383_v24  ;;  %v17410_v38 = vld [vmem:[#allocation7 + $0x2118] sm:$0xf]  ;;  %v13831_v15 = vor.u32 %v18587_v37, %v13828_v7  ;;  %v13796_v30 = vld [vmem:[#allocation7 + $0x4f8] sm:$0xf0]  ;;  %v13543_v24 = vor.u32 %v18515_v51, %v13540_v10 }
 0x78c   :  { %v19487_v48 = vld [vmem:[#allocation7 + $0x2134] sm:$0xf0]  ;;  %v18443_v9 = vld [vmem:[#allocation7 + $0x9c] sm:$0xf]  ;;  %v13799_v45 = vor.u32 %v18579_v33, %v13796_v30 }
 0x78d   :  { %10456 = vmatpush.bf16.msra.mxu0 %v17475_v6  ;;  %10482 = vmatpush.bf16.msra.mxu2 %v13639_v39  ;;  %v17411_v13 = vor.u32 %v19487_v48, %v17410_v38  ;;  %v17378_v25 = vld [vmem:[#allocation7 + $0x20d8] sm:$0xf]  ;;  %v13252_v52 = vld [vmem:[#allocation7 + $0xb8] sm:$0xf0]  ;;  %v10219_v38 = vpop.f32.mrf.mxu1 }
 0x78e   :  { %v19479_v21 = vld [vmem:[#allocation7 + $0x20f4] sm:$0xf0]  ;;  %v18507_v26 = vld [vmem:[#allocation7 + $0x29c] sm:$0xf] }
 0x78f   :  { %10495 = vmatpush.bf16.msra.mxu3 %v13895_v47  ;;  %10470 = vmatpush.bf16.msra.mxu1 %v13351_v54  ;;  %v17379_v6 = vor.u32 %v19479_v21, %v17378_v25  ;;  %v17346_v39 = vld [vmem:[#allocation7 + $0x2098] sm:$0xf]  ;;  %v10230_v47 = vpop.f32.mrf.mxu2  ;;  %v13508_v56 = vld [vmem:[#allocation7 + $0x2b8] sm:$0xf0] }
 0x790   :  { %v19471_v62 = vld [vmem:[#allocation7 + $0x20b4] sm:$0xf0]  ;;  %v10231_v49 = vadd.f32 %v10230_v47, %v10218_v60  ;;  %v18571_v54 = vld [vmem:[#allocation7 + $0x49c] sm:$0xf]  ;;  %v13511_v2 = vor.u32 %v18507_v26, %v13508_v56 }
 0x791   :  { %10457 = vmatpush.bf16.msra.mxu0 %v17443_v36  ;;  %10483 = vmatpush.bf16.msra.mxu2 %v13607_v40  ;;  %v10206_v36 = vpop.f32.mrf.mxu0  ;;  %v13764_v40 = vld [vmem:[#allocation7 + $0x4b8] sm:$0xf0]  ;;  %v17347_v48 = vor.u32 %v19471_v62, %v17346_v39  ;;  %v17314_v34 = vld [vmem:[#allocation7 + $0x2058] sm:$0xf] }
 0x792   :  { %v20337_v3 = vadd.f32 %v10243_v17, %v10231_v49  ;;  %v19463_v63 = vld [vmem:[#allocation7 + $0x2074] sm:$0xf0]  ;;  %v18435_v53 = vld [vmem:[#allocation7 + $0x5c] sm:$0xf]  ;;  %v13767_v37 = vor.u32 %v18571_v54, %v13764_v40 }
 0x793   :  { %10496 = vmatpush.bf16.msra.mxu3 %v13863_v58  ;;  %10471 = vmatpush.bf16.msra.mxu1 %v13319_v57  ;;  %v13255_v58 = vor.u32 %v18443_v9, %v13252_v52  ;;  %v13220_v7 = vld [vmem:[#allocation7 + $0x78] sm:$0xf0]  ;;  %v17282_v25 = vld [vmem:[#allocation7 + $0x2018] sm:$0xf] }
 0x794   :  { %v18499_v8 = vld [vmem:[#allocation7 + $0x25c] sm:$0xf]  ;;  %v19455_v21 = vld [vmem:[#allocation7 + $0x2034] sm:$0xf0]  ;;  %v13223_v59 = vor.u32 %v18435_v53, %v13220_v7 }
 0x795   :  { %10458 = vmatpush.bf16.msra.mxu0 %v17411_v13  ;;  %10484 = vmatpush.bf16.msra.mxu2 %v13575_v1  ;;  %v13476_v0 = vld [vmem:[#allocation7 + $0x278] sm:$0xf0]  ;;  %v17315_v1 = vor.u32 %v19463_v63, %v17314_v34 }
 0x796   :  { %v18563_v13 = vld [vmem:[#allocation7 + $0x45c] sm:$0xf]  ;;  %v13479_v60 = vor.u32 %v18499_v8, %v13476_v0 }
 0x797   :  { %10497 = vmatpush.bf16.msra.mxu3 %v13831_v15  ;;  %10472 = vmatpush.bf16.msra.mxu1 %v13287_v4  ;;  %v13732_v57 = vld [vmem:[#allocation7 + $0x478] sm:$0xf0]  ;;  %v10232_v33 = vpop.f32.mrf.mxu2 }
 0x798   :  { %v18427_v15 = vld [vmem:[#allocation7 + $0x1c] sm:$0xf]  ;;  %v13735_v10 = vor.u32 %v18563_v13, %v13732_v57 }
 0x799   :  { %10459 = vmatpush.bf16.msra.mxu0 %v17379_v6  ;;  %10485 = vmatpush.bf16.msra.mxu2 %v13543_v24  ;;  %v13188_v43 = vld [vmem:[#allocation7 + $0x38] sm:$0xf0]  ;;  %v10245_v24 = vpop.f32.mrf.mxu3 }
 0x79a   :  { %v18491_v51 = vld [vmem:[#allocation7 + $0x21c] sm:$0xf]  ;;  %v13191_v56 = vor.u32 %v18427_v15, %v13188_v43 }
 0x79b   :  { %10498 = vmatpush.bf16.msra.mxu3 %v13799_v45  ;;  %10473 = vmatpush.bf16.msra.mxu1 %v13255_v58  ;;  %v13444_v30 = vld [vmem:[#allocation7 + $0x238] sm:$0xf0]  ;;  %v17283_v45 = vor.u32 %v19455_v21, %v17282_v25 }
 0x79c   :  { %v18555_v6 = vld [vmem:[#allocation7 + $0x41c] sm:$0xf]  ;;  %v13447_v49 = vor.u32 %v18491_v51, %v13444_v30 }
 0x79d   :  { %10460 = vmatpush.bf16.msra.mxu0 %v17347_v48  ;;  %10486 = vmatpush.bf16.msra.mxu2 %v13511_v2  ;;  %v13700_v4 = vld [vmem:[#allocation7 + $0x438] sm:$0xf0] }
 0x79e   :  { %v18675_v39 = vld [vmem:[#allocation7 + $0x7dc] sm:$0xf]  ;;  %v13703_v54 = vor.u32 %v18555_v6, %v13700_v4  ;;  %v3471_v6 = vperm.slane %v20141_v19, 6 }
 0x79f   :  { %10499 = vmatpush.bf16.msra.mxu3 %v13767_v37  ;;  %v14180_v62 = vld [vmem:[#allocation7 + $0x7f8] sm:$0xf0]  ;;  %10474 = vmatpush.bf16.msra.mxu1 %v13223_v59 }
 0x7a0   :  { %v18739_v9 = vld [vmem:[#allocation7 + $0x9dc] sm:$0xf]  ;;  %v14183_v40 = vor.u32 %v18675_v39, %v14180_v62 }
 0x7a1   :  { %10461 = vmatpush.bf16.msra.mxu0 %v17315_v1  ;;  %v14436_v47 = vld [vmem:[#allocation7 + $0x9f8] sm:$0xf0]  ;;  %10487 = vmatpush.bf16.msra.mxu2 %v13479_v60 }
 0x7a2   :  { %v18803_v52 = vld [vmem:[#allocation7 + $0xbdc] sm:$0xf]  ;;  %v14439_v38 = vor.u32 %v18739_v9, %v14436_v47 }
 0x7a3   :  { %v14692_v26 = vld [vmem:[#allocation7 + $0xbf8] sm:$0xf0]  ;;  %10500 = vmatpush.bf16.msra.mxu3 %v13735_v10  ;;  %10475 = vmatpush.bf16.msra.mxu1 %v13191_v56 }
 0x7a4   :  { %v18867_v17 = vld [vmem:[#allocation7 + $0xddc] sm:$0xf]  ;;  %v14695_v48 = vor.u32 %v18803_v52, %v14692_v26  ;;  %v10256_v52 = vpop.f32.mrf.mxu0 }
 0x7a5   :  { %v14948_v36 = vld [vmem:[#allocation7 + $0xdf8] sm:$0xf0]  ;;  %10462 = vmatpush.bf16.msra.mxu0 %v17283_v45  ;;  %10488 = vmatpush.bf16.msra.mxu2 %v13447_v49  ;;  %v10269_v49 = vpop.f32.mrf.mxu1 }
 0x7a6   :  { %v18667_v58 = vld [vmem:[#allocation7 + $0x79c] sm:$0xf]  ;;  %v14951_v63 = vor.u32 %v18867_v17, %v14948_v36  ;;  %10476 = vmatmul.bf16.vlgmr.msra.gmra.mxu1 %v20004_v50 }
 0x7a7   :  { %v14148_v2 = vld [vmem:[#allocation7 + $0x7b8] sm:$0xf0]  ;;  %10501 = vmatpush.bf16.msra.mxu3 %v13703_v54  ;;  %10520 = vmatpush.bf16.msrb.mxu1 %v14439_v38 }
 0x7a8   :  { %v18731_v34 = vld [vmem:[#allocation7 + $0x99c] sm:$0xf]  ;;  %v14151_v13 = vor.u32 %v18667_v58, %v14148_v2  ;;  %10463 = vmatmul.bf16.vlgmr.msra.gmra.mxu0 %v20146_v32  ;;  %10489 = vmatmul.bf16.vlgmr.msra.gmra.mxu2 %v20008_v55 }
 0x7a9   :  { %v14404_v53 = vld [vmem:[#allocation7 + $0x9b8] sm:$0xf0]  ;;  %10507 = vmatpush.bf16.msrb.mxu0 %v14183_v40  ;;  %10533 = vmatpush.bf16.msrb.mxu2 %v14695_v48 }
 0x7aa   :  { %v18795_v37 = vld [vmem:[#allocation7 + $0xb9c] sm:$0xf]  ;;  %v14407_v57 = vor.u32 %v18731_v34, %v14404_v53  ;;  %10502 = vmatmul.bf16.vlgmr.msra.gmra.mxu3 %v20045_v23  ;;  %v10257_v23 = vadd.f32 %v10256_v52, %v3471_v6 }
 0x7ab   :  { %v14660_v7 = vld [vmem:[#allocation7 + $0xbb8] sm:$0xf0]  ;;  %10546 = vmatpush.bf16.msrb.mxu3 %v14951_v63 }
 0x7ac   :  { %v18859_v8 = vld [vmem:[#allocation7 + $0xd9c] sm:$0xf]  ;;  %v14663_v1 = vor.u32 %v18795_v37, %v14660_v7  ;;  %10521 = vmatpush.bf16.msrb.mxu1 %v14407_v57  ;;  %v10270_v58 = vadd.f32 %v10269_v49, %v10257_v23 }
 0x7ad   :  { %v14916_v0 = vld [vmem:[#allocation7 + $0xdb8] sm:$0xf0]  ;;  %10508 = vmatpush.bf16.msrb.mxu0 %v14151_v13 }
 0x7ae   :  { %v18659_v25 = vld [vmem:[#allocation7 + $0x75c] sm:$0xf]  ;;  %v14919_v60 = vor.u32 %v18859_v8, %v14916_v0  ;;  %10534 = vmatpush.bf16.msrb.mxu2 %v14663_v1 }
 0x7af   :  { %v14116_v21 = vld [vmem:[#allocation7 + $0x778] sm:$0xf0] }
 0x7b0   :  { %v18723_v59 = vld [vmem:[#allocation7 + $0x95c] sm:$0xf]  ;;  %v14119_v30 = vor.u32 %v18659_v25, %v14116_v21  ;;  %10547 = vmatpush.bf16.msrb.mxu3 %v14919_v60 }
 0x7b1   :  { %v14372_v15 = vld [vmem:[#allocation7 + $0x978] sm:$0xf0] }
 0x7b2   :  { %v18787_v43 = vld [vmem:[#allocation7 + $0xb5c] sm:$0xf]  ;;  %v14375_v4 = vor.u32 %v18723_v59, %v14372_v15  ;;  %10509 = vmatpush.bf16.msrb.mxu0 %v14119_v30  ;;  %v10282_v59 = vpop.f32.mrf.mxu2 }
 0x7b3   :  { %v14628_v51 = vld [vmem:[#allocation7 + $0xb78] sm:$0xf0] }
 0x7b4   :  { %v18851_v10 = vld [vmem:[#allocation7 + $0xd5c] sm:$0xf]  ;;  %v14631_v24 = vor.u32 %v18787_v43, %v14628_v51  ;;  %10522 = vmatpush.bf16.msrb.mxu1 %v14375_v4  ;;  %v10283_v51 = vadd.f32 %v10282_v59, %v10270_v58  ;;  %v10271_v4 = vpop.f32.mrf.mxu1 }
 0x7b5   :  { %v14884_v33 = vld [vmem:[#allocation7 + $0xd78] sm:$0xf0] }
 0x7b6   :  { %v18651_v39 = vld [vmem:[#allocation7 + $0x71c] sm:$0xf]  ;;  %v14887_v45 = vor.u32 %v18851_v10, %v14884_v33  ;;  %10535 = vmatpush.bf16.msrb.mxu2 %v14631_v24  ;;  %v10295_v10 = vpop.f32.mrf.mxu3  ;;  %v10258_v33 = vpop.f32.mrf.mxu0 }
 0x7b7   :  { %v14084_v62 = vld [vmem:[#allocation7 + $0x738] sm:$0xf0] }
 0x7b8   :  { %v18715_v9 = vld [vmem:[#allocation7 + $0x91c] sm:$0xf]  ;;  %v14087_v17 = vor.u32 %v18651_v39, %v14084_v62  ;;  %10548 = vmatpush.bf16.msrb.mxu3 %v14887_v45  ;;  %v20344_v39 = vadd.f32 %v10295_v10, %v10283_v51 }
 0x7b9   :  { %v14340_v50 = vld [vmem:[#allocation7 + $0x938] sm:$0xf0] }
 0x7ba   :  { %v18779_v47 = vld [vmem:[#allocation7 + $0xb1c] sm:$0xf]  ;;  %v14343_v36 = vor.u32 %v18715_v9, %v14340_v50  ;;  %10510 = vmatpush.bf16.msrb.mxu0 %v14087_v17 }
 0x7bb   :  { %v14596_v55 = vld [vmem:[#allocation7 + $0xb38] sm:$0xf0] }
 0x7bc   :  { %v18843_v26 = vld [vmem:[#allocation7 + $0xd1c] sm:$0xf]  ;;  %v14599_v54 = vor.u32 %v18779_v47, %v14596_v55  ;;  %10523 = vmatpush.bf16.msrb.mxu1 %v14343_v36 }
 0x7bd   :  { %v14852_v56 = vld [vmem:[#allocation7 + $0xd38] sm:$0xf0] }
 0x7be   :  { %v18643_v40 = vld [vmem:[#allocation7 + $0x6dc] sm:$0xf]  ;;  %v14855_v2 = vor.u32 %v18843_v26, %v14852_v56  ;;  %10536 = vmatpush.bf16.msrb.mxu2 %v14599_v54 }
 0x7bf   :  { %v14052_v38 = vld [vmem:[#allocation7 + $0x6f8] sm:$0xf0] }
 0x7c0   :  { %v18707_v48 = vld [vmem:[#allocation7 + $0x8dc] sm:$0xf]  ;;  %v14055_v8 = vor.u32 %v18643_v40, %v14052_v38  ;;  %10549 = vmatpush.bf16.msrb.mxu3 %v14855_v2 }
 0x7c1   :  { %v14308_v34 = vld [vmem:[#allocation7 + $0x8f8] sm:$0xf0] }
 0x7c2   :  { %v18771_v63 = vld [vmem:[#allocation7 + $0xadc] sm:$0xf]  ;;  %v14311_v0 = vor.u32 %v18707_v48, %v14308_v34  ;;  %10511 = vmatpush.bf16.msrb.mxu0 %v14055_v8  ;;  %v10297_v8 = vpop.f32.mrf.mxu3 }
 0x7c3   :  { %v14564_v53 = vld [vmem:[#allocation7 + $0xaf8] sm:$0xf0] }
 0x7c4   :  { %v18835_v37 = vld [vmem:[#allocation7 + $0xcdc] sm:$0xf]  ;;  %v14567_v13 = vor.u32 %v18771_v63, %v14564_v53  ;;  %10524 = vmatpush.bf16.msrb.mxu1 %v14311_v0  ;;  %v10284_v63 = vpop.f32.mrf.mxu2 }
 0x7c5   :  { %v14820_v7 = vld [vmem:[#allocation7 + $0xcf8] sm:$0xf0] }
 0x7c6   :  { %v18635_v57 = vld [vmem:[#allocation7 + $0x69c] sm:$0xf]  ;;  %v14823_v21 = vor.u32 %v18835_v37, %v14820_v7  ;;  %10537 = vmatpush.bf16.msrb.mxu2 %v14567_v13 }
 0x7c7   :  { %v14020_v1 = vld [vmem:[#allocation7 + $0x6b8] sm:$0xf0] }
 0x7c8   :  { %v18699_v25 = vld [vmem:[#allocation7 + $0x89c] sm:$0xf]  ;;  %v14023_v24 = vor.u32 %v18635_v57, %v14020_v1  ;;  %10550 = vmatpush.bf16.msrb.mxu3 %v14823_v21 }
 0x7c9   :  { %v14276_v60 = vld [vmem:[#allocation7 + $0x8b8] sm:$0xf0] }
 0x7ca   :  { %v18763_v15 = vld [vmem:[#allocation7 + $0xa9c] sm:$0xf]  ;;  %v14279_v62 = vor.u32 %v18699_v25, %v14276_v60  ;;  %10512 = vmatpush.bf16.msrb.mxu0 %v14023_v24 }
 0x7cb   :  { %v14532_v43 = vld [vmem:[#allocation7 + $0xab8] sm:$0xf0] }
 0x7cc   :  { %v18827_v30 = vld [vmem:[#allocation7 + $0xc9c] sm:$0xf]  ;;  %v14535_v9 = vor.u32 %v18763_v15, %v14532_v43  ;;  %10525 = vmatpush.bf16.msrb.mxu1 %v14279_v62 }
 0x7cd   :  { %v14788_v6 = vld [vmem:[#allocation7 + $0xcb8] sm:$0xf0] }
 0x7ce   :  { %v18627_v45 = vld [vmem:[#allocation7 + $0x65c] sm:$0xf]  ;;  %v14791_v55 = vor.u32 %v18827_v30, %v14788_v6  ;;  %10538 = vmatpush.bf16.msrb.mxu2 %v14535_v9 }
 0x7cf   :  { %v13988_v50 = vld [vmem:[#allocation7 + $0x678] sm:$0xf0] }
 0x7d0   :  { %v18691_v47 = vld [vmem:[#allocation7 + $0x85c] sm:$0xf]  ;;  %v13991_v17 = vor.u32 %v18627_v45, %v13988_v50  ;;  %10551 = vmatpush.bf16.msrb.mxu3 %v14791_v55 }
 0x7d1   :  { %v14244_v52 = vld [vmem:[#allocation7 + $0x878] sm:$0xf0] }
 0x7d2   :  { %v18755_v26 = vld [vmem:[#allocation7 + $0xa5c] sm:$0xf]  ;;  %v14247_v40 = vor.u32 %v18691_v47, %v14244_v52  ;;  %10513 = vmatpush.bf16.msrb.mxu0 %v13991_v17 }
 0x7d3   :  { %v14500_v56 = vld [vmem:[#allocation7 + $0xa78] sm:$0xf0] }
 0x7d4   :  { %v18819_v23 = vld [vmem:[#allocation7 + $0xc5c] sm:$0xf]  ;;  %v14503_v38 = vor.u32 %v18755_v26, %v14500_v56  ;;  %10526 = vmatpush.bf16.msrb.mxu1 %v14247_v40 }
 0x7d5   :  { %v14756_v49 = vld [vmem:[#allocation7 + $0xc78] sm:$0xf0] }
 0x7d6   :  { %v18619_v36 = vld [vmem:[#allocation7 + $0x61c] sm:$0xf]  ;;  %v14759_v34 = vor.u32 %v18819_v23, %v14756_v49  ;;  %10539 = vmatpush.bf16.msrb.mxu2 %v14503_v38 }
 0x7d7   :  { %v13956_v54 = vld [vmem:[#allocation7 + $0x638] sm:$0xf0] }
 0x7d8   :  { %v18683_v48 = vld [vmem:[#allocation7 + $0x81c] sm:$0xf]  ;;  %v13959_v1 = vor.u32 %v18619_v36, %v13956_v54  ;;  %10552 = vmatpush.bf16.msrb.mxu3 %v14759_v34 }
 0x7d9   :  { %v14212_v58 = vld [vmem:[#allocation7 + $0x838] sm:$0xf0] }
 0x7da   :  { %v18747_v2 = vld [vmem:[#allocation7 + $0xa1c] sm:$0xf]  ;;  %v14215_v60 = vor.u32 %v18683_v48, %v14212_v58  ;;  %10514 = vmatpush.bf16.msrb.mxu0 %v13959_v1 }
 0x7db   :  { %v14468_v53 = vld [vmem:[#allocation7 + $0xa38] sm:$0xf0] }
 0x7dc   :  { %v18811_v37 = vld [vmem:[#allocation7 + $0xc1c] sm:$0xf]  ;;  %v14471_v15 = vor.u32 %v18747_v2, %v14468_v53  ;;  %10527 = vmatpush.bf16.msrb.mxu1 %v14215_v60 }
 0x7dd   :  { %v14724_v7 = vld [vmem:[#allocation7 + $0xc38] sm:$0xf0]  ;;  %10515 = vmatmul.bf16.vlgmr.msrb.gmra.mxu0 %v20047_v28 }
 0x7de   :  { %v18931_v0 = vld [vmem:[#allocation7 + $0xfdc] sm:$0xf]  ;;  %v14727_v10 = vor.u32 %v18811_v37, %v14724_v7  ;;  %10540 = vmatpush.bf16.msrb.mxu2 %v14471_v15 }
 0x7df   :  { %v15204_v13 = vld [vmem:[#allocation7 + $0xff8] sm:$0xf0]  ;;  %10528 = vmatmul.bf16.vlgmr.msrb.gmra.mxu1 %v20052_v16 }
 0x7e0   :  { %v18995_v57 = vld [vmem:[#allocation7 + $0x11dc] sm:$0xf]  ;;  %v15207_v33 = vor.u32 %v18931_v0, %v15204_v13  ;;  %10553 = vmatpush.bf16.msrb.mxu3 %v14727_v10 }
 0x7e1   :  { %v15460_v25 = vld [vmem:[#allocation7 + $0x11f8] sm:$0xf0]  ;;  %10541 = vmatmul.bf16.vlgmr.msrb.gmra.mxu2 %v20057_v29 }
 0x7e2   :  { %v19059_v21 = vld [vmem:[#allocation7 + $0x13dc] sm:$0xf]  ;;  %v15463_v30 = vor.u32 %v18995_v57, %v15460_v25  ;;  %10559 = vmatpush.bf16.msra.mxu0 %v15207_v33  ;;  %v10308_v57 = vpop.f32.mrf.mxu0  ;;  %v10321_v25 = vpop.f32.mrf.mxu1 }
 0x7e3   :  { %v15716_v59 = vld [vmem:[#allocation7 + $0x13f8] sm:$0xf0]  ;;  %10554 = vmatmul.bf16.vlgmr.msrb.gmra.mxu3 %v20091_v41  ;;  %v10309_v41 = vadd.f32 %v10308_v57, %v20344_v39 }
 0x7e4   :  { %v19123_v43 = vld [vmem:[#allocation7 + $0x15dc] sm:$0xf]  ;;  %v15719_v6 = vor.u32 %v19059_v21, %v15716_v59  ;;  %10572 = vmatpush.bf16.msra.mxu1 %v15463_v30 }
 0x7e5   :  { %v15972_v51 = vld [vmem:[#allocation7 + $0x15f8] sm:$0xf0]  ;;  %v10322_v10 = vadd.f32 %v10321_v25, %v10309_v41 }
 0x7e6   :  { %v18923_v4 = vld [vmem:[#allocation7 + $0xf9c] sm:$0xf]  ;;  %v15975_v9 = vor.u32 %v19123_v43, %v15972_v51  ;;  %10585 = vmatpush.bf16.msra.mxu2 %v15719_v6 }
 0x7e7   :  { %v15172_v24 = vld [vmem:[#allocation7 + $0xfb8] sm:$0xf0] }
 0x7e8   :  { %v18987_v62 = vld [vmem:[#allocation7 + $0x119c] sm:$0xf]  ;;  %v15175_v26 = vor.u32 %v18923_v4, %v15172_v24  ;;  %10598 = vmatpush.bf16.msra.mxu3 %v15975_v9 }
 0x7e9   :  { %v15428_v45 = vld [vmem:[#allocation7 + $0x11b8] sm:$0xf0] }
 0x7ea   :  { %v19051_v50 = vld [vmem:[#allocation7 + $0x139c] sm:$0xf]  ;;  %v15431_v56 = vor.u32 %v18987_v62, %v15428_v45  ;;  %10560 = vmatpush.bf16.msra.mxu0 %v15175_v26  ;;  %v10334_v26 = vpop.f32.mrf.mxu2 }
 0x7eb   :  { %v15684_v47 = vld [vmem:[#allocation7 + $0x13b8] sm:$0xf0] }
 0x7ec   :  { %v19115_v55 = vld [vmem:[#allocation7 + $0x159c] sm:$0xf]  ;;  %v15687_v23 = vor.u32 %v19051_v50, %v15684_v47  ;;  %10573 = vmatpush.bf16.msra.mxu1 %v15431_v56 }
 0x7ed   :  { %v15940_v52 = vld [vmem:[#allocation7 + $0x15b8] sm:$0xf0] }
 0x7ee   :  { %v18915_v49 = vld [vmem:[#allocation7 + $0xf5c] sm:$0xf]  ;;  %v15943_v54 = vor.u32 %v19115_v55, %v15940_v52  ;;  %10586 = vmatpush.bf16.msra.mxu2 %v15687_v23 }
 0x7ef   :  { %v15140_v17 = vld [vmem:[#allocation7 + $0xf78] sm:$0xf0] }
 0x7f0   :  { %v18979_v36 = vld [vmem:[#allocation7 + $0x115c] sm:$0xf]  ;;  %v15143_v34 = vor.u32 %v18915_v49, %v15140_v17  ;;  %10599 = vmatpush.bf16.msra.mxu3 %v15943_v54  ;;  %v10335_v17 = vadd.f32 %v10334_v26, %v10322_v10  ;;  %v10310_v54 = vpop.f32.mrf.mxu0 }
 0x7f1   :  { %v15396_v40 = vld [vmem:[#allocation7 + $0x1178] sm:$0xf0] }
 0x7f2   :  { %v19043_v38 = vld [vmem:[#allocation7 + $0x135c] sm:$0xf]  ;;  %v15399_v63 = vor.u32 %v18979_v36, %v15396_v40  ;;  %10561 = vmatpush.bf16.msra.mxu0 %v15143_v34  ;;  %v10347_v36 = vpop.f32.mrf.mxu3 }
 0x7f3   :  { %v15652_v48 = vld [vmem:[#allocation7 + $0x1378] sm:$0xf0] }
 0x7f4   :  { %v19107_v58 = vld [vmem:[#allocation7 + $0x155c] sm:$0xf]  ;;  %v15655_v53 = vor.u32 %v19043_v38, %v15652_v48  ;;  %10574 = vmatpush.bf16.msra.mxu1 %v15399_v63  ;;  %v10323_v48 = vpop.f32.mrf.mxu1 }
 0x7f5   :  { %v15908_v2 = vld [vmem:[#allocation7 + $0x1578] sm:$0xf0] }
 0x7f6   :  { %v18907_v37 = vld [vmem:[#allocation7 + $0xf1c] sm:$0xf]  ;;  %v15911_v8 = vor.u32 %v19107_v58, %v15908_v2  ;;  %10587 = vmatpush.bf16.msra.mxu2 %v15655_v53  ;;  %v20351_v2 = vadd.f32 %v10347_v36, %v10335_v17 }
 0x7f7   :  { %v15108_v28 = vld [vmem:[#allocation7 + $0xf38] sm:$0xf0] }
 0x7f8   :  { %v18971_v7 = vld [vmem:[#allocation7 + $0x111c] sm:$0xf]  ;;  %v15111_v21 = vor.u32 %v18907_v37, %v15108_v28  ;;  %10600 = vmatpush.bf16.msra.mxu3 %v15911_v8 }
 0x7f9   :  { %v15364_v0 = vld [vmem:[#allocation7 + $0x1138] sm:$0xf0] }
 0x7fa   :  { %v19035_v13 = vld [vmem:[#allocation7 + $0x131c] sm:$0xf]  ;;  %v15367_v59 = vor.u32 %v18971_v7, %v15364_v0  ;;  %10562 = vmatpush.bf16.msra.mxu0 %v15111_v21 }
 0x7fb   :  { %v15620_v16 = vld [vmem:[#allocation7 + $0x1338] sm:$0xf0] }
 0x7fc   :  { %v19099_v29 = vld [vmem:[#allocation7 + $0x151c] sm:$0xf]  ;;  %v15623_v60 = vor.u32 %v19035_v13, %v15620_v16  ;;  %10575 = vmatpush.bf16.msra.mxu1 %v15367_v59 }
 0x7fd   :  { %v15876_v1 = vld [vmem:[#allocation7 + $0x1538] sm:$0xf0] }
 0x7fe   :  { %v18899_v15 = vld [vmem:[#allocation7 + $0xedc] sm:$0xf]  ;;  %v15879_v33 = vor.u32 %v19099_v29, %v15876_v1  ;;  %10588 = vmatpush.bf16.msra.mxu2 %v15623_v60 }
 0x7ff   :  { %v15076_v43 = vld [vmem:[#allocation7 + $0xef8] sm:$0xf0] }
 0x800   :  { %v18963_v51 = vld [vmem:[#allocation7 + $0x10dc] sm:$0xf]  ;;  %v15079_v9 = vor.u32 %v18899_v15, %v15076_v43  ;;  %10601 = vmatpush.bf16.msra.mxu3 %v15879_v33 }
 0x801   :  { %v15332_v30 = vld [vmem:[#allocation7 + $0x10f8] sm:$0xf0] }
 0x802   :  { %v19027_v6 = vld [vmem:[#allocation7 + $0x12dc] sm:$0xf]  ;;  %v15335_v39 = vor.u32 %v18963_v51, %v15332_v30  ;;  %10563 = vmatpush.bf16.msra.mxu0 %v15079_v9  ;;  %v10336_v51 = vpop.f32.mrf.mxu2 }
 0x803   :  { %v15588_v4 = vld [vmem:[#allocation7 + $0x12f8] sm:$0xf0] }
 0x804   :  { %v19091_v24 = vld [vmem:[#allocation7 + $0x14dc] sm:$0xf]  ;;  %v15591_v45 = vor.u32 %v19027_v6, %v15588_v4  ;;  %10576 = vmatpush.bf16.msra.mxu1 %v15335_v39  ;;  %v10349_v6 = vpop.f32.mrf.mxu3 }
 0x805   :  { %v15844_v62 = vld [vmem:[#allocation7 + $0x14f8] sm:$0xf0] }
 0x806   :  { %v18891_v50 = vld [vmem:[#allocation7 + $0xe9c] sm:$0xf]  ;;  %v15847_v52 = vor.u32 %v19091_v24, %v15844_v62  ;;  %10589 = vmatpush.bf16.msra.mxu2 %v15591_v45 }
 0x807   :  { %v15044_v47 = vld [vmem:[#allocation7 + $0xeb8] sm:$0xf0] }
 0x808   :  { %v18955_v55 = vld [vmem:[#allocation7 + $0x109c] sm:$0xf]  ;;  %v15047_v58 = vor.u32 %v18891_v50, %v15044_v47  ;;  %10602 = vmatpush.bf16.msra.mxu3 %v15847_v52 }
 0x809   :  { %v15300_v56 = vld [vmem:[#allocation7 + $0x10b8] sm:$0xf0] }
 0x80a   :  { %v19019_v23 = vld [vmem:[#allocation7 + $0x129c] sm:$0xf]  ;;  %v15303_v34 = vor.u32 %v18955_v55, %v15300_v56  ;;  %10564 = vmatpush.bf16.msra.mxu0 %v15047_v58 }
 0x80b   :  { %v15556_v49 = vld [vmem:[#allocation7 + $0x12b8] sm:$0xf0] }
 0x80c   :  { %v19083_v40 = vld [vmem:[#allocation7 + $0x149c] sm:$0xf]  ;;  %v15559_v63 = vor.u32 %v19019_v23, %v15556_v49  ;;  %10577 = vmatpush.bf16.msra.mxu1 %v15303_v34 }
 0x80d   :  { %v15812_v38 = vld [vmem:[#allocation7 + $0x14b8] sm:$0xf0] }
 0x80e   :  { %v18883_v53 = vld [vmem:[#allocation7 + $0xe5c] sm:$0xf]  ;;  %v15815_v7 = vor.u32 %v19083_v40, %v15812_v38  ;;  %10590 = vmatpush.bf16.msra.mxu2 %v15559_v63 }
 0x80f   :  { %v15012_v37 = vld [vmem:[#allocation7 + $0xe78] sm:$0xf0] }
 0x810   :  { %v18947_v28 = vld [vmem:[#allocation7 + $0x105c] sm:$0xf]  ;;  %v15015_v29 = vor.u32 %v18883_v53, %v15012_v37  ;;  %10603 = vmatpush.bf16.msra.mxu3 %v15815_v7 }
 0x811   :  { %v15268_v8 = vld [vmem:[#allocation7 + $0x1078] sm:$0xf0] }
 0x812   :  { %v19011_v0 = vld [vmem:[#allocation7 + $0x125c] sm:$0xf]  ;;  %v15271_v25 = vor.u32 %v18947_v28, %v15268_v8  ;;  %10565 = vmatpush.bf16.msra.mxu0 %v15015_v29 }
 0x813   :  { %v15524_v13 = vld [vmem:[#allocation7 + $0x1278] sm:$0xf0] }
 0x814   :  { %v19075_v16 = vld [vmem:[#allocation7 + $0x145c] sm:$0xf]  ;;  %v15527_v21 = vor.u32 %v19011_v0, %v15524_v13  ;;  %10578 = vmatpush.bf16.msra.mxu1 %v15271_v25 }
 0x815   :  { %v15780_v57 = vld [vmem:[#allocation7 + $0x1478] sm:$0xf0] }
 0x816   :  { %v18875_v1 = vld [vmem:[#allocation7 + $0xe1c] sm:$0xf]  ;;  %v15783_v43 = vor.u32 %v19075_v16, %v15780_v57  ;;  %10591 = vmatpush.bf16.msra.mxu2 %v15527_v21 }
 0x817   :  { %v14980_v41 = vld [vmem:[#allocation7 + $0xe38] sm:$0xf0] }
 0x818   :  { %v18939_v59 = vld [vmem:[#allocation7 + $0x101c] sm:$0xf]  ;;  %v14983_v9 = vor.u32 %v18875_v1, %v14980_v41  ;;  %10604 = vmatpush.bf16.msra.mxu3 %v15783_v43 }
 0x819   :  { %v15236_v60 = vld [vmem:[#allocation7 + $0x1038] sm:$0xf0] }
 0x81a   :  { %v19003_v15 = vld [vmem:[#allocation7 + $0x121c] sm:$0xf]  ;;  %v15239_v47 = vor.u32 %v18939_v59, %v15236_v60  ;;  %10566 = vmatpush.bf16.msra.mxu0 %v14983_v9 }
 0x81b   :  { %v15492_v10 = vld [vmem:[#allocation7 + $0x1238] sm:$0xf0] }
 0x81c   :  { %v19067_v33 = vld [vmem:[#allocation7 + $0x141c] sm:$0xf]  ;;  %v15495_v55 = vor.u32 %v19003_v15, %v15492_v10  ;;  %10579 = vmatpush.bf16.msra.mxu1 %v15239_v47 }
 0x81d   :  { %v15748_v30 = vld [vmem:[#allocation7 + $0x1438] sm:$0xf0]  ;;  %10567 = vmatmul.bf16.vlgmr.msra.gmra.mxu0 %v20095_v42 }
 0x81e   :  { %v19187_v4 = vld [vmem:[#allocation7 + $0x17dc] sm:$0xf]  ;;  %v15751_v56 = vor.u32 %v19067_v33, %v15748_v30  ;;  %10592 = vmatpush.bf16.msra.mxu2 %v15495_v55  ;;  %v10360_v30 = vpop.f32.mrf.mxu0 }
 0x81f   :  { %v16228_v24 = vld [vmem:[#allocation7 + $0x17f8] sm:$0xf0]  ;;  %10580 = vmatmul.bf16.vlgmr.msra.gmra.mxu1 %v20105_v35 }
 0x820   :  { %v19251_v62 = vld [vmem:[#allocation7 + $0x19dc] sm:$0xf]  ;;  %v16231_v23 = vor.u32 %v19187_v4, %v16228_v24  ;;  %10605 = vmatpush.bf16.msra.mxu3 %v15751_v56  ;;  %v10373_v4 = vpop.f32.mrf.mxu1 }
 0x821   :  { %v16484_v39 = vld [vmem:[#allocation7 + $0x19f8] sm:$0xf0]  ;;  %10593 = vmatmul.bf16.vlgmr.msra.gmra.mxu2 %v20097_v44 }
 0x822   :  { %v19315_v45 = vld [vmem:[#allocation7 + $0x1bdc] sm:$0xf]  ;;  %v16487_v49 = vor.u32 %v19251_v62, %v16484_v39  ;;  %10611 = vmatpush.bf16.msrb.mxu0 %v16231_v23 }
 0x823   :  { %v16740_v50 = vld [vmem:[#allocation7 + $0x1bf8] sm:$0xf0]  ;;  %10606 = vmatmul.bf16.vlgmr.msra.gmra.mxu3 %v20124_v14  ;;  %v10361_v14 = vadd.f32 %v10360_v30, %v20351_v2 }
 0x824   :  { %v19379_v52 = vld [vmem:[#allocation7 + $0x1ddc] sm:$0xf]  ;;  %v16743_v17 = vor.u32 %v19315_v45, %v16740_v50  ;;  %10624 = vmatpush.bf16.msrb.mxu1 %v16487_v49 }
 0x825   :  { %v16996_v26 = vld [vmem:[#allocation7 + $0x1df8] sm:$0xf0]  ;;  %v10374_v47 = vadd.f32 %v10373_v4, %v10361_v14 }
 0x826   :  { %v19179_v36 = vld [vmem:[#allocation7 + $0x179c] sm:$0xf]  ;;  %v16999_v38 = vor.u32 %v19379_v52, %v16996_v26  ;;  %10637 = vmatpush.bf16.msrb.mxu2 %v16743_v17 }
 0x827   :  { %v16196_v54 = vld [vmem:[#allocation7 + $0x17b8] sm:$0xf0] }
 0x828   :  { %v19243_v40 = vld [vmem:[#allocation7 + $0x199c] sm:$0xf]  ;;  %v16199_v37 = vor.u32 %v19179_v36, %v16196_v54  ;;  %10650 = vmatpush.bf16.msrb.mxu3 %v16999_v38 }
 0x829   :  { %v16452_v48 = vld [vmem:[#allocation7 + $0x19b8] sm:$0xf0] }
 0x82a   :  { %v19307_v58 = vld [vmem:[#allocation7 + $0x1b9c] sm:$0xf]  ;;  %v16455_v28 = vor.u32 %v19243_v40, %v16452_v48  ;;  %10612 = vmatpush.bf16.msrb.mxu0 %v16199_v37 }
 0x82b   :  { %v16708_v34 = vld [vmem:[#allocation7 + $0x1bb8] sm:$0xf0] }
 0x82c   :  { %v19371_v63 = vld [vmem:[#allocation7 + $0x1d9c] sm:$0xf]  ;;  %v16711_v7 = vor.u32 %v19307_v58, %v16708_v34  ;;  %10625 = vmatpush.bf16.msrb.mxu1 %v16455_v28  ;;  %v10386_v58 = vpop.f32.mrf.mxu2  ;;  %v10399_v28 = vpop.f32.mrf.mxu3 }
 0x82d   :  { %v16964_v53 = vld [vmem:[#allocation7 + $0x1db8] sm:$0xf0]  ;;  %v10387_v37 = vadd.f32 %v10386_v58, %v10374_v47 }
 0x82e   :  { %v19171_v8 = vld [vmem:[#allocation7 + $0x175c] sm:$0xf]  ;;  %v16967_v16 = vor.u32 %v19371_v63, %v16964_v53  ;;  %10638 = vmatpush.bf16.msrb.mxu2 %v16711_v7  ;;  %v10362_v7 = vpop.f32.mrf.mxu0 }
 0x82f   :  { %v16164_v0 = vld [vmem:[#allocation7 + $0x1778] sm:$0xf0]  ;;  %v17562_v7 = vld [vmem:[#allocation8 + $0x60] sm:$0xf] }
 0x830   :  { %v19235_v13 = vld [vmem:[#allocation7 + $0x195c] sm:$0xf]  ;;  %v16167_v21 = vor.u32 %v19171_v8, %v16164_v0  ;;  %10651 = vmatpush.bf16.msrb.mxu3 %v16967_v16 }
 0x831   :  { %v16420_v57 = vld [vmem:[#allocation7 + $0x1978] sm:$0xf0] }
 0x832   :  { %v19299_v29 = vld [vmem:[#allocation7 + $0x1b5c] sm:$0xf]  ;;  %v16423_v59 = vor.u32 %v19235_v13, %v16420_v57  ;;  %10613 = vmatpush.bf16.msrb.mxu0 %v16167_v21  ;;  %v10375_v13 = vpop.f32.mrf.mxu1  ;;  %v20358_v57 = vadd.f32 %v10399_v28, %v10387_v37 }
 0x833   :  { %v16676_v1 = vld [vmem:[#allocation7 + $0x1b78] sm:$0xf0]  ;;  %v19541_v13 = vld [vmem:[#allocation8 + $0xe4] sm:$0xf0] }
 0x834   :  { %v19363_v41 = vld [vmem:[#allocation7 + $0x1d5c] sm:$0xf]  ;;  %v16679_v60 = vor.u32 %v19299_v29, %v16676_v1  ;;  %10626 = vmatpush.bf16.msrb.mxu1 %v16423_v59 }
 0x835   :  { %v16932_v25 = vld [vmem:[#allocation7 + $0x1d78] sm:$0xf0] }
 0x836   :  { %v19163_v15 = vld [vmem:[#allocation7 + $0x171c] sm:$0xf]  ;;  %v16935_v51 = vor.u32 %v19363_v41, %v16932_v25  ;;  %10639 = vmatpush.bf16.msrb.mxu2 %v16679_v60 }
 0x837   :  { %v16132_v42 = vld [vmem:[#allocation7 + $0x1738] sm:$0xf0] }
 0x838   :  { %v19227_v43 = vld [vmem:[#allocation7 + $0x191c] sm:$0xf]  ;;  %v16135_v24 = vor.u32 %v19163_v15, %v16132_v42  ;;  %10652 = vmatpush.bf16.msrb.mxu3 %v16935_v51 }
 0x839   :  { %v16388_v10 = vld [vmem:[#allocation7 + $0x1938] sm:$0xf0] }
 0x83a   :  { %v19291_v33 = vld [vmem:[#allocation7 + $0x1b1c] sm:$0xf]  ;;  %v16391_v62 = vor.u32 %v19227_v43, %v16388_v10  ;;  %10614 = vmatpush.bf16.msrb.mxu0 %v16135_v24 }
 0x83b   :  { %v16644_v35 = vld [vmem:[#allocation7 + $0x1b38] sm:$0xf0] }
 0x83c   :  { %v19355_v44 = vld [vmem:[#allocation7 + $0x1d1c] sm:$0xf]  ;;  %v16647_v9 = vor.u32 %v19291_v33, %v16644_v35  ;;  %10627 = vmatpush.bf16.msrb.mxu1 %v16391_v62  ;;  %v10388_v62 = vpop.f32.mrf.mxu2 }
 0x83d   :  { %v16900_v6 = vld [vmem:[#allocation7 + $0x1d38] sm:$0xf0]  ;;  %v19537_v62 = vld [vmem:[#allocation8 + $0xc4] sm:$0xf0] }
 0x83e   :  { %v19155_v39 = vld [vmem:[#allocation7 + $0x16dc] sm:$0xf]  ;;  %v16903_v55 = vor.u32 %v19355_v44, %v16900_v6  ;;  %10640 = vmatpush.bf16.msrb.mxu2 %v16647_v9 }
 0x83f   :  { %v16100_v45 = vld [vmem:[#allocation7 + $0x16f8] sm:$0xf0] }
 0x840   :  { %v19219_v50 = vld [vmem:[#allocation7 + $0x18dc] sm:$0xf]  ;;  %v16103_v17 = vor.u32 %v19155_v39, %v16100_v45  ;;  %10653 = vmatpush.bf16.msrb.mxu3 %v16903_v55 }
 0x841   :  { %v16356_v52 = vld [vmem:[#allocation7 + $0x18f8] sm:$0xf0] }
 0x842   :  { %v19283_v26 = vld [vmem:[#allocation7 + $0x1adc] sm:$0xf]  ;;  %v16359_v2 = vor.u32 %v19219_v50, %v16356_v52  ;;  %10615 = vmatpush.bf16.msrb.mxu0 %v16103_v17  ;;  %v10401_v50 = vpop.f32.mrf.mxu3 }
 0x843   :  { %v16612_v56 = vld [vmem:[#allocation7 + $0x1af8] sm:$0xf0] }
 0x844   :  { %v19347_v23 = vld [vmem:[#allocation7 + $0x1cdc] sm:$0xf]  ;;  %v16615_v36 = vor.u32 %v19283_v26, %v16612_v56  ;;  %10628 = vmatpush.bf16.msrb.mxu1 %v16359_v2 }
 0x845   :  { %v16868_v49 = vld [vmem:[#allocation7 + $0x1cf8] sm:$0xf0] }
 0x846   :  { %v19147_v54 = vld [vmem:[#allocation7 + $0x169c] sm:$0xf]  ;;  %v16871_v48 = vor.u32 %v19347_v23, %v16868_v49  ;;  %10641 = vmatpush.bf16.msrb.mxu2 %v16615_v36  ;;  %v17570_v23 = vld [vmem:[#allocation8 + $0x70] sm:$0xf]  ;;  %v19527_v49 = vld [vmem:[#allocation8 + $0x74] sm:$0xf0] }
 0x847   :  { %v16068_v40 = vld [vmem:[#allocation7 + $0x16b8] sm:$0xf0]  ;;  %v17634_v36 = vld [vmem:[#allocation8 + $0xf0] sm:$0xf]  ;;  %v17571_v58 = vor.u32 %v19527_v49, %v17570_v23 }
 0x848   :  { %v19211_v38 = vld [vmem:[#allocation7 + $0x189c] sm:$0xf]  ;;  %v16071_v16 = vor.u32 %v19147_v54, %v16068_v40  ;;  %10654 = vmatpush.bf16.msrb.mxu3 %v16871_v48  ;;  %v19543_v54 = vld [vmem:[#allocation8 + $0xf4] sm:$0xf0]  ;;  %v17538_v49 = vld [vmem:[#allocation8 + $0x30] sm:$0xf] }
 0x849   :  { %v16324_v34 = vld [vmem:[#allocation7 + $0x18b8] sm:$0xf0]  ;;  %v17635_v37 = vor.u32 %v19543_v54, %v17634_v36  ;;  %v19535_v36 = vld [vmem:[#allocation8 + $0xb4] sm:$0xf0] }
 0x84a   :  { %v19275_v63 = vld [vmem:[#allocation7 + $0x1a9c] sm:$0xf]  ;;  %v16327_v29 = vor.u32 %v19211_v38, %v16324_v34  ;;  %10616 = vmatpush.bf16.msrb.mxu0 %v16071_v16 }
 0x84b   :  { %v16580_v53 = vld [vmem:[#allocation7 + $0x1ab8] sm:$0xf0] }
 0x84c   :  { %v19339_v8 = vld [vmem:[#allocation7 + $0x1c9c] sm:$0xf]  ;;  %v16583_v1 = vor.u32 %v19275_v63, %v16580_v53  ;;  %10629 = vmatpush.bf16.msrb.mxu1 %v16327_v29 }
 0x84d   :  { %v16836_v0 = vld [vmem:[#allocation7 + $0x1cb8] sm:$0xf0] }
 0x84e   :  { %v19139_v41 = vld [vmem:[#allocation7 + $0x165c] sm:$0xf]  ;;  %v16839_v59 = vor.u32 %v19339_v8, %v16836_v0  ;;  %10642 = vmatpush.bf16.msrb.mxu2 %v16583_v1  ;;  %v19525_v8 = vld [vmem:[#allocation8 + $0x64] sm:$0xf0]  ;;  %v17626_v0 = vld [vmem:[#allocation8 + $0xe0] sm:$0xf] }
 0x84f   :  { %v16036_v25 = vld [vmem:[#allocation7 + $0x1678] sm:$0xf0]  ;;  %v17563_v1 = vor.u32 %v19525_v8, %v17562_v7  ;;  %v17530_v8 = vld [vmem:[#allocation8 + $0x20] sm:$0xf] }
 0x850   :  { %v19203_v21 = vld [vmem:[#allocation7 + $0x185c] sm:$0xf]  ;;  %v16039_v10 = vor.u32 %v19139_v41, %v16036_v25  ;;  %10655 = vmatpush.bf16.msrb.mxu3 %v16839_v59  ;;  %v17627_v59 = vor.u32 %v19541_v13, %v17626_v0  ;;  %v19517_v0 = vld [vmem:[#allocation8 + $0x24] sm:$0xf0]  ;;  %v20372_v13 = vpop.f32.mrf.mxu3 }
 0x851   :  { %v16292_v60 = vld [vmem:[#allocation7 + $0x1878] sm:$0xf0] }
 0x852   :  { %v19267_v15 = vld [vmem:[#allocation7 + $0x1a5c] sm:$0xf]  ;;  %v16295_v30 = vor.u32 %v19203_v21, %v16292_v60  ;;  %10617 = vmatpush.bf16.msrb.mxu0 %v16039_v10 }
 0x853   :  { %v16548_v42 = vld [vmem:[#allocation7 + $0x1a78] sm:$0xf0] }
 0x854   :  { %v19331_v43 = vld [vmem:[#allocation7 + $0x1c5c] sm:$0xf]  ;;  %v16551_v44 = vor.u32 %v19267_v15, %v16548_v42  ;;  %10630 = vmatpush.bf16.msrb.mxu1 %v16295_v30  ;;  %v17554_v15 = vld [vmem:[#allocation8 + $0x50] sm:$0xf]  ;;  %v19523_v42 = vld [vmem:[#allocation8 + $0x54] sm:$0xf0] }
 0x855   :  { %v16804_v51 = vld [vmem:[#allocation7 + $0x1c78] sm:$0xf0] }
 0x856   :  { %v19131_v33 = vld [vmem:[#allocation7 + $0x161c] sm:$0xf]  ;;  %v16807_v24 = vor.u32 %v19331_v43, %v16804_v51  ;;  %10643 = vmatpush.bf16.msrb.mxu2 %v16551_v44  ;;  %v17618_v43 = vld [vmem:[#allocation8 + $0xd0] sm:$0xf]  ;;  %v19539_v51 = vld [vmem:[#allocation8 + $0xd4] sm:$0xf0] }
 0x857   :  { %v16004_v35 = vld [vmem:[#allocation7 + $0x1638] sm:$0xf0] }
 0x858   :  { %v19195_v6 = vld [vmem:[#allocation7 + $0x181c] sm:$0xf]  ;;  %v16007_v26 = vor.u32 %v19131_v33, %v16004_v35  ;;  %10656 = vmatpush.bf16.msrb.mxu3 %v16807_v24  ;;  %v17555_v35 = vor.u32 %v19523_v42, %v17554_v15  ;;  %v20364_v24 = vpop.f32.mrf.mxu0  ;;  %v17531_v15 = vor.u32 %v19517_v0, %v17530_v8  ;;  %v17690_v0 = vld [vmem:[#allocation8 + $0x160] sm:$0xf] }
 0x859   :  { %v16260_v14 = vld [vmem:[#allocation7 + $0x1838] sm:$0xf0] }
 0x85a   :  { %v19259_v4 = vld [vmem:[#allocation7 + $0x1a1c] sm:$0xf]  ;;  %v16263_v17 = vor.u32 %v19195_v6, %v16260_v14  ;;  %10618 = vmatpush.bf16.msrb.mxu0 %v16007_v26  ;;  %v17619_v6 = vor.u32 %v19539_v51, %v17618_v43 }
 0x85b   :  { %v16516_v9 = vld [vmem:[#allocation7 + $0x1a38] sm:$0xf0] }
 0x85c   :  { %v19323_v39 = vld [vmem:[#allocation7 + $0x1c1c] sm:$0xf]  ;;  %v16519_v2 = vor.u32 %v19259_v4, %v16516_v9  ;;  %10631 = vmatpush.bf16.msrb.mxu1 %v16263_v17  ;;  %v17546_v4 = vld [vmem:[#allocation8 + $0x40] sm:$0xf]  ;;  %v10690_v9 = vadd.f32 3.0, %v20209_v20 }
 0x85d   :  { %v16772_v45 = vld [vmem:[#allocation7 + $0x1c38] sm:$0xf0]  ;;  %10619 = vmatmul.bf16.vlgmr.msrb.gmra.mxu0 %v20120_v11  ;;  %v19519_v17 = vld [vmem:[#allocation8 + $0x34] sm:$0xf0] }
 0x85e   :  { %v19443_v47 = vld [vmem:[#allocation7 + $0x1fdc] sm:$0xf]  ;;  %v16775_v40 = vor.u32 %v19323_v39, %v16772_v45  ;;  %10644 = vmatpush.bf16.msrb.mxu2 %v16519_v2  ;;  %v20368_v39 = vpop.f32.mrf.mxu1  ;;  %v17602_v2 = vld [vmem:[#allocation8 + $0xb0] sm:$0xf] }
 0x85f   :  { %v17252_v55 = vld [vmem:[#allocation7 + $0x1ff8] sm:$0xf0]  ;;  %10632 = vmatmul.bf16.vlgmr.msrb.gmra.mxu1 %v20122_v12  ;;  %v19521_v12 = vld [vmem:[#allocation8 + $0x44] sm:$0xf0] }
 0x860   :  { %v19507_v52 = vld [vmem:[#allocation7 + $0x21dc] sm:$0xf]  ;;  %v17255_v38 = vor.u32 %v19443_v47, %v17252_v55  ;;  %10657 = vmatpush.bf16.msrb.mxu3 %v16775_v40  ;;  %v17547_v47 = vor.u32 %v19521_v12, %v17546_v4  ;;  %v10698_v40 = vmax.f32 %v10690_v9, 0.0  ;;  %v17514_v9 = vld [vmem:[#allocation8] sm:$0xf] }
 0x861   :  { %v17508_v56 = vld [vmem:[#allocation7 + $0x21f8] sm:$0xf0]  ;;  %10645 = vmatmul.bf16.vlgmr.msrb.gmra.mxu2 %v20126_v27  ;;  %v17610_v27 = vld [vmem:[#allocation8 + $0xc0] sm:$0xf] }
 0x862   :  { %v17511_v48 = vor.u32 %v19507_v52, %v17508_v56  ;;  %v19435_v34 = vld [vmem:[#allocation7 + $0x1f9c] sm:$0xf]  ;;  %10663 = vmatpush.bf16.msra.mxu0 %v17255_v38  ;;  %11512 = vmatpush.bf16.msra.mxu2 %v17571_v58  ;;  %v17611_v56 = vor.u32 %v19537_v62, %v17610_v27  ;;  %v17539_v58 = vor.u32 %v19519_v17, %v17538_v49  ;;  %v17698_v49 = vld [vmem:[#allocation8 + $0x170] sm:$0xf]  ;;  %v19559_v17 = vld [vmem:[#allocation8 + $0x174] sm:$0xf0] }
 0x863   :  { %v17220_v63 = vld [vmem:[#allocation7 + $0x1fb8] sm:$0xf0]  ;;  %10658 = vmatmul.bf16.vlgmr.msrb.gmra.mxu3 %v20134_v31  ;;  %v10689_v31 = vadd.f32 3.0, %v20186_v46 }
 0x864   :  { %v19499_v53 = vld [vmem:[#allocation7 + $0x219c] sm:$0xf]  ;;  %v17223_v16 = vor.u32 %v19435_v34, %v17220_v63  ;;  %10676 = vmatpush.bf16.msra.mxu1 %v17511_v48  ;;  %11525 = vmatpush.bf16.msra.mxu3 %v17635_v37  ;;  %v17603_v37 = vor.u32 %v19535_v36, %v17602_v2  ;;  %v17762_v2 = vld [vmem:[#allocation8 + $0x1f0] sm:$0xf] }
 0x865   :  { %v17476_v28 = vld [vmem:[#allocation7 + $0x21b8] sm:$0xf0]  ;;  %v10697_v54 = vmax.f32 %v10689_v31, 0.0 }
 0x866   :  { %v17479_v29 = vor.u32 %v19499_v53, %v17476_v28  ;;  %v19427_v41 = vld [vmem:[#allocation7 + $0x1f5c] sm:$0xf]  ;;  %10664 = vmatpush.bf16.msra.mxu0 %v17223_v16  ;;  %11513 = vmatpush.bf16.msra.mxu2 %v17563_v1  ;;  %v20370_v28 = vpop.f32.mrf.mxu2  ;;  %v10414_v16 = vpop.f32.mrf.mxu0  ;;  %v19533_v1 = vld [vmem:[#allocation8 + $0xa4] sm:$0xf0] }
 0x867   :  { %v17188_v25 = vld [vmem:[#allocation7 + $0x1f78] sm:$0xf0]  ;;  %v19557_v16 = vld [vmem:[#allocation8 + $0x164] sm:$0xf0] }
 0x868   :  { %v19491_v21 = vld [vmem:[#allocation7 + $0x215c] sm:$0xf]  ;;  %v17191_v10 = vor.u32 %v19427_v41, %v17188_v25  ;;  %10677 = vmatpush.bf16.msra.mxu1 %v17479_v29  ;;  %11526 = vmatpush.bf16.msra.mxu3 %v17627_v59  ;;  %v17594_v29 = vld [vmem:[#allocation8 + $0xa0] sm:$0xf]  ;;  %v10705_v41 = vmin.f32 %v10697_v54, 6.0  ;;  %v10706_v25 = vmin.f32 %v10698_v40, 6.0 }
 0x869   :  { %v17444_v60 = vld [vmem:[#allocation7 + $0x2178] sm:$0xf0]  ;;  %v19575_v54 = vld [vmem:[#allocation8 + $0x1f4] sm:$0xf0]  ;;  %v17826_v40 = vld [vmem:[#allocation8 + $0x270] sm:$0xf] }
 0x86a   :  { %v17447_v33 = vor.u32 %v19491_v21, %v17444_v60  ;;  %v19419_v30 = vld [vmem:[#allocation7 + $0x1f1c] sm:$0xf]  ;;  %10665 = vmatpush.bf16.msra.mxu0 %v17191_v10  ;;  %11514 = vmatpush.bf16.msra.mxu2 %v17555_v35  ;;  %v10427_v21 = vpop.f32.mrf.mxu1  ;;  %v17595_v10 = vor.u32 %v19533_v1, %v17594_v29  ;;  %v17522_v35 = vld [vmem:[#allocation8 + $0x10] sm:$0xf]  ;;  %v17754_v29 = vld [vmem:[#allocation8 + $0x1e0] sm:$0xf] }
 0x86b   :  { %v17156_v11 = vld [vmem:[#allocation7 + $0x1f38] sm:$0xf0]  ;;  %v19589_v21 = vld [vmem:[#allocation8 + $0x264] sm:$0xf0] }
 0x86c   :  { %v19483_v44 = vld [vmem:[#allocation7 + $0x211c] sm:$0xf]  ;;  %v17159_v45 = vor.u32 %v19419_v30, %v17156_v11  ;;  %10678 = vmatpush.bf16.msra.mxu1 %v17447_v33  ;;  %11527 = vmatpush.bf16.msra.mxu3 %v17619_v6  ;;  %v19515_v30 = vld [vmem:[#allocation8 + $0x14] sm:$0xf0]  ;;  %v17586_v11 = vld [vmem:[#allocation8 + $0x90] sm:$0xf] }
 0x86d   :  { %v17412_v14 = vld [vmem:[#allocation7 + $0x2138] sm:$0xf0]  ;;  %v17523_v27 = vor.u32 %v19515_v30, %v17522_v35  ;;  %v17746_v35 = vld [vmem:[#allocation8 + $0x1d0] sm:$0xf] }
 0x86e   :  { %v17415_v50 = vor.u32 %v19483_v44, %v17412_v14  ;;  %v19411_v55 = vld [vmem:[#allocation7 + $0x1edc] sm:$0xf]  ;;  %10666 = vmatpush.bf16.msra.mxu0 %v17159_v45  ;;  %11515 = vmatpush.bf16.msra.mxu2 %v17547_v47  ;;  %v19531_v44 = vld [vmem:[#allocation8 + $0x94] sm:$0xf0]  ;;  %v10713_v45 = vmul.f32 %v10705_v41, %v20186_v46  ;;  %v19573_v41 = vld [vmem:[#allocation8 + $0x1e4] sm:$0xf0] }
 0x86f   :  { %v17124_v52 = vld [vmem:[#allocation7 + $0x1ef8] sm:$0xf0]  ;;  %v17587_v47 = vor.u32 %v19531_v44, %v17586_v11  ;;  %v19571_v44 = vld [vmem:[#allocation8 + $0x1d4] sm:$0xf0] }
 0x870   :  { %v19475_v26 = vld [vmem:[#allocation7 + $0x20dc] sm:$0xf]  ;;  %v17127_v38 = vor.u32 %v19411_v55, %v17124_v52  ;;  %10679 = vmatpush.bf16.msra.mxu1 %v17415_v50  ;;  %11528 = vmatpush.bf16.msra.mxu3 %v17611_v56  ;;  %v10714_v50 = vmul.f32 %v10706_v25, %v20209_v20  ;;  %v10440_v55 = vpop.f32.mrf.mxu2  ;;  %v19513_v52 = vld [vmem:[#allocation8 + $0x4] sm:$0xf0]  ;;  %v17890_v20 = vld [vmem:[#allocation8 + $0x2f0] sm:$0xf] }
 0x871   :  { %v17380_v23 = vld [vmem:[#allocation7 + $0x20f8] sm:$0xf0]  ;;  %v19529_v56 = vld [vmem:[#allocation8 + $0x84] sm:$0xf0]  ;;  %v17818_v25 = vld [vmem:[#allocation8 + $0x260] sm:$0xf] }
 0x872   :  { %v17383_v48 = vor.u32 %v19475_v26, %v17380_v23  ;;  %v19403_v34 = vld [vmem:[#allocation7 + $0x1e9c] sm:$0xf]  ;;  %10667 = vmatpush.bf16.msra.mxu0 %v17127_v38  ;;  %11516 = vmatpush.bf16.msra.mxu2 %v17539_v58  ;;  %v17578_v26 = vld [vmem:[#allocation8 + $0x80] sm:$0xf]  ;;  %v10453_v23 = vpop.f32.mrf.mxu3  ;;  %v19591_v38 = vld [vmem:[#allocation8 + $0x274] sm:$0xf0] }
 0x873   :  { %v17092_v63 = vld [vmem:[#allocation7 + $0x1eb8] sm:$0xf0]  ;;  %v19607_v58 = vld [vmem:[#allocation8 + $0x2f4] sm:$0xf0]  ;;  %v17827_v8 = vor.u32 %v19591_v38, %v17826_v40  ;;  %v19569_v55 = vld [vmem:[#allocation8 + $0x1c4] sm:$0xf0]  ;;  %v20386_v23 = vpop.f32.mrf.mxu0  ;;  %v10477_v40 = vpop.f32.mrf.mxu1 }
 0x874   :  { %v19467_v53 = vld [vmem:[#allocation7 + $0x209c] sm:$0xf]  ;;  %v17095_v59 = vor.u32 %v19403_v34, %v17092_v63  ;;  %10680 = vmatpush.bf16.msra.mxu1 %v17383_v48  ;;  %11529 = vmatpush.bf16.msra.mxu3 %v17603_v37  ;;  %v17515_v48 = vor.u32 %v19513_v52, %v17514_v9  ;;  %v10721_v34 = vmul.f32 0.16666667, %v10713_v45  ;;  %v10722_v63 = vmul.f32 0.16666667, %v10714_v50 }
 0x875   :  { %v17348_v7 = vld [vmem:[#allocation7 + $0x20b8] sm:$0xf0]  ;;  %v17699_v37 = vor.u32 %v19559_v17, %v17698_v49  ;;  %v17891_v1 = vor.u32 %v19607_v58, %v17890_v20  ;;  %v17674_v9 = vld [vmem:[#allocation8 + $0x140] sm:$0xf]  ;;  %v19553_v45 = vld [vmem:[#allocation8 + $0x144] sm:$0xf0] }
 0x876   :  { %v17351_v60 = vor.u32 %v19467_v53, %v17348_v7  ;;  %v19395_v42 = vld [vmem:[#allocation7 + $0x1e5c] sm:$0xf]  ;;  %10668 = vmatpush.bf16.msra.mxu0 %v17095_v59  ;;  %11517 = vmatpush.bf16.msra.mxu2 %v17531_v15  ;;  %v17579_v53 = vor.u32 %v19529_v56, %v17578_v26  ;;  %v17763_v7 = vor.u32 %v19575_v54, %v17762_v2  ;;  %v17882_v59 = vld [vmem:[#allocation8 + $0x2e0] sm:$0xf]  ;;  %v10692_v56 = vadd.f32 3.0, %v20275_v22 }
 0x877   :  { %v17060_v43 = vld [vmem:[#allocation7 + $0x1e78] sm:$0xf0]  ;;  %v17691_v15 = vor.u32 %v19557_v16, %v17690_v0  ;;  %v20378_v30 = vpack.c.bf16 %v10722_v63, %v10722_v63  ;;  %v17738_v50 = vld [vmem:[#allocation8 + $0x1c0] sm:$0xf]  ;;  %v19601_v17 = vld [vmem:[#allocation8 + $0x2c4] sm:$0xf0]  ;;  %v17675_v38 = vor.u32 %v19553_v45, %v17674_v9 }
 0x878   :  { %v19459_v51 = vld [vmem:[#allocation7 + $0x205c] sm:$0xf]  ;;  %v17063_v6 = vor.u32 %v19395_v42, %v17060_v43  ;;  %10681 = vmatpush.bf16.msra.mxu1 %v17351_v60  ;;  %11530 = vmatpush.bf16.msra.mxu3 %v17595_v10  ;;  %v19605_v60 = vld [vmem:[#allocation8 + $0x2e4] sm:$0xf0]  ;;  %v20376_v42 = vpack.c.bf16 %v10721_v34, %v10721_v34  ;;  %v17755_v43 = vor.u32 %v19573_v41, %v17754_v29  ;;  %v17682_v10 = vld [vmem:[#allocation8 + $0x150] sm:$0xf] }
 0x879   :  { %v17316_v33 = vld [vmem:[#allocation7 + $0x2078] sm:$0xf0]  ;;  %v17883_v11 = vor.u32 %v19605_v60, %v17882_v59  ;;  %v17802_v52 = vld [vmem:[#allocation8 + $0x240] sm:$0xf]  ;;  %v10693_v2 = vadd.f32 3.0, %v20306_v5  ;;  %v3472_v54 = vperm.slane %v20141_v19, 7 }
 0x87a   :  { %v19387_v14 = vld [vmem:[#allocation7 + $0x1e1c] sm:$0xf]  ;;  %v17319_v12 = vor.u32 %v19459_v51, %v17316_v33  ;;  %10669 = vmatpush.bf16.msra.mxu0 %v17063_v6  ;;  %11518 = vmatpush.bf16.msra.mxu2 %v17523_v27  ;;  %v17819_v51 = vor.u32 %v19589_v21, %v17818_v25  ;;  %v19555_v33 = vld [vmem:[#allocation8 + $0x154] sm:$0xf0]  ;;  %v17810_v6 = vld [vmem:[#allocation8 + $0x250] sm:$0xf] }
 0x87b   :  { %v17028_v4 = vld [vmem:[#allocation7 + $0x1e38] sm:$0xf0]  ;;  %v19603_v27 = vld [vmem:[#allocation8 + $0x2d4] sm:$0xf0]  ;;  %v17866_v49 = vld [vmem:[#allocation8 + $0x2c0] sm:$0xf]  ;;  %v10478_v25 = vadd.f32 %v10477_v40, %v3472_v54  ;;  %v10479_v9 = vpop.f32.mrf.mxu1 }
 0x87c   :  { %v19451_v62 = vld [vmem:[#allocation7 + $0x201c] sm:$0xf]  ;;  %v17031_v36 = vor.u32 %v19387_v14, %v17028_v4  ;;  %10682 = vmatpush.bf16.msra.mxu1 %v17319_v12  ;;  %11531 = vmatpush.bf16.msra.mxu3 %v17587_v47  ;;  %v19587_v14 = vld [vmem:[#allocation8 + $0x254] sm:$0xf0]  ;;  %v10691_v4 = vadd.f32 3.0, %v20244_v61  ;;  %v17867_v63 = vor.u32 %v19601_v17, %v17866_v49  ;;  %v10700_v29 = vmax.f32 %v10692_v56, 0.0 }
 0x87d   :  { %v17284_v31 = vld [vmem:[#allocation7 + $0x2038] sm:$0xf0]  ;;  %v17874_v12 = vld [vmem:[#allocation8 + $0x2d0] sm:$0xf]  ;;  %v19551_v58 = vld [vmem:[#allocation8 + $0x134] sm:$0xf0] }
 0x87e   :  { %v17287_v46 = vor.u32 %v19451_v62, %v17284_v31  ;;  %10670 = vmatpush.bf16.msra.mxu0 %v17031_v36  ;;  %11519 = vmatpush.bf16.msra.mxu2 %v17515_v48  ;;  %v17683_v62 = vor.u32 %v19555_v33, %v17682_v10  ;;  %v17747_v31 = vor.u32 %v19571_v44, %v17746_v35  ;;  %v10699_v26 = vmax.f32 %v10691_v4, 0.0  ;;  %v17666_v20 = vld [vmem:[#allocation8 + $0x130] sm:$0xf]  ;;  %v19599_v16 = vld [vmem:[#allocation8 + $0x2b4] sm:$0xf0]  ;;  %v10490_v10 = vpop.f32.mrf.mxu2  ;;  %v10466_v4 = vpop.f32.mrf.mxu0 }
 0x87f   :  { %v17875_v47 = vor.u32 %v19603_v27, %v17874_v12  ;;  %v10694_v36 = vadd.f32 3.0, %v20337_v3  ;;  %v17730_v34 = vld [vmem:[#allocation8 + $0x1b0] sm:$0xf]  ;;  %v17667_v41 = vor.u32 %v19551_v58, %v17666_v20  ;;  %v17658_v60 = vld [vmem:[#allocation8 + $0x120] sm:$0xf] }
 0x880   :  { %10683 = vmatpush.bf16.msra.mxu1 %v17287_v46  ;;  %11532 = vmatpush.bf16.msra.mxu3 %v17579_v53  ;;  %v17739_v46 = vor.u32 %v19569_v55, %v17738_v50  ;;  %v19567_v53 = vld [vmem:[#allocation8 + $0x1b4] sm:$0xf0]  ;;  %v17858_v0 = vld [vmem:[#allocation8 + $0x2b0] sm:$0xf]  ;;  %v19565_v33 = vld [vmem:[#allocation8 + $0x1a4] sm:$0xf0] }
 0x881   :  { %10671 = vmatmul.bf16.vlgmr.msra.gmra.mxu0 %v20136_v18  ;;  %11520 = vmatmul.bf16.vlgmr.msra.gmra.mxu2 %v20376_v42  ;;  %v17811_v18 = vor.u32 %v19587_v14, %v17810_v6  ;;  %v10702_v19 = vmax.f32 %v10694_v36, 0.0  ;;  %v17731_v21 = vor.u32 %v19567_v53, %v17730_v34  ;;  %v17786_v35 = vld [vmem:[#allocation8 + $0x220] sm:$0xf]  ;;  %v10491_v6 = vadd.f32 %v10490_v10, %v10478_v25  ;;  %v10503_v14 = vpop.f32.mrf.mxu3  ;;  %v19597_v27 = vld [vmem:[#allocation8 + $0x2a4] sm:$0xf0] }
 0x882   :  { %11538 = vmatpush.bf16.msrb.mxu0 %v17699_v37  ;;  %11564 = vmatpush.bf16.msrb.mxu2 %v17827_v8  ;;  %v17794_v37 = vld [vmem:[#allocation8 + $0x230] sm:$0xf]  ;;  %v10707_v8 = vmin.f32 %v10699_v26, 6.0  ;;  %v17850_v12 = vld [vmem:[#allocation8 + $0x2a0] sm:$0xf] }
 0x883   :  { %10684 = vmatmul.bf16.vlgmr.msra.gmra.mxu1 %v20146_v32  ;;  %11533 = vmatmul.bf16.vlgmr.msra.gmra.mxu3 %v20378_v30  ;;  %v19585_v32 = vld [vmem:[#allocation8 + $0x244] sm:$0xf0]  ;;  %v20392_v50 = vadd.f32 %v10503_v14, %v10491_v6  ;;  %v17851_v26 = vor.u32 %v19597_v27, %v17850_v12  ;;  %v19563_v56 = vld [vmem:[#allocation8 + $0x194] sm:$0xf0]  ;;  %v17778_v49 = vld [vmem:[#allocation8 + $0x210] sm:$0xf] }
 0x884   :  { %11551 = vmatpush.bf16.msrb.mxu1 %v17763_v7  ;;  %11577 = vmatpush.bf16.msrb.mxu3 %v17891_v1  ;;  %v17803_v48 = vor.u32 %v19585_v32, %v17802_v52  ;;  %v19583_v7 = vld [vmem:[#allocation8 + $0x234] sm:$0xf0]  ;;  %v10701_v1 = vmax.f32 %v10693_v2, 0.0  ;;  %v10715_v44 = vmul.f32 %v10707_v8, %v20244_v61  ;;  %v17650_v52 = vld [vmem:[#allocation8 + $0x110] sm:$0xf]  ;;  %v10413_v8 = vadd.f32 %v20364_v24, %v20358_v57 }
 0x885   :  { %v17795_v59 = vor.u32 %v19583_v7, %v17794_v37  ;;  %v19547_v32 = vld [vmem:[#allocation8 + $0x114] sm:$0xf0]  ;;  %v17714_v61 = vld [vmem:[#allocation8 + $0x190] sm:$0xf]  ;;  %v19561_v53 = vld [vmem:[#allocation8 + $0x184] sm:$0xf0] }
 0x886   :  { %11539 = vmatpush.bf16.msrb.mxu0 %v17691_v15  ;;  %11565 = vmatpush.bf16.msrb.mxu2 %v17819_v51  ;;  %v19549_v15 = vld [vmem:[#allocation8 + $0x124] sm:$0xf0]  ;;  %v17859_v51 = vor.u32 %v19599_v16, %v17858_v0  ;;  %v19579_v17 = vld [vmem:[#allocation8 + $0x214] sm:$0xf0]  ;;  %v17842_v2 = vld [vmem:[#allocation8 + $0x290] sm:$0xf]  ;;  %v17715_v58 = vor.u32 %v19563_v56, %v17714_v61  ;;  %v10492_v0 = vpop.f32.mrf.mxu2  ;;  %v10426_v10 = vadd.f32 %v20368_v39, %v10413_v8 }
 0x887   :  { %v17659_v45 = vor.u32 %v19549_v15, %v17658_v60  ;;  %v19595_v36 = vld [vmem:[#allocation8 + $0x294] sm:$0xf0]  ;;  %v10723_v54 = vmul.f32 0.16666667, %v10715_v44  ;;  %v17779_v34 = vor.u32 %v19579_v17, %v17778_v49  ;;  %v17770_v37 = vld [vmem:[#allocation8 + $0x200] sm:$0xf] }
 0x888   :  { %11552 = vmatpush.bf16.msrb.mxu1 %v17755_v43  ;;  %11578 = vmatpush.bf16.msrb.mxu3 %v17883_v11  ;;  %v17722_v43 = vld [vmem:[#allocation8 + $0x1a0] sm:$0xf]  ;;  %v19581_v11 = vld [vmem:[#allocation8 + $0x224] sm:$0xf0]  ;;  %v19526_v25 = vld [vmem:[#allocation8 + $0x74] sm:$0xf]  ;;  %v10439_v12 = vadd.f32 %v20370_v28, %v10426_v10 }
 0x889   :  { %v17787_v55 = vor.u32 %v19581_v11, %v17786_v35  ;;  %v19577_v16 = vld [vmem:[#allocation8 + $0x204] sm:$0xf0]  ;;  %v19542_v60 = vld [vmem:[#allocation8 + $0xf4] sm:$0xf]  ;;  %v17636_v15 = vld [vmem:[#allocation8 + $0xf8] sm:$0xf0] }
 0x88a   :  { %11540 = vmatpush.bf16.msrb.mxu0 %v17683_v62  ;;  %11566 = vmatpush.bf16.msrb.mxu2 %v17811_v18  ;;  %v10708_v62 = vmin.f32 %v10700_v29, 6.0  ;;  %v10710_v18 = vmin.f32 %v10702_v19, 6.0  ;;  %v17834_v29 = vld [vmem:[#allocation8 + $0x280] sm:$0xf]  ;;  %v10505_v19 = vpop.f32.mrf.mxu3  ;;  %v17771_v24 = vor.u32 %v19577_v16, %v17770_v37  ;;  %v17639_v44 = vor.u32 %v19542_v60, %v17636_v15  ;;  %v19621_v14 = vld [vmem:[#allocation8 + $0x364] sm:$0xf0] }
 0x88b   :  { %v17946_v6 = vld [vmem:[#allocation8 + $0x360] sm:$0xf]  ;;  %v19524_v4 = vld [vmem:[#allocation8 + $0x64] sm:$0xf]  ;;  %v17564_v27 = vld [vmem:[#allocation8 + $0x68] sm:$0xf0] }
 0x88c   :  { %11553 = vmatpush.bf16.msrb.mxu1 %v17747_v31  ;;  %11579 = vmatpush.bf16.msrb.mxu3 %v17875_v47  ;;  %v10709_v31 = vmin.f32 %v10701_v1, 6.0  ;;  %v17723_v47 = vor.u32 %v19565_v33, %v17722_v43  ;;  %v10716_v40 = vmul.f32 %v10708_v62, %v20275_v22  ;;  %v10718_v7 = vmul.f32 %v10710_v18, %v20337_v3  ;;  %v19593_v1 = vld [vmem:[#allocation8 + $0x284] sm:$0xf0]  ;;  %v19540_v62 = vld [vmem:[#allocation8 + $0xe4] sm:$0xf] }
 0x88d   :  { %v17843_v22 = vor.u32 %v19595_v36, %v17842_v2  ;;  %v17835_v33 = vor.u32 %v19593_v1, %v17834_v29  ;;  %v20401_v18 = vpack.c.bf16 %v10723_v54, %v10723_v54  ;;  %v17567_v28 = vor.u32 %v19524_v4, %v17564_v27  ;;  %v19522_v61 = vld [vmem:[#allocation8 + $0x54] sm:$0xf]  ;;  %v17556_v56 = vld [vmem:[#allocation8 + $0x58] sm:$0xf0]  ;;  %v19615_v0 = vld [vmem:[#allocation8 + $0x334] sm:$0xf0] }
 0x88e   :  { %11541 = vmatpush.bf16.msrb.mxu0 %v17675_v38  ;;  %11567 = vmatpush.bf16.msrb.mxu2 %v17803_v48  ;;  %v17651_v38 = vor.u32 %v19547_v32, %v17650_v52  ;;  %v19545_v48 = vld [vmem:[#allocation8 + $0x104] sm:$0xf0]  ;;  %v10717_v20 = vmul.f32 %v10709_v31, %v20306_v5  ;;  %v17954_v5 = vld [vmem:[#allocation8 + $0x370] sm:$0xf]  ;;  %v10724_v43 = vmul.f32 0.16666667, %v10716_v40  ;;  %v17559_v54 = vor.u32 %v19522_v61, %v17556_v56 }
 0x88f   :  { %v17628_v31 = vld [vmem:[#allocation8 + $0xe8] sm:$0xf0]  ;;  %v17938_v52 = vld [vmem:[#allocation8 + $0x350] sm:$0xf]  ;;  %v19619_v32 = vld [vmem:[#allocation8 + $0x354] sm:$0xf0] }
 0x890   :  { %11554 = vmatpush.bf16.msrb.mxu1 %v17739_v46  ;;  %11580 = vmatpush.bf16.msrb.mxu3 %v17867_v63  ;;  %v17642_v46 = vld [vmem:[#allocation8 + $0x100] sm:$0xf]  ;;  %v10725_v3 = vmul.f32 0.16666667, %v10717_v20  ;;  %v20403_v9 = vpack.c.bf16 %v10724_v43, %v10724_v43  ;;  %v19538_v49 = vld [vmem:[#allocation8 + $0xd4] sm:$0xf]  ;;  %v17939_v36 = vor.u32 %v19619_v32, %v17938_v52  ;;  %v10542_v43 = vpop.f32.mrf.mxu2 }
 0x891   :  { %v17706_v63 = vld [vmem:[#allocation8 + $0x180] sm:$0xf]  ;;  %v17620_v17 = vld [vmem:[#allocation8 + $0xd8] sm:$0xf0]  ;;  %v19536_v20 = vld [vmem:[#allocation8 + $0xc4] sm:$0xf] }
 0x892   :  { %11542 = vmatpush.bf16.msrb.mxu0 %v17667_v41  ;;  %11568 = vmatpush.bf16.msrb.mxu2 %v17795_v59  ;;  %v19623_v41 = vld [vmem:[#allocation8 + $0x374] sm:$0xf0]  ;;  %v17572_v59 = vld [vmem:[#allocation8 + $0x78] sm:$0xf0]  ;;  %v17707_v57 = vor.u32 %v19561_v53, %v17706_v63  ;;  %v20405_v39 = vpack.c.bf16 %v10725_v3, %v10725_v3  ;;  %v17930_v40 = vld [vmem:[#allocation8 + $0x340] sm:$0xf]  ;;  %v10555_v10 = vpop.f32.mrf.mxu3 }
 0x893   :  { %v17955_v35 = vor.u32 %v19623_v41, %v17954_v5  ;;  %v17575_v11 = vor.u32 %v19526_v25, %v17572_v59  ;;  %v19518_v16 = vld [vmem:[#allocation8 + $0x34] sm:$0xf]  ;;  %v17540_v1 = vld [vmem:[#allocation8 + $0x38] sm:$0xf0]  ;;  %v17914_v59 = vld [vmem:[#allocation8 + $0x320] sm:$0xf] }
 0x894   :  { %11555 = vmatpush.bf16.msrb.mxu1 %v17731_v21  ;;  %11581 = vmatpush.bf16.msrb.mxu3 %v17859_v51  ;;  %v17643_v21 = vor.u32 %v19545_v48, %v17642_v46  ;;  %v10726_v51 = vmul.f32 0.16666667, %v10718_v7  ;;  %v19520_v46 = vld [vmem:[#allocation8 + $0x44] sm:$0xf]  ;;  %v17548_v48 = vld [vmem:[#allocation8 + $0x48] sm:$0xf0] }
 0x895   :  { %v17551_v7 = vor.u32 %v19520_v46, %v17548_v48  ;;  %v19534_v19 = vld [vmem:[#allocation8 + $0xb4] sm:$0xf]  ;;  %v17604_v5 = vld [vmem:[#allocation8 + $0xb8] sm:$0xf0]  ;;  %v19613_v60 = vld [vmem:[#allocation8 + $0x324] sm:$0xf0] }
 0x896   :  { %11543 = vmatpush.bf16.msrb.mxu0 %v17659_v45  ;;  %11569 = vmatpush.bf16.msrb.mxu2 %v17787_v55  ;;  %v17947_v45 = vor.u32 %v19621_v14, %v17946_v6  ;;  %v17631_v55 = vor.u32 %v19540_v62, %v17628_v31  ;;  %v19516_v15 = vld [vmem:[#allocation8 + $0x24] sm:$0xf]  ;;  %v17532_v3 = vld [vmem:[#allocation8 + $0x28] sm:$0xf0]  ;;  %v19611_v27 = vld [vmem:[#allocation8 + $0x314] sm:$0xf0] }
 0x897   :  { %v17535_v14 = vor.u32 %v19516_v15, %v17532_v3  ;;  %v19514_v62 = vld [vmem:[#allocation8 + $0x14] sm:$0xf]  ;;  %v17524_v31 = vld [vmem:[#allocation8 + $0x18] sm:$0xf0]  ;;  %v17898_v52 = vld [vmem:[#allocation8 + $0x300] sm:$0xf] }
 0x898   :  { %11556 = vmatpush.bf16.msrb.mxu1 %v17723_v47  ;;  %11582 = vmatpush.bf16.msrb.mxu3 %v17851_v26  ;;  %v20407_v47 = vpack.c.bf16 %v10726_v51, %v10726_v51  ;;  %v10452_v26 = vadd.f32 %v20372_v13, %v10439_v12  ;;  %v17623_v13 = vor.u32 %v19538_v49, %v17620_v17  ;;  %v17906_v12 = vld [vmem:[#allocation8 + $0x310] sm:$0xf]  ;;  %v19609_v56 = vld [vmem:[#allocation8 + $0x304] sm:$0xf0]  ;;  %v19512_v49 = vld [vmem:[#allocation8 + $0x4] sm:$0xf] }
 0x899   :  { %v17527_v61 = vor.u32 %v19514_v62, %v17524_v31  ;;  %v17516_v17 = vld [vmem:[#allocation8 + $0x8] sm:$0xf0]  ;;  %v17700_v46 = vld [vmem:[#allocation8 + $0x178] sm:$0xf0]  ;;  %v19590_v48 = vld [vmem:[#allocation8 + $0x274] sm:$0xf] }
 0x89a   :  { %11544 = vmatpush.bf16.msrb.mxu0 %v17651_v38  ;;  %11570 = vmatpush.bf16.msrb.mxu2 %v17779_v34  ;;  %v20415_v2 = vadd.f32 %v20386_v23, %v10452_v26  ;;  %v19617_v38 = vld [vmem:[#allocation8 + $0x344] sm:$0xf0]  ;;  %v10516_v34 = vpop.f32.mrf.mxu0  ;;  %v10529_v23 = vpop.f32.mrf.mxu1  ;;  %v17684_v3 = vld [vmem:[#allocation8 + $0x158] sm:$0xf0]  ;;  %v17676_v31 = vld [vmem:[#allocation8 + $0x148] sm:$0xf0] }
 0x89b   :  { %v10517_v53 = vadd.f32 %v10516_v34, %v20392_v50  ;;  %v17931_v37 = vor.u32 %v19617_v38, %v17930_v40  ;;  %v17607_v50 = vor.u32 %v19534_v19, %v17604_v5  ;;  %v19558_v40 = vld [vmem:[#allocation8 + $0x174] sm:$0xf]  ;;  %v10557_v38 = vpop.f32.mrf.mxu3  ;;  %v19588_v19 = vld [vmem:[#allocation8 + $0x264] sm:$0xf]  ;;  %v17820_v5 = vld [vmem:[#allocation8 + $0x268] sm:$0xf0] }
 0x89c   :  { %11557 = vmatpush.bf16.msrb.mxu1 %v17715_v58  ;;  %11583 = vmatpush.bf16.msrb.mxu3 %v17843_v22  ;;  %v17612_v58 = vld [vmem:[#allocation8 + $0xc8] sm:$0xf0]  ;;  %v10695_v63 = vadd.f32 3.0, %v20415_v2  ;;  %v17922_v22 = vld [vmem:[#allocation8 + $0x330] sm:$0xf]  ;;  %v17823_v15 = vor.u32 %v19588_v19, %v17820_v5 }
 0x89d   :  { %v17615_v8 = vor.u32 %v19536_v20, %v17612_v58  ;;  %v10530_v29 = vadd.f32 %v10529_v23, %v10517_v53  ;;  %v17923_v25 = vor.u32 %v19615_v0, %v17922_v22  ;;  %v17828_v20 = vld [vmem:[#allocation8 + $0x278] sm:$0xf0]  ;;  %v17899_v58 = vor.u32 %v19609_v56, %v17898_v52  ;;  %v19606_v34 = vld [vmem:[#allocation8 + $0x2f4] sm:$0xf]  ;;  %v19556_v0 = vld [vmem:[#allocation8 + $0x164] sm:$0xf] }
 0x89e   :  { %11545 = vmatpush.bf16.msrb.mxu0 %v17643_v21  ;;  %11571 = vmatpush.bf16.msrb.mxu2 %v17771_v24  ;;  %v10703_v41 = vmax.f32 %v10695_v63, 0.0  ;;  %v17543_v21 = vor.u32 %v19518_v16, %v17540_v1  ;;  %v17596_v24 = vld [vmem:[#allocation8 + $0xa8] sm:$0xf0]  ;;  %v17892_v63 = vld [vmem:[#allocation8 + $0x2f8] sm:$0xf0]  ;;  %v17519_v53 = vor.u32 %v19512_v49, %v17516_v17  ;;  %v17831_v22 = vor.u32 %v19590_v48, %v17828_v20 }
 0x89f   :  { %v10543_v51 = vadd.f32 %v10542_v43, %v10530_v29  ;;  %v17895_v29 = vor.u32 %v19606_v34, %v17892_v63  ;;  %v17692_v1 = vld [vmem:[#allocation8 + $0x168] sm:$0xf0]  ;;  %v19554_v43 = vld [vmem:[#allocation8 + $0x154] sm:$0xf]  ;;  %v17668_v17 = vld [vmem:[#allocation8 + $0x138] sm:$0xf0] }
 0x8a0   :  { %11558 = vmatpush.bf16.msrb.mxu1 %v17707_v57  ;;  %11584 = vmatpush.bf16.msrb.mxu3 %v17835_v33  ;;  %v19532_v57 = vld [vmem:[#allocation8 + $0xa4] sm:$0xf]  ;;  %v17868_v52 = vld [vmem:[#allocation8 + $0x2c8] sm:$0xf0]  ;;  %v19550_v49 = vld [vmem:[#allocation8 + $0x134] sm:$0xf] }
 0x8a1   :  { %11546 = vmatmul.bf16.vlgmr.msrb.gmra.mxu0 %v20401_v18  ;;  %11572 = vmatmul.bf16.vlgmr.msrb.gmra.mxu2 %v20405_v39  ;;  %v20419_v6 = vadd.f32 %v10555_v10, %v10543_v51  ;;  %v17599_v4 = vor.u32 %v19532_v57, %v17596_v24  ;;  %v19586_v57 = vld [vmem:[#allocation8 + $0x254] sm:$0xf]  ;;  %v17812_v10 = vld [vmem:[#allocation8 + $0x258] sm:$0xf0]  ;;  %v17986_v38 = vld [vmem:[#allocation8 + $0x3b0] sm:$0xf]  ;;  %v17671_v34 = vor.u32 %v19550_v49, %v17668_v17 }
 0x8a2   :  { %11590 = vmatpush.bf16.msra.mxu0 %v17955_v35  ;;  %11616 = vmatpush.bf16.msra.mxu2 %v17575_v11  ;;  %v10518_v33 = vpop.f32.mrf.mxu0  ;;  %v10711_v35 = vmin.f32 %v10703_v41, 6.0  ;;  %v10531_v11 = vpop.f32.mrf.mxu1  ;;  %v19604_v41 = vld [vmem:[#allocation8 + $0x2e4] sm:$0xf]  ;;  %v19598_v48 = vld [vmem:[#allocation8 + $0x2b4] sm:$0xf] }
 0x8a3   :  { %11559 = vmatmul.bf16.vlgmr.msrb.gmra.mxu1 %v20403_v9  ;;  %11585 = vmatmul.bf16.vlgmr.msrb.gmra.mxu3 %v20407_v47  ;;  %v18002_v33 = vld [vmem:[#allocation8 + $0x3d0] sm:$0xf]  ;;  %v19602_v11 = vld [vmem:[#allocation8 + $0x2d4] sm:$0xf]  ;;  %v17860_v20 = vld [vmem:[#allocation8 + $0x2b8] sm:$0xf0] }
 0x8a4   :  { %11629 = vmatpush.bf16.msra.mxu3 %v17639_v44  ;;  %v17915_v44 = vor.u32 %v19613_v60, %v17914_v59  ;;  %v10719_v32 = vmul.f32 %v10711_v35, %v20415_v2  ;;  %v19637_v59 = vld [vmem:[#allocation8 + $0x3e4] sm:$0xf0]  ;;  %v17695_v60 = vor.u32 %v19556_v0, %v17692_v1  ;;  %v19635_v35 = vld [vmem:[#allocation8 + $0x3d4] sm:$0xf0]  ;;  %v17852_v0 = vld [vmem:[#allocation8 + $0x2a8] sm:$0xf0] }
 0x8a5   :  { %v17978_v1 = vld [vmem:[#allocation8 + $0x3a0] sm:$0xf]  ;;  %v19629_v19 = vld [vmem:[#allocation8 + $0x3a4] sm:$0xf0]  ;;  %v19574_v17 = vld [vmem:[#allocation8 + $0x1f4] sm:$0xf] }
 0x8a6   :  { %11591 = vmatpush.bf16.msra.mxu0 %v17947_v45  ;;  %11617 = vmatpush.bf16.msra.mxu2 %v17567_v28  ;;  %v19530_v45 = vld [vmem:[#allocation8 + $0x94] sm:$0xf]  ;;  %v17588_v28 = vld [vmem:[#allocation8 + $0x98] sm:$0xf0]  ;;  %v10727_v2 = vmul.f32 0.16666667, %v10719_v32 }
 0x8a7   :  { %v17591_v26 = vor.u32 %v19530_v45, %v17588_v28  ;;  %v19584_v45 = vld [vmem:[#allocation8 + $0x244] sm:$0xf]  ;;  %v17804_v28 = vld [vmem:[#allocation8 + $0x248] sm:$0xf0] }
 0x8a8   :  { %11630 = vmatpush.bf16.msra.mxu3 %v17631_v55  ;;  %v17907_v55 = vor.u32 %v19611_v27, %v17906_v12  ;;  %v17815_v12 = vor.u32 %v19586_v57, %v17812_v10  ;;  %v19552_v27 = vld [vmem:[#allocation8 + $0x144] sm:$0xf]  ;;  %v17807_v56 = vor.u32 %v19584_v45, %v17804_v28  ;;  %v17970_v57 = vld [vmem:[#allocation8 + $0x390] sm:$0xf]  ;;  %v17844_v10 = vld [vmem:[#allocation8 + $0x298] sm:$0xf0] }
 0x8a9   :  { %v19625_v45 = vld [vmem:[#allocation8 + $0x384] sm:$0xf0] }
 0x8aa   :  { %11592 = vmatpush.bf16.msra.mxu0 %v17939_v36  ;;  %11618 = vmatpush.bf16.msra.mxu2 %v17559_v54  ;;  %v10544_v36 = vpop.f32.mrf.mxu2  ;;  %v19528_v54 = vld [vmem:[#allocation8 + $0x84] sm:$0xf]  ;;  %v20427_v32 = vpop.f32.mrf.mxu0 }
 0x8ab   :  { %v19582_v36 = vld [vmem:[#allocation8 + $0x234] sm:$0xf] }
 0x8ac   :  { %11631 = vmatpush.bf16.msra.mxu3 %v17623_v13  ;;  %v17580_v13 = vld [vmem:[#allocation8 + $0x88] sm:$0xf0] }
 0x8ad   :  { %v17583_v23 = vor.u32 %v19528_v54, %v17580_v13 }
 0x8ae   :  { %11593 = vmatpush.bf16.msra.mxu0 %v17931_v37  ;;  %11619 = vmatpush.bf16.msra.mxu2 %v17551_v7  ;;  %v18018_v37 = vld [vmem:[#allocation8 + $0x3f0] sm:$0xf]  ;;  %v19639_v7 = vld [vmem:[#allocation8 + $0x3f4] sm:$0xf0] }
 0x8af   :  { %v18019_v16 = vor.u32 %v19639_v7, %v18018_v37  ;;  %v19580_v37 = vld [vmem:[#allocation8 + $0x224] sm:$0xf]  ;;  %v17788_v7 = vld [vmem:[#allocation8 + $0x228] sm:$0xf0] }
 0x8b0   :  { %11632 = vmatpush.bf16.msra.mxu3 %v17615_v8  ;;  %v17703_v8 = vor.u32 %v19558_v40, %v17700_v46  ;;  %v17796_v40 = vld [vmem:[#allocation8 + $0x238] sm:$0xf0]  ;;  %v19631_v46 = vld [vmem:[#allocation8 + $0x3b4] sm:$0xf0] }
 0x8b1   :  { %11603 = vmatpush.bf16.msra.mxu1 %v18019_v16  ;;  %v17799_v63 = vor.u32 %v19582_v36, %v17796_v40  ;;  %v20433_v16 = vpop.f32.mrf.mxu3  ;;  %v17764_v36 = vld [vmem:[#allocation8 + $0x1f8] sm:$0xf0]  ;;  %v19620_v40 = vld [vmem:[#allocation8 + $0x364] sm:$0xf] }
 0x8b2   :  { %11594 = vmatpush.bf16.msra.mxu0 %v17923_v25  ;;  %11620 = vmatpush.bf16.msra.mxu2 %v17543_v21  ;;  %v17884_v25 = vld [vmem:[#allocation8 + $0x2e8] sm:$0xf0]  ;;  %v20422_v21 = vpack.c.bf16 %v10727_v2, %v10727_v2  ;;  %v19548_v2 = vld [vmem:[#allocation8 + $0x124] sm:$0xf] }
 0x8b3   :  { %v17887_v51 = vor.u32 %v19604_v41, %v17884_v25  ;;  %v17791_v25 = vor.u32 %v19580_v37, %v17788_v7  ;;  %v19616_v7 = vld [vmem:[#allocation8 + $0x344] sm:$0xf] }
 0x8b4   :  { %11633 = vmatpush.bf16.msra.mxu3 %v17607_v50  ;;  %v18010_v50 = vld [vmem:[#allocation8 + $0x3e0] sm:$0xf] }
 0x8b5   :  { %v18011_v24 = vor.u32 %v19637_v59, %v18010_v50  ;;  %v19546_v50 = vld [vmem:[#allocation8 + $0x114] sm:$0xf]  ;;  %v17652_v59 = vld [vmem:[#allocation8 + $0x118] sm:$0xf0] }
 0x8b6   :  { %11595 = vmatpush.bf16.msra.mxu0 %v17915_v44  ;;  %11621 = vmatpush.bf16.msra.mxu2 %v17535_v14  ;;  %v17876_v44 = vld [vmem:[#allocation8 + $0x2d8] sm:$0xf0]  ;;  %v18003_v14 = vor.u32 %v19635_v35, %v18002_v33  ;;  %v19544_v33 = vld [vmem:[#allocation8 + $0x104] sm:$0xf] }
 0x8b7   :  { %11604 = vmatpush.bf16.msra.mxu1 %v18011_v24  ;;  %v17879_v62 = vor.u32 %v19602_v11, %v17876_v44  ;;  %v19627_v24 = vld [vmem:[#allocation8 + $0x394] sm:$0xf0]  ;;  %v17655_v11 = vor.u32 %v19546_v50, %v17652_v59  ;;  %v19566_v50 = vld [vmem:[#allocation8 + $0x1b4] sm:$0xf]  ;;  %v17732_v59 = vld [vmem:[#allocation8 + $0x1b8] sm:$0xf0] }
 0x8b8   :  { %11634 = vmatpush.bf16.msra.mxu3 %v17599_v4  ;;  %v17687_v4 = vor.u32 %v19554_v43, %v17684_v3  ;;  %v17780_v3 = vld [vmem:[#allocation8 + $0x218] sm:$0xf0]  ;;  %v17971_v35 = vor.u32 %v19627_v24, %v17970_v57  ;;  %v19564_v24 = vld [vmem:[#allocation8 + $0x1a4] sm:$0xf] }
 0x8ba   :  { %11596 = vmatpush.bf16.msra.mxu0 %v17907_v55  ;;  %11622 = vmatpush.bf16.msra.mxu2 %v17527_v61  ;;  %v19600_v55 = vld [vmem:[#allocation8 + $0x2c4] sm:$0xf]  ;;  %v20429_v61 = vpop.f32.mrf.mxu1 }
 0x8bb   :  { %11605 = vmatpush.bf16.msra.mxu1 %v18003_v14  ;;  %v17871_v13 = vor.u32 %v19600_v55, %v17868_v52  ;;  %v17644_v14 = vld [vmem:[#allocation8 + $0x108] sm:$0xf0]  ;;  %v19622_v52 = vld [vmem:[#allocation8 + $0x374] sm:$0xf] }
 0x8bc   :  { %11635 = vmatpush.bf16.msra.mxu3 %v17591_v26  ;;  %v17679_v26 = vor.u32 %v19552_v27, %v17676_v31  ;;  %v17962_v31 = vld [vmem:[#allocation8 + $0x380] sm:$0xf]  ;;  %v17836_v55 = vld [vmem:[#allocation8 + $0x288] sm:$0xf0] }
 0x8be   :  { %11597 = vmatpush.bf16.msra.mxu0 %v17899_v58  ;;  %11623 = vmatpush.bf16.msra.mxu2 %v17519_v53  ;;  %v17987_v58 = vor.u32 %v19631_v46, %v17986_v38  ;;  %v17863_v53 = vor.u32 %v19598_v48, %v17860_v20  ;;  %v17948_v38 = vld [vmem:[#allocation8 + $0x368] sm:$0xf0]  ;;  %v17767_v46 = vor.u32 %v19574_v17, %v17764_v36  ;;  %v19572_v48 = vld [vmem:[#allocation8 + $0x1e4] sm:$0xf] }
 0x8bf   :  { %v17756_v20 = vld [vmem:[#allocation8 + $0x1e8] sm:$0xf0] }
 0x8c0   :  { %11636 = vmatpush.bf16.msra.mxu3 %v17583_v23  ;;  %v17660_v23 = vld [vmem:[#allocation8 + $0x128] sm:$0xf0] }
 0x8c1   :  { %11598 = vmatmul.bf16.vlgmr.msra.gmra.mxu0 %v20422_v21  ;;  %11624 = vmatmul.bf16.vlgmr.msra.gmra.mxu2 %v20376_v42  ;;  %v17994_v42 = vld [vmem:[#allocation8 + $0x3c0] sm:$0xf]  ;;  %v17663_v41 = vor.u32 %v19548_v2, %v17660_v23  ;;  %v17759_v2 = vor.u32 %v19572_v48, %v17756_v20  ;;  %v17748_v23 = vld [vmem:[#allocation8 + $0x1d8] sm:$0xf0] }
 0x8c2   :  { %11642 = vmatpush.bf16.msrb.mxu0 %v17703_v8  ;;  %11668 = vmatpush.bf16.msrb.mxu2 %v17831_v22  ;;  %v20431_v8 = vpop.f32.mrf.mxu2  ;;  %v19596_v22 = vld [vmem:[#allocation8 + $0x2a4] sm:$0xf]  ;;  %v10583_v5 = vpop.f32.mrf.mxu1 }
 0x8c3   :  { %11637 = vmatmul.bf16.vlgmr.msra.gmra.mxu3 %v20378_v30  ;;  %v19633_v30 = vld [vmem:[#allocation8 + $0x3c4] sm:$0xf0]  ;;  %v17855_v43 = vor.u32 %v19596_v22, %v17852_v0  ;;  %v17932_v22 = vld [vmem:[#allocation8 + $0x348] sm:$0xf0] }
 0x8c4   :  { %11681 = vmatpush.bf16.msrb.mxu3 %v17895_v29  ;;  %v17995_v54 = vor.u32 %v19633_v30, %v17994_v42  ;;  %v10570_v29 = vpop.f32.mrf.mxu0  ;;  %v17956_v42 = vld [vmem:[#allocation8 + $0x378] sm:$0xf0]  ;;  %v10609_v30 = vpop.f32.mrf.mxu3  ;;  %v17935_v5 = vor.u32 %v19616_v7, %v17932_v22  ;;  %v19638_v7 = vld [vmem:[#allocation8 + $0x3f4] sm:$0xf] }
 0x8c5   :  { %v19568_v29 = vld [vmem:[#allocation8 + $0x1c4] sm:$0xf]  ;;  %v18020_v22 = vld [vmem:[#allocation8 + $0x3f8] sm:$0xf0] }
 0x8c6   :  { %11643 = vmatpush.bf16.msrb.mxu0 %v17695_v60  ;;  %11669 = vmatpush.bf16.msrb.mxu2 %v17823_v15  ;;  %v19578_v60 = vld [vmem:[#allocation8 + $0x214] sm:$0xf]  ;;  %v17979_v15 = vor.u32 %v19629_v19, %v17978_v1  ;;  %v17740_v1 = vld [vmem:[#allocation8 + $0x1c8] sm:$0xf0] }
 0x8c7   :  { %11606 = vmatpush.bf16.msra.mxu1 %v17995_v54  ;;  %v17783_v44 = vor.u32 %v19578_v60, %v17780_v3  ;;  %v19612_v60 = vld [vmem:[#allocation8 + $0x324] sm:$0xf]  ;;  %v10569_v3 = vadd.f32 %v20427_v32, %v20419_v6 }
 0x8c8   :  { %11682 = vmatpush.bf16.msrb.mxu3 %v17887_v51  ;;  %v19594_v51 = vld [vmem:[#allocation8 + $0x294] sm:$0xf]  ;;  %v19608_v32 = vld [vmem:[#allocation8 + $0x304] sm:$0xf] }
 0x8c9   :  { %v17847_v27 = vor.u32 %v19594_v51, %v17844_v10  ;;  %v17724_v51 = vld [vmem:[#allocation8 + $0x1a8] sm:$0xf0] }
 0x8ca   :  { %11644 = vmatpush.bf16.msrb.mxu0 %v17687_v4  ;;  %11670 = vmatpush.bf16.msrb.mxu2 %v17815_v12  ;;  %v19576_v4 = vld [vmem:[#allocation8 + $0x204] sm:$0xf]  ;;  %v17772_v12 = vld [vmem:[#allocation8 + $0x208] sm:$0xf0]  ;;  %v10596_v28 = vpop.f32.mrf.mxu2 }
 0x8cb   :  { %11607 = vmatpush.bf16.msra.mxu1 %v17987_v58  ;;  %v17775_v49 = vor.u32 %v19576_v4, %v17772_v12  ;;  %v17951_v58 = vor.u32 %v19620_v40, %v17948_v38  ;;  %v17727_v4 = vor.u32 %v19564_v24, %v17724_v51  ;;  %v10582_v12 = vadd.f32 %v20429_v61, %v10569_v3  ;;  %v20444_v38 = vld [vmem:[#allocation11 + $0x2] ss:$8 sm:$0x3]  ;;  %v17988_v3 = vld [vmem:[#allocation8 + $0x3b8] sm:$0xf0] }
 0x8cc   :  { %11683 = vmatpush.bf16.msrb.mxu3 %v17879_v62  ;;  %v19592_v62 = vld [vmem:[#allocation8 + $0x284] sm:$0xf]  ;;  %v10868_v48 = vperm.slane %v20444_v38, 0 }
 0x8cd   :  { %v17839_v54 = vor.u32 %v19592_v62, %v17836_v55  ;;  %v17716_v62 = vld [vmem:[#allocation8 + $0x198] sm:$0xf0]  ;;  %v10595_v6 = vadd.f32 %v20431_v8, %v10582_v12 }
 0x8ce   :  { %11645 = vmatpush.bf16.msrb.mxu0 %v17679_v26  ;;  %11671 = vmatpush.bf16.msrb.mxu2 %v17807_v56  ;;  %v17963_v26 = vor.u32 %v19625_v45, %v17962_v31  ;;  %v17647_v56 = vor.u32 %v19544_v33, %v17644_v14  ;;  %v17908_v14 = vld [vmem:[#allocation8 + $0x318] sm:$0xf0]  ;;  %v17900_v45 = vld [vmem:[#allocation8 + $0x308] sm:$0xf0] }
 0x8cf   :  { %11608 = vmatpush.bf16.msra.mxu1 %v17979_v15  ;;  %v17916_v15 = vld [vmem:[#allocation8 + $0x328] sm:$0xf0] }
 0x8d0   :  { %11684 = vmatpush.bf16.msrb.mxu3 %v17871_v13  ;;  %v17959_v13 = vor.u32 %v19622_v52, %v17956_v42  ;;  %v19560_v52 = vld [vmem:[#allocation8 + $0x184] sm:$0xf]  ;;  %v17708_v42 = vld [vmem:[#allocation8 + $0x188] sm:$0xf0] }
 0x8d1   :  { %v17711_v61 = vor.u32 %v19560_v52, %v17708_v42 }
 0x8d2   :  { %11646 = vmatpush.bf16.msrb.mxu0 %v17671_v34  ;;  %11672 = vmatpush.bf16.msrb.mxu2 %v17799_v63  ;;  %v19618_v34 = vld [vmem:[#allocation8 + $0x354] sm:$0xf]  ;;  %v17940_v63 = vld [vmem:[#allocation8 + $0x358] sm:$0xf0] }
 0x8d3   :  { %11609 = vmatpush.bf16.msra.mxu1 %v17971_v35  ;;  %v17943_v37 = vor.u32 %v19618_v34, %v17940_v63  ;;  %v17919_v35 = vor.u32 %v19612_v60, %v17916_v15  ;;  %v17996_v60 = vld [vmem:[#allocation8 + $0x3c8] sm:$0xf0] }
 0x8d4   :  { %11685 = vmatpush.bf16.msrb.mxu3 %v17863_v53  ;;  %v19570_v53 = vld [vmem:[#allocation8 + $0x1d4] sm:$0xf] }
 0x8d5   :  { %v17751_v0 = vor.u32 %v19570_v53, %v17748_v23 }
 0x8d6   :  { %11647 = vmatpush.bf16.msrb.mxu0 %v17663_v41  ;;  %11673 = vmatpush.bf16.msrb.mxu2 %v17791_v25  ;;  %v19614_v25 = vld [vmem:[#allocation8 + $0x334] sm:$0xf] }
 0x8d7   :  { %11610 = vmatpush.bf16.msra.mxu1 %v17963_v26  ;;  %v17903_v26 = vor.u32 %v19608_v32, %v17900_v45  ;;  %v19624_v45 = vld [vmem:[#allocation8 + $0x384] sm:$0xf] }
 0x8d8   :  { %11686 = vmatpush.bf16.msrb.mxu3 %v17855_v43  ;;  %v17735_v43 = vor.u32 %v19566_v50, %v17732_v59  ;;  %v18004_v50 = vld [vmem:[#allocation8 + $0x3d8] sm:$0xf0] }
 0x8da   :  { %11648 = vmatpush.bf16.msrb.mxu0 %v17655_v11  ;;  %11674 = vmatpush.bf16.msrb.mxu2 %v17783_v44  ;;  %v10620_v19 = vpop.f32.mrf.mxu0  ;;  %v19610_v44 = vld [vmem:[#allocation8 + $0x314] sm:$0xf] }
 0x8db   :  { %11655 = vmatpush.bf16.msrb.mxu1 %v17767_v46  ;;  %v17911_v31 = vor.u32 %v19610_v44, %v17908_v14  ;;  %v19626_v14 = vld [vmem:[#allocation8 + $0x394] sm:$0xf] }
 0x8dc   :  { %11687 = vmatpush.bf16.msrb.mxu3 %v17847_v27  ;;  %v10633_v41 = vpop.f32.mrf.mxu1  ;;  %v19562_v27 = vld [vmem:[#allocation8 + $0x194] sm:$0xf] }
 0x8dd   :  { %v17719_v28 = vor.u32 %v19562_v27, %v17716_v62 }
 0x8de   :  { %11649 = vmatpush.bf16.msrb.mxu0 %v17647_v56  ;;  %11675 = vmatpush.bf16.msrb.mxu2 %v17775_v49  ;;  %v10608_v56 = vadd.f32 %v20433_v16, %v10595_v6 }
 0x8df   :  { %11656 = vmatpush.bf16.msrb.mxu1 %v17759_v2 }
 0x8e0   :  { %11688 = vmatpush.bf16.msrb.mxu3 %v17839_v54  ;;  %v10621_v49 = vadd.f32 %v10620_v19, %v10608_v56  ;;  %v10869_v56 = vperm.slane %v20444_v38, 1  ;;  %v19644_v38 = vld [vmem:[#allocation10 + $0x20] sm:$0xff] }
 0x8e1   :  { %11650 = vmatmul.bf16.vlgmr.msrb.gmra.mxu0 %v20401_v18  ;;  %11676 = vmatmul.bf16.vlgmr.msrb.gmra.mxu2 %v20405_v39  ;;  %v17924_v18 = vld [vmem:[#allocation8 + $0x338] sm:$0xf0]  ;;  %v17743_v39 = vor.u32 %v19568_v29, %v17740_v1  ;;  %v18023_v29 = vor.u32 %v19638_v7, %v18020_v22  ;;  %v19641_v7 = vld [vmem:[#allocation10 + $0x8] sm:$0xff]  ;;  %v19640_v22 = vld [vmem:[#allocation10] sm:$0xff] }
 0x8e2   :  { %11694 = vmatpush.bf16.msra.mxu0 %v17959_v13  ;;  %v10622_v33 = vpop.f32.mrf.mxu0  ;;  %v10634_v17 = vadd.f32 %v10633_v41, %v10621_v49  ;;  %v18012_v41 = vld [vmem:[#allocation8 + $0x3e8] sm:$0xf0] }
 0x8e3   :  { %11689 = vmatmul.bf16.vlgmr.msrb.gmra.mxu3 %v20407_v47  ;;  %11657 = vmatpush.bf16.msrb.mxu1 %v17751_v0  ;;  %v17927_v47 = vor.u32 %v19614_v25, %v17924_v18  ;;  %v19628_v33 = vld [vmem:[#allocation8 + $0x3a4] sm:$0xf] }
 0x8e4   :  { %v10646_v57 = vpop.f32.mrf.mxu2  ;;  %v10635_v11 = vpop.f32.mrf.mxu1 }
 0x8e5   :  { %v10647_v8 = vadd.f32 %v10646_v57, %v10634_v17 }
 0x8e6   :  { %11695 = vmatpush.bf16.msra.mxu0 %v17951_v58  ;;  %v10659_v10 = vpop.f32.mrf.mxu3 }
 0x8e7   :  { %11658 = vmatpush.bf16.msrb.mxu1 %v17743_v39  ;;  %v10660_v36 = vadd.f32 %v10659_v10, %v10647_v8  ;;  %v19634_v39 = vld [vmem:[#allocation8 + $0x3d4] sm:$0xf] }
 0x8e8   :  { %v18007_v59 = vor.u32 %v19634_v39, %v18004_v50 }
 0x8ea   :  { %11696 = vmatpush.bf16.msra.mxu0 %v17943_v37 }
 0x8eb   :  { %11659 = vmatpush.bf16.msrb.mxu1 %v17735_v43  ;;  %v19630_v43 = vld [vmem:[#allocation8 + $0x3b4] sm:$0xf] }
 0x8ec   :  { %v10648_v55 = vpop.f32.mrf.mxu2  ;;  %v17991_v51 = vor.u32 %v19630_v43, %v17988_v3  ;;  %v19649_v43 = vld [vmem:[#allocation10 + $0x48] sm:$0xff] }
 0x8ee   :  { %11697 = vmatpush.bf16.msra.mxu0 %v17935_v5  ;;  %v10661_v30 = vpop.f32.mrf.mxu3  ;;  %v19636_v5 = vld [vmem:[#allocation8 + $0x3e4] sm:$0xf] }
 0x8ef   :  { %11660 = vmatpush.bf16.msrb.mxu1 %v17727_v4  ;;  %v18015_v18 = vor.u32 %v19636_v5, %v18012_v41  ;;  %v17972_v4 = vld [vmem:[#allocation8 + $0x398] sm:$0xf0]  ;;  %v19652_v5 = vld [vmem:[#allocation10 + $0x60] sm:$0xff] }
 0x8f0   :  { %v17975_v32 = vor.u32 %v19626_v14, %v17972_v4 }
 0x8f2   :  { %11698 = vmatpush.bf16.msra.mxu0 %v17927_v47  ;;  %v19632_v47 = vld [vmem:[#allocation8 + $0x3c4] sm:$0xf] }
 0x8f3   :  { %11661 = vmatpush.bf16.msrb.mxu1 %v17719_v28  ;;  %v17999_v15 = vor.u32 %v19632_v47, %v17996_v60  ;;  %v17964_v28 = vld [vmem:[#allocation8 + $0x388] sm:$0xf0] }
 0x8f4   :  { %v17967_v52 = vor.u32 %v19624_v45, %v17964_v28  ;;  %v19663_v28 = vld [vmem:[#allocation10 + $0xb8] sm:$0xff] }
 0x8f6   :  { %11699 = vmatpush.bf16.msra.mxu0 %v17919_v35  ;;  %v17980_v35 = vld [vmem:[#allocation8 + $0x3a8] sm:$0xf0] }
 0x8f7   :  { %11662 = vmatpush.bf16.msrb.mxu1 %v17711_v61  ;;  %v17983_v44 = vor.u32 %v19628_v33, %v17980_v35 }
 0x8fa   :  { %11700 = vmatpush.bf16.msra.mxu0 %v17911_v31 }
 0x8fe   :  { %11701 = vmatpush.bf16.msra.mxu0 %v17903_v26  ;;  %v10672_v54 = vpop.f32.mrf.mxu0 }
 0x8ff   :  { %v10673_v13 = vadd.f32 %v10672_v54, %v10660_v36 }
 0x900   :  { %v10685_v40 = vpop.f32.mrf.mxu1 }
 0x901   :  { %11702 = vmatmul.bf16.vlgmr.msra.gmra.mxu0 %v20422_v21  ;;  %v10686_v46 = vadd.f32 %v10685_v40, %v10673_v13 }
 0x902   :  { %11958 = vmatpush.bf16.msrb.mxu0 %v19663_v28 }
 0x903   :  { %v10696_v20 = vadd.f32 3.0, %v10686_v46 }
 0x904   :  { %v11521_v58 = vpop.f32.mrf.mxu2 }
 0x905   :  { %v10704_v16 = vmax.f32 %v10696_v20, 0.0  ;;  %v11522_v34 = vadd.f32 %v11521_v58, %v10868_v48  ;;  %v19647_v48 = vld [vmem:[#allocation10 + $0x38] sm:$0xff]  ;;  %v19646_v58 = vld [vmem:[#allocation10 + $0x30] sm:$0xff] }
 0x906   :  { %v11534_v63 = vpop.f32.mrf.mxu3  ;;  %v10674_v2 = vpop.f32.mrf.mxu0  ;;  %11861 = vmatpush.bf16.msra.mxu2 %v19647_v48 }
 0x907   :  { %v10712_v53 = vmin.f32 %v10704_v16, 6.0  ;;  %v11535_v37 = vadd.f32 %v11534_v63, %v11522_v34  ;;  %v19645_v63 = vld [vmem:[#allocation10 + $0x28] sm:$0xff] }
 0x908   :  { %v10687_v23 = vpop.f32.mrf.mxu1 }
 0x909   :  { %v10720_v21 = vmul.f32 %v10712_v53, %v10686_v46  ;;  %v19643_v23 = vld [vmem:[#allocation10 + $0x18] sm:$0xff] }
 0x90a   :  { %11862 = vmatpush.bf16.msra.mxu2 %v19646_v58 }
 0x90b   :  { %v10728_v0 = vmul.f32 0.16666667, %v10720_v21 }
 0x90c   :  { %v11523_v19 = vpop.f32.mrf.mxu2 }
 0x90d   :  { %v10866_v1 = vpack.c.bf16 %v10728_v0, %v10728_v0  ;;  %v19653_v19 = vld [vmem:[#allocation10 + $0x68] sm:$0xff] }
 0x90e   :  { %v11536_v25 = vpop.f32.mrf.mxu3  ;;  %11863 = vmatpush.bf16.msra.mxu2 %v19645_v63 }
 0x90f   :  { %11611 = vmatmul.bf16.vlgmr.msra.gmra.mxu1 %v10866_v1 }
 0x910   :  { %11707 = vmatpush.bf16.msra.mxu1 %v18023_v29  ;;  %v19655_v29 = vld [vmem:[#allocation10 + $0x78] sm:$0xff] }
 0x911   :  { %11874 = vmatpush.bf16.msra.mxu3 %v19655_v29 }
 0x912   :  { %11864 = vmatpush.bf16.msra.mxu2 %v19644_v38 }
 0x914   :  { %11708 = vmatpush.bf16.msra.mxu1 %v18015_v18  ;;  %v19651_v18 = vld [vmem:[#allocation10 + $0x58] sm:$0xff] }
 0x916   :  { %11865 = vmatpush.bf16.msra.mxu2 %v19643_v23 }
 0x918   :  { %11709 = vmatpush.bf16.msra.mxu1 %v18007_v59  ;;  %v19650_v59 = vld [vmem:[#allocation10 + $0x50] sm:$0xff] }
 0x91c   :  { %11710 = vmatpush.bf16.msra.mxu1 %v17999_v15 }
 0x91e   :  { %v11547_v57 = vpop.f32.mrf.mxu0 }
 0x91f   :  { %v11548_v10 = vadd.f32 %v11547_v57, %v11535_v37  ;;  %11663 = vmatmul.bf16.vlgmr.msrb.gmra.mxu1 %v20403_v9  ;;  %v19642_v37 = vld [vmem:[#allocation10 + $0x10] sm:$0xff] }
 0x920   :  { %v11560_v24 = vpop.f32.mrf.mxu1  ;;  %11711 = vmatpush.bf16.msra.mxu1 %v17991_v51  ;;  %11866 = vmatpush.bf16.msra.mxu2 %v19642_v37  ;;  %v19665_v37 = vld [vmem:[#allocation10 + $0xc8] sm:$0xff] }
 0x921   :  { %v11561_v11 = vadd.f32 %v11560_v24, %v11548_v10  ;;  %v19648_v24 = vld [vmem:[#allocation10 + $0x40] sm:$0xff] }
 0x924   :  { %v11573_v12 = vpop.f32.mrf.mxu2  ;;  %11712 = vmatpush.bf16.msra.mxu1 %v17983_v44  ;;  %11867 = vmatpush.bf16.msra.mxu2 %v19641_v7  ;;  %v11908_v7 = vld [vmem:[#allocation11 + $0x4] ss:$0 sm:$0xff] }
 0x925   :  { %v11574_v62 = vadd.f32 %v11573_v12, %v11561_v11 }
 0x926   :  { %v11586_v27 = vpop.f32.mrf.mxu3  ;;  %v11549_v31 = vpop.f32.mrf.mxu0 }
 0x927   :  { %v11587_v55 = vadd.f32 %v11586_v27, %v11574_v62 }
 0x928   :  { %v11562_v6 = vpop.f32.mrf.mxu1  ;;  %11713 = vmatpush.bf16.msra.mxu1 %v17975_v32  ;;  %11868 = vmatpush.bf16.msra.mxu2 %v19640_v22 }
 0x92c   :  { %v11575_v42 = vpop.f32.mrf.mxu2  ;;  %11714 = vmatpush.bf16.msra.mxu1 %v17967_v52  ;;  %v19661_v52 = vld [vmem:[#allocation10 + $0xa8] sm:$0xff] }
 0x92d   :  { %v19660_v42 = vld [vmem:[#allocation10 + $0xa0] sm:$0xff] }
 0x92e   :  { %v11588_v30 = vpop.f32.mrf.mxu3 }
 0x92f   :  { %11715 = vmatmul.bf16.vlgmr.msra.gmra.mxu1 %v10866_v1  ;;  %v19654_v1 = vld [vmem:[#allocation10 + $0x70] sm:$0xff] }
 0x930   :  { %11875 = vmatpush.bf16.msra.mxu3 %v19654_v1 }
 0x934   :  { %11876 = vmatpush.bf16.msra.mxu3 %v19653_v19 }
 0x938   :  { %11877 = vmatpush.bf16.msra.mxu3 %v19652_v5  ;;  %v11988_v5 = vld [vmem:[#allocation11 + $0x5] ss:$0 sm:$0xff] }
 0x93c   :  { %11878 = vmatpush.bf16.msra.mxu3 %v19651_v18 }
 0x93e   :  { %v11599_v9 = vpop.f32.mrf.mxu0 }
 0x93f   :  { %v11600_v26 = vadd.f32 %v11599_v9, %v11587_v55  ;;  %v19662_v55 = vld [vmem:[#allocation10 + $0xb0] sm:$0xff]  ;;  %v19659_v9 = vld [vmem:[#allocation10 + $0x98] sm:$0xff] }
 0x940   :  { %11879 = vmatpush.bf16.msra.mxu3 %v19650_v59  ;;  %11959 = vmatpush.bf16.msrb.mxu0 %v19662_v55 }
 0x944   :  { %v11625_v61 = vpop.f32.mrf.mxu2  ;;  %11880 = vmatpush.bf16.msra.mxu3 %v19649_v43  ;;  %11960 = vmatpush.bf16.msrb.mxu0 %v19661_v52 }
 0x945   :  { %v11626_v17 = vadd.f32 %v11625_v61, %v10869_v56  ;;  %v19657_v61 = vld [vmem:[#allocation10 + $0x88] sm:$0xff] }
 0x946   :  { %v11638_v49 = vpop.f32.mrf.mxu3  ;;  %v11601_v8 = vpop.f32.mrf.mxu0 }
 0x947   :  { %v11639_v36 = vadd.f32 %v11638_v49, %v11626_v17  ;;  %v19656_v49 = vld [vmem:[#allocation10 + $0x80] sm:$0xff]  ;;  %v19671_v17 = vld [vmem:[#allocation10 + $0xf8] sm:$0xff]  ;;  %v19670_v8 = vld [vmem:[#allocation10 + $0xf0] sm:$0xff] }
 0x948   :  { %11881 = vmatpush.bf16.msra.mxu3 %v19648_v24  ;;  %11961 = vmatpush.bf16.msrb.mxu0 %v19660_v42 }
 0x949   :  { %12038 = vmatpush.bf16.msrb.mxu1 %v19671_v17 }
 0x94c   :  { %v11627_v54 = vpop.f32.mrf.mxu2  ;;  %11962 = vmatpush.bf16.msrb.mxu0 %v19659_v9 }
 0x94d   :  { %12039 = vmatpush.bf16.msrb.mxu1 %v19670_v8  ;;  %v19668_v54 = vld [vmem:[#allocation10 + $0xe0] sm:$0xff] }
 0x94e   :  { %v11640_v13 = vpop.f32.mrf.mxu3 }
 0x94f   :  { %v11762_v13 = vld [vmem:[#allocation11 + $0x3] ss:$0 sm:$0xff] }
 0x95e   :  { %v11651_v40 = vpop.f32.mrf.mxu0 }
 0x95f   :  { %v11652_v46 = vadd.f32 %v11651_v40, %v11639_v36  ;;  %v19669_v36 = vld [vmem:[#allocation10 + $0xe8] sm:$0xff]  ;;  %v19667_v40 = vld [vmem:[#allocation10 + $0xd8] sm:$0xff] }
 0x960   :  { %12040 = vmatpush.bf16.msrb.mxu1 %v19669_v36 }
 0x964   :  { %v11677_v20 = vpop.f32.mrf.mxu2  ;;  %12041 = vmatpush.bf16.msrb.mxu1 %v19668_v54 }
 0x966   :  { %v11690_v16 = vpop.f32.mrf.mxu3  ;;  %v11653_v34 = vpop.f32.mrf.mxu0 }
 0x968   :  { %12042 = vmatpush.bf16.msrb.mxu1 %v19667_v40 }
 0x96c   :  { %v11679_v2 = vpop.f32.mrf.mxu2 }
 0x96e   :  { %v11692_v53 = vpop.f32.mrf.mxu3 }
 0x97e   :  { %v11703_v21 = vpop.f32.mrf.mxu0 }
 0x986   :  { %v11705_v0 = vpop.f32.mrf.mxu0 }
 0x98c   :  { %v11612_v41 = vpop.f32.mrf.mxu1 }
 0x98d   :  { %v11613_v25 = vadd.f32 %v11612_v41, %v11600_v26  ;;  %v19658_v26 = vld [vmem:[#allocation10 + $0x90] sm:$0xff] }
 0x98e   :  { %11963 = vmatpush.bf16.msrb.mxu0 %v19658_v26 }
 0x98f   :  { %v11720_v39 = vadd.f32 3.0, %v11613_v25 }
 0x991   :  { %v11722_v50 = vmax.f32 %v11720_v39, 0.0 }
 0x992   :  { %11964 = vmatpush.bf16.msrb.mxu0 %v19657_v61 }
 0x993   :  { %v11724_v47 = vmin.f32 %v11722_v50, 6.0 }
 0x994   :  { %v11614_v60 = vpop.f32.mrf.mxu1 }
 0x995   :  { %v11726_v15 = vmul.f32 %v11724_v47, %v11613_v25 }
 0x996   :  { %11965 = vmatpush.bf16.msrb.mxu0 %v19656_v49 }
 0x997   :  { %v11728_v3 = vmul.f32 0.16666667, %v11726_v15 }
 0x999   :  { %v11763_v57 = vpack.c.bf16 %v11728_v3, %v11728_v3 }
 0x99b   :  { %11869 = vmatmul.bf16.vlgmr.msra.gmra.mxu2 %v11763_v57 }
 0x99c   :  { %v11664_v51 = vpop.f32.mrf.mxu1 }
 0x99d   :  { %v11665_v10 = vadd.f32 %v11664_v51, %v11652_v46 }
 0x99f   :  { %v11678_v33 = vadd.f32 %v11677_v20, %v11665_v10 }
 0x9a1   :  { %v11691_v35 = vadd.f32 %v11690_v16, %v11678_v33  ;;  %v19666_v16 = vld [vmem:[#allocation10 + $0xd0] sm:$0xff] }
 0x9a2   :  { %12043 = vmatpush.bf16.msrb.mxu1 %v19666_v16 }
 0x9a3   :  { %v11704_v44 = vadd.f32 %v11703_v21, %v11691_v35  ;;  %v19664_v21 = vld [vmem:[#allocation10 + $0xc0] sm:$0xff] }
 0x9a4   :  { %v11666_v11 = vpop.f32.mrf.mxu1 }
 0x9a6   :  { %12044 = vmatpush.bf16.msrb.mxu1 %v19665_v37 }
 0x9aa   :  { %12045 = vmatpush.bf16.msrb.mxu1 %v19664_v21 }
 0x9ac   :  { %v11716_v14 = vpop.f32.mrf.mxu1 }
 0x9ad   :  { %v11717_v4 = vadd.f32 %v11716_v14, %v11704_v44 }
 0x9af   :  { %v11721_v12 = vadd.f32 3.0, %v11717_v4 }
 0x9b1   :  { %v11723_v27 = vmax.f32 %v11721_v12, 0.0 }
 0x9b3   :  { %v11725_v62 = vmin.f32 %v11723_v27, 6.0 }
 0x9b4   :  { %v11718_v31 = vpop.f32.mrf.mxu1 }
 0x9b5   :  { %v11727_v6 = vmul.f32 %v11725_v62, %v11717_v4 }
 0x9b7   :  { %v11729_v32 = vmul.f32 0.16666667, %v11727_v6 }
 0x9b9   :  { %v11764_v45 = vpack.c.bf16 %v11729_v32, %v11729_v32 }
 0x9bb   :  { %11882 = vmatmul.bf16.vlgmr.msra.gmra.mxu3 %v11764_v45 }
 0xa1e   :  { %v11870_v30 = vpop.f32.mrf.mxu2 }
 0xa1f   :  { %v11871_v46 = vadd.f32 %v11870_v30, %v11762_v13 }
 0xa26   :  { %v11872_v56 = vpop.f32.mrf.mxu2 }
 0xa3e   :  { %v11883_v48 = vpop.f32.mrf.mxu3 }
 0xa3f   :  { %v11884_v20 = vadd.f32 %v11883_v48, %v11871_v46 }
 0xa41   :  { %v11887_v58 = vadd.f32 3.0, %v11884_v20 }
 0xa43   :  { %v11888_v34 = vmax.f32 %v11887_v58, 0.0 }
 0xa45   :  { %v11889_v63 = vmin.f32 %v11888_v34, 6.0 }
 0xa46   :  { %v11885_v2 = vpop.f32.mrf.mxu3 }
 0xa47   :  { %v11890_v53 = vmul.f32 %v11889_v63, %v11884_v20 }
 0xa49   :  { %v11891_v38 = vmul.f32 0.16666667, %v11890_v53 }
 0xa4b   :  { %v11909_v23 = vpack.c.bf16 %v11891_v38, %v11891_v38 }
 0xa4d   :  { %11966 = vmatmul.bf16.vlgmr.msrb.gmra.mxu0 %v11909_v23 }
 0xaca   :  { %v11967_v22 = vpop.f32.mrf.mxu0 }
 0xacb   :  { %v11968_v0 = vadd.f32 %v11967_v22, %v11908_v7 }
 0xacd   :  { %v11971_v29 = vmax.f32 %v11968_v0, 0.0 }
 0xacf   :  { %v11989_v1 = vpack.c.bf16 %v11971_v29, %v11971_v29 }
 0xad1   :  { %12046 = vmatmul.bf16.vlgmr.msrb.gmra.mxu1 %v11989_v1 }
 0xad2   :  { %v11969_v19 = vpop.f32.mrf.mxu0 }
 0xb4e   :  { %v12047_v41 = vpop.f32.mrf.mxu1 }
 0xb4f   :  { %v12048_v25 = vadd.f32 %v12047_v41, %v11988_v5 }
 0xb51   :  { %12051 = vst [vmem:[#allocation13] sm:$0xff] %v12048_v25 }
 0xb52   :  { %12062 = dma.vmem_to_hbm [thread:$0]  %s12058_s5, 128, %s12060_s9, [#allocation4]  }
 0xb56   :  { %v12049_v18 = vpop.f32.mrf.mxu1 }
 0xb57   :  { %19864 = dma.done.wait [#allocation4], 128  }
 0xb58   :  { %19865 = vsyncadd [#allocation4], 4294967168 }
 0xb59   :  { %12067 = vsyncpa [#allocation3], 1 }
 0xb5a   :  { %12068 = vsyncpa [#allocation6], 1 }
 0xb5b   :  { %12069 = vsyncpa [#allocation9], 1 }
 0xb5c   :  { %12070 = vsyncpa [#allocation12], 1 }
 0xb5d   :  { %12071 = vsyncpa [#allocation4], 1 }

</bundles_post_ra>
